<compile_context>
chip_gen: v7x
topology: tpu7x:2x2x1
jax: 0.10.0
libtpu: 0.0.40
codegen_flags: <defaults>
</compile_context>

<pallas_src>
import functools

import jax
import jax.numpy as jnp
from jax.experimental import pallas as pl
from jax.experimental.pallas import tpu as pltpu

ACC_DTYPE = jnp.float32      # MXU accumulator / epilogue dtype
MXU_DTYPE = jnp.bfloat16     # MXU input dtype (activations + weights)


@functools.lru_cache(maxsize=1)
def _vmem_limit_bytes():
    # ~half of physical VMEM: 64 MiB on v5e/v6e (128 MiB), 32 MiB on v7x (64 MiB).
    try:
        cap = int(pltpu.get_tpu_info().vmem_capacity_bytes)
    except Exception:
        cap = 64 * 1024 * 1024
    return int(max(32 * 1024 * 1024, min(cap // 2, 96 * 1024 * 1024)))


def _compiler_params():
    return pltpu.CompilerParams(
        dimension_semantics=("parallel",),     # batch axis -> both TCs on v7x
        vmem_limit_bytes=_vmem_limit_bytes(),
    )


# -----------------------------------------------------------------------------
# Pallas kernel: direct convolution (bias + optional ReLU fused)
# -----------------------------------------------------------------------------
def _conv_kernel(x_ref, w_ref, b_ref, o_ref, *, kh, kw, stride, relu):
    """Direct conv: one (oh*ow, Cin) @ (Cin, Cout) MXU dot per tap.

    x_ref : (stride*stride, 1, Hpp, Wpp, Cin)  phase-decomposed padded input (bf16)
    w_ref : (kh*kw, Cin, Cout)                 bf16 weights
    b_ref : (1, Cout)                          f32 bias
    o_ref : (1, oh, ow, Cout)
    """
    oh, ow, cout = o_ref.shape[1], o_ref.shape[2], o_ref.shape[3]
    cin = x_ref.shape[-1]
    m = oh * ow

    bias = b_ref[...].astype(ACC_DTYPE)              # hoisted out of the tap loop
    acc = jnp.zeros((m, cout), ACC_DTYPE)
    t = 0
    for i in range(kh):
        for j in range(kw):
            ph = (i % stride) * stride + (j % stride)    # stride phase
            di, dj = i // stride, j // stride            # offset inside the phase
            slab = x_ref[ph, 0, di:di + oh, dj:dj + ow, :].reshape(m, cin)
            acc = acc + jnp.dot(slab, w_ref[t], preferred_element_type=ACC_DTYPE)
            t += 1
    acc = acc + bias
    if relu:
        acc = jnp.maximum(acc, 0.0)
    o_ref[0] = acc.reshape(oh, ow, cout).astype(o_ref.dtype)


def conv2d(x, w_taps, bias, *, kh, kw, stride=1, pad=0, relu=False,
           out_dtype=MXU_DTYPE):
    """NHWC conv at real (unpadded) channel width. w_taps: (kh*kw, Cin, Cout)."""
    n, h, w, _ = x.shape
    cout = w_taps.shape[-1]
    oh = (h + 2 * pad - kh) // stride + 1
    ow = (w + 2 * pad - kw) // stride + 1

    xp = jnp.pad(x, ((0, 0), (pad, pad), (pad, pad), (0, 0))) if pad else x
    hp, wp = xp.shape[1], xp.shape[2]
    if stride == 1:
        phases = xp[None]                                # (1, N, Hp, Wp, Cin)
    else:
        rh, rw = (-hp) % stride, (-wp) % stride          # round up to stride mult.
        if rh or rw:
            xp = jnp.pad(xp, ((0, 0), (0, rh), (0, rw), (0, 0)))
        # TODO(synk): move the pad + stride-phase split in-kernel (strided pl.ds
        #             reads of the raw NHWC input) to drop this small HBM staging.
        phases = jnp.stack(
            [xp[:, p::stride, q::stride, :]
             for p in range(stride) for q in range(stride)], axis=0)

    kernel = functools.partial(_conv_kernel, kh=kh, kw=kw, stride=stride, relu=relu)
    grid_spec = pltpu.PrefetchScalarGridSpec(
        num_scalar_prefetch=0,
        grid=(n,),
        in_specs=[
            pl.BlockSpec((phases.shape[0], 1) + phases.shape[2:],
                         lambda b: (0, b, 0, 0, 0)),
            pl.BlockSpec(w_taps.shape, lambda b: (0, 0, 0)),
            pl.BlockSpec(bias.shape, lambda b: (0, 0)),
        ],
        out_specs=pl.BlockSpec((1, oh, ow, cout), lambda b: (b, 0, 0, 0)),
    )
    return pl.pallas_call(
        kernel,
        out_shape=jax.ShapeDtypeStruct((n, oh, ow, cout), out_dtype),
        grid_spec=grid_spec,
        compiler_params=_compiler_params(),
    )(phases, w_taps, bias)


# -----------------------------------------------------------------------------
# Pallas kernel: fused FPN level
#   lateral 1x1 conv + in-kernel 2x nearest upsample/add + 3x3 smoothing
# -----------------------------------------------------------------------------
def _fpn_level_kernel(*refs, has_residual, emit_inner):
    it = iter(refs)
    f_ref = next(it)
    wl_ref = next(it)
    bl_ref = next(it)
    r_ref = next(it) if has_residual else None
    ws_ref = next(it)
    bs_ref = next(it)
    inner_ref = next(it) if emit_inner else None
    out_ref = next(it)
    pad_ref = next(it)

    oh, ow, cout = out_ref.shape[1], out_ref.shape[2], out_ref.shape[3]
    cin = f_ref.shape[3]
    m = oh * ow

    # ---- lateral 1x1 conv: single (oh*ow, Cin) @ (Cin, Cout) dot -------------
    feat2 = f_ref[0].reshape(m, cin)
    lat = jnp.dot(feat2, wl_ref[...], preferred_element_type=ACC_DTYPE)
    lat = lat + bl_ref[...].astype(ACC_DTYPE)            # bias hoisted once
    lat3 = lat.reshape(oh, ow, cout)

    # ---- fused top-down pathway: in-kernel 2x nearest upsample + add ---------
    if has_residual:
        hc, wc = r_ref.shape[1], r_ref.shape[2]
        r = r_ref[0].astype(ACC_DTYPE)                                   # (hc, wc, C)
        r = jnp.broadcast_to(r[:, :, None, :], (hc, wc, 2, cout))
        r = r.reshape(hc, 2 * wc, cout)                                  # repeat cols
        r = jnp.broadcast_to(r[:, None, :, :], (hc, 2, 2 * wc, cout))
        r = r.reshape(2 * hc, 2 * wc, cout)                              # repeat rows
        lat3 = lat3 + r

    inner_bf = lat3.astype(MXU_DTYPE)
    if emit_inner:                       # skip for the finest level (never read)
        inner_ref[0] = inner_bf

    # ---- 3x3 smoothing conv (stride 1, pad 1) from a VMEM scratch ------------
    # Zero only the 1-wide halo (interior is fully overwritten each grid step),
    # then one interior slab store.
    zrow = jnp.zeros((1, ow + 2, cout), MXU_DTYPE)
    zcol = jnp.zeros((oh + 2, 1, cout), MXU_DTYPE)
    pad_ref[0:1, :, :] = zrow
    pad_ref[oh + 1:oh + 2, :, :] = zrow
    pad_ref[:, 0:1, :] = zcol
    pad_ref[:, ow + 1:ow + 2, :] = zcol
    pad_ref[1:1 + oh, 1:1 + ow, :] = inner_bf

    bs = bs_ref[...].astype(ACC_DTYPE)                   # hoisted once
    acc = jnp.zeros((m, cout), ACC_DTYPE)
    t = 0
    for i in range(3):
        for j in range(3):
            slab = pad_ref[i:i + oh, j:j + ow, :].reshape(m, cout)
            acc = acc + jnp.dot(slab, ws_ref[t], preferred_element_type=ACC_DTYPE)
            t += 1
    acc = acc + bs
    out_ref[0] = acc.reshape(oh, ow, cout).astype(out_ref.dtype)


def fpn_level(feat, lateral, smooth, residual, *, emit_inner=True):
    """One FPN level as a single pallas_call.

    Returns (last_inner bf16 or None, result f32)."""
    n, oh, ow, cin = feat.shape
    wl, bl = lateral                     # wl: (1, Cin, Cout) packed 1x1 weights
    ws, bs = smooth                      # ws: (9, Cout, Cout)
    wl2 = wl[0]                          # (Cin, Cout)
    cout = wl2.shape[-1]
    has_res = residual is not None
    if has_res:
        assert residual.shape[1] * 2 == oh and residual.shape[2] * 2 == ow, (
            "TODO(synk): only the exact 2x top-down upsample is fused in-kernel")

    inputs = [feat, wl2, bl]
    in_specs = [
        pl.BlockSpec((1, oh, ow, cin), lambda b: (b, 0, 0, 0)),
        pl.BlockSpec(wl2.shape, lambda b: (0, 0)),
        pl.BlockSpec(bl.shape, lambda b: (0, 0)),
    ]
    if has_res:
        hc, wc = residual.shape[1], residual.shape[2]
        inputs.append(residual)
        in_specs.append(pl.BlockSpec((1, hc, wc, cout), lambda b: (b, 0, 0, 0)))
    inputs += [ws, bs]
    in_specs += [
        pl.BlockSpec(ws.shape, lambda b: (0, 0, 0)),
        pl.BlockSpec(bs.shape, lambda b: (0, 0)),
    ]

    res_shape = jax.ShapeDtypeStruct((n, oh, ow, cout), jnp.float32)
    res_spec = pl.BlockSpec((1, oh, ow, cout), lambda b: (b, 0, 0, 0))
    if emit_inner:
        out_shape = (jax.ShapeDtypeStruct((n, oh, ow, cout), MXU_DTYPE), res_shape)
        out_specs = (pl.BlockSpec((1, oh, ow, cout), lambda b: (b, 0, 0, 0)),
                     res_spec)
    else:
        out_shape = res_shape
        out_specs = res_spec

    grid_spec = pltpu.PrefetchScalarGridSpec(
        num_scalar_prefetch=0,
        grid=(n,),
        in_specs=in_specs,
        out_specs=out_specs,
        scratch_shapes=[pltpu.VMEM((oh + 2, ow + 2, cout), MXU_DTYPE)],
    )
    out = pl.pallas_call(
        functools.partial(_fpn_level_kernel, has_residual=has_res,
                          emit_inner=emit_inner),
        out_shape=out_shape,
        grid_spec=grid_spec,
        compiler_params=_compiler_params(),
    )(*inputs)
    if emit_inner:
        inner, result = out
        return inner, result
    return None, out


# -----------------------------------------------------------------------------
# Parameter construction (deterministic, synthetic — no checkpoint loading)
# -----------------------------------------------------------------------------
def _init_conv(key, kh, kw, cin, cout):
    w = jax.random.normal(key, (kh, kw, cin, cout), jnp.float32) * 0.05
    b = jnp.full((cout,), 0.01, jnp.float32)
    return w, b


def _pack_conv(w_hwio, b):
    """Cast weights to bf16 once and reshape to (taps, Cin, Cout) — no padding."""
    kh, kw, cin, cout = w_hwio.shape
    w = w_hwio.reshape(kh * kw, cin, cout).astype(MXU_DTYPE)
    bp = b.reshape(1, cout).astype(jnp.float32)
    return w, bp


def make_params(in_ch, backbone_channels, out_channel, seed=0):
    key = jax.random.PRNGKey(seed)
    keys = jax.random.split(key, 3 * len(backbone_channels))
    params = {"backbone": [], "fpn_inner": [], "fpn_layer": [],
              "out_channel": out_channel}
    cprev = in_ch
    for i, c in enumerate(backbone_channels):
        params["backbone"].append(
            _pack_conv(*_init_conv(keys[3 * i], 3, 3, cprev, c)))
        params["fpn_inner"].append(
            _pack_conv(*_init_conv(keys[3 * i + 1], 1, 1, c, out_channel)))
        params["fpn_layer"].append(
            _pack_conv(*_init_conv(keys[3 * i + 2], 3, 3, out_channel, out_channel)))
        cprev = c
    return params


# -----------------------------------------------------------------------------
# backbone_with_FPN forward
# -----------------------------------------------------------------------------
def backbone_with_fpn_forward(params, x_nchw):
    # NCHW -> NHWC, bf16 activations at real (unpadded) channel width.
    x = jnp.transpose(x_nchw, (0, 2, 3, 1)).astype(MXU_DTYPE)

    # get_intermediate_layers: run the backbone sequentially, capture each stage.
    feats = []
    h = x
    for (w_taps, bias) in params["backbone"]:
        h = conv2d(h, w_taps, bias, kh=3, kw=3, stride=2, pad=1, relu=True)
        feats.append(h)

    # FeaturePyramidNetwork top-down pathway (coarsest -> finest): one fused
    # Pallas kernel per level (lateral 1x1 + fused 2x upsample add + 3x3 smooth).
    results = [None] * len(feats)
    last_inner = None
    for idx in range(len(feats) - 1, -1, -1):
        last_inner, results[idx] = fpn_level(
            feats[idx], params["fpn_inner"][idx], params["fpn_layer"][idx],
            last_inner, emit_inner=(idx > 0))

    names = [f"feat{i + 1}" for i in range(len(feats))]
    # NHWC -> NCHW f32, matching the PyTorch module's output layout.
    return {n: jnp.transpose(r, (0, 3, 1, 2)) for n, r in zip(names, results)}


# -----------------------------------------------------------------------------
# main
# -----------------------------------------------------------------------------
if __name__ == "__main__":
    batch, in_ch, hw = 2, 4, 16
    backbone_channels = [8, 16, 32]       # input_channels fed to the FPN
    out_channel = 16

    key = jax.random.PRNGKey(0)
    x = jax.random.normal(key, (batch, in_ch, hw, hw), jnp.float32)

    params = make_params(in_ch, backbone_channels, out_channel, seed=0)
    fwd = jax.jit(lambda inp: backbone_with_fpn_forward(params, inp))

    outputs = fwd(x)
    outputs = jax.tree_util.tree_map(jax.block_until_ready, outputs)

    expected = {
        "feat1": (batch, out_channel, 8, 8),
        "feat2": (batch, out_channel, 4, 4),
        "feat3": (batch, out_channel, 2, 2),
    }
    for name, exp_shape in expected.items():
        assert outputs[name].shape == exp_shape, (name, outputs[name].shape, exp_shape)
        assert bool(jnp.all(jnp.isfinite(outputs[name])))

    print("KERNEL_OK")
</pallas_src>

<mosaic_0001>
module attributes {stable_mosaic.version = 11 : i64} {
  func.func @_conv_kernel(%arg0: i32, %arg1: memref<4x1x9x9x4xbf16, #tpu.memory_space<vmem>>, %arg2: memref<9x4x8xbf16, #tpu.memory_space<vmem>>, %arg3: memref<1x8xf32, #tpu.memory_space<vmem>>, %arg4: memref<1x8x8x8xbf16, #tpu.memory_space<vmem>>) attributes {dimension_semantics = [#tpu.dimension_semantics<parallel>], iteration_bounds = array<i64: 2>, scalar_prefetch = 0 : i64, scratch_operands = 0 : i64, tpu.core_type = #tpu.core_type<tc>, window_params = [{transform_indices = @transform_0, window_bounds = array<i64: 4, 1, 9, 9, 4>}, {pipeline_mode = #tpu.pipeline_mode<synchronous>, transform_indices = @transform_1, window_bounds = array<i64: 9, 4, 8>}, {pipeline_mode = #tpu.pipeline_mode<synchronous>, transform_indices = @transform_2, window_bounds = array<i64: 1, 8>}, {transform_indices = @transform_3, window_bounds = array<i64: 1, 8, 8, 8>}]} {
    %c0 = arith.constant 0 : index
    %c0_0 = arith.constant 0 : index
    %0 = vector.load %arg3[%c0, %c0_0] : memref<1x8xf32, #tpu.memory_space<vmem>>, vector<1x8xf32>
    %cst = arith.constant 0.000000e+00 : f32
    %1 = vector.broadcast %cst : f32 to vector<64x8xf32>
    %c0_1 = arith.constant 0 : index
    %c0_2 = arith.constant 0 : index
    %c0_3 = arith.constant 0 : index
    %c0_4 = arith.constant 0 : index
    %c0_5 = arith.constant 0 : index
    %2 = vector.load %arg1[%c0_1, %c0_2, %c0_3, %c0_4, %c0_5] : memref<4x1x9x9x4xbf16, #tpu.memory_space<vmem>>, vector<1x1x8x8x4xbf16>
    %3 = vector.shape_cast %2 : vector<1x1x8x8x4xbf16> to vector<8x8x4xbf16>
    %4 = vector.shape_cast %3 : vector<8x8x4xbf16> to vector<64x4xbf16>
    %c0_6 = arith.constant 0 : index
    %c0_7 = arith.constant 0 : index
    %c0_8 = arith.constant 0 : index
    %5 = vector.load %arg2[%c0_6, %c0_7, %c0_8] : memref<9x4x8xbf16, #tpu.memory_space<vmem>>, vector<1x4x8xbf16>
    %6 = vector.shape_cast %5 : vector<1x4x8xbf16> to vector<4x8xbf16>
    %cst_9 = arith.constant dense<0.000000e+00> : vector<64x8xf32>
    %7 = tpu.matmul %4, %6, %cst_9 {dimension_numbers = #tpu.dot_dimension_numbers<[1], [0], [0], [1], [0, 0, 1, 1], [], []>} : vector<64x4xbf16>, vector<4x8xbf16>, vector<64x8xf32> -> vector<64x8xf32>
    %8 = arith.addf %1, %7 : vector<64x8xf32>
    %c1 = arith.constant 1 : index
    %c0_10 = arith.constant 0 : index
    %c0_11 = arith.constant 0 : index
    %c0_12 = arith.constant 0 : index
    %c0_13 = arith.constant 0 : index
    %9 = vector.load %arg1[%c1, %c0_10, %c0_11, %c0_12, %c0_13] : memref<4x1x9x9x4xbf16, #tpu.memory_space<vmem>>, vector<1x1x8x8x4xbf16>
    %10 = vector.shape_cast %9 : vector<1x1x8x8x4xbf16> to vector<8x8x4xbf16>
    %11 = vector.shape_cast %10 : vector<8x8x4xbf16> to vector<64x4xbf16>
    %c1_14 = arith.constant 1 : index
    %c0_15 = arith.constant 0 : index
    %c0_16 = arith.constant 0 : index
    %12 = vector.load %arg2[%c1_14, %c0_15, %c0_16] : memref<9x4x8xbf16, #tpu.memory_space<vmem>>, vector<1x4x8xbf16>
    %13 = vector.shape_cast %12 : vector<1x4x8xbf16> to vector<4x8xbf16>
    %cst_17 = arith.constant dense<0.000000e+00> : vector<64x8xf32>
    %14 = tpu.matmul %11, %13, %cst_17 {dimension_numbers = #tpu.dot_dimension_numbers<[1], [0], [0], [1], [0, 0, 1, 1], [], []>} : vector<64x4xbf16>, vector<4x8xbf16>, vector<64x8xf32> -> vector<64x8xf32>
    %15 = arith.addf %8, %14 : vector<64x8xf32>
    %c0_18 = arith.constant 0 : index
    %c0_19 = arith.constant 0 : index
    %c0_20 = arith.constant 0 : index
    %c1_21 = arith.constant 1 : index
    %c0_22 = arith.constant 0 : index
    %16 = vector.load %arg1[%c0_18, %c0_19, %c0_20, %c1_21, %c0_22] : memref<4x1x9x9x4xbf16, #tpu.memory_space<vmem>>, vector<1x1x8x8x4xbf16>
    %17 = vector.shape_cast %16 : vector<1x1x8x8x4xbf16> to vector<8x8x4xbf16>
    %18 = vector.shape_cast %17 : vector<8x8x4xbf16> to vector<64x4xbf16>
    %c2 = arith.constant 2 : index
    %c0_23 = arith.constant 0 : index
    %c0_24 = arith.constant 0 : index
    %19 = vector.load %arg2[%c2, %c0_23, %c0_24] : memref<9x4x8xbf16, #tpu.memory_space<vmem>>, vector<1x4x8xbf16>
    %20 = vector.shape_cast %19 : vector<1x4x8xbf16> to vector<4x8xbf16>
    %cst_25 = arith.constant dense<0.000000e+00> : vector<64x8xf32>
    %21 = tpu.matmul %18, %20, %cst_25 {dimension_numbers = #tpu.dot_dimension_numbers<[1], [0], [0], [1], [0, 0, 1, 1], [], []>} : vector<64x4xbf16>, vector<4x8xbf16>, vector<64x8xf32> -> vector<64x8xf32>
    %22 = arith.addf %15, %21 : vector<64x8xf32>
    %c2_26 = arith.constant 2 : index
    %c0_27 = arith.constant 0 : index
    %c0_28 = arith.constant 0 : index
    %c0_29 = arith.constant 0 : index
    %c0_30 = arith.constant 0 : index
    %23 = vector.load %arg1[%c2_26, %c0_27, %c0_28, %c0_29, %c0_30] : memref<4x1x9x9x4xbf16, #tpu.memory_space<vmem>>, vector<1x1x8x8x4xbf16>
    %24 = vector.shape_cast %23 : vector<1x1x8x8x4xbf16> to vector<8x8x4xbf16>
    %25 = vector.shape_cast %24 : vector<8x8x4xbf16> to vector<64x4xbf16>
    %c3 = arith.constant 3 : index
    %c0_31 = arith.constant 0 : index
    %c0_32 = arith.constant 0 : index
    %26 = vector.load %arg2[%c3, %c0_31, %c0_32] : memref<9x4x8xbf16, #tpu.memory_space<vmem>>, vector<1x4x8xbf16>
    %27 = vector.shape_cast %26 : vector<1x4x8xbf16> to vector<4x8xbf16>
    %cst_33 = arith.constant dense<0.000000e+00> : vector<64x8xf32>
    %28 = tpu.matmul %25, %27, %cst_33 {dimension_numbers = #tpu.dot_dimension_numbers<[1], [0], [0], [1], [0, 0, 1, 1], [], []>} : vector<64x4xbf16>, vector<4x8xbf16>, vector<64x8xf32> -> vector<64x8xf32>
    %29 = arith.addf %22, %28 : vector<64x8xf32>
    %c3_34 = arith.constant 3 : index
    %c0_35 = arith.constant 0 : index
    %c0_36 = arith.constant 0 : index
    %c0_37 = arith.constant 0 : index
    %c0_38 = arith.constant 0 : index
    %30 = vector.load %arg1[%c3_34, %c0_35, %c0_36, %c0_37, %c0_38] : memref<4x1x9x9x4xbf16, #tpu.memory_space<vmem>>, vector<1x1x8x8x4xbf16>
    %31 = vector.shape_cast %30 : vector<1x1x8x8x4xbf16> to vector<8x8x4xbf16>
    %32 = vector.shape_cast %31 : vector<8x8x4xbf16> to vector<64x4xbf16>
    %c4 = arith.constant 4 : index
    %c0_39 = arith.constant 0 : index
    %c0_40 = arith.constant 0 : index
    %33 = vector.load %arg2[%c4, %c0_39, %c0_40] : memref<9x4x8xbf16, #tpu.memory_space<vmem>>, vector<1x4x8xbf16>
    %34 = vector.shape_cast %33 : vector<1x4x8xbf16> to vector<4x8xbf16>
    %cst_41 = arith.constant dense<0.000000e+00> : vector<64x8xf32>
    %35 = tpu.matmul %32, %34, %cst_41 {dimension_numbers = #tpu.dot_dimension_numbers<[1], [0], [0], [1], [0, 0, 1, 1], [], []>} : vector<64x4xbf16>, vector<4x8xbf16>, vector<64x8xf32> -> vector<64x8xf32>
    %36 = arith.addf %29, %35 : vector<64x8xf32>
    %c2_42 = arith.constant 2 : index
    %c0_43 = arith.constant 0 : index
    %c0_44 = arith.constant 0 : index
    %c1_45 = arith.constant 1 : index
    %c0_46 = arith.constant 0 : index
    %37 = vector.load %arg1[%c2_42, %c0_43, %c0_44, %c1_45, %c0_46] : memref<4x1x9x9x4xbf16, #tpu.memory_space<vmem>>, vector<1x1x8x8x4xbf16>
    %38 = vector.shape_cast %37 : vector<1x1x8x8x4xbf16> to vector<8x8x4xbf16>
    %39 = vector.shape_cast %38 : vector<8x8x4xbf16> to vector<64x4xbf16>
    %c5 = arith.constant 5 : index
    %c0_47 = arith.constant 0 : index
    %c0_48 = arith.constant 0 : index
    %40 = vector.load %arg2[%c5, %c0_47, %c0_48] : memref<9x4x8xbf16, #tpu.memory_space<vmem>>, vector<1x4x8xbf16>
    %41 = vector.shape_cast %40 : vector<1x4x8xbf16> to vector<4x8xbf16>
    %cst_49 = arith.constant dense<0.000000e+00> : vector<64x8xf32>
    %42 = tpu.matmul %39, %41, %cst_49 {dimension_numbers = #tpu.dot_dimension_numbers<[1], [0], [0], [1], [0, 0, 1, 1], [], []>} : vector<64x4xbf16>, vector<4x8xbf16>, vector<64x8xf32> -> vector<64x8xf32>
    %43 = arith.addf %36, %42 : vector<64x8xf32>
    %c0_50 = arith.constant 0 : index
    %c0_51 = arith.constant 0 : index
    %c1_52 = arith.constant 1 : index
    %c0_53 = arith.constant 0 : index
    %c0_54 = arith.constant 0 : index
    %44 = vector.load %arg1[%c0_50, %c0_51, %c1_52, %c0_53, %c0_54] : memref<4x1x9x9x4xbf16, #tpu.memory_space<vmem>>, vector<1x1x8x8x4xbf16>
    %45 = vector.shape_cast %44 : vector<1x1x8x8x4xbf16> to vector<8x8x4xbf16>
    %46 = vector.shape_cast %45 : vector<8x8x4xbf16> to vector<64x4xbf16>
    %c6 = arith.constant 6 : index
    %c0_55 = arith.constant 0 : index
    %c0_56 = arith.constant 0 : index
    %47 = vector.load %arg2[%c6, %c0_55, %c0_56] : memref<9x4x8xbf16, #tpu.memory_space<vmem>>, vector<1x4x8xbf16>
    %48 = vector.shape_cast %47 : vector<1x4x8xbf16> to vector<4x8xbf16>
    %cst_57 = arith.constant dense<0.000000e+00> : vector<64x8xf32>
    %49 = tpu.matmul %46, %48, %cst_57 {dimension_numbers = #tpu.dot_dimension_numbers<[1], [0], [0], [1], [0, 0, 1, 1], [], []>} : vector<64x4xbf16>, vector<4x8xbf16>, vector<64x8xf32> -> vector<64x8xf32>
    %50 = arith.addf %43, %49 : vector<64x8xf32>
    %c1_58 = arith.constant 1 : index
    %c0_59 = arith.constant 0 : index
    %c1_60 = arith.constant 1 : index
    %c0_61 = arith.constant 0 : index
    %c0_62 = arith.constant 0 : index
    %51 = vector.load %arg1[%c1_58, %c0_59, %c1_60, %c0_61, %c0_62] : memref<4x1x9x9x4xbf16, #tpu.memory_space<vmem>>, vector<1x1x8x8x4xbf16>
    %52 = vector.shape_cast %51 : vector<1x1x8x8x4xbf16> to vector<8x8x4xbf16>
    %53 = vector.shape_cast %52 : vector<8x8x4xbf16> to vector<64x4xbf16>
    %c7 = arith.constant 7 : index
    %c0_63 = arith.constant 0 : index
    %c0_64 = arith.constant 0 : index
    %54 = vector.load %arg2[%c7, %c0_63, %c0_64] : memref<9x4x8xbf16, #tpu.memory_space<vmem>>, vector<1x4x8xbf16>
    %55 = vector.shape_cast %54 : vector<1x4x8xbf16> to vector<4x8xbf16>
    %cst_65 = arith.constant dense<0.000000e+00> : vector<64x8xf32>
    %56 = tpu.matmul %53, %55, %cst_65 {dimension_numbers = #tpu.dot_dimension_numbers<[1], [0], [0], [1], [0, 0, 1, 1], [], []>} : vector<64x4xbf16>, vector<4x8xbf16>, vector<64x8xf32> -> vector<64x8xf32>
    %57 = arith.addf %50, %56 : vector<64x8xf32>
    %c0_66 = arith.constant 0 : index
    %c0_67 = arith.constant 0 : index
    %c1_68 = arith.constant 1 : index
    %c1_69 = arith.constant 1 : index
    %c0_70 = arith.constant 0 : index
    %58 = vector.load %arg1[%c0_66, %c0_67, %c1_68, %c1_69, %c0_70] : memref<4x1x9x9x4xbf16, #tpu.memory_space<vmem>>, vector<1x1x8x8x4xbf16>
    %59 = vector.shape_cast %58 : vector<1x1x8x8x4xbf16> to vector<8x8x4xbf16>
    %60 = vector.shape_cast %59 : vector<8x8x4xbf16> to vector<64x4xbf16>
    %c8 = arith.constant 8 : index
    %c0_71 = arith.constant 0 : index
    %c0_72 = arith.constant 0 : index
    %61 = vector.load %arg2[%c8, %c0_71, %c0_72] : memref<9x4x8xbf16, #tpu.memory_space<vmem>>, vector<1x4x8xbf16>
    %62 = vector.shape_cast %61 : vector<1x4x8xbf16> to vector<4x8xbf16>
    %cst_73 = arith.constant dense<0.000000e+00> : vector<64x8xf32>
    %63 = tpu.matmul %60, %62, %cst_73 {dimension_numbers = #tpu.dot_dimension_numbers<[1], [0], [0], [1], [0, 0, 1, 1], [], []>} : vector<64x4xbf16>, vector<4x8xbf16>, vector<64x8xf32> -> vector<64x8xf32>
    %64 = arith.addf %57, %63 : vector<64x8xf32>
    %65 = vector.broadcast %0 : vector<1x8xf32> to vector<64x8xf32>
    %66 = arith.addf %64, %65 : vector<64x8xf32>
    %cst_74 = arith.constant 0.000000e+00 : f32
    %67 = vector.broadcast %cst_74 : f32 to vector<64x8xf32>
    %68 = arith.maximumf %66, %67 : vector<64x8xf32>
    %69 = vector.shape_cast %68 : vector<64x8xf32> to vector<8x8x8xf32>
    %70 = arith.truncf %69 : vector<8x8x8xf32> to vector<8x8x8xbf16>
    %c0_75 = arith.constant 0 : index
    %c0_76 = arith.constant 0 : index
    %c0_77 = arith.constant 0 : index
    %c0_78 = arith.constant 0 : index
    %71 = vector.load %arg4[%c0_75, %c0_76, %c0_77, %c0_78] : memref<1x8x8x8xbf16, #tpu.memory_space<vmem>>, vector<1x8x8x8xbf16>
    %72 = vector.shape_cast %71 : vector<1x8x8x8xbf16> to vector<8x8x8xbf16>
    %73 = vector.shape_cast %70 : vector<8x8x8xbf16> to vector<1x8x8x8xbf16>
    tpu.vector_store %arg4[%c0_75, %c0_76, %c0_77, %c0_78], %73 {strides = array<i32>} : memref<1x8x8x8xbf16, #tpu.memory_space<vmem>>, vector<1x8x8x8xbf16>,
    return
  }
  func.func @transform_0(%arg0: i32) -> (i32, i32, i32, i32, i32) {
    %c0_i32 = arith.constant 0 : i32
    %c0_i32_0 = arith.constant 0 : i32
    %c0_i32_1 = arith.constant 0 : i32
    %c0_i32_2 = arith.constant 0 : i32
    %c0_i32_3 = arith.constant 0 : i32
    return %c0_i32, %arg0, %c0_i32_0, %c0_i32_1, %c0_i32_2 : i32, i32, i32, i32, i32
  }
  func.func @transform_1(%arg0: i32) -> (i32, i32, i32) {
    %c0_i32 = arith.constant 0 : i32
    %c0_i32_0 = arith.constant 0 : i32
    %c0_i32_1 = arith.constant 0 : i32
    %c0_i32_2 = arith.constant 0 : i32
    return %c0_i32, %c0_i32_0, %c0_i32_1 : i32, i32, i32
  }
  func.func @transform_2(%arg0: i32) -> (i32, i32) {
    %c0_i32 = arith.constant 0 : i32
    %c0_i32_0 = arith.constant 0 : i32
    %c0_i32_1 = arith.constant 0 : i32
    return %c0_i32, %c0_i32_0 : i32, i32
  }
  func.func @transform_3(%arg0: i32) -> (i32, i32, i32, i32) {
    %c0_i32 = arith.constant 0 : i32
    %c0_i32_0 = arith.constant 0 : i32
    %c0_i32_1 = arith.constant 0 : i32
    %c0_i32_2 = arith.constant 0 : i32
    return %arg0, %c0_i32, %c0_i32_0, %c0_i32_1 : i32, i32, i32, i32
  }
}

module attributes {stable_mosaic.version = 11 : i64} {
  func.func @_conv_kernel(%arg0: i32, %arg1: memref<4x1x5x5x8xbf16, #tpu.memory_space<vmem>>, %arg2: memref<9x8x16xbf16, #tpu.memory_space<vmem>>, %arg3: memref<1x16xf32, #tpu.memory_space<vmem>>, %arg4: memref<1x4x4x16xbf16, #tpu.memory_space<vmem>>) attributes {dimension_semantics = [#tpu.dimension_semantics<parallel>], iteration_bounds = array<i64: 2>, scalar_prefetch = 0 : i64, scratch_operands = 0 : i64, tpu.core_type = #tpu.core_type<tc>, window_params = [{transform_indices = @transform_0, window_bounds = array<i64: 4, 1, 5, 5, 8>}, {pipeline_mode = #tpu.pipeline_mode<synchronous>, transform_indices = @transform_1, window_bounds = array<i64: 9, 8, 16>}, {pipeline_mode = #tpu.pipeline_mode<synchronous>, transform_indices = @transform_2, window_bounds = array<i64: 1, 16>}, {transform_indices = @transform_3, window_bounds = array<i64: 1, 4, 4, 16>}]} {
    %c0 = arith.constant 0 : index
    %c0_0 = arith.constant 0 : index
    %0 = vector.load %arg3[%c0, %c0_0] : memref<1x16xf32, #tpu.memory_space<vmem>>, vector<1x16xf32>
    %cst = arith.constant 0.000000e+00 : f32
    %1 = vector.broadcast %cst : f32 to vector<16x16xf32>
    %c0_1 = arith.constant 0 : index
    %c0_2 = arith.constant 0 : index
    %c0_3 = arith.constant 0 : index
    %c0_4 = arith.constant 0 : index
    %c0_5 = arith.constant 0 : index
    %2 = vector.load %arg1[%c0_1, %c0_2, %c0_3, %c0_4, %c0_5] : memref<4x1x5x5x8xbf16, #tpu.memory_space<vmem>>, vector<1x1x4x4x8xbf16>
    %3 = vector.shape_cast %2 : vector<1x1x4x4x8xbf16> to vector<4x4x8xbf16>
    %4 = vector.shape_cast %3 : vector<4x4x8xbf16> to vector<16x8xbf16>
    %c0_6 = arith.constant 0 : index
    %c0_7 = arith.constant 0 : index
    %c0_8 = arith.constant 0 : index
    %5 = vector.load %arg2[%c0_6, %c0_7, %c0_8] : memref<9x8x16xbf16, #tpu.memory_space<vmem>>, vector<1x8x16xbf16>
    %6 = vector.shape_cast %5 : vector<1x8x16xbf16> to vector<8x16xbf16>
    %cst_9 = arith.constant dense<0.000000e+00> : vector<16x16xf32>
    %7 = tpu.matmul %4, %6, %cst_9 {dimension_numbers = #tpu.dot_dimension_numbers<[1], [0], [0], [1], [0, 0, 1, 1], [], []>} : vector<16x8xbf16>, vector<8x16xbf16>, vector<16x16xf32> -> vector<16x16xf32>
    %8 = arith.addf %1, %7 : vector<16x16xf32>
    %c1 = arith.constant 1 : index
    %c0_10 = arith.constant 0 : index
    %c0_11 = arith.constant 0 : index
    %c0_12 = arith.constant 0 : index
    %c0_13 = arith.constant 0 : index
    %9 = vector.load %arg1[%c1, %c0_10, %c0_11, %c0_12, %c0_13] : memref<4x1x5x5x8xbf16, #tpu.memory_space<vmem>>, vector<1x1x4x4x8xbf16>
    %10 = vector.shape_cast %9 : vector<1x1x4x4x8xbf16> to vector<4x4x8xbf16>
    %11 = vector.shape_cast %10 : vector<4x4x8xbf16> to vector<16x8xbf16>
    %c1_14 = arith.constant 1 : index
    %c0_15 = arith.constant 0 : index
    %c0_16 = arith.constant 0 : index
    %12 = vector.load %arg2[%c1_14, %c0_15, %c0_16] : memref<9x8x16xbf16, #tpu.memory_space<vmem>>, vector<1x8x16xbf16>
    %13 = vector.shape_cast %12 : vector<1x8x16xbf16> to vector<8x16xbf16>
    %cst_17 = arith.constant dense<0.000000e+00> : vector<16x16xf32>
    %14 = tpu.matmul %11, %13, %cst_17 {dimension_numbers = #tpu.dot_dimension_numbers<[1], [0], [0], [1], [0, 0, 1, 1], [], []>} : vector<16x8xbf16>, vector<8x16xbf16>, vector<16x16xf32> -> vector<16x16xf32>
    %15 = arith.addf %8, %14 : vector<16x16xf32>
    %c0_18 = arith.constant 0 : index
    %c0_19 = arith.constant 0 : index
    %c0_20 = arith.constant 0 : index
    %c1_21 = arith.constant 1 : index
    %c0_22 = arith.constant 0 : index
    %16 = vector.load %arg1[%c0_18, %c0_19, %c0_20, %c1_21, %c0_22] : memref<4x1x5x5x8xbf16, #tpu.memory_space<vmem>>, vector<1x1x4x4x8xbf16>
    %17 = vector.shape_cast %16 : vector<1x1x4x4x8xbf16> to vector<4x4x8xbf16>
    %18 = vector.shape_cast %17 : vector<4x4x8xbf16> to vector<16x8xbf16>
    %c2 = arith.constant 2 : index
    %c0_23 = arith.constant 0 : index
    %c0_24 = arith.constant 0 : index
    %19 = vector.load %arg2[%c2, %c0_23, %c0_24] : memref<9x8x16xbf16, #tpu.memory_space<vmem>>, vector<1x8x16xbf16>
    %20 = vector.shape_cast %19 : vector<1x8x16xbf16> to vector<8x16xbf16>
    %cst_25 = arith.constant dense<0.000000e+00> : vector<16x16xf32>
    %21 = tpu.matmul %18, %20, %cst_25 {dimension_numbers = #tpu.dot_dimension_numbers<[1], [0], [0], [1], [0, 0, 1, 1], [], []>} : vector<16x8xbf16>, vector<8x16xbf16>, vector<16x16xf32> -> vector<16x16xf32>
    %22 = arith.addf %15, %21 : vector<16x16xf32>
    %c2_26 = arith.constant 2 : index
    %c0_27 = arith.constant 0 : index
    %c0_28 = arith.constant 0 : index
    %c0_29 = arith.constant 0 : index
    %c0_30 = arith.constant 0 : index
    %23 = vector.load %arg1[%c2_26, %c0_27, %c0_28, %c0_29, %c0_30] : memref<4x1x5x5x8xbf16, #tpu.memory_space<vmem>>, vector<1x1x4x4x8xbf16>
    %24 = vector.shape_cast %23 : vector<1x1x4x4x8xbf16> to vector<4x4x8xbf16>
    %25 = vector.shape_cast %24 : vector<4x4x8xbf16> to vector<16x8xbf16>
    %c3 = arith.constant 3 : index
    %c0_31 = arith.constant 0 : index
    %c0_32 = arith.constant 0 : index
    %26 = vector.load %arg2[%c3, %c0_31, %c0_32] : memref<9x8x16xbf16, #tpu.memory_space<vmem>>, vector<1x8x16xbf16>
    %27 = vector.shape_cast %26 : vector<1x8x16xbf16> to vector<8x16xbf16>
    %cst_33 = arith.constant dense<0.000000e+00> : vector<16x16xf32>
    %28 = tpu.matmul %25, %27, %cst_33 {dimension_numbers = #tpu.dot_dimension_numbers<[1], [0], [0], [1], [0, 0, 1, 1], [], []>} : vector<16x8xbf16>, vector<8x16xbf16>, vector<16x16xf32> -> vector<16x16xf32>
    %29 = arith.addf %22, %28 : vector<16x16xf32>
    %c3_34 = arith.constant 3 : index
    %c0_35 = arith.constant 0 : index
    %c0_36 = arith.constant 0 : index
    %c0_37 = arith.constant 0 : index
    %c0_38 = arith.constant 0 : index
    %30 = vector.load %arg1[%c3_34, %c0_35, %c0_36, %c0_37, %c0_38] : memref<4x1x5x5x8xbf16, #tpu.memory_space<vmem>>, vector<1x1x4x4x8xbf16>
    %31 = vector.shape_cast %30 : vector<1x1x4x4x8xbf16> to vector<4x4x8xbf16>
    %32 = vector.shape_cast %31 : vector<4x4x8xbf16> to vector<16x8xbf16>
    %c4 = arith.constant 4 : index
    %c0_39 = arith.constant 0 : index
    %c0_40 = arith.constant 0 : index
    %33 = vector.load %arg2[%c4, %c0_39, %c0_40] : memref<9x8x16xbf16, #tpu.memory_space<vmem>>, vector<1x8x16xbf16>
    %34 = vector.shape_cast %33 : vector<1x8x16xbf16> to vector<8x16xbf16>
    %cst_41 = arith.constant dense<0.000000e+00> : vector<16x16xf32>
    %35 = tpu.matmul %32, %34, %cst_41 {dimension_numbers = #tpu.dot_dimension_numbers<[1], [0], [0], [1], [0, 0, 1, 1], [], []>} : vector<16x8xbf16>, vector<8x16xbf16>, vector<16x16xf32> -> vector<16x16xf32>
    %36 = arith.addf %29, %35 : vector<16x16xf32>
    %c2_42 = arith.constant 2 : index
    %c0_43 = arith.constant 0 : index
    %c0_44 = arith.constant 0 : index
    %c1_45 = arith.constant 1 : index
    %c0_46 = arith.constant 0 : index
    %37 = vector.load %arg1[%c2_42, %c0_43, %c0_44, %c1_45, %c0_46] : memref<4x1x5x5x8xbf16, #tpu.memory_space<vmem>>, vector<1x1x4x4x8xbf16>
    %38 = vector.shape_cast %37 : vector<1x1x4x4x8xbf16> to vector<4x4x8xbf16>
    %39 = vector.shape_cast %38 : vector<4x4x8xbf16> to vector<16x8xbf16>
    %c5 = arith.constant 5 : index
    %c0_47 = arith.constant 0 : index
    %c0_48 = arith.constant 0 : index
    %40 = vector.load %arg2[%c5, %c0_47, %c0_48] : memref<9x8x16xbf16, #tpu.memory_space<vmem>>, vector<1x8x16xbf16>
    %41 = vector.shape_cast %40 : vector<1x8x16xbf16> to vector<8x16xbf16>
    %cst_49 = arith.constant dense<0.000000e+00> : vector<16x16xf32>
    %42 = tpu.matmul %39, %41, %cst_49 {dimension_numbers = #tpu.dot_dimension_numbers<[1], [0], [0], [1], [0, 0, 1, 1], [], []>} : vector<16x8xbf16>, vector<8x16xbf16>, vector<16x16xf32> -> vector<16x16xf32>
    %43 = arith.addf %36, %42 : vector<16x16xf32>
    %c0_50 = arith.constant 0 : index
    %c0_51 = arith.constant 0 : index
    %c1_52 = arith.constant 1 : index
    %c0_53 = arith.constant 0 : index
    %c0_54 = arith.constant 0 : index
    %44 = vector.load %arg1[%c0_50, %c0_51, %c1_52, %c0_53, %c0_54] : memref<4x1x5x5x8xbf16, #tpu.memory_space<vmem>>, vector<1x1x4x4x8xbf16>
    %45 = vector.shape_cast %44 : vector<1x1x4x4x8xbf16> to vector<4x4x8xbf16>
    %46 = vector.shape_cast %45 : vector<4x4x8xbf16> to vector<16x8xbf16>
    %c6 = arith.constant 6 : index
    %c0_55 = arith.constant 0 : index
    %c0_56 = arith.constant 0 : index
    %47 = vector.load %arg2[%c6, %c0_55, %c0_56] : memref<9x8x16xbf16, #tpu.memory_space<vmem>>, vector<1x8x16xbf16>
    %48 = vector.shape_cast %47 : vector<1x8x16xbf16> to vector<8x16xbf16>
    %cst_57 = arith.constant dense<0.000000e+00> : vector<16x16xf32>
    %49 = tpu.matmul %46, %48, %cst_57 {dimension_numbers = #tpu.dot_dimension_numbers<[1], [0], [0], [1], [0, 0, 1, 1], [], []>} : vector<16x8xbf16>, vector<8x16xbf16>, vector<16x16xf32> -> vector<16x16xf32>
    %50 = arith.addf %43, %49 : vector<16x16xf32>
    %c1_58 = arith.constant 1 : index
    %c0_59 = arith.constant 0 : index
    %c1_60 = arith.constant 1 : index
    %c0_61 = arith.constant 0 : index
    %c0_62 = arith.constant 0 : index
    %51 = vector.load %arg1[%c1_58, %c0_59, %c1_60, %c0_61, %c0_62] : memref<4x1x5x5x8xbf16, #tpu.memory_space<vmem>>, vector<1x1x4x4x8xbf16>
    %52 = vector.shape_cast %51 : vector<1x1x4x4x8xbf16> to vector<4x4x8xbf16>
    %53 = vector.shape_cast %52 : vector<4x4x8xbf16> to vector<16x8xbf16>
    %c7 = arith.constant 7 : index
    %c0_63 = arith.constant 0 : index
    %c0_64 = arith.constant 0 : index
    %54 = vector.load %arg2[%c7, %c0_63, %c0_64] : memref<9x8x16xbf16, #tpu.memory_space<vmem>>, vector<1x8x16xbf16>
    %55 = vector.shape_cast %54 : vector<1x8x16xbf16> to vector<8x16xbf16>
    %cst_65 = arith.constant dense<0.000000e+00> : vector<16x16xf32>
    %56 = tpu.matmul %53, %55, %cst_65 {dimension_numbers = #tpu.dot_dimension_numbers<[1], [0], [0], [1], [0, 0, 1, 1], [], []>} : vector<16x8xbf16>, vector<8x16xbf16>, vector<16x16xf32> -> vector<16x16xf32>
    %57 = arith.addf %50, %56 : vector<16x16xf32>
    %c0_66 = arith.constant 0 : index
    %c0_67 = arith.constant 0 : index
    %c1_68 = arith.constant 1 : index
    %c1_69 = arith.constant 1 : index
    %c0_70 = arith.constant 0 : index
    %58 = vector.load %arg1[%c0_66, %c0_67, %c1_68, %c1_69, %c0_70] : memref<4x1x5x5x8xbf16, #tpu.memory_space<vmem>>, vector<1x1x4x4x8xbf16>
    %59 = vector.shape_cast %58 : vector<1x1x4x4x8xbf16> to vector<4x4x8xbf16>
    %60 = vector.shape_cast %59 : vector<4x4x8xbf16> to vector<16x8xbf16>
    %c8 = arith.constant 8 : index
    %c0_71 = arith.constant 0 : index
    %c0_72 = arith.constant 0 : index
    %61 = vector.load %arg2[%c8, %c0_71, %c0_72] : memref<9x8x16xbf16, #tpu.memory_space<vmem>>, vector<1x8x16xbf16>
    %62 = vector.shape_cast %61 : vector<1x8x16xbf16> to vector<8x16xbf16>
    %cst_73 = arith.constant dense<0.000000e+00> : vector<16x16xf32>
    %63 = tpu.matmul %60, %62, %cst_73 {dimension_numbers = #tpu.dot_dimension_numbers<[1], [0], [0], [1], [0, 0, 1, 1], [], []>} : vector<16x8xbf16>, vector<8x16xbf16>, vector<16x16xf32> -> vector<16x16xf32>
    %64 = arith.addf %57, %63 : vector<16x16xf32>
    %65 = vector.broadcast %0 : vector<1x16xf32> to vector<16x16xf32>
    %66 = arith.addf %64, %65 : vector<16x16xf32>
    %cst_74 = arith.constant 0.000000e+00 : f32
    %67 = vector.broadcast %cst_74 : f32 to vector<16x16xf32>
    %68 = arith.maximumf %66, %67 : vector<16x16xf32>
    %69 = vector.shape_cast %68 : vector<16x16xf32> to vector<4x4x16xf32>
    %70 = arith.truncf %69 : vector<4x4x16xf32> to vector<4x4x16xbf16>
    %c0_75 = arith.constant 0 : index
    %c0_76 = arith.constant 0 : index
    %c0_77 = arith.constant 0 : index
    %c0_78 = arith.constant 0 : index
    %71 = vector.load %arg4[%c0_75, %c0_76, %c0_77, %c0_78] : memref<1x4x4x16xbf16, #tpu.memory_space<vmem>>, vector<1x4x4x16xbf16>
    %72 = vector.shape_cast %71 : vector<1x4x4x16xbf16> to vector<4x4x16xbf16>
    %73 = vector.shape_cast %70 : vector<4x4x16xbf16> to vector<1x4x4x16xbf16>
    tpu.vector_store %arg4[%c0_75, %c0_76, %c0_77, %c0_78], %73 {strides = array<i32>} : memref<1x4x4x16xbf16, #tpu.memory_space<vmem>>, vector<1x4x4x16xbf16>,
    return
  }
  func.func @transform_0(%arg0: i32) -> (i32, i32, i32, i32, i32) {
    %c0_i32 = arith.constant 0 : i32
    %c0_i32_0 = arith.constant 0 : i32
    %c0_i32_1 = arith.constant 0 : i32
    %c0_i32_2 = arith.constant 0 : i32
    %c0_i32_3 = arith.constant 0 : i32
    return %c0_i32, %arg0, %c0_i32_0, %c0_i32_1, %c0_i32_2 : i32, i32, i32, i32, i32
  }
  func.func @transform_1(%arg0: i32) -> (i32, i32, i32) {
    %c0_i32 = arith.constant 0 : i32
    %c0_i32_0 = arith.constant 0 : i32
    %c0_i32_1 = arith.constant 0 : i32
    %c0_i32_2 = arith.constant 0 : i32
    return %c0_i32, %c0_i32_0, %c0_i32_1 : i32, i32, i32
  }
  func.func @transform_2(%arg0: i32) -> (i32, i32) {
    %c0_i32 = arith.constant 0 : i32
    %c0_i32_0 = arith.constant 0 : i32
    %c0_i32_1 = arith.constant 0 : i32
    return %c0_i32, %c0_i32_0 : i32, i32
  }
  func.func @transform_3(%arg0: i32) -> (i32, i32, i32, i32) {
    %c0_i32 = arith.constant 0 : i32
    %c0_i32_0 = arith.constant 0 : i32
    %c0_i32_1 = arith.constant 0 : i32
    %c0_i32_2 = arith.constant 0 : i32
    return %arg0, %c0_i32, %c0_i32_0, %c0_i32_1 : i32, i32, i32, i32
  }
}

module attributes {stable_mosaic.version = 11 : i64} {
  func.func @_conv_kernel(%arg0: i32, %arg1: memref<4x1x3x3x16xbf16, #tpu.memory_space<vmem>>, %arg2: memref<9x16x32xbf16, #tpu.memory_space<vmem>>, %arg3: memref<1x32xf32, #tpu.memory_space<vmem>>, %arg4: memref<1x2x2x32xbf16, #tpu.memory_space<vmem>>) attributes {dimension_semantics = [#tpu.dimension_semantics<parallel>], iteration_bounds = array<i64: 2>, scalar_prefetch = 0 : i64, scratch_operands = 0 : i64, tpu.core_type = #tpu.core_type<tc>, window_params = [{transform_indices = @transform_0, window_bounds = array<i64: 4, 1, 3, 3, 16>}, {pipeline_mode = #tpu.pipeline_mode<synchronous>, transform_indices = @transform_1, window_bounds = array<i64: 9, 16, 32>}, {pipeline_mode = #tpu.pipeline_mode<synchronous>, transform_indices = @transform_2, window_bounds = array<i64: 1, 32>}, {transform_indices = @transform_3, window_bounds = array<i64: 1, 2, 2, 32>}]} {
    %c0 = arith.constant 0 : index
    %c0_0 = arith.constant 0 : index
    %0 = vector.load %arg3[%c0, %c0_0] : memref<1x32xf32, #tpu.memory_space<vmem>>, vector<1x32xf32>
    %cst = arith.constant 0.000000e+00 : f32
    %1 = vector.broadcast %cst : f32 to vector<4x32xf32>
    %c0_1 = arith.constant 0 : index
    %c0_2 = arith.constant 0 : index
    %c0_3 = arith.constant 0 : index
    %c0_4 = arith.constant 0 : index
    %c0_5 = arith.constant 0 : index
    %2 = vector.load %arg1[%c0_1, %c0_2, %c0_3, %c0_4, %c0_5] : memref<4x1x3x3x16xbf16, #tpu.memory_space<vmem>>, vector<1x1x2x2x16xbf16>
    %3 = vector.shape_cast %2 : vector<1x1x2x2x16xbf16> to vector<2x2x16xbf16>
    %4 = vector.shape_cast %3 : vector<2x2x16xbf16> to vector<4x16xbf16>
    %c0_6 = arith.constant 0 : index
    %c0_7 = arith.constant 0 : index
    %c0_8 = arith.constant 0 : index
    %5 = vector.load %arg2[%c0_6, %c0_7, %c0_8] : memref<9x16x32xbf16, #tpu.memory_space<vmem>>, vector<1x16x32xbf16>
    %6 = vector.shape_cast %5 : vector<1x16x32xbf16> to vector<16x32xbf16>
    %cst_9 = arith.constant dense<0.000000e+00> : vector<4x32xf32>
    %7 = tpu.matmul %4, %6, %cst_9 {dimension_numbers = #tpu.dot_dimension_numbers<[1], [0], [0], [1], [0, 0, 1, 1], [], []>} : vector<4x16xbf16>, vector<16x32xbf16>, vector<4x32xf32> -> vector<4x32xf32>
    %8 = arith.addf %1, %7 : vector<4x32xf32>
    %c1 = arith.constant 1 : index
    %c0_10 = arith.constant 0 : index
    %c0_11 = arith.constant 0 : index
    %c0_12 = arith.constant 0 : index
    %c0_13 = arith.constant 0 : index
    %9 = vector.load %arg1[%c1, %c0_10, %c0_11, %c0_12, %c0_13] : memref<4x1x3x3x16xbf16, #tpu.memory_space<vmem>>, vector<1x1x2x2x16xbf16>
    %10 = vector.shape_cast %9 : vector<1x1x2x2x16xbf16> to vector<2x2x16xbf16>
    %11 = vector.shape_cast %10 : vector<2x2x16xbf16> to vector<4x16xbf16>
    %c1_14 = arith.constant 1 : index
    %c0_15 = arith.constant 0 : index
    %c0_16 = arith.constant 0 : index
    %12 = vector.load %arg2[%c1_14, %c0_15, %c0_16] : memref<9x16x32xbf16, #tpu.memory_space<vmem>>, vector<1x16x32xbf16>
    %13 = vector.shape_cast %12 : vector<1x16x32xbf16> to vector<16x32xbf16>
    %cst_17 = arith.constant dense<0.000000e+00> : vector<4x32xf32>
    %14 = tpu.matmul %11, %13, %cst_17 {dimension_numbers = #tpu.dot_dimension_numbers<[1], [0], [0], [1], [0, 0, 1, 1], [], []>} : vector<4x16xbf16>, vector<16x32xbf16>, vector<4x32xf32> -> vector<4x32xf32>
    %15 = arith.addf %8, %14 : vector<4x32xf32>
    %c0_18 = arith.constant 0 : index
    %c0_19 = arith.constant 0 : index
    %c0_20 = arith.constant 0 : index
    %c1_21 = arith.constant 1 : index
    %c0_22 = arith.constant 0 : index
    %16 = vector.load %arg1[%c0_18, %c0_19, %c0_20, %c1_21, %c0_22] : memref<4x1x3x3x16xbf16, #tpu.memory_space<vmem>>, vector<1x1x2x2x16xbf16>
    %17 = vector.shape_cast %16 : vector<1x1x2x2x16xbf16> to vector<2x2x16xbf16>
    %18 = vector.shape_cast %17 : vector<2x2x16xbf16> to vector<4x16xbf16>
    %c2 = arith.constant 2 : index
    %c0_23 = arith.constant 0 : index
    %c0_24 = arith.constant 0 : index
    %19 = vector.load %arg2[%c2, %c0_23, %c0_24] : memref<9x16x32xbf16, #tpu.memory_space<vmem>>, vector<1x16x32xbf16>
    %20 = vector.shape_cast %19 : vector<1x16x32xbf16> to vector<16x32xbf16>
    %cst_25 = arith.constant dense<0.000000e+00> : vector<4x32xf32>
    %21 = tpu.matmul %18, %20, %cst_25 {dimension_numbers = #tpu.dot_dimension_numbers<[1], [0], [0], [1], [0, 0, 1, 1], [], []>} : vector<4x16xbf16>, vector<16x32xbf16>, vector<4x32xf32> -> vector<4x32xf32>
    %22 = arith.addf %15, %21 : vector<4x32xf32>
    %c2_26 = arith.constant 2 : index
    %c0_27 = arith.constant 0 : index
    %c0_28 = arith.constant 0 : index
    %c0_29 = arith.constant 0 : index
    %c0_30 = arith.constant 0 : index
    %23 = vector.load %arg1[%c2_26, %c0_27, %c0_28, %c0_29, %c0_30] : memref<4x1x3x3x16xbf16, #tpu.memory_space<vmem>>, vector<1x1x2x2x16xbf16>
    %24 = vector.shape_cast %23 : vector<1x1x2x2x16xbf16> to vector<2x2x16xbf16>
    %25 = vector.shape_cast %24 : vector<2x2x16xbf16> to vector<4x16xbf16>
    %c3 = arith.constant 3 : index
    %c0_31 = arith.constant 0 : index
    %c0_32 = arith.constant 0 : index
    %26 = vector.load %arg2[%c3, %c0_31, %c0_32] : memref<9x16x32xbf16, #tpu.memory_space<vmem>>, vector<1x16x32xbf16>
    %27 = vector.shape_cast %26 : vector<1x16x32xbf16> to vector<16x32xbf16>
    %cst_33 = arith.constant dense<0.000000e+00> : vector<4x32xf32>
    %28 = tpu.matmul %25, %27, %cst_33 {dimension_numbers = #tpu.dot_dimension_numbers<[1], [0], [0], [1], [0, 0, 1, 1], [], []>} : vector<4x16xbf16>, vector<16x32xbf16>, vector<4x32xf32> -> vector<4x32xf32>
    %29 = arith.addf %22, %28 : vector<4x32xf32>
    %c3_34 = arith.constant 3 : index
    %c0_35 = arith.constant 0 : index
    %c0_36 = arith.constant 0 : index
    %c0_37 = arith.constant 0 : index
    %c0_38 = arith.constant 0 : index
    %30 = vector.load %arg1[%c3_34, %c0_35, %c0_36, %c0_37, %c0_38] : memref<4x1x3x3x16xbf16, #tpu.memory_space<vmem>>, vector<1x1x2x2x16xbf16>
    %31 = vector.shape_cast %30 : vector<1x1x2x2x16xbf16> to vector<2x2x16xbf16>
    %32 = vector.shape_cast %31 : vector<2x2x16xbf16> to vector<4x16xbf16>
    %c4 = arith.constant 4 : index
    %c0_39 = arith.constant 0 : index
    %c0_40 = arith.constant 0 : index
    %33 = vector.load %arg2[%c4, %c0_39, %c0_40] : memref<9x16x32xbf16, #tpu.memory_space<vmem>>, vector<1x16x32xbf16>
    %34 = vector.shape_cast %33 : vector<1x16x32xbf16> to vector<16x32xbf16>
    %cst_41 = arith.constant dense<0.000000e+00> : vector<4x32xf32>
    %35 = tpu.matmul %32, %34, %cst_41 {dimension_numbers = #tpu.dot_dimension_numbers<[1], [0], [0], [1], [0, 0, 1, 1], [], []>} : vector<4x16xbf16>, vector<16x32xbf16>, vector<4x32xf32> -> vector<4x32xf32>
    %36 = arith.addf %29, %35 : vector<4x32xf32>
    %c2_42 = arith.constant 2 : index
    %c0_43 = arith.constant 0 : index
    %c0_44 = arith.constant 0 : index
    %c1_45 = arith.constant 1 : index
    %c0_46 = arith.constant 0 : index
    %37 = vector.load %arg1[%c2_42, %c0_43, %c0_44, %c1_45, %c0_46] : memref<4x1x3x3x16xbf16, #tpu.memory_space<vmem>>, vector<1x1x2x2x16xbf16>
    %38 = vector.shape_cast %37 : vector<1x1x2x2x16xbf16> to vector<2x2x16xbf16>
    %39 = vector.shape_cast %38 : vector<2x2x16xbf16> to vector<4x16xbf16>
    %c5 = arith.constant 5 : index
    %c0_47 = arith.constant 0 : index
    %c0_48 = arith.constant 0 : index
    %40 = vector.load %arg2[%c5, %c0_47, %c0_48] : memref<9x16x32xbf16, #tpu.memory_space<vmem>>, vector<1x16x32xbf16>
    %41 = vector.shape_cast %40 : vector<1x16x32xbf16> to vector<16x32xbf16>
    %cst_49 = arith.constant dense<0.000000e+00> : vector<4x32xf32>
    %42 = tpu.matmul %39, %41, %cst_49 {dimension_numbers = #tpu.dot_dimension_numbers<[1], [0], [0], [1], [0, 0, 1, 1], [], []>} : vector<4x16xbf16>, vector<16x32xbf16>, vector<4x32xf32> -> vector<4x32xf32>
    %43 = arith.addf %36, %42 : vector<4x32xf32>
    %c0_50 = arith.constant 0 : index
    %c0_51 = arith.constant 0 : index
    %c1_52 = arith.constant 1 : index
    %c0_53 = arith.constant 0 : index
    %c0_54 = arith.constant 0 : index
    %44 = vector.load %arg1[%c0_50, %c0_51, %c1_52, %c0_53, %c0_54] : memref<4x1x3x3x16xbf16, #tpu.memory_space<vmem>>, vector<1x1x2x2x16xbf16>
    %45 = vector.shape_cast %44 : vector<1x1x2x2x16xbf16> to vector<2x2x16xbf16>
    %46 = vector.shape_cast %45 : vector<2x2x16xbf16> to vector<4x16xbf16>
    %c6 = arith.constant 6 : index
    %c0_55 = arith.constant 0 : index
    %c0_56 = arith.constant 0 : index
    %47 = vector.load %arg2[%c6, %c0_55, %c0_56] : memref<9x16x32xbf16, #tpu.memory_space<vmem>>, vector<1x16x32xbf16>
    %48 = vector.shape_cast %47 : vector<1x16x32xbf16> to vector<16x32xbf16>
    %cst_57 = arith.constant dense<0.000000e+00> : vector<4x32xf32>
    %49 = tpu.matmul %46, %48, %cst_57 {dimension_numbers = #tpu.dot_dimension_numbers<[1], [0], [0], [1], [0, 0, 1, 1], [], []>} : vector<4x16xbf16>, vector<16x32xbf16>, vector<4x32xf32> -> vector<4x32xf32>
    %50 = arith.addf %43, %49 : vector<4x32xf32>
    %c1_58 = arith.constant 1 : index
    %c0_59 = arith.constant 0 : index
    %c1_60 = arith.constant 1 : index
    %c0_61 = arith.constant 0 : index
    %c0_62 = arith.constant 0 : index
    %51 = vector.load %arg1[%c1_58, %c0_59, %c1_60, %c0_61, %c0_62] : memref<4x1x3x3x16xbf16, #tpu.memory_space<vmem>>, vector<1x1x2x2x16xbf16>
    %52 = vector.shape_cast %51 : vector<1x1x2x2x16xbf16> to vector<2x2x16xbf16>
    %53 = vector.shape_cast %52 : vector<2x2x16xbf16> to vector<4x16xbf16>
    %c7 = arith.constant 7 : index
    %c0_63 = arith.constant 0 : index
    %c0_64 = arith.constant 0 : index
    %54 = vector.load %arg2[%c7, %c0_63, %c0_64] : memref<9x16x32xbf16, #tpu.memory_space<vmem>>, vector<1x16x32xbf16>
    %55 = vector.shape_cast %54 : vector<1x16x32xbf16> to vector<16x32xbf16>
    %cst_65 = arith.constant dense<0.000000e+00> : vector<4x32xf32>
    %56 = tpu.matmul %53, %55, %cst_65 {dimension_numbers = #tpu.dot_dimension_numbers<[1], [0], [0], [1], [0, 0, 1, 1], [], []>} : vector<4x16xbf16>, vector<16x32xbf16>, vector<4x32xf32> -> vector<4x32xf32>
    %57 = arith.addf %50, %56 : vector<4x32xf32>
    %c0_66 = arith.constant 0 : index
    %c0_67 = arith.constant 0 : index
    %c1_68 = arith.constant 1 : index
    %c1_69 = arith.constant 1 : index
    %c0_70 = arith.constant 0 : index
    %58 = vector.load %arg1[%c0_66, %c0_67, %c1_68, %c1_69, %c0_70] : memref<4x1x3x3x16xbf16, #tpu.memory_space<vmem>>, vector<1x1x2x2x16xbf16>
    %59 = vector.shape_cast %58 : vector<1x1x2x2x16xbf16> to vector<2x2x16xbf16>
    %60 = vector.shape_cast %59 : vector<2x2x16xbf16> to vector<4x16xbf16>
    %c8 = arith.constant 8 : index
    %c0_71 = arith.constant 0 : index
    %c0_72 = arith.constant 0 : index
    %61 = vector.load %arg2[%c8, %c0_71, %c0_72] : memref<9x16x32xbf16, #tpu.memory_space<vmem>>, vector<1x16x32xbf16>
    %62 = vector.shape_cast %61 : vector<1x16x32xbf16> to vector<16x32xbf16>
    %cst_73 = arith.constant dense<0.000000e+00> : vector<4x32xf32>
    %63 = tpu.matmul %60, %62, %cst_73 {dimension_numbers = #tpu.dot_dimension_numbers<[1], [0], [0], [1], [0, 0, 1, 1], [], []>} : vector<4x16xbf16>, vector<16x32xbf16>, vector<4x32xf32> -> vector<4x32xf32>
    %64 = arith.addf %57, %63 : vector<4x32xf32>
    %65 = vector.broadcast %0 : vector<1x32xf32> to vector<4x32xf32>
    %66 = arith.addf %64, %65 : vector<4x32xf32>
    %cst_74 = arith.constant 0.000000e+00 : f32
    %67 = vector.broadcast %cst_74 : f32 to vector<4x32xf32>
    %68 = arith.maximumf %66, %67 : vector<4x32xf32>
    %69 = vector.shape_cast %68 : vector<4x32xf32> to vector<2x2x32xf32>
    %70 = arith.truncf %69 : vector<2x2x32xf32> to vector<2x2x32xbf16>
    %c0_75 = arith.constant 0 : index
    %c0_76 = arith.constant 0 : index
    %c0_77 = arith.constant 0 : index
    %c0_78 = arith.constant 0 : index
    %71 = vector.load %arg4[%c0_75, %c0_76, %c0_77, %c0_78] : memref<1x2x2x32xbf16, #tpu.memory_space<vmem>>, vector<1x2x2x32xbf16>
    %72 = vector.shape_cast %71 : vector<1x2x2x32xbf16> to vector<2x2x32xbf16>
    %73 = vector.shape_cast %70 : vector<2x2x32xbf16> to vector<1x2x2x32xbf16>
    tpu.vector_store %arg4[%c0_75, %c0_76, %c0_77, %c0_78], %73 {strides = array<i32>} : memref<1x2x2x32xbf16, #tpu.memory_space<vmem>>, vector<1x2x2x32xbf16>,
    return
  }
  func.func @transform_0(%arg0: i32) -> (i32, i32, i32, i32, i32) {
    %c0_i32 = arith.constant 0 : i32
    %c0_i32_0 = arith.constant 0 : i32
    %c0_i32_1 = arith.constant 0 : i32
    %c0_i32_2 = arith.constant 0 : i32
    %c0_i32_3 = arith.constant 0 : i32
    return %c0_i32, %arg0, %c0_i32_0, %c0_i32_1, %c0_i32_2 : i32, i32, i32, i32, i32
  }
  func.func @transform_1(%arg0: i32) -> (i32, i32, i32) {
    %c0_i32 = arith.constant 0 : i32
    %c0_i32_0 = arith.constant 0 : i32
    %c0_i32_1 = arith.constant 0 : i32
    %c0_i32_2 = arith.constant 0 : i32
    return %c0_i32, %c0_i32_0, %c0_i32_1 : i32, i32, i32
  }
  func.func @transform_2(%arg0: i32) -> (i32, i32) {
    %c0_i32 = arith.constant 0 : i32
    %c0_i32_0 = arith.constant 0 : i32
    %c0_i32_1 = arith.constant 0 : i32
    return %c0_i32, %c0_i32_0 : i32, i32
  }
  func.func @transform_3(%arg0: i32) -> (i32, i32, i32, i32) {
    %c0_i32 = arith.constant 0 : i32
    %c0_i32_0 = arith.constant 0 : i32
    %c0_i32_1 = arith.constant 0 : i32
    %c0_i32_2 = arith.constant 0 : i32
    return %arg0, %c0_i32, %c0_i32_0, %c0_i32_1 : i32, i32, i32, i32
  }
}

module attributes {stable_mosaic.version = 11 : i64} {
  func.func @_fpn_level_kernel(%arg0: i32, %arg1: memref<1x2x2x32xbf16, #tpu.memory_space<vmem>>, %arg2: memref<32x16xbf16, #tpu.memory_space<vmem>>, %arg3: memref<1x16xf32, #tpu.memory_space<vmem>>, %arg4: memref<9x16x16xbf16, #tpu.memory_space<vmem>>, %arg5: memref<1x16xf32, #tpu.memory_space<vmem>>, %arg6: memref<1x2x2x16xbf16, #tpu.memory_space<vmem>>, %arg7: memref<1x2x2x16xf32, #tpu.memory_space<vmem>>, %arg8: memref<4x4x16xbf16, #tpu.memory_space<vmem>>) attributes {dimension_semantics = [#tpu.dimension_semantics<parallel>], iteration_bounds = array<i64: 2>, scalar_prefetch = 0 : i64, scratch_operands = 1 : i64, tpu.core_type = #tpu.core_type<tc>, window_params = [{transform_indices = @transform_0, window_bounds = array<i64: 1, 2, 2, 32>}, {pipeline_mode = #tpu.pipeline_mode<synchronous>, transform_indices = @transform_1, window_bounds = array<i64: 32, 16>}, {pipeline_mode = #tpu.pipeline_mode<synchronous>, transform_indices = @transform_2, window_bounds = array<i64: 1, 16>}, {pipeline_mode = #tpu.pipeline_mode<synchronous>, transform_indices = @transform_3, window_bounds = array<i64: 9, 16, 16>}, {pipeline_mode = #tpu.pipeline_mode<synchronous>, transform_indices = @transform_4, window_bounds = array<i64: 1, 16>}, {transform_indices = @transform_5, window_bounds = array<i64: 1, 2, 2, 16>}, {transform_indices = @transform_6, window_bounds = array<i64: 1, 2, 2, 16>}]} {
    %c0 = arith.constant 0 : index
    %c0_0 = arith.constant 0 : index
    %c0_1 = arith.constant 0 : index
    %c0_2 = arith.constant 0 : index
    %0 = vector.load %arg1[%c0, %c0_0, %c0_1, %c0_2] : memref<1x2x2x32xbf16, #tpu.memory_space<vmem>>, vector<1x2x2x32xbf16>
    %1 = vector.shape_cast %0 : vector<1x2x2x32xbf16> to vector<2x2x32xbf16>
    %2 = vector.shape_cast %1 : vector<2x2x32xbf16> to vector<4x32xbf16>
    %c0_3 = arith.constant 0 : index
    %c0_4 = arith.constant 0 : index
    %3 = vector.load %arg2[%c0_3, %c0_4] : memref<32x16xbf16, #tpu.memory_space<vmem>>, vector<32x16xbf16>
    %cst = arith.constant dense<0.000000e+00> : vector<4x16xf32>
    %4 = tpu.matmul %2, %3, %cst {dimension_numbers = #tpu.dot_dimension_numbers<[1], [0], [0], [1], [0, 0, 1, 1], [], []>} : vector<4x32xbf16>, vector<32x16xbf16>, vector<4x16xf32> -> vector<4x16xf32>
    %c0_5 = arith.constant 0 : index
    %c0_6 = arith.constant 0 : index
    %5 = vector.load %arg3[%c0_5, %c0_6] : memref<1x16xf32, #tpu.memory_space<vmem>>, vector<1x16xf32>
    %6 = vector.broadcast %5 : vector<1x16xf32> to vector<4x16xf32>
    %7 = arith.addf %4, %6 : vector<4x16xf32>
    %8 = vector.shape_cast %7 : vector<4x16xf32> to vector<2x2x16xf32>
    %9 = arith.truncf %8 : vector<2x2x16xf32> to vector<2x2x16xbf16>
    %c0_7 = arith.constant 0 : index
    %c0_8 = arith.constant 0 : index
    %c0_9 = arith.constant 0 : index
    %c0_10 = arith.constant 0 : index
    %10 = vector.load %arg6[%c0_7, %c0_8, %c0_9, %c0_10] : memref<1x2x2x16xbf16, #tpu.memory_space<vmem>>, vector<1x2x2x16xbf16>
    %11 = vector.shape_cast %10 : vector<1x2x2x16xbf16> to vector<2x2x16xbf16>
    %12 = vector.shape_cast %9 : vector<2x2x16xbf16> to vector<1x2x2x16xbf16>
    tpu.vector_store %arg6[%c0_7, %c0_8, %c0_9, %c0_10], %12 {strides = array<i32>} : memref<1x2x2x16xbf16, #tpu.memory_space<vmem>>, vector<1x2x2x16xbf16>,
    %cst_11 = arith.constant 0.000000e+00 : bf16
    %13 = vector.broadcast %cst_11 : bf16 to vector<1x4x16xbf16>
    %cst_12 = arith.constant 0.000000e+00 : bf16
    %14 = vector.broadcast %cst_12 : bf16 to vector<4x1x16xbf16>
    %c0_13 = arith.constant 0 : index
    %c0_14 = arith.constant 0 : index
    %c0_15 = arith.constant 0 : index
    %15 = vector.load %arg8[%c0_13, %c0_14, %c0_15] : memref<4x4x16xbf16, #tpu.memory_space<vmem>>, vector<1x4x16xbf16>
    tpu.vector_store %arg8[%c0_13, %c0_14, %c0_15], %13 {strides = array<i32>} : memref<4x4x16xbf16, #tpu.memory_space<vmem>>, vector<1x4x16xbf16>,
    %c3 = arith.constant 3 : index
    %c0_16 = arith.constant 0 : index
    %c0_17 = arith.constant 0 : index
    %16 = vector.load %arg8[%c3, %c0_16, %c0_17] : memref<4x4x16xbf16, #tpu.memory_space<vmem>>, vector<1x4x16xbf16>
    tpu.vector_store %arg8[%c3, %c0_16, %c0_17], %13 {strides = array<i32>} : memref<4x4x16xbf16, #tpu.memory_space<vmem>>, vector<1x4x16xbf16>,
    %c0_18 = arith.constant 0 : index
    %c0_19 = arith.constant 0 : index
    %c0_20 = arith.constant 0 : index
    %17 = vector.load %arg8[%c0_18, %c0_19, %c0_20] : memref<4x4x16xbf16, #tpu.memory_space<vmem>>, vector<4x1x16xbf16>
    tpu.vector_store %arg8[%c0_18, %c0_19, %c0_20], %14 {strides = array<i32>} : memref<4x4x16xbf16, #tpu.memory_space<vmem>>, vector<4x1x16xbf16>,
    %c0_21 = arith.constant 0 : index
    %c3_22 = arith.constant 3 : index
    %c0_23 = arith.constant 0 : index
    %18 = vector.load %arg8[%c0_21, %c3_22, %c0_23] : memref<4x4x16xbf16, #tpu.memory_space<vmem>>, vector<4x1x16xbf16>
    tpu.vector_store %arg8[%c0_21, %c3_22, %c0_23], %14 {strides = array<i32>} : memref<4x4x16xbf16, #tpu.memory_space<vmem>>, vector<4x1x16xbf16>,
    %c1 = arith.constant 1 : index
    %c1_24 = arith.constant 1 : index
    %c0_25 = arith.constant 0 : index
    %19 = vector.load %arg8[%c1, %c1_24, %c0_25] : memref<4x4x16xbf16, #tpu.memory_space<vmem>>, vector<2x2x16xbf16>
    tpu.vector_store %arg8[%c1, %c1_24, %c0_25], %9 {strides = array<i32>} : memref<4x4x16xbf16, #tpu.memory_space<vmem>>, vector<2x2x16xbf16>,
    %c0_26 = arith.constant 0 : index
    %c0_27 = arith.constant 0 : index
    %20 = vector.load %arg5[%c0_26, %c0_27] : memref<1x16xf32, #tpu.memory_space<vmem>>, vector<1x16xf32>
    %cst_28 = arith.constant 0.000000e+00 : f32
    %21 = vector.broadcast %cst_28 : f32 to vector<4x16xf32>
    %c0_29 = arith.constant 0 : index
    %c0_30 = arith.constant 0 : index
    %c0_31 = arith.constant 0 : index
    %22 = vector.load %arg8[%c0_29, %c0_30, %c0_31] : memref<4x4x16xbf16, #tpu.memory_space<vmem>>, vector<2x2x16xbf16>
    %23 = vector.shape_cast %22 : vector<2x2x16xbf16> to vector<4x16xbf16>
    %c0_32 = arith.constant 0 : index
    %c0_33 = arith.constant 0 : index
    %c0_34 = arith.constant 0 : index
    %24 = vector.load %arg4[%c0_32, %c0_33, %c0_34] : memref<9x16x16xbf16, #tpu.memory_space<vmem>>, vector<1x16x16xbf16>
    %25 = vector.shape_cast %24 : vector<1x16x16xbf16> to vector<16x16xbf16>
    %cst_35 = arith.constant dense<0.000000e+00> : vector<4x16xf32>
    %26 = tpu.matmul %23, %25, %cst_35 {dimension_numbers = #tpu.dot_dimension_numbers<[1], [0], [0], [1], [0, 0, 1, 1], [], []>} : vector<4x16xbf16>, vector<16x16xbf16>, vector<4x16xf32> -> vector<4x16xf32>
    %27 = arith.addf %21, %26 : vector<4x16xf32>
    %c0_36 = arith.constant 0 : index
    %c1_37 = arith.constant 1 : index
    %c0_38 = arith.constant 0 : index
    %28 = vector.load %arg8[%c0_36, %c1_37, %c0_38] : memref<4x4x16xbf16, #tpu.memory_space<vmem>>, vector<2x2x16xbf16>
    %29 = vector.shape_cast %28 : vector<2x2x16xbf16> to vector<4x16xbf16>
    %c1_39 = arith.constant 1 : index
    %c0_40 = arith.constant 0 : index
    %c0_41 = arith.constant 0 : index
    %30 = vector.load %arg4[%c1_39, %c0_40, %c0_41] : memref<9x16x16xbf16, #tpu.memory_space<vmem>>, vector<1x16x16xbf16>
    %31 = vector.shape_cast %30 : vector<1x16x16xbf16> to vector<16x16xbf16>
    %cst_42 = arith.constant dense<0.000000e+00> : vector<4x16xf32>
    %32 = tpu.matmul %29, %31, %cst_42 {dimension_numbers = #tpu.dot_dimension_numbers<[1], [0], [0], [1], [0, 0, 1, 1], [], []>} : vector<4x16xbf16>, vector<16x16xbf16>, vector<4x16xf32> -> vector<4x16xf32>
    %33 = arith.addf %27, %32 : vector<4x16xf32>
    %c0_43 = arith.constant 0 : index
    %c2 = arith.constant 2 : index
    %c0_44 = arith.constant 0 : index
    %34 = vector.load %arg8[%c0_43, %c2, %c0_44] : memref<4x4x16xbf16, #tpu.memory_space<vmem>>, vector<2x2x16xbf16>
    %35 = vector.shape_cast %34 : vector<2x2x16xbf16> to vector<4x16xbf16>
    %c2_45 = arith.constant 2 : index
    %c0_46 = arith.constant 0 : index
    %c0_47 = arith.constant 0 : index
    %36 = vector.load %arg4[%c2_45, %c0_46, %c0_47] : memref<9x16x16xbf16, #tpu.memory_space<vmem>>, vector<1x16x16xbf16>
    %37 = vector.shape_cast %36 : vector<1x16x16xbf16> to vector<16x16xbf16>
    %cst_48 = arith.constant dense<0.000000e+00> : vector<4x16xf32>
    %38 = tpu.matmul %35, %37, %cst_48 {dimension_numbers = #tpu.dot_dimension_numbers<[1], [0], [0], [1], [0, 0, 1, 1], [], []>} : vector<4x16xbf16>, vector<16x16xbf16>, vector<4x16xf32> -> vector<4x16xf32>
    %39 = arith.addf %33, %38 : vector<4x16xf32>
    %c1_49 = arith.constant 1 : index
    %c0_50 = arith.constant 0 : index
    %c0_51 = arith.constant 0 : index
    %40 = vector.load %arg8[%c1_49, %c0_50, %c0_51] : memref<4x4x16xbf16, #tpu.memory_space<vmem>>, vector<2x2x16xbf16>
    %41 = vector.shape_cast %40 : vector<2x2x16xbf16> to vector<4x16xbf16>
    %c3_52 = arith.constant 3 : index
    %c0_53 = arith.constant 0 : index
    %c0_54 = arith.constant 0 : index
    %42 = vector.load %arg4[%c3_52, %c0_53, %c0_54] : memref<9x16x16xbf16, #tpu.memory_space<vmem>>, vector<1x16x16xbf16>
    %43 = vector.shape_cast %42 : vector<1x16x16xbf16> to vector<16x16xbf16>
    %cst_55 = arith.constant dense<0.000000e+00> : vector<4x16xf32>
    %44 = tpu.matmul %41, %43, %cst_55 {dimension_numbers = #tpu.dot_dimension_numbers<[1], [0], [0], [1], [0, 0, 1, 1], [], []>} : vector<4x16xbf16>, vector<16x16xbf16>, vector<4x16xf32> -> vector<4x16xf32>
    %45 = arith.addf %39, %44 : vector<4x16xf32>
    %c1_56 = arith.constant 1 : index
    %c1_57 = arith.constant 1 : index
    %c0_58 = arith.constant 0 : index
    %46 = vector.load %arg8[%c1_56, %c1_57, %c0_58] : memref<4x4x16xbf16, #tpu.memory_space<vmem>>, vector<2x2x16xbf16>
    %47 = vector.shape_cast %46 : vector<2x2x16xbf16> to vector<4x16xbf16>
    %c4 = arith.constant 4 : index
    %c0_59 = arith.constant 0 : index
    %c0_60 = arith.constant 0 : index
    %48 = vector.load %arg4[%c4, %c0_59, %c0_60] : memref<9x16x16xbf16, #tpu.memory_space<vmem>>, vector<1x16x16xbf16>
    %49 = vector.shape_cast %48 : vector<1x16x16xbf16> to vector<16x16xbf16>
    %cst_61 = arith.constant dense<0.000000e+00> : vector<4x16xf32>
    %50 = tpu.matmul %47, %49, %cst_61 {dimension_numbers = #tpu.dot_dimension_numbers<[1], [0], [0], [1], [0, 0, 1, 1], [], []>} : vector<4x16xbf16>, vector<16x16xbf16>, vector<4x16xf32> -> vector<4x16xf32>
    %51 = arith.addf %45, %50 : vector<4x16xf32>
    %c1_62 = arith.constant 1 : index
    %c2_63 = arith.constant 2 : index
    %c0_64 = arith.constant 0 : index
    %52 = vector.load %arg8[%c1_62, %c2_63, %c0_64] : memref<4x4x16xbf16, #tpu.memory_space<vmem>>, vector<2x2x16xbf16>
    %53 = vector.shape_cast %52 : vector<2x2x16xbf16> to vector<4x16xbf16>
    %c5 = arith.constant 5 : index
    %c0_65 = arith.constant 0 : index
    %c0_66 = arith.constant 0 : index
    %54 = vector.load %arg4[%c5, %c0_65, %c0_66] : memref<9x16x16xbf16, #tpu.memory_space<vmem>>, vector<1x16x16xbf16>
    %55 = vector.shape_cast %54 : vector<1x16x16xbf16> to vector<16x16xbf16>
    %cst_67 = arith.constant dense<0.000000e+00> : vector<4x16xf32>
    %56 = tpu.matmul %53, %55, %cst_67 {dimension_numbers = #tpu.dot_dimension_numbers<[1], [0], [0], [1], [0, 0, 1, 1], [], []>} : vector<4x16xbf16>, vector<16x16xbf16>, vector<4x16xf32> -> vector<4x16xf32>
    %57 = arith.addf %51, %56 : vector<4x16xf32>
    %c2_68 = arith.constant 2 : index
    %c0_69 = arith.constant 0 : index
    %c0_70 = arith.constant 0 : index
    %58 = vector.load %arg8[%c2_68, %c0_69, %c0_70] : memref<4x4x16xbf16, #tpu.memory_space<vmem>>, vector<2x2x16xbf16>
    %59 = vector.shape_cast %58 : vector<2x2x16xbf16> to vector<4x16xbf16>
    %c6 = arith.constant 6 : index
    %c0_71 = arith.constant 0 : index
    %c0_72 = arith.constant 0 : index
    %60 = vector.load %arg4[%c6, %c0_71, %c0_72] : memref<9x16x16xbf16, #tpu.memory_space<vmem>>, vector<1x16x16xbf16>
    %61 = vector.shape_cast %60 : vector<1x16x16xbf16> to vector<16x16xbf16>
    %cst_73 = arith.constant dense<0.000000e+00> : vector<4x16xf32>
    %62 = tpu.matmul %59, %61, %cst_73 {dimension_numbers = #tpu.dot_dimension_numbers<[1], [0], [0], [1], [0, 0, 1, 1], [], []>} : vector<4x16xbf16>, vector<16x16xbf16>, vector<4x16xf32> -> vector<4x16xf32>
    %63 = arith.addf %57, %62 : vector<4x16xf32>
    %c2_74 = arith.constant 2 : index
    %c1_75 = arith.constant 1 : index
    %c0_76 = arith.constant 0 : index
    %64 = vector.load %arg8[%c2_74, %c1_75, %c0_76] : memref<4x4x16xbf16, #tpu.memory_space<vmem>>, vector<2x2x16xbf16>
    %65 = vector.shape_cast %64 : vector<2x2x16xbf16> to vector<4x16xbf16>
    %c7 = arith.constant 7 : index
    %c0_77 = arith.constant 0 : index
    %c0_78 = arith.constant 0 : index
    %66 = vector.load %arg4[%c7, %c0_77, %c0_78] : memref<9x16x16xbf16, #tpu.memory_space<vmem>>, vector<1x16x16xbf16>
    %67 = vector.shape_cast %66 : vector<1x16x16xbf16> to vector<16x16xbf16>
    %cst_79 = arith.constant dense<0.000000e+00> : vector<4x16xf32>
    %68 = tpu.matmul %65, %67, %cst_79 {dimension_numbers = #tpu.dot_dimension_numbers<[1], [0], [0], [1], [0, 0, 1, 1], [], []>} : vector<4x16xbf16>, vector<16x16xbf16>, vector<4x16xf32> -> vector<4x16xf32>
    %69 = arith.addf %63, %68 : vector<4x16xf32>
    %c2_80 = arith.constant 2 : index
    %c2_81 = arith.constant 2 : index
    %c0_82 = arith.constant 0 : index
    %70 = vector.load %arg8[%c2_80, %c2_81, %c0_82] : memref<4x4x16xbf16, #tpu.memory_space<vmem>>, vector<2x2x16xbf16>
    %71 = vector.shape_cast %70 : vector<2x2x16xbf16> to vector<4x16xbf16>
    %c8 = arith.constant 8 : index
    %c0_83 = arith.constant 0 : index
    %c0_84 = arith.constant 0 : index
    %72 = vector.load %arg4[%c8, %c0_83, %c0_84] : memref<9x16x16xbf16, #tpu.memory_space<vmem>>, vector<1x16x16xbf16>
    %73 = vector.shape_cast %72 : vector<1x16x16xbf16> to vector<16x16xbf16>
    %cst_85 = arith.constant dense<0.000000e+00> : vector<4x16xf32>
    %74 = tpu.matmul %71, %73, %cst_85 {dimension_numbers = #tpu.dot_dimension_numbers<[1], [0], [0], [1], [0, 0, 1, 1], [], []>} : vector<4x16xbf16>, vector<16x16xbf16>, vector<4x16xf32> -> vector<4x16xf32>
    %75 = arith.addf %69, %74 : vector<4x16xf32>
    %76 = vector.broadcast %20 : vector<1x16xf32> to vector<4x16xf32>
    %77 = arith.addf %75, %76 : vector<4x16xf32>
    %78 = vector.shape_cast %77 : vector<4x16xf32> to vector<2x2x16xf32>
    %c0_86 = arith.constant 0 : index
    %c0_87 = arith.constant 0 : index
    %c0_88 = arith.constant 0 : index
    %c0_89 = arith.constant 0 : index
    %79 = vector.load %arg7[%c0_86, %c0_87, %c0_88, %c0_89] : memref<1x2x2x16xf32, #tpu.memory_space<vmem>>, vector<1x2x2x16xf32>
    %80 = vector.shape_cast %79 : vector<1x2x2x16xf32> to vector<2x2x16xf32>
    %81 = vector.shape_cast %78 : vector<2x2x16xf32> to vector<1x2x2x16xf32>
    tpu.vector_store %arg7[%c0_86, %c0_87, %c0_88, %c0_89], %81 {strides = array<i32>} : memref<1x2x2x16xf32, #tpu.memory_space<vmem>>, vector<1x2x2x16xf32>,
    return
  }
  func.func @transform_0(%arg0: i32) -> (i32, i32, i32, i32) {
    %c0_i32 = arith.constant 0 : i32
    %c0_i32_0 = arith.constant 0 : i32
    %c0_i32_1 = arith.constant 0 : i32
    %c0_i32_2 = arith.constant 0 : i32
    return %arg0, %c0_i32, %c0_i32_0, %c0_i32_1 : i32, i32, i32, i32
  }
  func.func @transform_1(%arg0: i32) -> (i32, i32) {
    %c0_i32 = arith.constant 0 : i32
    %c0_i32_0 = arith.constant 0 : i32
    %c0_i32_1 = arith.constant 0 : i32
    return %c0_i32, %c0_i32_0 : i32, i32
  }
  func.func @transform_2(%arg0: i32) -> (i32, i32) {
    %c0_i32 = arith.constant 0 : i32
    %c0_i32_0 = arith.constant 0 : i32
    %c0_i32_1 = arith.constant 0 : i32
    return %c0_i32, %c0_i32_0 : i32, i32
  }
  func.func @transform_3(%arg0: i32) -> (i32, i32, i32) {
    %c0_i32 = arith.constant 0 : i32
    %c0_i32_0 = arith.constant 0 : i32
    %c0_i32_1 = arith.constant 0 : i32
    %c0_i32_2 = arith.constant 0 : i32
    return %c0_i32, %c0_i32_0, %c0_i32_1 : i32, i32, i32
  }
  func.func @transform_4(%arg0: i32) -> (i32, i32) {
    %c0_i32 = arith.constant 0 : i32
    %c0_i32_0 = arith.constant 0 : i32
    %c0_i32_1 = arith.constant 0 : i32
    return %c0_i32, %c0_i32_0 : i32, i32
  }
  func.func @transform_5(%arg0: i32) -> (i32, i32, i32, i32) {
    %c0_i32 = arith.constant 0 : i32
    %c0_i32_0 = arith.constant 0 : i32
    %c0_i32_1 = arith.constant 0 : i32
    %c0_i32_2 = arith.constant 0 : i32
    return %arg0, %c0_i32, %c0_i32_0, %c0_i32_1 : i32, i32, i32, i32
  }
  func.func @transform_6(%arg0: i32) -> (i32, i32, i32, i32) {
    %c0_i32 = arith.constant 0 : i32
    %c0_i32_0 = arith.constant 0 : i32
    %c0_i32_1 = arith.constant 0 : i32
    %c0_i32_2 = arith.constant 0 : i32
    return %arg0, %c0_i32, %c0_i32_0, %c0_i32_1 : i32, i32, i32, i32
  }
}

module attributes {stable_mosaic.version = 11 : i64} {
  func.func @_fpn_level_kernel(%arg0: i32, %arg1: memref<1x8x8x8xbf16, #tpu.memory_space<vmem>>, %arg2: memref<8x16xbf16, #tpu.memory_space<vmem>>, %arg3: memref<1x16xf32, #tpu.memory_space<vmem>>, %arg4: memref<1x4x4x16xbf16, #tpu.memory_space<vmem>>, %arg5: memref<9x16x16xbf16, #tpu.memory_space<vmem>>, %arg6: memref<1x16xf32, #tpu.memory_space<vmem>>, %arg7: memref<1x8x8x16xf32, #tpu.memory_space<vmem>>, %arg8: memref<10x10x16xbf16, #tpu.memory_space<vmem>>) attributes {dimension_semantics = [#tpu.dimension_semantics<parallel>], iteration_bounds = array<i64: 2>, scalar_prefetch = 0 : i64, scratch_operands = 1 : i64, tpu.core_type = #tpu.core_type<tc>, window_params = [{transform_indices = @transform_0, window_bounds = array<i64: 1, 8, 8, 8>}, {pipeline_mode = #tpu.pipeline_mode<synchronous>, transform_indices = @transform_1, window_bounds = array<i64: 8, 16>}, {pipeline_mode = #tpu.pipeline_mode<synchronous>, transform_indices = @transform_2, window_bounds = array<i64: 1, 16>}, {transform_indices = @transform_3, window_bounds = array<i64: 1, 4, 4, 16>}, {pipeline_mode = #tpu.pipeline_mode<synchronous>, transform_indices = @transform_4, window_bounds = array<i64: 9, 16, 16>}, {pipeline_mode = #tpu.pipeline_mode<synchronous>, transform_indices = @transform_5, window_bounds = array<i64: 1, 16>}, {transform_indices = @transform_6, window_bounds = array<i64: 1, 8, 8, 16>}]} {
    %c0 = arith.constant 0 : index
    %c0_0 = arith.constant 0 : index
    %c0_1 = arith.constant 0 : index
    %c0_2 = arith.constant 0 : index
    %0 = vector.load %arg1[%c0, %c0_0, %c0_1, %c0_2] : memref<1x8x8x8xbf16, #tpu.memory_space<vmem>>, vector<1x8x8x8xbf16>
    %1 = vector.shape_cast %0 : vector<1x8x8x8xbf16> to vector<8x8x8xbf16>
    %2 = vector.shape_cast %1 : vector<8x8x8xbf16> to vector<64x8xbf16>
    %c0_3 = arith.constant 0 : index
    %c0_4 = arith.constant 0 : index
    %3 = vector.load %arg2[%c0_3, %c0_4] : memref<8x16xbf16, #tpu.memory_space<vmem>>, vector<8x16xbf16>
    %cst = arith.constant dense<0.000000e+00> : vector<64x16xf32>
    %4 = tpu.matmul %2, %3, %cst {dimension_numbers = #tpu.dot_dimension_numbers<[1], [0], [0], [1], [0, 0, 1, 1], [], []>} : vector<64x8xbf16>, vector<8x16xbf16>, vector<64x16xf32> -> vector<64x16xf32>
    %c0_5 = arith.constant 0 : index
    %c0_6 = arith.constant 0 : index
    %5 = vector.load %arg3[%c0_5, %c0_6] : memref<1x16xf32, #tpu.memory_space<vmem>>, vector<1x16xf32>
    %6 = vector.broadcast %5 : vector<1x16xf32> to vector<64x16xf32>
    %7 = arith.addf %4, %6 : vector<64x16xf32>
    %8 = vector.shape_cast %7 : vector<64x16xf32> to vector<8x8x16xf32>
    %c0_7 = arith.constant 0 : index
    %c0_8 = arith.constant 0 : index
    %c0_9 = arith.constant 0 : index
    %c0_10 = arith.constant 0 : index
    %9 = vector.load %arg4[%c0_7, %c0_8, %c0_9, %c0_10] : memref<1x4x4x16xbf16, #tpu.memory_space<vmem>>, vector<1x4x4x16xbf16>
    %10 = vector.shape_cast %9 : vector<1x4x4x16xbf16> to vector<4x4x16xbf16>
    %11 = arith.extf %10 : vector<4x4x16xbf16> to vector<4x4x16xf32>
    %12 = vector.shape_cast %11 : vector<4x4x16xf32> to vector<4x4x1x16xf32>
    %13 = vector.shape_cast %12 : vector<4x4x1x16xf32> to vector<4x4x1x16xf32>
    %14 = vector.broadcast %13 : vector<4x4x1x16xf32> to vector<4x4x2x16xf32>
    %15 = vector.shape_cast %14 : vector<4x4x2x16xf32> to vector<4x8x16xf32>
    %16 = vector.shape_cast %15 : vector<4x8x16xf32> to vector<4x1x8x16xf32>
    %17 = vector.shape_cast %16 : vector<4x1x8x16xf32> to vector<4x1x8x16xf32>
    %18 = vector.broadcast %17 : vector<4x1x8x16xf32> to vector<4x2x8x16xf32>
    %19 = vector.shape_cast %18 : vector<4x2x8x16xf32> to vector<8x8x16xf32>
    %20 = arith.addf %8, %19 : vector<8x8x16xf32>
    %21 = arith.truncf %20 : vector<8x8x16xf32> to vector<8x8x16xbf16>
    %cst_11 = arith.constant 0.000000e+00 : bf16
    %22 = vector.broadcast %cst_11 : bf16 to vector<1x10x16xbf16>
    %cst_12 = arith.constant 0.000000e+00 : bf16
    %23 = vector.broadcast %cst_12 : bf16 to vector<10x1x16xbf16>
    %c0_13 = arith.constant 0 : index
    %c0_14 = arith.constant 0 : index
    %c0_15 = arith.constant 0 : index
    %24 = vector.load %arg8[%c0_13, %c0_14, %c0_15] : memref<10x10x16xbf16, #tpu.memory_space<vmem>>, vector<1x10x16xbf16>
    tpu.vector_store %arg8[%c0_13, %c0_14, %c0_15], %22 {strides = array<i32>} : memref<10x10x16xbf16, #tpu.memory_space<vmem>>, vector<1x10x16xbf16>,
    %c9 = arith.constant 9 : index
    %c0_16 = arith.constant 0 : index
    %c0_17 = arith.constant 0 : index
    %25 = vector.load %arg8[%c9, %c0_16, %c0_17] : memref<10x10x16xbf16, #tpu.memory_space<vmem>>, vector<1x10x16xbf16>
    tpu.vector_store %arg8[%c9, %c0_16, %c0_17], %22 {strides = array<i32>} : memref<10x10x16xbf16, #tpu.memory_space<vmem>>, vector<1x10x16xbf16>,
    %c0_18 = arith.constant 0 : index
    %c0_19 = arith.constant 0 : index
    %c0_20 = arith.constant 0 : index
    %26 = vector.load %arg8[%c0_18, %c0_19, %c0_20] : memref<10x10x16xbf16, #tpu.memory_space<vmem>>, vector<10x1x16xbf16>
    tpu.vector_store %arg8[%c0_18, %c0_19, %c0_20], %23 {strides = array<i32>} : memref<10x10x16xbf16, #tpu.memory_space<vmem>>, vector<10x1x16xbf16>,
    %c0_21 = arith.constant 0 : index
    %c9_22 = arith.constant 9 : index
    %c0_23 = arith.constant 0 : index
    %27 = vector.load %arg8[%c0_21, %c9_22, %c0_23] : memref<10x10x16xbf16, #tpu.memory_space<vmem>>, vector<10x1x16xbf16>
    tpu.vector_store %arg8[%c0_21, %c9_22, %c0_23], %23 {strides = array<i32>} : memref<10x10x16xbf16, #tpu.memory_space<vmem>>, vector<10x1x16xbf16>,
    %c1 = arith.constant 1 : index
    %c1_24 = arith.constant 1 : index
    %c0_25 = arith.constant 0 : index
    %28 = vector.load %arg8[%c1, %c1_24, %c0_25] : memref<10x10x16xbf16, #tpu.memory_space<vmem>>, vector<8x8x16xbf16>
    tpu.vector_store %arg8[%c1, %c1_24, %c0_25], %21 {strides = array<i32>} : memref<10x10x16xbf16, #tpu.memory_space<vmem>>, vector<8x8x16xbf16>,
    %c0_26 = arith.constant 0 : index
    %c0_27 = arith.constant 0 : index
    %29 = vector.load %arg6[%c0_26, %c0_27] : memref<1x16xf32, #tpu.memory_space<vmem>>, vector<1x16xf32>
    %cst_28 = arith.constant 0.000000e+00 : f32
    %30 = vector.broadcast %cst_28 : f32 to vector<64x16xf32>
    %c0_29 = arith.constant 0 : index
    %c0_30 = arith.constant 0 : index
    %c0_31 = arith.constant 0 : index
    %31 = vector.load %arg8[%c0_29, %c0_30, %c0_31] : memref<10x10x16xbf16, #tpu.memory_space<vmem>>, vector<8x8x16xbf16>
    %32 = vector.shape_cast %31 : vector<8x8x16xbf16> to vector<64x16xbf16>
    %c0_32 = arith.constant 0 : index
    %c0_33 = arith.constant 0 : index
    %c0_34 = arith.constant 0 : index
    %33 = vector.load %arg5[%c0_32, %c0_33, %c0_34] : memref<9x16x16xbf16, #tpu.memory_space<vmem>>, vector<1x16x16xbf16>
    %34 = vector.shape_cast %33 : vector<1x16x16xbf16> to vector<16x16xbf16>
    %cst_35 = arith.constant dense<0.000000e+00> : vector<64x16xf32>
    %35 = tpu.matmul %32, %34, %cst_35 {dimension_numbers = #tpu.dot_dimension_numbers<[1], [0], [0], [1], [0, 0, 1, 1], [], []>} : vector<64x16xbf16>, vector<16x16xbf16>, vector<64x16xf32> -> vector<64x16xf32>
    %36 = arith.addf %30, %35 : vector<64x16xf32>
    %c0_36 = arith.constant 0 : index
    %c1_37 = arith.constant 1 : index
    %c0_38 = arith.constant 0 : index
    %37 = vector.load %arg8[%c0_36, %c1_37, %c0_38] : memref<10x10x16xbf16, #tpu.memory_space<vmem>>, vector<8x8x16xbf16>
    %38 = vector.shape_cast %37 : vector<8x8x16xbf16> to vector<64x16xbf16>
    %c1_39 = arith.constant 1 : index
    %c0_40 = arith.constant 0 : index
    %c0_41 = arith.constant 0 : index
    %39 = vector.load %arg5[%c1_39, %c0_40, %c0_41] : memref<9x16x16xbf16, #tpu.memory_space<vmem>>, vector<1x16x16xbf16>
    %40 = vector.shape_cast %39 : vector<1x16x16xbf16> to vector<16x16xbf16>
    %cst_42 = arith.constant dense<0.000000e+00> : vector<64x16xf32>
    %41 = tpu.matmul %38, %40, %cst_42 {dimension_numbers = #tpu.dot_dimension_numbers<[1], [0], [0], [1], [0, 0, 1, 1], [], []>} : vector<64x16xbf16>, vector<16x16xbf16>, vector<64x16xf32> -> vector<64x16xf32>
    %42 = arith.addf %36, %41 : vector<64x16xf32>
    %c0_43 = arith.constant 0 : index
    %c2 = arith.constant 2 : index
    %c0_44 = arith.constant 0 : index
    %43 = vector.load %arg8[%c0_43, %c2, %c0_44] : memref<10x10x16xbf16, #tpu.memory_space<vmem>>, vector<8x8x16xbf16>
    %44 = vector.shape_cast %43 : vector<8x8x16xbf16> to vector<64x16xbf16>
    %c2_45 = arith.constant 2 : index
    %c0_46 = arith.constant 0 : index
    %c0_47 = arith.constant 0 : index
    %45 = vector.load %arg5[%c2_45, %c0_46, %c0_47] : memref<9x16x16xbf16, #tpu.memory_space<vmem>>, vector<1x16x16xbf16>
    %46 = vector.shape_cast %45 : vector<1x16x16xbf16> to vector<16x16xbf16>
    %cst_48 = arith.constant dense<0.000000e+00> : vector<64x16xf32>
    %47 = tpu.matmul %44, %46, %cst_48 {dimension_numbers = #tpu.dot_dimension_numbers<[1], [0], [0], [1], [0, 0, 1, 1], [], []>} : vector<64x16xbf16>, vector<16x16xbf16>, vector<64x16xf32> -> vector<64x16xf32>
    %48 = arith.addf %42, %47 : vector<64x16xf32>
    %c1_49 = arith.constant 1 : index
    %c0_50 = arith.constant 0 : index
    %c0_51 = arith.constant 0 : index
    %49 = vector.load %arg8[%c1_49, %c0_50, %c0_51] : memref<10x10x16xbf16, #tpu.memory_space<vmem>>, vector<8x8x16xbf16>
    %50 = vector.shape_cast %49 : vector<8x8x16xbf16> to vector<64x16xbf16>
    %c3 = arith.constant 3 : index
    %c0_52 = arith.constant 0 : index
    %c0_53 = arith.constant 0 : index
    %51 = vector.load %arg5[%c3, %c0_52, %c0_53] : memref<9x16x16xbf16, #tpu.memory_space<vmem>>, vector<1x16x16xbf16>
    %52 = vector.shape_cast %51 : vector<1x16x16xbf16> to vector<16x16xbf16>
    %cst_54 = arith.constant dense<0.000000e+00> : vector<64x16xf32>
    %53 = tpu.matmul %50, %52, %cst_54 {dimension_numbers = #tpu.dot_dimension_numbers<[1], [0], [0], [1], [0, 0, 1, 1], [], []>} : vector<64x16xbf16>, vector<16x16xbf16>, vector<64x16xf32> -> vector<64x16xf32>
    %54 = arith.addf %48, %53 : vector<64x16xf32>
    %c1_55 = arith.constant 1 : index
    %c1_56 = arith.constant 1 : index
    %c0_57 = arith.constant 0 : index
    %55 = vector.load %arg8[%c1_55, %c1_56, %c0_57] : memref<10x10x16xbf16, #tpu.memory_space<vmem>>, vector<8x8x16xbf16>
    %56 = vector.shape_cast %55 : vector<8x8x16xbf16> to vector<64x16xbf16>
    %c4 = arith.constant 4 : index
    %c0_58 = arith.constant 0 : index
    %c0_59 = arith.constant 0 : index
    %57 = vector.load %arg5[%c4, %c0_58, %c0_59] : memref<9x16x16xbf16, #tpu.memory_space<vmem>>, vector<1x16x16xbf16>
    %58 = vector.shape_cast %57 : vector<1x16x16xbf16> to vector<16x16xbf16>
    %cst_60 = arith.constant dense<0.000000e+00> : vector<64x16xf32>
    %59 = tpu.matmul %56, %58, %cst_60 {dimension_numbers = #tpu.dot_dimension_numbers<[1], [0], [0], [1], [0, 0, 1, 1], [], []>} : vector<64x16xbf16>, vector<16x16xbf16>, vector<64x16xf32> -> vector<64x16xf32>
    %60 = arith.addf %54, %59 : vector<64x16xf32>
    %c1_61 = arith.constant 1 : index
    %c2_62 = arith.constant 2 : index
    %c0_63 = arith.constant 0 : index
    %61 = vector.load %arg8[%c1_61, %c2_62, %c0_63] : memref<10x10x16xbf16, #tpu.memory_space<vmem>>, vector<8x8x16xbf16>
    %62 = vector.shape_cast %61 : vector<8x8x16xbf16> to vector<64x16xbf16>
    %c5 = arith.constant 5 : index
    %c0_64 = arith.constant 0 : index
    %c0_65 = arith.constant 0 : index
    %63 = vector.load %arg5[%c5, %c0_64, %c0_65] : memref<9x16x16xbf16, #tpu.memory_space<vmem>>, vector<1x16x16xbf16>
    %64 = vector.shape_cast %63 : vector<1x16x16xbf16> to vector<16x16xbf16>
    %cst_66 = arith.constant dense<0.000000e+00> : vector<64x16xf32>
    %65 = tpu.matmul %62, %64, %cst_66 {dimension_numbers = #tpu.dot_dimension_numbers<[1], [0], [0], [1], [0, 0, 1, 1], [], []>} : vector<64x16xbf16>, vector<16x16xbf16>, vector<64x16xf32> -> vector<64x16xf32>
    %66 = arith.addf %60, %65 : vector<64x16xf32>
    %c2_67 = arith.constant 2 : index
    %c0_68 = arith.constant 0 : index
    %c0_69 = arith.constant 0 : index
    %67 = vector.load %arg8[%c2_67, %c0_68, %c0_69] : memref<10x10x16xbf16, #tpu.memory_space<vmem>>, vector<8x8x16xbf16>
    %68 = vector.shape_cast %67 : vector<8x8x16xbf16> to vector<64x16xbf16>
    %c6 = arith.constant 6 : index
    %c0_70 = arith.constant 0 : index
    %c0_71 = arith.constant 0 : index
    %69 = vector.load %arg5[%c6, %c0_70, %c0_71] : memref<9x16x16xbf16, #tpu.memory_space<vmem>>, vector<1x16x16xbf16>
    %70 = vector.shape_cast %69 : vector<1x16x16xbf16> to vector<16x16xbf16>
    %cst_72 = arith.constant dense<0.000000e+00> : vector<64x16xf32>
    %71 = tpu.matmul %68, %70, %cst_72 {dimension_numbers = #tpu.dot_dimension_numbers<[1], [0], [0], [1], [0, 0, 1, 1], [], []>} : vector<64x16xbf16>, vector<16x16xbf16>, vector<64x16xf32> -> vector<64x16xf32>
    %72 = arith.addf %66, %71 : vector<64x16xf32>
    %c2_73 = arith.constant 2 : index
    %c1_74 = arith.constant 1 : index
    %c0_75 = arith.constant 0 : index
    %73 = vector.load %arg8[%c2_73, %c1_74, %c0_75] : memref<10x10x16xbf16, #tpu.memory_space<vmem>>, vector<8x8x16xbf16>
    %74 = vector.shape_cast %73 : vector<8x8x16xbf16> to vector<64x16xbf16>
    %c7 = arith.constant 7 : index
    %c0_76 = arith.constant 0 : index
    %c0_77 = arith.constant 0 : index
    %75 = vector.load %arg5[%c7, %c0_76, %c0_77] : memref<9x16x16xbf16, #tpu.memory_space<vmem>>, vector<1x16x16xbf16>
    %76 = vector.shape_cast %75 : vector<1x16x16xbf16> to vector<16x16xbf16>
    %cst_78 = arith.constant dense<0.000000e+00> : vector<64x16xf32>
    %77 = tpu.matmul %74, %76, %cst_78 {dimension_numbers = #tpu.dot_dimension_numbers<[1], [0], [0], [1], [0, 0, 1, 1], [], []>} : vector<64x16xbf16>, vector<16x16xbf16>, vector<64x16xf32> -> vector<64x16xf32>
    %78 = arith.addf %72, %77 : vector<64x16xf32>
    %c2_79 = arith.constant 2 : index
    %c2_80 = arith.constant 2 : index
    %c0_81 = arith.constant 0 : index
    %79 = vector.load %arg8[%c2_79, %c2_80, %c0_81] : memref<10x10x16xbf16, #tpu.memory_space<vmem>>, vector<8x8x16xbf16>
    %80 = vector.shape_cast %79 : vector<8x8x16xbf16> to vector<64x16xbf16>
    %c8 = arith.constant 8 : index
    %c0_82 = arith.constant 0 : index
    %c0_83 = arith.constant 0 : index
    %81 = vector.load %arg5[%c8, %c0_82, %c0_83] : memref<9x16x16xbf16, #tpu.memory_space<vmem>>, vector<1x16x16xbf16>
    %82 = vector.shape_cast %81 : vector<1x16x16xbf16> to vector<16x16xbf16>
    %cst_84 = arith.constant dense<0.000000e+00> : vector<64x16xf32>
    %83 = tpu.matmul %80, %82, %cst_84 {dimension_numbers = #tpu.dot_dimension_numbers<[1], [0], [0], [1], [0, 0, 1, 1], [], []>} : vector<64x16xbf16>, vector<16x16xbf16>, vector<64x16xf32> -> vector<64x16xf32>
    %84 = arith.addf %78, %83 : vector<64x16xf32>
    %85 = vector.broadcast %29 : vector<1x16xf32> to vector<64x16xf32>
    %86 = arith.addf %84, %85 : vector<64x16xf32>
    %87 = vector.shape_cast %86 : vector<64x16xf32> to vector<8x8x16xf32>
    %c0_85 = arith.constant 0 : index
    %c0_86 = arith.constant 0 : index
    %c0_87 = arith.constant 0 : index
    %c0_88 = arith.constant 0 : index
    %88 = vector.load %arg7[%c0_85, %c0_86, %c0_87, %c0_88] : memref<1x8x8x16xf32, #tpu.memory_space<vmem>>, vector<1x8x8x16xf32>
    %89 = vector.shape_cast %88 : vector<1x8x8x16xf32> to vector<8x8x16xf32>
    %90 = vector.shape_cast %87 : vector<8x8x16xf32> to vector<1x8x8x16xf32>
    tpu.vector_store %arg7[%c0_85, %c0_86, %c0_87, %c0_88], %90 {strides = array<i32>} : memref<1x8x8x16xf32, #tpu.memory_space<vmem>>, vector<1x8x8x16xf32>,
    return
  }
  func.func @transform_0(%arg0: i32) -> (i32, i32, i32, i32) {
    %c0_i32 = arith.constant 0 : i32
    %c0_i32_0 = arith.constant 0 : i32
    %c0_i32_1 = arith.constant 0 : i32
    %c0_i32_2 = arith.constant 0 : i32
    return %arg0, %c0_i32, %c0_i32_0, %c0_i32_1 : i32, i32, i32, i32
  }
  func.func @transform_1(%arg0: i32) -> (i32, i32) {
    %c0_i32 = arith.constant 0 : i32
    %c0_i32_0 = arith.constant 0 : i32
    %c0_i32_1 = arith.constant 0 : i32
    return %c0_i32, %c0_i32_0 : i32, i32
  }
  func.func @transform_2(%arg0: i32) -> (i32, i32) {
    %c0_i32 = arith.constant 0 : i32
    %c0_i32_0 = arith.constant 0 : i32
    %c0_i32_1 = arith.constant 0 : i32
    return %c0_i32, %c0_i32_0 : i32, i32
  }
  func.func @transform_3(%arg0: i32) -> (i32, i32, i32, i32) {
    %c0_i32 = arith.constant 0 : i32
    %c0_i32_0 = arith.constant 0 : i32
    %c0_i32_1 = arith.constant 0 : i32
    %c0_i32_2 = arith.constant 0 : i32
    return %arg0, %c0_i32, %c0_i32_0, %c0_i32_1 : i32, i32, i32, i32
  }
  func.func @transform_4(%arg0: i32) -> (i32, i32, i32) {
    %c0_i32 = arith.constant 0 : i32
    %c0_i32_0 = arith.constant 0 : i32
    %c0_i32_1 = arith.constant 0 : i32
    %c0_i32_2 = arith.constant 0 : i32
    return %c0_i32, %c0_i32_0, %c0_i32_1 : i32, i32, i32
  }
  func.func @transform_5(%arg0: i32) -> (i32, i32) {
    %c0_i32 = arith.constant 0 : i32
    %c0_i32_0 = arith.constant 0 : i32
    %c0_i32_1 = arith.constant 0 : i32
    return %c0_i32, %c0_i32_0 : i32, i32
  }
  func.func @transform_6(%arg0: i32) -> (i32, i32, i32, i32) {
    %c0_i32 = arith.constant 0 : i32
    %c0_i32_0 = arith.constant 0 : i32
    %c0_i32_1 = arith.constant 0 : i32
    %c0_i32_2 = arith.constant 0 : i32
    return %arg0, %c0_i32, %c0_i32_0, %c0_i32_1 : i32, i32, i32, i32
  }
}

module attributes {stable_mosaic.version = 11 : i64} {
  func.func @_fpn_level_kernel(%arg0: i32, %arg1: memref<1x4x4x16xbf16, #tpu.memory_space<vmem>>, %arg2: memref<16x16xbf16, #tpu.memory_space<vmem>>, %arg3: memref<1x16xf32, #tpu.memory_space<vmem>>, %arg4: memref<1x2x2x16xbf16, #tpu.memory_space<vmem>>, %arg5: memref<9x16x16xbf16, #tpu.memory_space<vmem>>, %arg6: memref<1x16xf32, #tpu.memory_space<vmem>>, %arg7: memref<1x4x4x16xbf16, #tpu.memory_space<vmem>>, %arg8: memref<1x4x4x16xf32, #tpu.memory_space<vmem>>, %arg9: memref<6x6x16xbf16, #tpu.memory_space<vmem>>) attributes {dimension_semantics = [#tpu.dimension_semantics<parallel>], iteration_bounds = array<i64: 2>, scalar_prefetch = 0 : i64, scratch_operands = 1 : i64, tpu.core_type = #tpu.core_type<tc>, window_params = [{transform_indices = @transform_0, window_bounds = array<i64: 1, 4, 4, 16>}, {pipeline_mode = #tpu.pipeline_mode<synchronous>, transform_indices = @transform_1, window_bounds = array<i64: 16, 16>}, {pipeline_mode = #tpu.pipeline_mode<synchronous>, transform_indices = @transform_2, window_bounds = array<i64: 1, 16>}, {transform_indices = @transform_3, window_bounds = array<i64: 1, 2, 2, 16>}, {pipeline_mode = #tpu.pipeline_mode<synchronous>, transform_indices = @transform_4, window_bounds = array<i64: 9, 16, 16>}, {pipeline_mode = #tpu.pipeline_mode<synchronous>, transform_indices = @transform_5, window_bounds = array<i64: 1, 16>}, {transform_indices = @transform_6, window_bounds = array<i64: 1, 4, 4, 16>}, {transform_indices = @transform_7, window_bounds = array<i64: 1, 4, 4, 16>}]} {
    %c0 = arith.constant 0 : index
    %c0_0 = arith.constant 0 : index
    %c0_1 = arith.constant 0 : index
    %c0_2 = arith.constant 0 : index
    %0 = vector.load %arg1[%c0, %c0_0, %c0_1, %c0_2] : memref<1x4x4x16xbf16, #tpu.memory_space<vmem>>, vector<1x4x4x16xbf16>
    %1 = vector.shape_cast %0 : vector<1x4x4x16xbf16> to vector<4x4x16xbf16>
    %2 = vector.shape_cast %1 : vector<4x4x16xbf16> to vector<16x16xbf16>
    %c0_3 = arith.constant 0 : index
    %c0_4 = arith.constant 0 : index
    %3 = vector.load %arg2[%c0_3, %c0_4] : memref<16x16xbf16, #tpu.memory_space<vmem>>, vector<16x16xbf16>
    %cst = arith.constant dense<0.000000e+00> : vector<16x16xf32>
    %4 = tpu.matmul %2, %3, %cst {dimension_numbers = #tpu.dot_dimension_numbers<[1], [0], [0], [1], [0, 0, 1, 1], [], []>} : vector<16x16xbf16>, vector<16x16xbf16>, vector<16x16xf32> -> vector<16x16xf32>
    %c0_5 = arith.constant 0 : index
    %c0_6 = arith.constant 0 : index
    %5 = vector.load %arg3[%c0_5, %c0_6] : memref<1x16xf32, #tpu.memory_space<vmem>>, vector<1x16xf32>
    %6 = vector.broadcast %5 : vector<1x16xf32> to vector<16x16xf32>
    %7 = arith.addf %4, %6 : vector<16x16xf32>
    %8 = vector.shape_cast %7 : vector<16x16xf32> to vector<4x4x16xf32>
    %c0_7 = arith.constant 0 : index
    %c0_8 = arith.constant 0 : index
    %c0_9 = arith.constant 0 : index
    %c0_10 = arith.constant 0 : index
    %9 = vector.load %arg4[%c0_7, %c0_8, %c0_9, %c0_10] : memref<1x2x2x16xbf16, #tpu.memory_space<vmem>>, vector<1x2x2x16xbf16>
    %10 = vector.shape_cast %9 : vector<1x2x2x16xbf16> to vector<2x2x16xbf16>
    %11 = arith.extf %10 : vector<2x2x16xbf16> to vector<2x2x16xf32>
    %12 = vector.shape_cast %11 : vector<2x2x16xf32> to vector<2x2x1x16xf32>
    %13 = vector.shape_cast %12 : vector<2x2x1x16xf32> to vector<2x2x1x16xf32>
    %14 = vector.broadcast %13 : vector<2x2x1x16xf32> to vector<2x2x2x16xf32>
    %15 = vector.shape_cast %14 : vector<2x2x2x16xf32> to vector<2x4x16xf32>
    %16 = vector.shape_cast %15 : vector<2x4x16xf32> to vector<2x1x4x16xf32>
    %17 = vector.shape_cast %16 : vector<2x1x4x16xf32> to vector<2x1x4x16xf32>
    %18 = vector.broadcast %17 : vector<2x1x4x16xf32> to vector<2x2x4x16xf32>
    %19 = vector.shape_cast %18 : vector<2x2x4x16xf32> to vector<4x4x16xf32>
    %20 = arith.addf %8, %19 : vector<4x4x16xf32>
    %21 = arith.truncf %20 : vector<4x4x16xf32> to vector<4x4x16xbf16>
    %c0_11 = arith.constant 0 : index
    %c0_12 = arith.constant 0 : index
    %c0_13 = arith.constant 0 : index
    %c0_14 = arith.constant 0 : index
    %22 = vector.load %arg7[%c0_11, %c0_12, %c0_13, %c0_14] : memref<1x4x4x16xbf16, #tpu.memory_space<vmem>>, vector<1x4x4x16xbf16>
    %23 = vector.shape_cast %22 : vector<1x4x4x16xbf16> to vector<4x4x16xbf16>
    %24 = vector.shape_cast %21 : vector<4x4x16xbf16> to vector<1x4x4x16xbf16>
    tpu.vector_store %arg7[%c0_11, %c0_12, %c0_13, %c0_14], %24 {strides = array<i32>} : memref<1x4x4x16xbf16, #tpu.memory_space<vmem>>, vector<1x4x4x16xbf16>,
    %cst_15 = arith.constant 0.000000e+00 : bf16
    %25 = vector.broadcast %cst_15 : bf16 to vector<1x6x16xbf16>
    %cst_16 = arith.constant 0.000000e+00 : bf16
    %26 = vector.broadcast %cst_16 : bf16 to vector<6x1x16xbf16>
    %c0_17 = arith.constant 0 : index
    %c0_18 = arith.constant 0 : index
    %c0_19 = arith.constant 0 : index
    %27 = vector.load %arg9[%c0_17, %c0_18, %c0_19] : memref<6x6x16xbf16, #tpu.memory_space<vmem>>, vector<1x6x16xbf16>
    tpu.vector_store %arg9[%c0_17, %c0_18, %c0_19], %25 {strides = array<i32>} : memref<6x6x16xbf16, #tpu.memory_space<vmem>>, vector<1x6x16xbf16>,
    %c5 = arith.constant 5 : index
    %c0_20 = arith.constant 0 : index
    %c0_21 = arith.constant 0 : index
    %28 = vector.load %arg9[%c5, %c0_20, %c0_21] : memref<6x6x16xbf16, #tpu.memory_space<vmem>>, vector<1x6x16xbf16>
    tpu.vector_store %arg9[%c5, %c0_20, %c0_21], %25 {strides = array<i32>} : memref<6x6x16xbf16, #tpu.memory_space<vmem>>, vector<1x6x16xbf16>,
    %c0_22 = arith.constant 0 : index
    %c0_23 = arith.constant 0 : index
    %c0_24 = arith.constant 0 : index
    %29 = vector.load %arg9[%c0_22, %c0_23, %c0_24] : memref<6x6x16xbf16, #tpu.memory_space<vmem>>, vector<6x1x16xbf16>
    tpu.vector_store %arg9[%c0_22, %c0_23, %c0_24], %26 {strides = array<i32>} : memref<6x6x16xbf16, #tpu.memory_space<vmem>>, vector<6x1x16xbf16>,
    %c0_25 = arith.constant 0 : index
    %c5_26 = arith.constant 5 : index
    %c0_27 = arith.constant 0 : index
    %30 = vector.load %arg9[%c0_25, %c5_26, %c0_27] : memref<6x6x16xbf16, #tpu.memory_space<vmem>>, vector<6x1x16xbf16>
    tpu.vector_store %arg9[%c0_25, %c5_26, %c0_27], %26 {strides = array<i32>} : memref<6x6x16xbf16, #tpu.memory_space<vmem>>, vector<6x1x16xbf16>,
    %c1 = arith.constant 1 : index
    %c1_28 = arith.constant 1 : index
    %c0_29 = arith.constant 0 : index
    %31 = vector.load %arg9[%c1, %c1_28, %c0_29] : memref<6x6x16xbf16, #tpu.memory_space<vmem>>, vector<4x4x16xbf16>
    tpu.vector_store %arg9[%c1, %c1_28, %c0_29], %21 {strides = array<i32>} : memref<6x6x16xbf16, #tpu.memory_space<vmem>>, vector<4x4x16xbf16>,
    %c0_30 = arith.constant 0 : index
    %c0_31 = arith.constant 0 : index
    %32 = vector.load %arg6[%c0_30, %c0_31] : memref<1x16xf32, #tpu.memory_space<vmem>>, vector<1x16xf32>
    %cst_32 = arith.constant 0.000000e+00 : f32
    %33 = vector.broadcast %cst_32 : f32 to vector<16x16xf32>
    %c0_33 = arith.constant 0 : index
    %c0_34 = arith.constant 0 : index
    %c0_35 = arith.constant 0 : index
    %34 = vector.load %arg9[%c0_33, %c0_34, %c0_35] : memref<6x6x16xbf16, #tpu.memory_space<vmem>>, vector<4x4x16xbf16>
    %35 = vector.shape_cast %34 : vector<4x4x16xbf16> to vector<16x16xbf16>
    %c0_36 = arith.constant 0 : index
    %c0_37 = arith.constant 0 : index
    %c0_38 = arith.constant 0 : index
    %36 = vector.load %arg5[%c0_36, %c0_37, %c0_38] : memref<9x16x16xbf16, #tpu.memory_space<vmem>>, vector<1x16x16xbf16>
    %37 = vector.shape_cast %36 : vector<1x16x16xbf16> to vector<16x16xbf16>
    %cst_39 = arith.constant dense<0.000000e+00> : vector<16x16xf32>
    %38 = tpu.matmul %35, %37, %cst_39 {dimension_numbers = #tpu.dot_dimension_numbers<[1], [0], [0], [1], [0, 0, 1, 1], [], []>} : vector<16x16xbf16>, vector<16x16xbf16>, vector<16x16xf32> -> vector<16x16xf32>
    %39 = arith.addf %33, %38 : vector<16x16xf32>
    %c0_40 = arith.constant 0 : index
    %c1_41 = arith.constant 1 : index
    %c0_42 = arith.constant 0 : index
    %40 = vector.load %arg9[%c0_40, %c1_41, %c0_42] : memref<6x6x16xbf16, #tpu.memory_space<vmem>>, vector<4x4x16xbf16>
    %41 = vector.shape_cast %40 : vector<4x4x16xbf16> to vector<16x16xbf16>
    %c1_43 = arith.constant 1 : index
    %c0_44 = arith.constant 0 : index
    %c0_45 = arith.constant 0 : index
    %42 = vector.load %arg5[%c1_43, %c0_44, %c0_45] : memref<9x16x16xbf16, #tpu.memory_space<vmem>>, vector<1x16x16xbf16>
    %43 = vector.shape_cast %42 : vector<1x16x16xbf16> to vector<16x16xbf16>
    %cst_46 = arith.constant dense<0.000000e+00> : vector<16x16xf32>
    %44 = tpu.matmul %41, %43, %cst_46 {dimension_numbers = #tpu.dot_dimension_numbers<[1], [0], [0], [1], [0, 0, 1, 1], [], []>} : vector<16x16xbf16>, vector<16x16xbf16>, vector<16x16xf32> -> vector<16x16xf32>
    %45 = arith.addf %39, %44 : vector<16x16xf32>
    %c0_47 = arith.constant 0 : index
    %c2 = arith.constant 2 : index
    %c0_48 = arith.constant 0 : index
    %46 = vector.load %arg9[%c0_47, %c2, %c0_48] : memref<6x6x16xbf16, #tpu.memory_space<vmem>>, vector<4x4x16xbf16>
    %47 = vector.shape_cast %46 : vector<4x4x16xbf16> to vector<16x16xbf16>
    %c2_49 = arith.constant 2 : index
    %c0_50 = arith.constant 0 : index
    %c0_51 = arith.constant 0 : index
    %48 = vector.load %arg5[%c2_49, %c0_50, %c0_51] : memref<9x16x16xbf16, #tpu.memory_space<vmem>>, vector<1x16x16xbf16>
    %49 = vector.shape_cast %48 : vector<1x16x16xbf16> to vector<16x16xbf16>
    %cst_52 = arith.constant dense<0.000000e+00> : vector<16x16xf32>
    %50 = tpu.matmul %47, %49, %cst_52 {dimension_numbers = #tpu.dot_dimension_numbers<[1], [0], [0], [1], [0, 0, 1, 1], [], []>} : vector<16x16xbf16>, vector<16x16xbf16>, vector<16x16xf32> -> vector<16x16xf32>
    %51 = arith.addf %45, %50 : vector<16x16xf32>
    %c1_53 = arith.constant 1 : index
    %c0_54 = arith.constant 0 : index
    %c0_55 = arith.constant 0 : index
    %52 = vector.load %arg9[%c1_53, %c0_54, %c0_55] : memref<6x6x16xbf16, #tpu.memory_space<vmem>>, vector<4x4x16xbf16>
    %53 = vector.shape_cast %52 : vector<4x4x16xbf16> to vector<16x16xbf16>
    %c3 = arith.constant 3 : index
    %c0_56 = arith.constant 0 : index
    %c0_57 = arith.constant 0 : index
    %54 = vector.load %arg5[%c3, %c0_56, %c0_57] : memref<9x16x16xbf16, #tpu.memory_space<vmem>>, vector<1x16x16xbf16>
    %55 = vector.shape_cast %54 : vector<1x16x16xbf16> to vector<16x16xbf16>
    %cst_58 = arith.constant dense<0.000000e+00> : vector<16x16xf32>
    %56 = tpu.matmul %53, %55, %cst_58 {dimension_numbers = #tpu.dot_dimension_numbers<[1], [0], [0], [1], [0, 0, 1, 1], [], []>} : vector<16x16xbf16>, vector<16x16xbf16>, vector<16x16xf32> -> vector<16x16xf32>
    %57 = arith.addf %51, %56 : vector<16x16xf32>
    %c1_59 = arith.constant 1 : index
    %c1_60 = arith.constant 1 : index
    %c0_61 = arith.constant 0 : index
    %58 = vector.load %arg9[%c1_59, %c1_60, %c0_61] : memref<6x6x16xbf16, #tpu.memory_space<vmem>>, vector<4x4x16xbf16>
    %59 = vector.shape_cast %58 : vector<4x4x16xbf16> to vector<16x16xbf16>
    %c4 = arith.constant 4 : index
    %c0_62 = arith.constant 0 : index
    %c0_63 = arith.constant 0 : index
    %60 = vector.load %arg5[%c4, %c0_62, %c0_63] : memref<9x16x16xbf16, #tpu.memory_space<vmem>>, vector<1x16x16xbf16>
    %61 = vector.shape_cast %60 : vector<1x16x16xbf16> to vector<16x16xbf16>
    %cst_64 = arith.constant dense<0.000000e+00> : vector<16x16xf32>
    %62 = tpu.matmul %59, %61, %cst_64 {dimension_numbers = #tpu.dot_dimension_numbers<[1], [0], [0], [1], [0, 0, 1, 1], [], []>} : vector<16x16xbf16>, vector<16x16xbf16>, vector<16x16xf32> -> vector<16x16xf32>
    %63 = arith.addf %57, %62 : vector<16x16xf32>
    %c1_65 = arith.constant 1 : index
    %c2_66 = arith.constant 2 : index
    %c0_67 = arith.constant 0 : index
    %64 = vector.load %arg9[%c1_65, %c2_66, %c0_67] : memref<6x6x16xbf16, #tpu.memory_space<vmem>>, vector<4x4x16xbf16>
    %65 = vector.shape_cast %64 : vector<4x4x16xbf16> to vector<16x16xbf16>
    %c5_68 = arith.constant 5 : index
    %c0_69 = arith.constant 0 : index
    %c0_70 = arith.constant 0 : index
    %66 = vector.load %arg5[%c5_68, %c0_69, %c0_70] : memref<9x16x16xbf16, #tpu.memory_space<vmem>>, vector<1x16x16xbf16>
    %67 = vector.shape_cast %66 : vector<1x16x16xbf16> to vector<16x16xbf16>
    %cst_71 = arith.constant dense<0.000000e+00> : vector<16x16xf32>
    %68 = tpu.matmul %65, %67, %cst_71 {dimension_numbers = #tpu.dot_dimension_numbers<[1], [0], [0], [1], [0, 0, 1, 1], [], []>} : vector<16x16xbf16>, vector<16x16xbf16>, vector<16x16xf32> -> vector<16x16xf32>
    %69 = arith.addf %63, %68 : vector<16x16xf32>
    %c2_72 = arith.constant 2 : index
    %c0_73 = arith.constant 0 : index
    %c0_74 = arith.constant 0 : index
    %70 = vector.load %arg9[%c2_72, %c0_73, %c0_74] : memref<6x6x16xbf16, #tpu.memory_space<vmem>>, vector<4x4x16xbf16>
    %71 = vector.shape_cast %70 : vector<4x4x16xbf16> to vector<16x16xbf16>
    %c6 = arith.constant 6 : index
    %c0_75 = arith.constant 0 : index
    %c0_76 = arith.constant 0 : index
    %72 = vector.load %arg5[%c6, %c0_75, %c0_76] : memref<9x16x16xbf16, #tpu.memory_space<vmem>>, vector<1x16x16xbf16>
    %73 = vector.shape_cast %72 : vector<1x16x16xbf16> to vector<16x16xbf16>
    %cst_77 = arith.constant dense<0.000000e+00> : vector<16x16xf32>
    %74 = tpu.matmul %71, %73, %cst_77 {dimension_numbers = #tpu.dot_dimension_numbers<[1], [0], [0], [1], [0, 0, 1, 1], [], []>} : vector<16x16xbf16>, vector<16x16xbf16>, vector<16x16xf32> -> vector<16x16xf32>
    %75 = arith.addf %69, %74 : vector<16x16xf32>
    %c2_78 = arith.constant 2 : index
    %c1_79 = arith.constant 1 : index
    %c0_80 = arith.constant 0 : index
    %76 = vector.load %arg9[%c2_78, %c1_79, %c0_80] : memref<6x6x16xbf16, #tpu.memory_space<vmem>>, vector<4x4x16xbf16>
    %77 = vector.shape_cast %76 : vector<4x4x16xbf16> to vector<16x16xbf16>
    %c7 = arith.constant 7 : index
    %c0_81 = arith.constant 0 : index
    %c0_82 = arith.constant 0 : index
    %78 = vector.load %arg5[%c7, %c0_81, %c0_82] : memref<9x16x16xbf16, #tpu.memory_space<vmem>>, vector<1x16x16xbf16>
    %79 = vector.shape_cast %78 : vector<1x16x16xbf16> to vector<16x16xbf16>
    %cst_83 = arith.constant dense<0.000000e+00> : vector<16x16xf32>
    %80 = tpu.matmul %77, %79, %cst_83 {dimension_numbers = #tpu.dot_dimension_numbers<[1], [0], [0], [1], [0, 0, 1, 1], [], []>} : vector<16x16xbf16>, vector<16x16xbf16>, vector<16x16xf32> -> vector<16x16xf32>
    %81 = arith.addf %75, %80 : vector<16x16xf32>
    %c2_84 = arith.constant 2 : index
    %c2_85 = arith.constant 2 : index
    %c0_86 = arith.constant 0 : index
    %82 = vector.load %arg9[%c2_84, %c2_85, %c0_86] : memref<6x6x16xbf16, #tpu.memory_space<vmem>>, vector<4x4x16xbf16>
    %83 = vector.shape_cast %82 : vector<4x4x16xbf16> to vector<16x16xbf16>
    %c8 = arith.constant 8 : index
    %c0_87 = arith.constant 0 : index
    %c0_88 = arith.constant 0 : index
    %84 = vector.load %arg5[%c8, %c0_87, %c0_88] : memref<9x16x16xbf16, #tpu.memory_space<vmem>>, vector<1x16x16xbf16>
    %85 = vector.shape_cast %84 : vector<1x16x16xbf16> to vector<16x16xbf16>
    %cst_89 = arith.constant dense<0.000000e+00> : vector<16x16xf32>
    %86 = tpu.matmul %83, %85, %cst_89 {dimension_numbers = #tpu.dot_dimension_numbers<[1], [0], [0], [1], [0, 0, 1, 1], [], []>} : vector<16x16xbf16>, vector<16x16xbf16>, vector<16x16xf32> -> vector<16x16xf32>
    %87 = arith.addf %81, %86 : vector<16x16xf32>
    %88 = vector.broadcast %32 : vector<1x16xf32> to vector<16x16xf32>
    %89 = arith.addf %87, %88 : vector<16x16xf32>
    %90 = vector.shape_cast %89 : vector<16x16xf32> to vector<4x4x16xf32>
    %c0_90 = arith.constant 0 : index
    %c0_91 = arith.constant 0 : index
    %c0_92 = arith.constant 0 : index
    %c0_93 = arith.constant 0 : index
    %91 = vector.load %arg8[%c0_90, %c0_91, %c0_92, %c0_93] : memref<1x4x4x16xf32, #tpu.memory_space<vmem>>, vector<1x4x4x16xf32>
    %92 = vector.shape_cast %91 : vector<1x4x4x16xf32> to vector<4x4x16xf32>
    %93 = vector.shape_cast %90 : vector<4x4x16xf32> to vector<1x4x4x16xf32>
    tpu.vector_store %arg8[%c0_90, %c0_91, %c0_92, %c0_93], %93 {strides = array<i32>} : memref<1x4x4x16xf32, #tpu.memory_space<vmem>>, vector<1x4x4x16xf32>,
    return
  }
  func.func @transform_0(%arg0: i32) -> (i32, i32, i32, i32) {
    %c0_i32 = arith.constant 0 : i32
    %c0_i32_0 = arith.constant 0 : i32
    %c0_i32_1 = arith.constant 0 : i32
    %c0_i32_2 = arith.constant 0 : i32
    return %arg0, %c0_i32, %c0_i32_0, %c0_i32_1 : i32, i32, i32, i32
  }
  func.func @transform_1(%arg0: i32) -> (i32, i32) {
    %c0_i32 = arith.constant 0 : i32
    %c0_i32_0 = arith.constant 0 : i32
    %c0_i32_1 = arith.constant 0 : i32
    return %c0_i32, %c0_i32_0 : i32, i32
  }
  func.func @transform_2(%arg0: i32) -> (i32, i32) {
    %c0_i32 = arith.constant 0 : i32
    %c0_i32_0 = arith.constant 0 : i32
    %c0_i32_1 = arith.constant 0 : i32
    return %c0_i32, %c0_i32_0 : i32, i32
  }
  func.func @transform_3(%arg0: i32) -> (i32, i32, i32, i32) {
    %c0_i32 = arith.constant 0 : i32
    %c0_i32_0 = arith.constant 0 : i32
    %c0_i32_1 = arith.constant 0 : i32
    %c0_i32_2 = arith.constant 0 : i32
    return %arg0, %c0_i32, %c0_i32_0, %c0_i32_1 : i32, i32, i32, i32
  }
  func.func @transform_4(%arg0: i32) -> (i32, i32, i32) {
    %c0_i32 = arith.constant 0 : i32
    %c0_i32_0 = arith.constant 0 : i32
    %c0_i32_1 = arith.constant 0 : i32
    %c0_i32_2 = arith.constant 0 : i32
    return %c0_i32, %c0_i32_0, %c0_i32_1 : i32, i32, i32
  }
  func.func @transform_5(%arg0: i32) -> (i32, i32) {
    %c0_i32 = arith.constant 0 : i32
    %c0_i32_0 = arith.constant 0 : i32
    %c0_i32_1 = arith.constant 0 : i32
    return %c0_i32, %c0_i32_0 : i32, i32
  }
  func.func @transform_6(%arg0: i32) -> (i32, i32, i32, i32) {
    %c0_i32 = arith.constant 0 : i32
    %c0_i32_0 = arith.constant 0 : i32
    %c0_i32_1 = arith.constant 0 : i32
    %c0_i32_2 = arith.constant 0 : i32
    return %arg0, %c0_i32, %c0_i32_0, %c0_i32_1 : i32, i32, i32, i32
  }
  func.func @transform_7(%arg0: i32) -> (i32, i32, i32, i32) {
    %c0_i32 = arith.constant 0 : i32
    %c0_i32_0 = arith.constant 0 : i32
    %c0_i32_1 = arith.constant 0 : i32
    %c0_i32_2 = arith.constant 0 : i32
    return %arg0, %c0_i32, %c0_i32_0, %c0_i32_1 : i32, i32, i32, i32
  }
}

</mosaic_0001>

<bundles_post_ra>
// kernel: _lambda_.6
= control target key start
LH: loop header
LB: loop body
LE: loop exit
PB: predicated region body
PF: predicated region fallthrough
CT: control target
= control target key end

     0   :  { %s2460_s12 = smov 0   ;;  %s2462_s13 = smov 0   ;;  %s2830_s0 = inlined_call_operand.vmem [shape: bf16[4,2,9,9,4], index: 0, kind: input, shape index: {}]   ;;  %s2831_s1 = inlined_call_operand.vmem [shape: bf16[9,4,8], index: 1, kind: input, shape index: {}]   ;;  %s2832_s2 = inlined_call_operand.vmem [shape: f32[1,8], index: 2, kind: input, shape index: {}]   ;;  %s2833_s3 = inlined_call_operand.vmem [shape: bf16[2,8,8,8], index: 3, kind: output, shape index: {}]  }
   0x1   :  { %s2464_s14 = smov 0  }
   0x2 LB: > { %s1990_s15 = sadd.s32 4294967295, %s2438_s14   ;;  %s2477_s16 = sadd.s32 1, %s2438_s14   ;;  %s2438_s14 = sphi %s2464_s14, %s2838_s14   ;;  %s2434_s13 = sphi %s2462_s13, %s2837_s13   ;;  %s2430_s12 = sphi %s2460_s12, %s2836_s12  }
   0x3   : > { %s17_s17 = ssub.s32 %s2438_s14, %s2477_s16  ;;  %s20_s18 = sadd.s32 1, %s2434_s13 }
   0x4   : > { %p18_p0 = scmp.eq.s32.totalorder %s17_s17, 0  ;;  %p27_p1 = scmp.ne.s32.totalorder %s2434_s13, %s2430_s12 }
   0x5   : > { %p28_p2 = scmp.eq.s32.totalorder %s2438_s14, 0  ;;  %p1993_p4 = scmp.ge.s32.totalorder %s2438_s14, 2 }
   0x6   : > { %s2486_s19 = scalar_select %p18_p0, %s2434_s13, %s20_s18  }
   0x7   : > { %p29_p3 = por %p28_p2, %p27_p1  ;;  %127 = sbr.rel (%p1993_p4) target bundleno = 37 (0x25), region = 24 }
   0xe   : > { %130 = sbr.rel (!%p29_p3) target bundleno = 37 (0x25), region = 28  ;;  %s132_s20 = sand.u32 (%p29_p3), 1, %s2434_s13  }
   0xf   : > { %s2366_s21 = smul.u32 (%p29_p3), 72, %s2438_s14 }
  0x10   : > { %s2365_s22 = smul.u32 (%p29_p3), 288, %s132_s20 }
  0x11   : > { %s2494_s25 = scalar_lea.vmem (%p29_p3), %s2830_s0, %s2366_s21 }
  0x12   : > { %v153_v0 = vld [vmem:[%s2494_s25] sm:$0xff] (%p29_p3)   ;;  %v157_v1 = vld [vmem:[%s2494_s25 + $0x8] sm:$0xff] (%p29_p3)   ;;  %v161_v2 = vld [vmem:[%s2494_s25 + $0x10] sm:$0xff] (%p29_p3)   ;;  %s2499_s26 = scalar_lea.vmem (%p29_p3), [#allocation2], %s2365_s22 }
  0x13   : > { %154 = vst [vmem:[%s2499_s26] sm:$0xff] (%p29_p3), %v153_v0   ;;  %158 = vst [vmem:[%s2499_s26 + $0x8] sm:$0xff] (%p29_p3), %v157_v1   ;;  %v165_v3 = vld [vmem:[%s2494_s25 + $0x18] sm:$0xff] (%p29_p3)   ;;  %v169_v4 = vld [vmem:[%s2494_s25 + $0x20] sm:$0xff] (%p29_p3)  }
  0x14   : > { %162 = vst [vmem:[%s2499_s26 + $0x10] sm:$0xff] (%p29_p3), %v161_v2   ;;  %v173_v5 = vld [vmem:[%s2494_s25 + $0x28] sm:$0xff] (%p29_p3)   ;;  %166 = vst [vmem:[%s2499_s26 + $0x18] sm:$0xff] (%p29_p3), %v165_v3   ;;  %v177_v6 = vld [vmem:[%s2494_s25 + $0x30] sm:$0xff] (%p29_p3)  }
  0x15   : > { %170 = vst [vmem:[%s2499_s26 + $0x20] sm:$0xff] %v169_v4   ;;  %174 = vst [vmem:[%s2499_s26 + $0x28] sm:$0xff] %v173_v5   ;;  %v181_v7 = vld [vmem:[%s2494_s25 + $0x38] sm:$0xff]   ;;  %v185_v8 = vld [vmem:[%s2494_s25 + $0x40] sm:$0xff]  }
  0x16   : > { %178 = vst [vmem:[%s2499_s26 + $0x30] sm:$0xff] %v177_v6   ;;  %182 = vst [vmem:[%s2499_s26 + $0x38] sm:$0xff] %v181_v7   ;;  %v189_v9 = vld [vmem:[%s2494_s25 + $0x90] sm:$0xff]   ;;  %v193_v10 = vld [vmem:[%s2494_s25 + $0x98] sm:$0xff]  }
  0x17   : > { %186 = vst [vmem:[%s2499_s26 + $0x40] sm:$0xff] %v185_v8   ;;  %v197_v11 = vld [vmem:[%s2494_s25 + $0xa0] sm:$0xff]   ;;  %190 = vst [vmem:[%s2499_s26 + $0x48] sm:$0xff] %v189_v9   ;;  %v201_v12 = vld [vmem:[%s2494_s25 + $0xa8] sm:$0xff]  }
  0x18   : > { %194 = vst [vmem:[%s2499_s26 + $0x50] sm:$0xff] %v193_v10   ;;  %198 = vst [vmem:[%s2499_s26 + $0x58] sm:$0xff] %v197_v11   ;;  %v205_v13 = vld [vmem:[%s2494_s25 + $0xb0] sm:$0xff]   ;;  %v209_v14 = vld [vmem:[%s2494_s25 + $0xb8] sm:$0xff]  }
  0x19   : > { %202 = vst [vmem:[%s2499_s26 + $0x60] sm:$0xff] %v201_v12   ;;  %206 = vst [vmem:[%s2499_s26 + $0x68] sm:$0xff] %v205_v13   ;;  %v213_v15 = vld [vmem:[%s2494_s25 + $0xc0] sm:$0xff]   ;;  %v217_v16 = vld [vmem:[%s2494_s25 + $0xc8] sm:$0xff]  }
  0x1a   : > { %210 = vst [vmem:[%s2499_s26 + $0x70] sm:$0xff] %v209_v14   ;;  %v221_v17 = vld [vmem:[%s2494_s25 + $0xd0] sm:$0xff]   ;;  %214 = vst [vmem:[%s2499_s26 + $0x78] sm:$0xff] %v213_v15   ;;  %v225_v18 = vld [vmem:[%s2494_s25 + $0x120] sm:$0xff]  }
  0x1b   : > { %218 = vst [vmem:[%s2499_s26 + $0x80] sm:$0xff] %v217_v16   ;;  %222 = vst [vmem:[%s2499_s26 + $0x88] sm:$0xff] %v221_v17   ;;  %v229_v19 = vld [vmem:[%s2494_s25 + $0x128] sm:$0xff]   ;;  %v233_v20 = vld [vmem:[%s2494_s25 + $0x130] sm:$0xff]  }
  0x1c   : > { %226 = vst [vmem:[%s2499_s26 + $0x90] sm:$0xff] %v225_v18   ;;  %230 = vst [vmem:[%s2499_s26 + $0x98] sm:$0xff] %v229_v19   ;;  %v237_v21 = vld [vmem:[%s2494_s25 + $0x138] sm:$0xff]   ;;  %v241_v22 = vld [vmem:[%s2494_s25 + $0x140] sm:$0xff]  }
  0x1d   : > { %234 = vst [vmem:[%s2499_s26 + $0xa0] sm:$0xff] %v233_v20   ;;  %v245_v23 = vld [vmem:[%s2494_s25 + $0x148] sm:$0xff]   ;;  %238 = vst [vmem:[%s2499_s26 + $0xa8] sm:$0xff] %v237_v21   ;;  %v249_v24 = vld [vmem:[%s2494_s25 + $0x150] sm:$0xff]  }
  0x1e   : > { %242 = vst [vmem:[%s2499_s26 + $0xb0] sm:$0xff] %v241_v22   ;;  %246 = vst [vmem:[%s2499_s26 + $0xb8] sm:$0xff] %v245_v23   ;;  %v253_v25 = vld [vmem:[%s2494_s25 + $0x158] sm:$0xff]   ;;  %v257_v26 = vld [vmem:[%s2494_s25 + $0x160] sm:$0xff]  }
  0x1f   : > { %250 = vst [vmem:[%s2499_s26 + $0xc0] sm:$0xff] %v249_v24   ;;  %254 = vst [vmem:[%s2499_s26 + $0xc8] sm:$0xff] %v253_v25   ;;  %v261_v27 = vld [vmem:[%s2494_s25 + $0x1b0] sm:$0xff]   ;;  %v265_v28 = vld [vmem:[%s2494_s25 + $0x1b8] sm:$0xff]  }
  0x20   : > { %258 = vst [vmem:[%s2499_s26 + $0xd0] sm:$0xff] %v257_v26   ;;  %v269_v29 = vld [vmem:[%s2494_s25 + $0x1c0] sm:$0xff]   ;;  %262 = vst [vmem:[%s2499_s26 + $0xd8] sm:$0xff] %v261_v27   ;;  %v273_v30 = vld [vmem:[%s2494_s25 + $0x1c8] sm:$0xff]  }
  0x21   : > { %266 = vst [vmem:[%s2499_s26 + $0xe0] sm:$0xff] %v265_v28   ;;  %270 = vst [vmem:[%s2499_s26 + $0xe8] sm:$0xff] %v269_v29   ;;  %v277_v31 = vld [vmem:[%s2494_s25 + $0x1d0] sm:$0xff]   ;;  %v281_v32 = vld [vmem:[%s2494_s25 + $0x1d8] sm:$0xff]  }
  0x22   : > { %274 = vst [vmem:[%s2499_s26 + $0xf0] sm:$0xff] %v273_v30   ;;  %278 = vst [vmem:[%s2499_s26 + $0xf8] sm:$0xff] %v277_v31   ;;  %v285_v33 = vld [vmem:[%s2494_s25 + $0x1e0] sm:$0xff]   ;;  %v289_v34 = vld [vmem:[%s2494_s25 + $0x1e8] sm:$0xff]  }
  0x23   : > { %282 = vst [vmem:[%s2499_s26 + $0x100] sm:$0xff] %v281_v32   ;;  %v293_v35 = vld [vmem:[%s2494_s25 + $0x1f0] sm:$0xff]   ;;  %286 = vst [vmem:[%s2499_s26 + $0x108] sm:$0xff] %v285_v33  }
  0x24   : > { %290 = vst [vmem:[%s2499_s26 + $0x110] sm:$0xff] %v289_v34   ;;  %294 = vst [vmem:[%s2499_s26 + $0x118] sm:$0xff] %v293_v35  }
  0x25 PF: > { %p1995_p5 = scmp.ge.s32.totalorder %s2438_s14, 1  ;;  %p462_p6 = scmp.lt.s32.totalorder %s2438_s14, 3 }
  0x27   : > { %p463_p7 = pnand %p1995_p5, %p462_p6 }
  0x28   : > { %v2006_v36 = vld [vmem:[%s2831_s1 + $0x2] sm:$0x3] (!%p463_p7)  ;;  %vm552_vm0 = vcmask (!%p463_p7), 1041408   ;;  %v2578_v37 = vld [vmem:[%s2831_s1 + $0x8] sm:$0x3] (!%p463_p7)  ;;  %s469_s4 = sand.u32 (!%p463_p7), 1, %s2430_s12  }
  0x29   : > { %466 = sbr.rel (%p463_p7) target bundleno = 346 (0x15a), region = 69  ;;  %2355 = vmatprep.subr.msk.bf16.mxu1 (!%p463_p7), %vm552_vm0, %v2006_v36  ;;  %2359 = vmatprep.subr.msk.bf16.mxu0 (!%p463_p7), %vm552_vm0, %v2578_v37  ;;  %v554_v38 = vsel (!%p463_p7), %vm552_vm0, %v2006_v36, 0  ;;  %v2587_v39 = vsel (!%p463_p7), %vm552_vm0, %v2578_v37, 0  ;;  %v507_v40 = vld [vmem:[%s2831_s1] sm:$0x3] (!%p463_p7)  ;;  %vm539_vm1 = vcmask (!%p463_p7), 31744  }
  0x2a   : > { %s2367_s5 = smul.u32 (!%p463_p7), 288, %s469_s4  ;;  %2200 = vmatpush3.bf16.msra.mxu1 (!%p463_p7), %v554_v38  ;;  %2240 = vmatpush3.bf16.msra.mxu0 (!%p463_p7), %v2587_v39  ;;  %v2082_v41 = vld [vmem:[%s2831_s1 + $0xa] sm:$0x3] (!%p463_p7)  ;;  %v654_v42 = vsel (!%p463_p7), %vm552_vm0, %v507_v40, 0  ;;  %vm737_vm2 = vsmask.f32 (!%p463_p7), 3328 }
  0x2b   : > { %2356 = vmatprep.subr.msk.bf16.mxu1 (!%p463_p7), %vm552_vm0, %v507_v40  ;;  %2361 = vmatprep.subr.msk.bf16.mxu0 (!%p463_p7), %vm552_vm0, %v2082_v41  ;;  %v1347_v43 = vsel (!%p463_p7), %vm552_vm0, %v2082_v41, 0  ;;  %v2099_v47 = vld [vmem:[%s2831_s1 + $0xc] sm:$0x3] (!%p463_p7)  ;;  %vm738_vm3 = vsmask.f32 (!%p463_p7), 7440  ;;  %p492_p8 = scmp.lt.s32.totalorder (!%p463_p7), %s1990_s15, 1 }
  0x2c   : > { %s2600_s10 = scalar_lea.vmem (!%p463_p7), [#allocation2], %s2367_s5  ;;  %vm2628_vm4 = vmor (!%p463_p7), %vm737_vm2, %vm738_vm3  ;;  %v1466_v19 = vsel (!%p463_p7), %vm552_vm0, %v2099_v47, 0  ;;  %v2023_v25 = vld [vmem:[%s2831_s1 + $0x4] sm:$0x3] (!%p463_p7)  ;;  %vm1920_vm5 = vcmask (!%p463_p7), 60416  }
  0x2d   : > { %v2392_v44 = vld [vmem:[%s2600_s10 + $0x48] ss:$8 sps:$4 sm:$0xff] (!%p463_p7)   ;;  %v2393_v45 = vld [vmem:[%s2600_s10 + $0xd8] ss:$8 sps:$4 sm:$0xff] (!%p463_p7)   ;;  %v2067_v52 = vld [vmem:[%s2600_s10 + $0x94] sm:$0x1] (!%p463_p7) }
  0x2e   : > { %2201 = vmatprep.mubr.msk.bf16.mxu1 (!%p463_p7), %vm539_vm1, %v2392_v44  ;;  %v2394_v46 = vld [vmem:[%s2600_s10 + $0x58] ss:$8 sps:$4 sm:$0xff] (!%p463_p7)   ;;  %2241 = vmatprep.mubr.msk.bf16.mxu0 (!%p463_p7), %vm539_vm1, %v2393_v45  ;;  %v2395_v48 = vld [vmem:[%s2600_s10 + $0xe8] ss:$8 sps:$4 sm:$0xff] (!%p463_p7)   ;;  %v2069_v54 = vld [vmem:[%s2600_s10 + $0x9c] sm:$0x1] (!%p463_p7) }
  0x2f   : > { %2202 = vmatmul.mubr.msk.bf16.vlgmr.msra.gmra.mrb[0].mxu1 (!%p463_p7), %vm539_vm1, %v2394_v46  ;;  %v2396_v49 = vld [vmem:[%s2600_s10 + $0x68] ss:$8 sps:$4 sm:$0xff] (!%p463_p7)   ;;  %2242 = vmatmul.mubr.msk.bf16.vlgmr.msra.gmra.mrb[0].mxu0 (!%p463_p7), %vm539_vm1, %v2395_v48  ;;  %v2397_v50 = vld [vmem:[%s2600_s10 + $0x78] ss:$8 sps:$4 sm:$0xff] (!%p463_p7)   ;;  %v1218_v57 = vshll.u32 (!%p463_p7), %v2067_v52, 16  ;;  %v1232_v60 = vshll.u32 (!%p463_p7), %v2069_v54, 16 }
  0x30   : > { %2210 = vmatpush3.bf16.msra.mxu1 %v654_v42  ;;  %2250 = vmatpush3.bf16.msra.mxu0 %v1347_v43  ;;  %v2066_v51 = vld [vmem:[%s2600_s10 + $0x90] sm:$0xf]  ;;  %v2068_v53 = vld [vmem:[%s2600_s10 + $0x98] sm:$0xf]  ;;  %v2070_v61 = vld [vmem:[%s2600_s10 + $0xa0] sm:$0xf] }
  0x31   : > { %2205 = vmatprep.mubr.msk.bf16.mxu1 %vm539_vm1, %v2396_v49  ;;  %v1209_v55 = vshrl.u32 %v2066_v51, 16  ;;  %v1212_v56 = vshll.u32 %v2066_v51, 16  ;;  %2362 = vmatprep.subr.msk.bf16.mxu0 %vm552_vm0, %v2099_v47  ;;  %v1223_v58 = vshrl.u32 %v2068_v53, 16  ;;  %v1226_v59 = vshll.u32 %v2068_v53, 16  ;;  %v2071_v0 = vld [vmem:[%s2600_s10 + $0xa4] sm:$0x1] }
  0x32   : > { %v2072_v1 = vld [vmem:[%s2600_s10 + $0xa8] sm:$0xf]  ;;  %v1220_v2 = vrot.slane %v1218_v57, 5  ;;  %v1234_v5 = vrot.slane %v1232_v60, 5  ;;  %v2073_v6 = vld [vmem:[%s2600_s10 + $0xac] sm:$0x1]  ;;  %2357 = vmatprep.subr.msk.bf16.mxu1 %vm552_vm0, %v2023_v25 }
  0x33   : > { %v1211_v62 = vrot.slane %v1209_v55, 4  ;;  %v1214_v63 = vrot.slane %v1212_v56, 5  ;;  %v1225_v3 = vrot.slane %v1223_v58, 4  ;;  %v1228_v4 = vrot.slane %v1226_v59, 5  ;;  %v2398_v20 = vld [vmem:[%s2600_s10] ss:$8 sps:$4 sm:$0xff]  }
  0x34   : > { %v1237_v8 = vshrl.u32 %v2070_v61, 16  ;;  %v1240_v9 = vshll.u32 %v2070_v61, 16  ;;  %v1246_v10 = vshll.u32 %v2071_v0, 16  ;;  %v1251_v13 = vshrl.u32 %v2072_v1, 16  ;;  %v2399_v28 = vld [vmem:[%s2600_s10 + $0x10] ss:$8 sps:$4 sm:$0xff]  }
  0x35   : > { %v1215_v7 = vor.u32 %v1214_v63, %v1211_v62  ;;  %v1229_v12 = vor.u32 %v1228_v4, %v1225_v3  ;;  %v1254_v14 = vshll.u32 %v2072_v1, 16  ;;  %v1260_v15 = vshll.u32 %v2073_v6, 16  ;;  %v2074_v33 = vld [vmem:[%s2600_s10 + $0xb0] sm:$0xf]  ;;  %v2075_v34 = vld [vmem:[%s2600_s10 + $0xb4] sm:$0x1] }
  0x36   : > { %v1239_v17 = vrot.slane %v1237_v8, 4  ;;  %v1242_v18 = vrot.slane %v1240_v9, 5  ;;  %v1248_v22 = vrot.slane %v1246_v10, 5  ;;  %v1253_v23 = vrot.slane %v1251_v13, 4  ;;  %v2076_v38 = vld [vmem:[%s2600_s10 + $0xb8] sm:$0xf] }
  0x37   : > { %2206 = vmatmul.mubr.msk.bf16.gmra.mrb[4].mxu1 %vm539_vm1, %v2397_v50  ;;  %v1216_v16 = vrot.slane %v1215_v7, 4  ;;  %v1230_v21 = vrot.slane %v1229_v12, 4  ;;  %v1256_v24 = vrot.slane %v1254_v14, 5  ;;  %v1262_v31 = vrot.slane %v1260_v15, 5  ;;  %v2077_v40 = vld [vmem:[%s2600_s10 + $0xbc] sm:$0x1] }
  0x38   : > { %v1243_v27 = vor.u32 %v1242_v18, %v1239_v17  ;;  %2211 = vmatprep.mubr.msk.bf16.mxu1 %vm539_vm1, %v2398_v20  ;;  %v879_v32 = vsel %vm552_vm0, %v2023_v25, 0  ;;  %v1265_v41 = vshrl.u32 %v2074_v33, 16  ;;  %v1268_v43 = vshll.u32 %v2074_v33, 16  ;;  %v2078_v46 = vld [vmem:[%s2600_s10 + $0xc0] sm:$0xf]  ;;  %s2840_s15 = smov (!%p492_p8, %s1990_s15), 1 }
  0x39   : > { %v1221_v26 = vsel %vm2628_vm4, %v1216_v16, %v1220_v2  ;;  %v1235_v29 = vsel %vm2628_vm4, %v1230_v21, %v1234_v5  ;;  %v1257_v30 = vor.u32 %v1256_v24, %v1253_v23  ;;  %v1274_v44 = vshll.u32 %v2075_v34, 16  ;;  %v2079_v51 = vld [vmem:[%s2600_s10 + $0xc4] sm:$0x1]  ;;  %v2080_v56 = vld [vmem:[%s2600_s10 + $0xc8] sm:$0xf]  ;;  %s2153_s28 = sshll.u32 %s2840_s15, 5 }
  0x3a   : > { %v2083_v35 = vcombine.low %v1221_v26, %v1235_v29  ;;  %v1244_v36 = vrot.slane %v1243_v27, 4  ;;  %v1279_v45 = vshrl.u32 %v2076_v38, 16  ;;  %v1267_v48 = vrot.slane %v1265_v41, 4  ;;  %v2081_v60 = vld [vmem:[%s2600_s10 + $0xcc] sm:$0x1]  ;;  %s2802_s30 = scalar_lea.vmem %s2833_s3, %s2153_s28 }
  0x3b   : > { %v1258_v42 = vrot.slane %v1257_v30, 4  ;;  %v1282_v49 = vshll.u32 %v2076_v38, 16  ;;  %v1288_v50 = vshll.u32 %v2077_v40, 16  ;;  %v1270_v53 = vrot.slane %v1268_v43, 5  ;;  %v2400_v9 = vld [vmem:[%s2600_s10 + $0x20] ss:$8 sps:$4 sm:$0xff]  }
  0x3c   : > { %2251 = vmatprep.mubr.msk.bf16.mxu0 %vm539_vm1, %v2083_v35  ;;  %v1249_v47 = vsel %vm2628_vm4, %v1244_v36, %v1248_v22  ;;  %v1276_v54 = vrot.slane %v1274_v44, 5  ;;  %v1281_v55 = vrot.slane %v1279_v45, 4  ;;  %v1293_v61 = vshrl.u32 %v2078_v46, 16  ;;  %v2401_v16 = vld [vmem:[%s2600_s10 + $0x30] ss:$8 sps:$4 sm:$0xff]  }
  0x3d   : > { %v1263_v52 = vsel %vm2628_vm4, %v1258_v42, %v1262_v31  ;;  %v1284_v58 = vrot.slane %v1282_v49, 5  ;;  %v1290_v59 = vrot.slane %v1288_v50, 5  ;;  %v1271_v62 = vor.u32 %v1270_v53, %v1267_v48  ;;  %v2116_v20 = vld [vmem:[%s2831_s1 + $0xe] sm:$0x3]  ;;  %v2402_v24 = vld [vmem:[%s2600_s10 + $0x8] ss:$8 sps:$4 sm:$0xff]  }
  0x3e   : > { %v2084_v57 = vcombine.low %v1249_v47, %v1263_v52  ;;  %v1296_v63 = vshll.u32 %v2078_v46, 16  ;;  %v1302_v0 = vshll.u32 %v2079_v51, 16  ;;  %v1307_v1 = vshrl.u32 %v2080_v56, 16  ;;  %v721_v25 = vld [vmem:[%s2600_s10] sm:$0xf] }
  0x3f   : > { %2212 = vmatmul.mubr.msk.bf16.vlgmr.msra.gmra.mrb[0].mxu1 %vm539_vm1, %v2399_v28  ;;  %v1285_v2 = vor.u32 %v1284_v58, %v1281_v55  ;;  %v1295_v3 = vrot.slane %v1293_v61, 4  ;;  %v1310_v4 = vshll.u32 %v2080_v56, 16  ;;  %v1316_v5 = vshll.u32 %v2081_v60, 16  ;;  %v722_v27 = vld [vmem:[%s2600_s10 + $0x4] sm:$0x1] }
  0x40   : > { %2220 = vmatpush3.bf16.msra.mxu1 %v879_v32  ;;  %2252 = vmatmul.mubr.msk.bf16.vlgmr.msra.gmra.mrb[0].mxu0 %vm539_vm1, %v2084_v57  ;;  %v1272_v6 = vrot.slane %v1271_v62, 4  ;;  %v1298_v7 = vrot.slane %v1296_v63, 5  ;;  %v1309_v8 = vrot.slane %v1307_v1, 4  ;;  %v1304_v12 = vrot.slane %v1302_v0, 5  ;;  %v723_v28 = vld [vmem:[%s2600_s10 + $0x8] sm:$0xf] }
  0x41   : > { %2260 = vmatpush3.bf16.msra.mxu0 %v1466_v19  ;;  %v1286_v10 = vrot.slane %v1285_v2, 4  ;;  %v1312_v13 = vrot.slane %v1310_v4, 5  ;;  %2215 = vmatprep.mubr.msk.bf16.mxu1 %vm539_vm1, %v2400_v9  ;;  %v1318_v19 = vrot.slane %v1316_v5, 5  ;;  %v724_v29 = vld [vmem:[%s2600_s10 + $0xc] sm:$0x1]  ;;  %v741_v31 = vshrl.u32 %v721_v25, 16 }
  0x42   : > { %v1277_v14 = vsel %vm2628_vm4, %v1272_v6, %v1276_v54  ;;  %v1299_v15 = vor.u32 %v1298_v7, %v1295_v3  ;;  %2363 = vmatprep.subr.msk.bf16.mxu0 %vm552_vm0, %v2116_v20  ;;  %v744_v32 = vshll.u32 %v721_v25, 16  ;;  %v750_v33 = vshll.u32 %v722_v27, 16  ;;  %v2040_v34 = vld [vmem:[%s2831_s1 + $0x6] sm:$0x3]  ;;  %v725_v41 = vld [vmem:[%s2600_s10 + $0x10] sm:$0xf] }
  0x43   : > { %v1291_v17 = vsel %vm2628_vm4, %v1286_v10, %v1290_v59  ;;  %v1313_v18 = vor.u32 %v1312_v13, %v1309_v8  ;;  %v755_v36 = vshrl.u32 %v723_v28, 16  ;;  %v758_v38 = vshll.u32 %v723_v28, 16  ;;  %2358 = vmatprep.subr.msk.bf16.mxu1 %vm552_vm0, %v2040_v34  ;;  %v726_v45 = vld [vmem:[%s2600_s10 + $0x14] sm:$0x1]  ;;  %v727_v50 = vld [vmem:[%s2600_s10 + $0x18] sm:$0xf] }
  0x44   : > { %v2085_v21 = vcombine.low %v1277_v14, %v1291_v17  ;;  %v1300_v22 = vrot.slane %v1299_v15, 4  ;;  %v764_v40 = vshll.u32 %v724_v29, 16  ;;  %v743_v42 = vrot.slane %v741_v31, 4  ;;  %v728_v53 = vld [vmem:[%s2600_s10 + $0x1c] sm:$0x1] }
  0x45   : > { %v1314_v23 = vrot.slane %v1313_v18, 4  ;;  %v746_v43 = vrot.slane %v744_v32, 5  ;;  %v752_v44 = vrot.slane %v750_v33, 5  ;;  %v769_v46 = vshrl.u32 %v725_v41, 16  ;;  %v2403_v1 = vld [vmem:[%s2600_s10 + $0x18] ss:$8 sps:$4 sm:$0xff]  }
  0x46   : > { %2255 = vmatprep.mubr.msk.bf16.mxu0 %vm539_vm1, %v2085_v21  ;;  %v1305_v26 = vsel %vm2628_vm4, %v1300_v22, %v1304_v12  ;;  %v757_v47 = vrot.slane %v755_v36, 4  ;;  %v760_v48 = vrot.slane %v758_v38, 5  ;;  %v766_v49 = vrot.slane %v764_v40, 5  ;;  %v2404_v7 = vld [vmem:[%s2600_s10 + $0x28] ss:$8 sps:$4 sm:$0xff]  }
  0x47   : > { %2216 = vmatmul.mubr.msk.bf16.gmra.mrb[4].mxu1 %vm539_vm1, %v2401_v16  ;;  %v1319_v30 = vsel %vm2628_vm4, %v1314_v23, %v1318_v19  ;;  %v772_v51 = vshll.u32 %v725_v41, 16  ;;  %v747_v52 = vor.u32 %v746_v43, %v743_v42  ;;  %v771_v54 = vrot.slane %v769_v46, 4  ;;  %v729_v13 = vld [vmem:[%s2600_s10 + $0x20] sm:$0xf]  ;;  %v730_v14 = vld [vmem:[%s2600_s10 + $0x24] sm:$0x1] }
  0x48   : > { %v2086_v35 = vcombine.low %v1305_v26, %v1319_v30  ;;  %v778_v55 = vshll.u32 %v726_v45, 16  ;;  %v783_v56 = vshrl.u32 %v727_v50, 16  ;;  %v761_v57 = vor.u32 %v760_v48, %v757_v47  ;;  %v731_v16 = vld [vmem:[%s2600_s10 + $0x28] sm:$0xf]  ;;  %v732_v17 = vld [vmem:[%s2600_s10 + $0x2c] sm:$0x1] }
  0x49   : > { %v774_v58 = vrot.slane %v772_v51, 5  ;;  %v786_v59 = vshll.u32 %v727_v50, 16  ;;  %v792_v60 = vshll.u32 %v728_v53, 16  ;;  %v1585_v61 = vsel %vm552_vm0, %v2116_v20, 0  ;;  %v734_v29 = vld [vmem:[%s2600_s10 + $0x34] sm:$0x1] }
  0x4a   : > { %2256 = vmatmul.mubr.msk.bf16.gmra.mrb[4].mxu0 %vm539_vm1, %v2086_v35  ;;  %v748_v62 = vrot.slane %v747_v52, 4  ;;  %v780_v63 = vrot.slane %v778_v55, 5  ;;  %v785_v0 = vrot.slane %v783_v56, 4  ;;  %v762_v2 = vrot.slane %v761_v57, 4  ;;  %v2405_v31 = vld [vmem:[%s2600_s10 + $0x38] ss:$8 sps:$4 sm:$0xff]  }
  0x4b   : > { %2261 = vmatprep.mubr.msk.bf16.mxu0 %vm539_vm1, %v2402_v24  ;;  %v775_v3 = vor.u32 %v774_v58, %v771_v54  ;;  %v788_v4 = vrot.slane %v786_v59, 5  ;;  %v998_v5 = vsel %vm552_vm0, %v2040_v34, 0  ;;  %v794_v12 = vrot.slane %v792_v60, 5  ;;  %v733_v24 = vld [vmem:[%s2600_s10 + $0x30] sm:$0xf] }
  0x4c   : > { %v753_v6 = vsel %vm2628_vm4, %v748_v62, %v752_v44  ;;  %v767_v8 = vsel %vm2628_vm4, %v762_v2, %v766_v49  ;;  %v797_v18 = vshrl.u32 %v729_v13, 16  ;;  %v800_v19 = vshll.u32 %v729_v13, 16  ;;  %v735_v34 = vld [vmem:[%s2600_s10 + $0x38] sm:$0xf]  ;;  %v736_v35 = vld [vmem:[%s2600_s10 + $0x3c] sm:$0x1] }
  0x4d   : > { %v776_v9 = vrot.slane %v775_v3, 4  ;;  %v789_v10 = vor.u32 %v788_v4, %v785_v0  ;;  %v2024_v15 = vcombine.low %v753_v6, %v767_v8  ;;  %v806_v22 = vshll.u32 %v730_v14, 16  ;;  %v2406_v46 = vld [vmem:[%s2600_s10 + $0x50] ss:$8 sps:$4 sm:$0xff]   ;;  %v2125_v8 = vld [vmem:[%s2600_s10 + $0x8] sm:$0xf] }
  0x4e   : > { %v811_v23 = vshrl.u32 %v731_v16, 16  ;;  %v799_v25 = vrot.slane %v797_v18, 4  ;;  %v802_v26 = vrot.slane %v800_v19, 5  ;;  %v814_v27 = vshll.u32 %v731_v16, 16  ;;  %v2141_v51 = vld [vmem:[%s2831_s1 + $0x10] sm:$0x3] }
  0x4f   : > { %v781_v20 = vsel %vm2628_vm4, %v776_v9, %v780_v63  ;;  %v790_v21 = vrot.slane %v789_v10, 4  ;;  %2221 = vmatprep.mubr.msk.bf16.mxu1 %vm539_vm1, %v2024_v15  ;;  %v820_v28 = vshll.u32 %v732_v17, 16  ;;  %v808_v32 = vrot.slane %v806_v22, 5  ;;  %v2126_v9 = vld [vmem:[%s2600_s10 + $0xc] sm:$0x1] }
  0x50   : > { %v813_v33 = vrot.slane %v811_v23, 4  ;;  %v803_v38 = vor.u32 %v802_v26, %v799_v25  ;;  %v816_v40 = vrot.slane %v814_v27, 5  ;;  %v825_v42 = vshrl.u32 %v733_v24, 16  ;;  %v2127_v10 = vld [vmem:[%s2600_s10 + $0x10] sm:$0xf] }
  0x51   : > { %v795_v30 = vsel %vm2628_vm4, %v790_v21, %v794_v12  ;;  %v822_v41 = vrot.slane %v820_v28, 5  ;;  %v828_v43 = vshll.u32 %v733_v24, 16  ;;  %v834_v44 = vshll.u32 %v734_v29, 16  ;;  %v2128_v12 = vld [vmem:[%s2600_s10 + $0x14] sm:$0x1] }
  0x52   : > { %2262 = vmatmul.mubr.msk.bf16.vlgmr.msra.gmra.mrb[0].mxu0 %vm539_vm1, %v2403_v1  ;;  %v2025_v36 = vcombine.low %v781_v20, %v795_v30  ;;  %v839_v45 = vshrl.u32 %v735_v34, 16  ;;  %v804_v47 = vrot.slane %v803_v38, 4  ;;  %v817_v48 = vor.u32 %v816_v40, %v813_v33  ;;  %v2129_v19 = vld [vmem:[%s2600_s10 + $0x18] sm:$0xf]  ;;  %v2409_v20 = vld [vmem:[%s2600_s10 + $0xa0] ss:$8 sps:$4 sm:$0xff]  }
  0x53   : > { %2270 = vmatpush3.bf16.msra.mxu0 %v1585_v61  ;;  %2265 = vmatprep.mubr.msk.bf16.mxu0 %vm539_vm1, %v2404_v7  ;;  %v842_v49 = vshll.u32 %v735_v34, 16  ;;  %v848_v50 = vshll.u32 %v736_v35, 16  ;;  %v827_v52 = vrot.slane %v825_v42, 4  ;;  %v830_v53 = vrot.slane %v828_v43, 5  ;;  %v2410_v7 = vld [vmem:[%s2600_s10 + $0x70] ss:$8 sps:$4 sm:$0xff]  }
  0x54   : > { %2222 = vmatmul.mubr.msk.bf16.vlgmr.msra.gmra.mrb[0].mxu1 %vm539_vm1, %v2025_v36  ;;  %v841_v54 = vrot.slane %v839_v45, 4  ;;  %2364 = vmatprep.subr.msk.bf16.mxu0 %vm552_vm0, %v2141_v51  ;;  %v809_v55 = vsel %vm2628_vm4, %v804_v47, %v808_v32  ;;  %v818_v56 = vrot.slane %v817_v48, 4  ;;  %v836_v59 = vrot.slane %v834_v44, 5  ;;  %v2411_v21 = vld [vmem:[%s2600_s10 + $0x80] ss:$8 sps:$4 sm:$0xff]  }
  0x55   : > { %2230 = vmatpush3.bf16.msra.mxu1 %v998_v5  ;;  %v844_v57 = vrot.slane %v842_v49, 5  ;;  %v831_v58 = vor.u32 %v830_v53, %v827_v52  ;;  %v850_v62 = vrot.slane %v848_v50, 5  ;;  %v1815_v3 = vsel %vm552_vm0, %v2141_v51, 0  ;;  %v2408_v5 = vld [vmem:[%s2600_s10 + $0x90] ss:$8 sps:$4 sm:$0xff]  }
  0x56   : > { %2360 = vmatprep.subr.msk.bf16.mxu1 %vm552_vm0, %v2578_v37  ;;  %v823_v60 = vsel %vm2628_vm4, %v818_v56, %v822_v41  ;;  %v2407_v37 = vld [vmem:[%s2600_s10 + $0x60] ss:$8 sps:$4 sm:$0xff]   ;;  %v1677_v13 = vshrl.u32 %v2125_v8, 16  ;;  %v1680_v14 = vshll.u32 %v2125_v8, 16  ;;  %v1686_v15 = vshll.u32 %v2126_v9, 16 }
  0x57   : > { %v845_v61 = vor.u32 %v844_v57, %v841_v54  ;;  %v2026_v63 = vcombine.low %v809_v55, %v823_v60  ;;  %v832_v0 = vrot.slane %v831_v58, 4  ;;  %v1691_v16 = vshrl.u32 %v2127_v10, 16  ;;  %v2130_v24 = vld [vmem:[%s2600_s10 + $0x1c] sm:$0x1]  ;;  %v2131_v25 = vld [vmem:[%s2600_s10 + $0x20] sm:$0xf] }
  0x58   : > { %v1694_v17 = vshll.u32 %v2127_v10, 16  ;;  %v1700_v18 = vshll.u32 %v2128_v12, 16  ;;  %v1679_v22 = vrot.slane %v1677_v13, 4  ;;  %v1682_v23 = vrot.slane %v1680_v14, 5  ;;  %v2412_v26 = vld [vmem:[%s2600_s10 + $0xb0] ss:$8 sps:$4 sm:$0xff]  }
  0x59   : > { %v846_v1 = vrot.slane %v845_v61, 4  ;;  %2225 = vmatprep.mubr.msk.bf16.mxu1 %vm539_vm1, %v2026_v63  ;;  %v837_v2 = vsel %vm2628_vm4, %v832_v0, %v836_v59  ;;  %v1688_v27 = vrot.slane %v1686_v15, 5  ;;  %v1693_v28 = vrot.slane %v1691_v16, 4  ;;  %v2133_v50 = vld [vmem:[%s2600_s10 + $0x28] sm:$0xf] }
  0x5a   : > { %2266 = vmatmul.mubr.msk.bf16.gmra.mrb[4].mxu0 %vm539_vm1, %v2405_v31  ;;  %v1696_v29 = vrot.slane %v1694_v17, 5  ;;  %v1702_v30 = vrot.slane %v1700_v18, 5  ;;  %v2132_v31 = vld [vmem:[%s2600_s10 + $0x24] sm:$0x1]  ;;  %v1683_v32 = vor.u32 %v1682_v23, %v1679_v22  ;;  %v1705_v33 = vshrl.u32 %v2129_v19, 16 }
  0x5b   : > { %2271 = vmatprep.mubr.msk.bf16.mxu0 %vm539_vm1, %v2406_v46  ;;  %v851_v4 = vsel %vm2628_vm4, %v846_v1, %v850_v62  ;;  %v1708_v34 = vshll.u32 %v2129_v19, 16  ;;  %v1714_v35 = vshll.u32 %v2130_v24, 16  ;;  %v1719_v38 = vshrl.u32 %v2131_v25, 16  ;;  %v2134_v53 = vld [vmem:[%s2600_s10 + $0x2c] sm:$0x1] }
  0x5c   : > { %v2027_v6 = vcombine.low %v837_v2, %v851_v4  ;;  %v1697_v36 = vor.u32 %v1696_v29, %v1693_v28  ;;  %v1722_v40 = vshll.u32 %v2131_v25, 16  ;;  %v1728_v41 = vshll.u32 %v2132_v31, 16  ;;  %v2135_v54 = vld [vmem:[%s2600_s10 + $0x30] sm:$0xf]  ;;  %v2136_v55 = vld [vmem:[%s2600_s10 + $0x34] sm:$0x1] }
  0x5d   : > { %v1684_v42 = vrot.slane %v1683_v32, 4  ;;  %v1707_v43 = vrot.slane %v1705_v33, 4  ;;  %v1710_v44 = vrot.slane %v1708_v34, 5  ;;  %v1716_v45 = vrot.slane %v1714_v35, 5  ;;  %v2413_v60 = vld [vmem:[%s2600_s10 + $0xc0] ss:$8 sps:$4 sm:$0xff]  }
  0x5e   : > { %2226 = vmatmul.mubr.msk.bf16.gmra.mrb[4].mxu1 %vm539_vm1, %v2027_v6  ;;  %v1698_v46 = vrot.slane %v1697_v36, 4  ;;  %v1721_v47 = vrot.slane %v1719_v38, 4  ;;  %v1724_v48 = vrot.slane %v1722_v40, 5  ;;  %v1730_v49 = vrot.slane %v1728_v41, 5  ;;  %v2414_v1 = vld [vmem:[%s2600_s10 + $0xf8] ss:$8 sps:$4 sm:$0xff]  }
  0x5f   : > { %2231 = vmatprep.mubr.msk.bf16.mxu1 %vm539_vm1, %v2408_v5  ;;  %v1689_v51 = vsel %vm2628_vm4, %v1684_v42, %v1688_v27  ;;  %v1711_v52 = vor.u32 %v1710_v44, %v1707_v43  ;;  %v1733_v58 = vshrl.u32 %v2133_v50, 16  ;;  %v1736_v59 = vshll.u32 %v2133_v50, 16  ;;  %v2137_v4 = vld [vmem:[%s2600_s10 + $0x38] sm:$0xf]  ;;  %v2138_v9 = vld [vmem:[%s2600_s10 + $0x3c] sm:$0x1] }
  0x60   : > { %v1703_v56 = vsel %vm2628_vm4, %v1698_v46, %v1702_v30  ;;  %v1725_v57 = vor.u32 %v1724_v48, %v1721_v47  ;;  %v1742_v63 = vshll.u32 %v2134_v53, 16  ;;  %v1747_v0 = vshrl.u32 %v2135_v54, 16  ;;  %v2139_v14 = vld [vmem:[%s2600_s10 + $0x40] sm:$0xf]  ;;  %v2140_v15 = vld [vmem:[%s2600_s10 + $0x44] sm:$0x1] }
  0x61   : > { %v2142_v61 = vcombine.low %v1689_v51, %v1703_v56  ;;  %v1712_v62 = vrot.slane %v1711_v52, 4  ;;  %v1738_v2 = vrot.slane %v1736_v59, 5  ;;  %v1756_v8 = vshll.u32 %v2136_v55, 16  ;;  %v2415_v43 = vld [vmem:[%s2600_s10 + $0x108] ss:$8 sps:$4 sm:$0xff]  }
  0x62   : > { %2272 = vmatmul.mubr.msk.bf16.vlgmr.msra.gmra.mrb[0].mxu0 %vm539_vm1, %v2407_v37  ;;  %v1726_v37 = vrot.slane %v1725_v57, 4  ;;  %v1744_v6 = vrot.slane %v1742_v63, 5  ;;  %v1761_v16 = vshrl.u32 %v2137_v4, 16  ;;  %v1764_v19 = vshll.u32 %v2137_v4, 16  ;;  %v2150_v50 = vld [vmem:[%s2832_s2] ss:$0 sm:$0xff] }
  0x63   : > { %2280 = vmatpush3.bf16.msra.mxu0 %v1815_v3  ;;  %2275 = vmatprep.mubr.msk.bf16.mxu0 %vm539_vm1, %v2410_v7  ;;  %v1750_v3 = vshll.u32 %v2135_v54, 16  ;;  %v1717_v5 = vsel %vm2628_vm4, %v1712_v62, %v1716_v45  ;;  %v1749_v7 = vrot.slane %v1747_v0, 4  ;;  %v1758_v18 = vrot.slane %v1756_v8, 5 }
  0x64   : > { %v1731_v10 = vsel %vm2628_vm4, %v1726_v37, %v1730_v49  ;;  %v1763_v23 = vrot.slane %v1761_v16, 4  ;;  %v1775_v24 = vshrl.u32 %v2139_v14, 16  ;;  %v1766_v25 = vrot.slane %v1764_v19, 5 }
  0x65   : > { %v1752_v13 = vrot.slane %v1750_v3, 5  ;;  %v2143_v17 = vcombine.low %v1717_v5, %v1731_v10  ;;  %v1784_v27 = vshll.u32 %v2140_v15, 16 }
  0x66   : > { %2232 = vmatmul.mubr.msk.bf16.vlgmr.msra.gmra.mrb[0].mxu1 %vm539_vm1, %v2409_v20  ;;  %v1770_v20 = vshll.u32 %v2138_v9, 16  ;;  %v1777_v30 = vrot.slane %v1775_v24, 4  ;;  %v1767_v31 = vor.u32 %v1766_v25, %v1763_v23 }
  0x67   : > { %2290 = vmatpush3.bf16.msra.mxu1 %v2587_v39  ;;  %2235 = vmatprep.mubr.msk.bf16.mxu1 %vm539_vm1, %v2412_v26  ;;  %v1735_v39 = vrot.slane %v1733_v58, 4  ;;  %v1753_v22 = vor.u32 %v1752_v13, %v1749_v7  ;;  %v1778_v26 = vshll.u32 %v2139_v14, 16  ;;  %v1786_v40 = vrot.slane %v1784_v27, 5 }
  0x68   : > { %v1772_v32 = vrot.slane %v1770_v20, 5  ;;  %v1768_v36 = vrot.slane %v1767_v31, 4 }
  0x69   : > { %v1739_v12 = vor.u32 %v1738_v2, %v1735_v39  ;;  %v1754_v29 = vrot.slane %v1753_v22, 4  ;;  %v1780_v33 = vrot.slane %v1778_v26, 5 }
  0x6a   : > { %2276 = vmatmul.mubr.msk.bf16.gmra.mrb[4].mxu0 %vm539_vm1, %v2411_v21  ;;  %v1773_v41 = vsel %vm2628_vm4, %v1768_v36, %v1772_v32 }
  0x6b   : > { %2281 = vmatprep.mubr.msk.bf16.mxu0 %vm539_vm1, %v2142_v61  ;;  %v1740_v21 = vrot.slane %v1739_v12, 4  ;;  %v1759_v34 = vsel %vm2628_vm4, %v1754_v29, %v1758_v18  ;;  %v1781_v38 = vor.u32 %v1780_v33, %v1777_v30 }
  0x6d   : > { %v1745_v28 = vsel %vm2628_vm4, %v1740_v21, %v1744_v6  ;;  %v1782_v42 = vrot.slane %v1781_v38, 4 }
  0x6e   : > { %2236 = vmatmul.mubr.msk.bf16.gmra.mrb[4].mxu1 %vm539_vm1, %v2413_v60  ;;  %v2144_v35 = vcombine.low %v1745_v28, %v1759_v34 }
  0x6f   : > { %2245 = vmatprep.mubr.msk.bf16.mxu1 %vm539_vm1, %v2414_v1  ;;  %v1787_v44 = vsel %vm2628_vm4, %v1782_v42, %v1786_v40 }
  0x70   : > { %v2145_v45 = vcombine.low %v1773_v41, %v1787_v44 }
  0x72   : > { %2282 = vmatmul.mubr.msk.bf16.vlgmr.msra.gmra.mrb[0].mxu0 %vm539_vm1, %v2143_v17 }
  0x73   : > { %2285 = vmatprep.mubr.msk.bf16.mxu0 %vm539_vm1, %v2144_v35 }
  0x7a   : > { %2286 = vmatmul.mubr.msk.bf16.gmra.mrb[4].mxu0 %vm539_vm1, %v2145_v45  ;;  %2246 = vmatmul.mubr.msk.bf16.vlgmr.msra.gmra.mrb[4].mxu1 %vm539_vm1, %v2415_v43 }
 0x139   : > { %v2233_v46 = vpop.f32.mrb[0].mxu1 }
 0x13a   : > { %v1034_v47 = vpop.f32.mrb[1].mxu1 }
 0x13b   : > { %v2234_v48 = vpop.f32.mrb[2].mxu1 }
 0x13c   : > { %v1037_v49 = vpop.f32.mrb[3].mxu1 }
 0x145   : > { %v2283_v51 = vpop.f32.mrb[0].mxu0 }
 0x146   : > { %v2291_v11 = vadd.f32 %v2283_v51, %v2233_v46  ;;  %v1851_v52 = vpop.f32.mrb[1].mxu0 }
 0x147   : > { %v2292_v53 = vadd.f32 %v1851_v52, %v1034_v47  ;;  %v2284_v54 = vpop.f32.mrb[2].mxu0 }
 0x148   : > { %v1898_v55 = vadd.f32 %v2291_v11, %v2150_v50  ;;  %v2293_v56 = vadd.f32 %v2284_v54, %v2234_v48  ;;  %v1854_v57 = vpop.f32.mrb[3].mxu0 }
 0x149   : > { %v1896_v58 = vadd.f32 %v2292_v53, %v2150_v50  ;;  %v2294_v59 = vadd.f32 %v1854_v57, %v1037_v49 }
 0x14a   : > { %v1906_v60 = vmax.f32 %v1898_v55, 0.0  ;;  %v1899_v61 = vadd.f32 %v2293_v56, %v2150_v50 }
 0x14b   : > { %v1904_v62 = vmax.f32 %v1896_v58, 0.0  ;;  %v1897_v63 = vadd.f32 %v2294_v59, %v2150_v50 }
 0x14c   : > { %v1914_v0 = vpack.c.bf16 %v1906_v60, %v1906_v60  ;;  %v1907_v37 = vmax.f32 %v1899_v61, 0.0 }
 0x14d   : > { %v1912_v1 = vpack.c.bf16 %v1904_v62, %v1904_v62  ;;  %v1905_v39 = vmax.f32 %v1897_v63, 0.0  ;;  %v2287_v4 = vpop.f32.mrb[4].mxu0  ;;  %v2247_v5 = vpop.f32.mrb[4].mxu1 }
 0x14e   : > { %1923 = vst.msk [vmem:[%s2802_s30 + $0x8] sm:$0xf] %vm1920_vm5, %v1914_v0  ;;  %v1915_v2 = vpack.c.bf16 %v1907_v37, %v1907_v37  ;;  %v1867_v6 = vpop.f32.mrb[5].mxu0  ;;  %v2295_v7 = vadd.f32 %v2287_v4, %v2247_v5  ;;  %v1169_v8 = vpop.f32.mrb[5].mxu1 }
 0x14f   : > { %1921 = vst.msk [vmem:[%s2802_s30] sm:$0xf] %vm1920_vm5, %v1912_v1  ;;  %v1913_v3 = vpack.c.bf16 %v1905_v39, %v1905_v39  ;;  %v2288_v9 = vpop.f32.mrb[6].mxu0  ;;  %v2296_v10 = vadd.f32 %v1867_v6, %v1169_v8  ;;  %v2248_v12 = vpop.f32.mrb[6].mxu1 }
 0x150   : > { %1924 = vst.msk [vmem:[%s2802_s30 + $0xc] sm:$0xf] %vm1920_vm5, %v1915_v2  ;;  %v1870_v13 = vpop.f32.mrb[7].mxu0  ;;  %v1902_v14 = vadd.f32 %v2295_v7, %v2150_v50  ;;  %v2297_v15 = vadd.f32 %v2288_v9, %v2248_v12  ;;  %v1172_v16 = vpop.f32.mrb[7].mxu1 }
 0x151   : > { %1922 = vst.msk [vmem:[%s2802_s30 + $0x4] sm:$0xf] %vm1920_vm5, %v1913_v3  ;;  %v1900_v17 = vadd.f32 %v2296_v10, %v2150_v50  ;;  %v2298_v18 = vadd.f32 %v1870_v13, %v1172_v16 }
 0x152   : > { %v1910_v19 = vmax.f32 %v1902_v14, 0.0  ;;  %v1903_v20 = vadd.f32 %v2297_v15, %v2150_v50 }
 0x153   : > { %v1908_v21 = vmax.f32 %v1900_v17, 0.0  ;;  %v1901_v22 = vadd.f32 %v2298_v18, %v2150_v50 }
 0x154   : > { %v1918_v23 = vpack.c.bf16 %v1910_v19, %v1910_v19  ;;  %v1911_v24 = vmax.f32 %v1903_v20, 0.0 }
 0x155   : > { %v1916_v25 = vpack.c.bf16 %v1908_v21, %v1908_v21  ;;  %v1909_v26 = vmax.f32 %v1901_v22, 0.0 }
 0x156   : > { %1927 = vst.msk [vmem:[%s2802_s30 + $0x18] sm:$0xf] %vm1920_vm5, %v1918_v23  ;;  %v1919_v27 = vpack.c.bf16 %v1911_v24, %v1911_v24 }
 0x157   : > { %1925 = vst.msk [vmem:[%s2802_s30 + $0x10] sm:$0xf] %vm1920_vm5, %v1916_v25  ;;  %v1917_v28 = vpack.c.bf16 %v1909_v26, %v1909_v26 }
 0x158   : > { %1928 = vst.msk [vmem:[%s2802_s30 + $0x1c] sm:$0xf] %vm1920_vm5, %v1919_v27 }
 0x159   : > { %1926 = vst.msk [vmem:[%s2802_s30 + $0x14] sm:$0xf] %vm1920_vm5, %v1917_v28 }
 0x15a PF: > { %p10_p9 = scmp.ge.s32.totalorder %s2477_s16, 4   ;;  %s2836_s12 = smov %s2434_s13 }
 0x15b   : > { %s2837_s13 = smov %s2486_s19  ;;  %s2838_s14 = smov %s2477_s16 }
 0x15c   :  { %12 = sbr.rel (!%p10_p9) target bundleno = 2 (0x2), region = 121 }

// kernel: _lambda_.7
= control target key start
LH: loop header
LB: loop body
LE: loop exit
PB: predicated region body
PF: predicated region fallthrough
CT: control target
= control target key end

     0   :  { %s1576_s12 = smov 0   ;;  %s1578_s13 = smov 0   ;;  %s1785_s0 = inlined_call_operand.vmem [shape: bf16[4,2,5,5,8], index: 0, kind: input, shape index: {}]   ;;  %s1786_s1 = inlined_call_operand.vmem [shape: bf16[9,8,16], index: 1, kind: input, shape index: {}]   ;;  %s1787_s2 = inlined_call_operand.vmem [shape: f32[1,16], index: 2, kind: input, shape index: {}]   ;;  %s1788_s3 = inlined_call_operand.vmem [shape: bf16[2,4,4,16], index: 3, kind: output, shape index: {}]  }
   0x1   :  { %s1580_s14 = smov 0  }
   0x2 LB: > { %s1334_s15 = sadd.s32 4294967295, %s1551_s14   ;;  %s1593_s16 = sadd.s32 1, %s1551_s14   ;;  %s1551_s14 = sphi %s1580_s14, %s1795_s14   ;;  %s1547_s13 = sphi %s1578_s13, %s1794_s13   ;;  %s1543_s12 = sphi %s1576_s12, %s1793_s12  }
   0x3   : > { %s17_s17 = ssub.s32 %s1551_s14, %s1593_s16  ;;  %s20_s18 = sadd.s32 1, %s1547_s13 }
   0x4   : > { %p18_p0 = scmp.eq.s32.totalorder %s17_s17, 0  ;;  %p27_p1 = scmp.ne.s32.totalorder %s1547_s13, %s1543_s12 }
   0x5   : > { %p28_p2 = scmp.eq.s32.totalorder %s1551_s14, 0  ;;  %p1337_p4 = scmp.ge.s32.totalorder %s1551_s14, 2 }
   0x6   : > { %s1602_s19 = scalar_select %p18_p0, %s1547_s13, %s20_s18  }
   0x7   : > { %p29_p3 = por %p28_p2, %p27_p1  ;;  %127 = sbr.rel (%p1337_p4) target bundleno = 25 (0x19), region = 24 }
   0xe   : > { %130 = sbr.rel (!%p29_p3) target bundleno = 25 (0x19), region = 28  ;;  %s132_s20 = sand.u32 (%p29_p3), 1, %s1547_s13  }
   0xf   : > { %s1476_s21 = smul.u32 (%p29_p3), 20, %s1551_s14 }
  0x10   : > { %s1475_s22 = smul.u32 (%p29_p3), 80, %s132_s20 }
  0x11   : > { %s137_s25 = scalar_lea.vmem (%p29_p3), %s1785_s0, %s1476_s21 }
  0x12   : > { %v153_v0 = vld [vmem:[%s137_s25] sm:$0xff] (%p29_p3)   ;;  %v157_v1 = vld [vmem:[%s137_s25 + $0x8] sm:$0xff] (%p29_p3)   ;;  %v161_v2 = vld [vmem:[%s137_s25 + $0x10] sm:$0xf] (%p29_p3)  ;;  %s134_s26 = scalar_lea.vmem (%p29_p3), [#allocation2], %s1475_s22 }
  0x13   : > { %154 = vst [vmem:[%s134_s26] sm:$0xff] (%p29_p3), %v153_v0   ;;  %158 = vst [vmem:[%s134_s26 + $0x8] sm:$0xff] (%p29_p3), %v157_v1   ;;  %v163_v3 = vld [vmem:[%s137_s25 + $0x28] sm:$0xff] (%p29_p3)   ;;  %v167_v4 = vld [vmem:[%s137_s25 + $0x30] sm:$0xff] (%p29_p3)  }
  0x14   : > { %162 = vst [vmem:[%s134_s26 + $0x10] sm:$0xf] (%p29_p3), %v161_v2  ;;  %v171_v5 = vld [vmem:[%s137_s25 + $0x38] sm:$0xf] (%p29_p3)  ;;  %164 = vst [vmem:[%s134_s26 + $0x14] sm:$0xff] (%p29_p3), %v163_v3   ;;  %v173_v6 = vld [vmem:[%s137_s25 + $0x50] sm:$0xff] (%p29_p3)  }
  0x15   : > { %168 = vst [vmem:[%s134_s26 + $0x1c] sm:$0xff] %v167_v4   ;;  %172 = vst [vmem:[%s134_s26 + $0x24] sm:$0xf] %v171_v5  ;;  %v177_v7 = vld [vmem:[%s137_s25 + $0x58] sm:$0xff]   ;;  %v181_v8 = vld [vmem:[%s137_s25 + $0x60] sm:$0xf] }
  0x16   : > { %174 = vst [vmem:[%s134_s26 + $0x28] sm:$0xff] %v173_v6   ;;  %178 = vst [vmem:[%s134_s26 + $0x30] sm:$0xff] %v177_v7   ;;  %v183_v9 = vld [vmem:[%s137_s25 + $0x78] sm:$0xff]   ;;  %v187_v10 = vld [vmem:[%s137_s25 + $0x80] sm:$0xff]  }
  0x17   : > { %182 = vst [vmem:[%s134_s26 + $0x38] sm:$0xf] %v181_v8  ;;  %v191_v11 = vld [vmem:[%s137_s25 + $0x88] sm:$0xf]  ;;  %184 = vst [vmem:[%s134_s26 + $0x3c] sm:$0xff] %v183_v9  }
  0x18   : > { %188 = vst [vmem:[%s134_s26 + $0x44] sm:$0xff] %v187_v10   ;;  %192 = vst [vmem:[%s134_s26 + $0x4c] sm:$0xf] %v191_v11 }
  0x19 PF: > { %p1339_p5 = scmp.ge.s32.totalorder %s1551_s14, 1  ;;  %p254_p6 = scmp.lt.s32.totalorder %s1551_s14, 3 }
  0x1b   : > { %p255_p7 = pnand %p1339_p5, %p254_p6 }
  0x1c   : > { %v1346_v12 = vld [vmem:[%s1786_s1 + $0x4] sm:$0xf] (!%p255_p7)  ;;  %vm328_vm0 = vcmask (!%p255_p7), 1043456   ;;  %v295_v13 = vld [vmem:[%s1786_s1] sm:$0xf] (!%p255_p7)  ;;  %v312_v14 = vlaneseq (!%p255_p7)  ;;  %v1553_v15 = vmov (!%p255_p7), 0.0  }
  0x1d   : > { %258 = sbr.rel (%p255_p7) target bundleno = 308 (0x134), region = 69  ;;  %1421 = vmatprep.subr.bf16.mxu0 (!%p255_p7), %v1553_v15  ;;  %1427 = vmatprep.subr.bf16.mxu1 (!%p255_p7), %v1553_v15  ;;  %v330_v16 = vsel (!%p255_p7), %vm328_vm0, %v1346_v12, 0  ;;  %v398_v17 = vsel (!%p255_p7), %vm328_vm0, %v295_v13, 0  ;;  %s261_s4 = sand.u32 (!%p255_p7), 1, %s1543_s12   ;;  %v1554_v18 = vmov (!%p255_p7), 1983009808  }
  0x1e   : > { %1422 = vmatpush3.bf16.msra.mxu0 (!%p255_p7), %v330_v16  ;;  %1428 = vmatpush3.bf16.msra.mxu1 (!%p255_p7), %v398_v17  ;;  %s1477_s5 = smul.u32 (!%p255_p7), 80, %s261_s4  ;;  %v310_v19 = vunpack.c.l.s4 (!%p255_p7), %v1554_v18  ;;  %v313_v20 = vshrl.u32 (!%p255_p7), %v312_v14, 7  ;;  %v1353_v21 = vld [vmem:[%s1786_s1 + $0x8] sm:$0xf] (!%p255_p7)  ;;  %vm1555_vm1 = vmmov (!%p255_p7), 0   ;;  %vm324_vm2 = vcmask (!%p255_p7), 64512  }
  0x1f   : > { %1423 = vmatprep.mubr.msk.bf16.mxu0 (!%p255_p7), %vm1555_vm1, %v1553_v15  ;;  %1429 = vmatprep.mubr.msk.bf16.mxu1 (!%p255_p7), %vm1555_vm1, %v1553_v15  ;;  %v567_v22 = vsel (!%p255_p7), %vm328_vm0, %v1353_v21, 0  ;;  %v1359_v23 = vld [vmem:[%s1786_s1 + $0xc] sm:$0xf] (!%p255_p7)  ;;  %vm481_vm3 = vsmask.f32 (!%p255_p7), 1280  ;;  %p284_p8 = scmp.lt.s32.totalorder (!%p255_p7), %s1334_s15, 1 }
  0x20   : > { %v311_v24 = vunpack.c.0.s8 (!%p255_p7), %v310_v19  ;;  %1433 = vmatprep.subr.bf16.mxu0 (!%p255_p7), %v1553_v15  ;;  %1439 = vmatprep.subr.bf16.mxu1 (!%p255_p7), %v1553_v15  ;;  %v644_v25 = vsel (!%p255_p7), %vm328_vm0, %v1359_v23, 0  ;;  %vm482_vm4 = vsmask.f32 (!%p255_p7), 3336  ;;  %vm484_vm5 = vsmask.f32 (!%p255_p7), 5392  ;;  %s1637_s10 = scalar_lea.vmem (!%p255_p7), [#allocation2], %s1477_s5 }
  0x21   : > { %v1517_v26 = vld.sshfl [vmem:[%s1637_s10 + $0x14] sm:$0xf pattern:$0x76325410] (!%p255_p7)  ;;  %vm486_vm6 = vsmask.f32 (!%p255_p7), 7448  ;;  %vm483_vm7 = vmor (!%p255_p7), %vm481_vm3, %vm482_vm4 }
  0x22   : > { %v1518_v27 = vld.sshfl [vmem:[%s1637_s10 + $0x1c] sm:$0xf pattern:$0x76325410] (!%p255_p7)  ;;  %v1641_v28 = vsub.s32 (!%p255_p7), %v311_v24, %v313_v20  ;;  %vm1654_vm8 = vmor (!%p255_p7), %vm483_vm7, %vm484_vm5  ;;  %v1375_v10 = vld [vmem:[%s1786_s1 + $0x14] sm:$0xf] (!%p255_p7) }
  0x23   : > { %v1519_v29 = vld.sshfl [vmem:[%s1637_s10] sm:$0xf pattern:$0x76325410] (!%p255_p7)  ;;  %v323_v32 = vcombine.low (!%p255_p7), %v1517_v26, %v1518_v27  ;;  %vm1665_vm9 = vmor (!%p255_p7), %vm1654_vm8, %vm486_vm6  ;;  %v885_v20 = vsel (!%p255_p7), %vm328_vm0, %v1375_v10, 0  ;;  %vm1268_vm10 = vcmask (!%p255_p7), 123904  }
  0x24   : > { %v1520_v30 = vld.sshfl [vmem:[%s1637_s10 + $0x8] sm:$0xf pattern:$0x76325410]  ;;  %v1365_v16 = vld [vmem:[%s1786_s1 + $0x10] sm:$0xf] }
  0x25   : > { %v1349_v31 = vld.sshfl [vmem:[%s1637_s10] sm:$0x13 pattern:$0x76325410]  ;;  %1424 = vmatmul.mubr.msk.bf16.vlgmr.msra.gmra.mrb[0].mxu0 %vm324_vm2, %v323_v32  ;;  %v393_v39 = vcombine.low %v1519_v29, %v1520_v30  ;;  %v721_v27 = vsel %vm328_vm0, %v1365_v16, 0  ;;  %s1797_s15 = smov (!%p284_p8, %s1334_s15), 1 }
  0x26   : > { %v1350_v33 = vld.sshfl [vmem:[%s1637_s10 + $0x4] sm:$0x13 pattern:$0x76325410]  ;;  %v456_v34 = vcombine.high %v1349_v31, %v1349_v31  ;;  %v489_v37 = vshrl.u32 %v1349_v31, 16  ;;  %v492_v38 = vshll.u32 %v1349_v31, 16  ;;  %1434 = vmatpush3.bf16.msra.mxu0 %v567_v22  ;;  %1435 = vmatprep.mubr.msk.bf16.mxu0 %vm1555_vm1, %v1553_v15 }
  0x27   : > { %v1351_v35 = vld.sshfl [vmem:[%s1637_s10 + $0x8] sm:$0x13 pattern:$0x76325410]  ;;  %v464_v36 = vcombine.high %v1350_v33, %v1350_v33  ;;  %v503_v43 = vshrl.u32 %v1350_v33, 16  ;;  %v506_v48 = vshll.u32 %v1350_v33, 16  ;;  %1430 = vmatmul.mubr.msk.bf16.vlgmr.msra.gmra.mrb[0].mxu1 %vm324_vm2, %v393_v39  ;;  %1445 = vmatprep.subr.bf16.mxu0 %v1553_v15 }
  0x28   : > { %v1352_v40 = vld.sshfl [vmem:[%s1637_s10 + $0xc] sm:$0x13 pattern:$0x76325410]  ;;  %v472_v41 = vcombine.high %v1351_v35, %v1351_v35  ;;  %v498_v42 = vshll.u32 %v456_v34, 16  ;;  %v491_v46 = vrot.slane %v489_v37, 6  ;;  %1440 = vmatpush3.bf16.msra.mxu1 %v644_v25  ;;  %1441 = vmatprep.mubr.msk.bf16.mxu1 %vm1555_vm1, %v1553_v15 }
  0x29   : > { %v480_v44 = vcombine.high %v1352_v40, %v1352_v40  ;;  %v494_v47 = vrot.slane %v492_v38, 7  ;;  %v505_v50 = vrot.slane %v503_v43, 6  ;;  %v512_v51 = vshll.u32 %v464_v36, 16  ;;  %1451 = vmatprep.subr.bf16.mxu1 %v1553_v15  ;;  %s1402_s28 = sshll.u32 %s1797_s15, 3 }
  0x2a   : > { %v500_v49 = vrot.slane %v498_v42, 7  ;;  %v517_v52 = vshrl.u32 %v1351_v35, 16  ;;  %v508_v54 = vrot.slane %v506_v48, 7  ;;  %v520_v55 = vshll.u32 %v1351_v35, 16  ;;  %s288_s30 = scalar_lea.vmem %s1788_s3, %s1402_s28 }
  0x2b   : > { %v495_v53 = vor.u32 %v494_v47, %v491_v46  ;;  %v526_v56 = vshll.u32 %v472_v41, 16  ;;  %v531_v59 = vshrl.u32 %v1352_v40, 16  ;;  %v534_v60 = vshll.u32 %v1352_v40, 16 }
  0x2c   : > { %v519_v58 = vrot.slane %v517_v52, 6  ;;  %v509_v62 = vor.u32 %v508_v54, %v505_v50  ;;  %v514_v63 = vrot.slane %v512_v51, 7  ;;  %v522_v0 = vrot.slane %v520_v55, 7 }
  0x2d   : > { %v496_v61 = vrot.slane %v495_v53, 2  ;;  %v1521_v1 = vld.sshfl [vmem:[%s1637_s10 + $0x28] sm:$0xf pattern:$0x76325410]  ;;  %v528_v2 = vrot.slane %v526_v56, 7 }
  0x2e   : > { %v533_v3 = vrot.slane %v531_v59, 6  ;;  %v536_v4 = vrot.slane %v534_v60, 7  ;;  %v540_v5 = vshll.u32 %v480_v44, 16  ;;  %v510_v8 = vrot.slane %v509_v62, 2 }
  0x2f   : > { %v1522_v6 = vld.sshfl [vmem:[%s1637_s10 + $0x30] sm:$0xf pattern:$0x76325410]  ;;  %v501_v7 = vsel %vm1665_vm9, %v496_v61, %v500_v49  ;;  %v523_v9 = vor.u32 %v522_v0, %v519_v58 }
  0x30   : > { %v537_v11 = vor.u32 %v536_v4, %v533_v3  ;;  %v542_v12 = vrot.slane %v540_v5, 7  ;;  %v1679_v13 = vsel %vm1665_vm9, %v510_v8, %v514_v63  ;;  %v639_v19 = vcombine.low %v1521_v1, %v1522_v6  ;;  %v1687_v21 = vld.sshfl [vmem:[%s1637_s10 + $0x3c] sm:$0xf pattern:$0x76325410] }
  0x31   : > { %v524_v14 = vrot.slane %v523_v9, 2  ;;  %v546_v18 = vcombine.low %v501_v7, %v1679_v13  ;;  %v1694_v23 = vld.sshfl [vmem:[%s1637_s10 + $0x44] sm:$0xf pattern:$0x76325410] }
  0x32   : > { %v538_v17 = vrot.slane %v537_v11, 2  ;;  %v1371_v24 = vld.sshfl [vmem:[%s1637_s10 + $0x28] sm:$0x13 pattern:$0x76325410]  ;;  %1442 = vmatmul.mubr.msk.bf16.vlgmr.msra.gmra.mrb[4].mxu1 %vm324_vm2, %v639_v19  ;;  %v716_v6 = vcombine.low %v1687_v21, %v1694_v23 }
  0x33   : > { %v1691_v22 = vsel %vm1665_vm9, %v524_v14, %v528_v2  ;;  %v554_v26 = vrot.slane %v546_v18, %v1641_v28  ;;  %v1372_v29 = vld.sshfl [vmem:[%s1637_s10 + $0x2c] sm:$0x13 pattern:$0x76325410]  ;;  %v781_v30 = vcombine.high %v1371_v24, %v1371_v24  ;;  %1452 = vmatpush3.bf16.msra.mxu1 %v885_v20  ;;  %1453 = vmatprep.mubr.msk.bf16.mxu1 %vm1555_vm1, %v1553_v15  ;;  %v807_v34 = vshrl.u32 %v1371_v24, 16 }
  0x34   : > { %v1699_v25 = vsel %vm1665_vm9, %v538_v17, %v542_v12  ;;  %v1373_v32 = vld.sshfl [vmem:[%s1637_s10 + $0x30] sm:$0x13 pattern:$0x76325410]  ;;  %v789_v33 = vcombine.high %v1372_v29, %v1372_v29  ;;  %v810_v35 = vshll.u32 %v1371_v24, 16  ;;  %v821_v39 = vshrl.u32 %v1372_v29, 16  ;;  %1463 = vmatprep.subr.bf16.mxu1 %v1553_v15 }
  0x35   : > { %v547_v31 = vcombine.low %v1691_v22, %v1699_v25  ;;  %v1374_v36 = vld.sshfl [vmem:[%s1637_s10 + $0x34] sm:$0x13 pattern:$0x76325410]  ;;  %v797_v37 = vcombine.high %v1373_v32, %v1373_v32  ;;  %v816_v38 = vshll.u32 %v781_v30, 16  ;;  %v809_v41 = vrot.slane %v807_v34, 6 }
  0x36   : > { %v812_v42 = vrot.slane %v810_v35, 7  ;;  %v805_v43 = vcombine.high %v1374_v36, %v1374_v36  ;;  %v823_v44 = vrot.slane %v821_v39, 6  ;;  %v824_v45 = vshll.u32 %v1372_v29, 16  ;;  %v1381_v3 = vld [vmem:[%s1786_s1 + $0x18] sm:$0xf] }
  0x37   : > { %v561_v40 = vrot.slane %v547_v31, %v1641_v28  ;;  %v830_v46 = vshll.u32 %v789_v33, 16  ;;  %v835_v49 = vshrl.u32 %v1373_v32, 16  ;;  %v838_v50 = vshll.u32 %v1373_v32, 16  ;;  %v1387_v32 = vld [vmem:[%s1786_s1 + $0x1c] sm:$0xf] }
  0x38   : > { %v813_v48 = vor.u32 %v812_v42, %v809_v41  ;;  %v818_v51 = vrot.slane %v816_v38, 7  ;;  %v826_v52 = vrot.slane %v824_v45, 7  ;;  %v844_v53 = vshll.u32 %v797_v37, 16  ;;  %v1397_v33 = vld [vmem:[%s1786_s1 + $0x20] sm:$0xf] }
  0x39   : > { %v562_v47 = vcombine.low %v554_v26, %v561_v40  ;;  %v849_v54 = vshrl.u32 %v1374_v36, 16  ;;  %v837_v56 = vrot.slane %v835_v49, 6  ;;  %v840_v58 = vrot.slane %v838_v50, 7 }
  0x3a   : > { %v814_v55 = vrot.slane %v813_v48, 2  ;;  %v852_v59 = vshll.u32 %v1374_v36, 16  ;;  %v827_v60 = vor.u32 %v826_v52, %v823_v44  ;;  %v832_v61 = vrot.slane %v830_v46, 7 }
  0x3b   : > { %1436 = vmatmul.mubr.msk.bf16.vlgmr.msra.gmra.mrb[4].mxu0 %vm324_vm2, %v562_v47  ;;  %v851_v62 = vrot.slane %v849_v54, 6  ;;  %v858_v63 = vshll.u32 %v805_v43, 16  ;;  %v841_v0 = vor.u32 %v840_v58, %v837_v56  ;;  %v846_v1 = vrot.slane %v844_v53, 7 }
  0x3c   : > { %1446 = vmatpush3.bf16.msra.mxu0 %v721_v27  ;;  %1447 = vmatprep.mubr.msk.bf16.mxu0 %vm1555_vm1, %v1553_v15  ;;  %v854_v2 = vrot.slane %v852_v59, 7  ;;  %v819_v4 = vsel %vm1665_vm9, %v814_v55, %v818_v51  ;;  %v828_v5 = vrot.slane %v827_v60, 2  ;;  %v1525_v10 = vld.sshfl [vmem:[%s1637_s10 + $0x4] sm:$0xf pattern:$0x76325410]  ;;  %v1182_v40 = vcombine.low %v1679_v13, %v1691_v22 }
  0x3d   : > { %1457 = vmatprep.subr.bf16.mxu0 %v1553_v15  ;;  %v842_v7 = vrot.slane %v841_v0, 2  ;;  %v860_v9 = vrot.slane %v858_v63, 7  ;;  %v1526_v11 = vld.sshfl [vmem:[%s1637_s10 + $0xc] sm:$0xf pattern:$0x76325410] }
  0x3e   : > { %v855_v8 = vor.u32 %v854_v2, %v851_v62  ;;  %v833_v12 = vsel %vm1665_vm9, %v828_v5, %v832_v61  ;;  %v1396_v14 = vld.sshfl [vmem:[%s1637_s10 + $0x10] sm:$0x13 pattern:$0x76325410]  ;;  %v962_v16 = vsel %vm328_vm0, %v1381_v3, 0  ;;  %v957_v39 = vcombine.low %v1525_v10, %v1526_v11 }
  0x3f   : > { %v847_v17 = vsel %vm1665_vm9, %v842_v7, %v846_v1  ;;  %v864_v19 = vcombine.low %v819_v4, %v833_v12  ;;  %v1123_v20 = vcombine.high %v1396_v14, %v1396_v14  ;;  %v1167_v24 = vshrl.u32 %v1396_v14, 16  ;;  %v1527_v35 = vld.sshfl [vmem:[%s1637_s10 + $0x18] sm:$0xf pattern:$0x76325410] }
  0x40   : > { %v856_v18 = vrot.slane %v855_v8, 2  ;;  %v1170_v21 = vshll.u32 %v1396_v14, 16  ;;  %v1528_v36 = vld.sshfl [vmem:[%s1637_s10 + $0x20] sm:$0xf pattern:$0x76325410]  ;;  %v1190_v47 = vrot.slane %v1182_v40, %v1641_v28 }
  0x41   : > { %v872_v26 = vrot.slane %v864_v19, %v1641_v28  ;;  %v1169_v29 = vrot.slane %v1167_v24, 6  ;;  %v1176_v31 = vshll.u32 %v1123_v20, 16  ;;  %v1039_v42 = vsel %vm328_vm0, %v1387_v32, 0  ;;  %v1399_v32 = vld [vmem:[%s1787_s2] ss:$0 sm:$0xff] }
  0x42   : > { %v861_v23 = vsel %vm1665_vm9, %v856_v18, %v860_v9  ;;  %v1172_v30 = vrot.slane %v1170_v21, 7  ;;  %v1203_v44 = vsel %vm328_vm0, %v1397_v33, 0  ;;  %v1034_v22 = vcombine.low %v1527_v35, %v1528_v36 }
  0x43   : > { %1448 = vmatmul.mubr.msk.bf16.vlgmr.msra.gmra.mrb[8].mxu0 %vm324_vm2, %v716_v6  ;;  %v865_v27 = vcombine.low %v847_v17, %v861_v23  ;;  %v1178_v38 = vrot.slane %v1176_v31, 7 }
  0x44   : > { %1458 = vmatpush3.bf16.msra.mxu0 %v962_v16  ;;  %1459 = vmatprep.mubr.msk.bf16.mxu0 %vm1555_vm1, %v1553_v15  ;;  %v1173_v37 = vor.u32 %v1172_v30, %v1169_v29 }
  0x45   : > { %1469 = vmatprep.subr.bf16.mxu0 %v1553_v15  ;;  %v879_v34 = vrot.slane %v865_v27, %v1641_v28 }
  0x46   : > { %v1174_v43 = vrot.slane %v1173_v37, 2 }
  0x47   : > { %v880_v41 = vcombine.low %v872_v26, %v879_v34 }
  0x48   : > { %v1179_v45 = vsel %vm1665_vm9, %v1174_v43, %v1178_v38 }
  0x49   : > { %1454 = vmatmul.mubr.msk.bf16.vlgmr.msra.gmra.mrb[8].mxu1 %vm324_vm2, %v880_v41  ;;  %v1183_v46 = vcombine.low %v1699_v25, %v1179_v45 }
  0x4a   : > { %1464 = vmatpush3.bf16.msra.mxu1 %v1039_v42  ;;  %1465 = vmatprep.mubr.msk.bf16.mxu1 %vm1555_vm1, %v1553_v15 }
  0x4b   : > { %1460 = vmatmul.mubr.msk.bf16.vlgmr.msra.gmra.mrb[12].mxu0 %vm324_vm2, %v957_v39  ;;  %v1197_v13 = vrot.slane %v1183_v46, %v1641_v28 }
  0x4c   : > { %1470 = vmatpush3.bf16.msra.mxu0 %v1203_v44  ;;  %1471 = vmatprep.mubr.msk.bf16.mxu0 %vm1555_vm1, %v1553_v15 }
  0x4d   : > { %v1198_v48 = vcombine.low %v1190_v47, %v1197_v13 }
  0x51   : > { %1466 = vmatmul.mubr.msk.bf16.vlgmr.msra.gmra.mrb[12].mxu1 %vm324_vm2, %v1034_v22 }
  0x53   : > { %1472 = vmatmul.mubr.msk.bf16.vlgmr.msra.gmra.mrb[16].mxu0 %vm324_vm2, %v1198_v48 }
  0xf8   : > { %v366_v57 = vpop.f32.mrb[0].mxu0 }
  0xf9   : > { %v1425_v49 = vpop.f32.mrb[1].mxu0 }
  0xfa   : > { %v434_v25 = vpop.f32.mrb[0].mxu1  ;;  %v369_v50 = vpop.f32.mrb[2].mxu0 }
  0xfb   : > { %v435_v51 = vadd.f32 %v434_v25, %v366_v57  ;;  %v1431_v52 = vpop.f32.mrb[1].mxu1  ;;  %v1426_v53 = vpop.f32.mrb[3].mxu0 }
  0xfc   : > { %v437_v54 = vpop.f32.mrb[2].mxu1 }
  0xfd   : > { %v438_v55 = vadd.f32 %v437_v54, %v369_v50  ;;  %v1432_v56 = vpop.f32.mrb[3].mxu1 }
 0x105   : > { %v680_v58 = vpop.f32.mrb[4].mxu1 }
 0x106   : > { %v1443_v15 = vpop.f32.mrb[5].mxu1 }
 0x107   : > { %v683_v59 = vpop.f32.mrb[6].mxu1 }
 0x108   : > { %v1444_v28 = vpop.f32.mrb[7].mxu1 }
 0x10e   : > { %v603_v60 = vpop.f32.mrb[4].mxu0 }
 0x10f   : > { %v610_v61 = vadd.f32 %v603_v60, %v435_v51  ;;  %v1437_v62 = vpop.f32.mrb[5].mxu0 }
 0x110   : > { %v606_v63 = vpop.f32.mrb[6].mxu0 }
 0x111   : > { %v611_v0 = vadd.f32 %v606_v63, %v438_v55  ;;  %v687_v1 = vadd.f32 %v680_v58, %v610_v61  ;;  %v1438_v2 = vpop.f32.mrb[7].mxu0 }
 0x113   : > { %v688_v3 = vadd.f32 %v683_v59, %v611_v0 }
 0x116   : > { %v757_v4 = vpop.f32.mrb[8].mxu0 }
 0x117   : > { %v764_v5 = vadd.f32 %v757_v4, %v687_v1  ;;  %v1449_v6 = vpop.f32.mrb[9].mxu0 }
 0x118   : > { %v760_v7 = vpop.f32.mrb[10].mxu0 }
 0x119   : > { %v765_v8 = vadd.f32 %v760_v7, %v688_v3  ;;  %v1450_v9 = vpop.f32.mrb[11].mxu0 }
 0x11c   : > { %v921_v10 = vpop.f32.mrb[8].mxu1 }
 0x11d   : > { %v928_v11 = vadd.f32 %v921_v10, %v764_v5  ;;  %v1455_v12 = vpop.f32.mrb[9].mxu1 }
 0x11e   : > { %v998_v14 = vpop.f32.mrb[12].mxu0  ;;  %v924_v16 = vpop.f32.mrb[10].mxu1 }
 0x11f   : > { %v1461_v17 = vpop.f32.mrb[13].mxu0  ;;  %v929_v18 = vadd.f32 %v924_v16, %v765_v8  ;;  %v1456_v19 = vpop.f32.mrb[11].mxu1  ;;  %v1005_v20 = vadd.f32 %v998_v14, %v928_v11 }
 0x120   : > { %v1001_v24 = vpop.f32.mrb[14].mxu0 }
 0x121   : > { %v1462_v21 = vpop.f32.mrb[15].mxu0  ;;  %v1006_v23 = vadd.f32 %v1001_v24, %v929_v18 }
 0x124   : > { %v1075_v26 = vpop.f32.mrb[12].mxu1 }
 0x125   : > { %v1082_v27 = vadd.f32 %v1075_v26, %v1005_v20  ;;  %v1467_v29 = vpop.f32.mrb[13].mxu1 }
 0x126   : > { %v1239_v30 = vpop.f32.mrb[16].mxu0  ;;  %v1078_v31 = vpop.f32.mrb[14].mxu1 }
 0x127   : > { %v1473_v33 = vpop.f32.mrb[17].mxu0  ;;  %v1083_v34 = vadd.f32 %v1078_v31, %v1006_v23  ;;  %v1468_v35 = vpop.f32.mrb[15].mxu1  ;;  %v1246_v36 = vadd.f32 %v1239_v30, %v1082_v27 }
 0x128   : > { %v1242_v37 = vpop.f32.mrb[18].mxu0 }
 0x129   : > { %v1474_v38 = vpop.f32.mrb[19].mxu0  ;;  %v1254_v39 = vadd.f32 %v1399_v32, %v1246_v36  ;;  %v1247_v40 = vadd.f32 %v1242_v37, %v1083_v34 }
 0x12b   : > { %v1256_v41 = vmax.f32 %v1254_v39, 0.0  ;;  %v1255_v42 = vadd.f32 %v1399_v32, %v1247_v40 }
 0x12d   : > { %v1260_v43 = vcombine.high %v1256_v41, %v1256_v41  ;;  %v1264_v44 = vpack.c.bf16 %v1256_v41, %v1256_v41  ;;  %v1257_v45 = vmax.f32 %v1255_v42, 0.0 }
 0x12f   : > { %v1265_v46 = vpack.c.bf16 %v1260_v43, %v1260_v43  ;;  %1269 = vst.msk [vmem:[%s288_s30] sm:$0x3] %vm1268_vm10, %v1264_v44  ;;  %v1261_v47 = vcombine.high %v1257_v45, %v1257_v45  ;;  %v1266_v13 = vpack.c.bf16 %v1257_v45, %v1257_v45 }
 0x131   : > { %1270 = vst.msk [vmem:[%s288_s30 + $0x2] sm:$0x3] %vm1268_vm10, %v1265_v46  ;;  %v1267_v22 = vpack.c.bf16 %v1261_v47, %v1261_v47  ;;  %1271 = vst.msk [vmem:[%s288_s30 + $0x4] sm:$0x3] %vm1268_vm10, %v1266_v13 }
 0x133   : > { %1272 = vst.msk [vmem:[%s288_s30 + $0x6] sm:$0x3] %vm1268_vm10, %v1267_v22 }
 0x134 PF: > { %p10_p9 = scmp.ge.s32.totalorder %s1593_s16, 4   ;;  %s1793_s12 = smov %s1547_s13 }
 0x135   : > { %s1794_s13 = smov %s1602_s19  ;;  %s1795_s14 = smov %s1593_s16 }
 0x136   :  { %12 = sbr.rel (!%p10_p9) target bundleno = 2 (0x2), region = 121 }

// kernel: _lambda_.8
= control target key start
LH: loop header
LB: loop body
LE: loop exit
PB: predicated region body
PF: predicated region fallthrough
CT: control target
= control target key end

     0   :  { %s1338_s12 = smov 0   ;;  %s1340_s13 = smov 0   ;;  %s1519_s0 = inlined_call_operand.vmem [shape: bf16[4,2,3,3,16], index: 0, kind: input, shape index: {}]   ;;  %s1520_s1 = inlined_call_operand.vmem [shape: bf16[9,16,32], index: 1, kind: input, shape index: {}]   ;;  %s1521_s2 = inlined_call_operand.vmem [shape: f32[1,32], index: 2, kind: input, shape index: {}]   ;;  %s1522_s3 = inlined_call_operand.vmem [shape: bf16[2,2,2,32], index: 3, kind: output, shape index: {}]  }
   0x1   :  { %s1342_s14 = smov 0  }
   0x2 LB: > { %s1108_s15 = sadd.s32 4294967295, %s1312_s14   ;;  %s1355_s16 = sadd.s32 1, %s1312_s14   ;;  %s1312_s14 = sphi %s1342_s14, %s1527_s14   ;;  %s1308_s13 = sphi %s1340_s13, %s1526_s13   ;;  %s1304_s12 = sphi %s1338_s12, %s1525_s12  }
   0x3   : > { %s17_s17 = ssub.s32 %s1312_s14, %s1355_s16  ;;  %s20_s18 = sadd.s32 1, %s1308_s13 }
   0x4   : > { %p18_p0 = scmp.eq.s32.totalorder %s17_s17, 0  ;;  %p27_p1 = scmp.ne.s32.totalorder %s1308_s13, %s1304_s12 }
   0x5   : > { %p28_p2 = scmp.eq.s32.totalorder %s1312_s14, 0  ;;  %p1111_p4 = scmp.ge.s32.totalorder %s1312_s14, 2 }
   0x6   : > { %s1364_s19 = scalar_select %p18_p0, %s1308_s13, %s20_s18  }
   0x7   : > { %p29_p3 = por %p28_p2, %p27_p1  ;;  %127 = sbr.rel (%p1111_p4) target bundleno = 24 (0x18), region = 24 }
   0xe   : > { %130 = sbr.rel (!%p29_p3) target bundleno = 24 (0x18), region = 28  ;;  %s132_s20 = sand.u32 (%p29_p3), 1, %s1308_s13  }
   0xf   : > { %s1251_s21 = smul.u32 (%p29_p3), 6, %s1312_s14 }
  0x10   : > { %s1250_s22 = smul.u32 (%p29_p3), 24, %s132_s20 }
  0x11   : > { %s137_s25 = scalar_lea.vmem (%p29_p3), %s1519_s0, %s1251_s21 }
  0x12   : > { %v153_v0 = vld [vmem:[%s137_s25] sm:$0xf] (%p29_p3)   ;;  %v157_v1 = vld [vmem:[%s137_s25 + $0x4] sm:$0x3] (%p29_p3)  ;;  %s134_s26 = scalar_lea.vmem (%p29_p3), [#allocation2], %s1250_s22 }
  0x13   : > { %154 = vst [vmem:[%s134_s26] sm:$0xf] (%p29_p3), %v153_v0   ;;  %158 = vst [vmem:[%s134_s26 + $0x4] sm:$0x3] (%p29_p3), %v157_v1  ;;  %v159_v2 = vld [vmem:[%s137_s25 + $0xc] sm:$0xf] (%p29_p3)  }
  0x14   : > { %v163_v3 = vld [vmem:[%s137_s25 + $0x10] sm:$0x3] (%p29_p3)  ;;  %v165_v4 = vld [vmem:[%s137_s25 + $0x18] sm:$0xf] (%p29_p3)   ;;  %160 = vst [vmem:[%s134_s26 + $0x6] sm:$0xf] (%p29_p3), %v159_v2  }
  0x15   : > { %164 = vst [vmem:[%s134_s26 + $0xa] sm:$0x3] %v163_v3  ;;  %166 = vst [vmem:[%s134_s26 + $0xc] sm:$0xf] %v165_v4   ;;  %v169_v5 = vld [vmem:[%s137_s25 + $0x1c] sm:$0x3] }
  0x16   : > { %v171_v6 = vld [vmem:[%s137_s25 + $0x24] sm:$0xf]   ;;  %v175_v7 = vld [vmem:[%s137_s25 + $0x28] sm:$0x3]  ;;  %170 = vst [vmem:[%s134_s26 + $0x10] sm:$0x3] %v169_v5 }
  0x17   : > { %172 = vst [vmem:[%s134_s26 + $0x12] sm:$0xf] %v171_v6   ;;  %176 = vst [vmem:[%s134_s26 + $0x16] sm:$0x3] %v175_v7 }
  0x18 PF: > { %p1113_p5 = scmp.ge.s32.totalorder %s1312_s14, 1  ;;  %p222_p6 = scmp.lt.s32.totalorder %s1312_s14, 3 }
  0x1a   : > { %p223_p7 = pnand %p1113_p5, %p222_p6 }
  0x1b   : > { %v1281_v8 = vld [vmem:[%s1520_s1 + $0x8] sm:$0xff] (!%p223_p7)   ;;  %v273_v9 = vlaneseq (!%p223_p7)  ;;  %v1314_v10 = vmov (!%p223_p7), 0.0   ;;  %v1282_v11 = vld [vmem:[%s1520_s1] sm:$0xff] (!%p223_p7)   ;;  %vm1315_vm0 = vmmov (!%p223_p7), 0   ;;  %s229_s4 = sand.u32 (!%p223_p7), 1, %s1304_s12   ;;  %vm290_vm2 = vcmask (!%p223_p7), 130048  }
  0x1c   : > { %226 = sbr.rel (%p223_p7) target bundleno = 296 (0x128), region = 69  ;;  %1196 = vmatprep.subr.bf16.mxu0 (!%p223_p7), %v1314_v10  ;;  %1202 = vmatprep.subr.bf16.mxu1 (!%p223_p7), %v1314_v10  ;;  %v1316_v12 = vmov (!%p223_p7), 1966171168   ;;  %vm420_vm1 = vsmask.f32 (!%p223_p7), 256  ;;  %v1283_v29 = vld [vmem:[%s1520_s1 + $0x10] sm:$0xff] (!%p223_p7)  }
  0x1d   : > { %1197 = vmatpush3.bf16.msra.mxu0 (!%p223_p7), %v1281_v8  ;;  %1198 = vmatprep.mubr.msk.bf16.mxu0 (!%p223_p7), %vm1315_vm0, %v1314_v10  ;;  %s1252_s5 = smul.u32 (!%p223_p7), 24, %s229_s4  ;;  %v271_v13 = vunpack.c.l.s4 (!%p223_p7), %v1316_v12  ;;  %v1387_v14 = vshrl.u32 (!%p223_p7), %v273_v9, 7  ;;  %vm421_vm3 = vsmask.f32 (!%p223_p7), 1284  ;;  %vm423_vm4 = vsmask.f32 (!%p223_p7), 2312 }
  0x1e   : > { %1203 = vmatpush3.bf16.msra.mxu1 (!%p223_p7), %v1282_v11  ;;  %1204 = vmatprep.mubr.msk.bf16.mxu1 (!%p223_p7), %vm1315_vm0, %v1314_v10  ;;  %vm422_vm5 = vmor (!%p223_p7), %vm420_vm1, %vm421_vm3  ;;  %vm425_vm7 = vsmask.f32 (!%p223_p7), 3340  ;;  %vm427_vm9 = vsmask.f32 (!%p223_p7), 4368  ;;  %vm429_vm10 = vsmask.f32 (!%p223_p7), 5396 }
  0x1f   : > { %1208 = vmatprep.subr.bf16.mxu0 (!%p223_p7), %v1314_v10  ;;  %1214 = vmatprep.subr.bf16.mxu1 (!%p223_p7), %v1314_v10  ;;  %v272_v15 = vunpack.c.0.s8 (!%p223_p7), %v271_v13  ;;  %s1391_s6 = scalar_lea.vmem (!%p223_p7), [#allocation2], %s1252_s5  ;;  %vm424_vm6 = vmor (!%p223_p7), %vm422_vm5, %vm423_vm4  ;;  %vm431_vm12 = vsmask.f32 (!%p223_p7), 6424  ;;  %vm433_vm13 = vsmask.f32 (!%p223_p7), 7452  ;;  %v1284_v32 = vld [vmem:[%s1520_s1 + $0x18] sm:$0xff] (!%p223_p7)  }
  0x20   : > { %v1115_v16 = vld [vmem:[%s1391_s6 + $0x6] sm:$0x1] (!%p223_p7)  ;;  %v1116_v17 = vld [vmem:[%s1391_s6 + $0x8] sm:$0x1] (!%p223_p7)  ;;  %v257_v18 = vld [vmem:[%s1391_s6] sm:$0x1] (!%p223_p7) }
  0x21   : > { %v269_v19 = vcombine.low (!%p223_p7), %v1115_v16, %v1116_v17  ;;  %v1397_v20 = vsub.s32 (!%p223_p7), %v272_v15, %v1387_v14  ;;  %v258_v21 = vld [vmem:[%s1391_s6 + $0x2] sm:$0x1] (!%p223_p7)  ;;  %v1123_v22 = vld.sshfl [vmem:[%s1391_s6] sm:$0x11 pattern:$0x75316420] (!%p223_p7)  ;;  %vm426_vm8 = vmor (!%p223_p7), %vm424_vm6, %vm425_vm7 }
  0x22   : > { %v336_v23 = vcombine.low (!%p223_p7), %v257_v18, %v258_v21  ;;  %v1124_v24 = vld.sshfl [vmem:[%s1391_s6 + $0x2] sm:$0x11 pattern:$0x75316420] (!%p223_p7)  ;;  %v411_v25 = vcombine.high (!%p223_p7), %v1123_v22, %v1123_v22  ;;  %vm428_vm11 = vmor (!%p223_p7), %vm426_vm8, %vm427_vm9  ;;  %v436_v30 = vshrl.u32 (!%p223_p7), %v1123_v22, 16  ;;  %v1286_v59 = vld [vmem:[%s1520_s1 + $0x28] sm:$0xff] (!%p223_p7)  }
  0x23   : > { %v276_v26 = vrot.slane %v269_v19, %v1397_v20  ;;  %v419_v27 = vcombine.high %v1124_v24, %v1124_v24  ;;  %vm430_vm14 = vmor %vm428_vm11, %vm429_vm10  ;;  %v445_v34 = vshrl.u32 %v1124_v24, 16  ;;  %v1131_v37 = vld [vmem:[%s1391_s6 + $0xc] sm:$0x1]  ;;  %v1132_v38 = vld [vmem:[%s1391_s6 + $0xe] sm:$0x1]  ;;  %p251_p8 = scmp.lt.s32.totalorder %s1108_s15, 1 }
  0x24   : > { %v343_v28 = vrot.slane %v336_v23, %v1397_v20  ;;  %v441_v33 = vshll.u32 %v411_v25, 16  ;;  %vm432_vm15 = vmor %vm430_vm14, %vm431_vm12  ;;  %v529_v40 = vcombine.low %v1131_v37, %v1132_v38  ;;  %v1137_v43 = vld [vmem:[%s1391_s6 + $0x12] sm:$0x1]  ;;  %v1138_v44 = vld [vmem:[%s1391_s6 + $0x14] sm:$0x1] }
  0x25   : > { %v283_v31 = vrot.slane %v276_v26, %v1397_v20  ;;  %v450_v35 = vshll.u32 %v419_v27, 16  ;;  %vm1415_vm1 = vmor %vm432_vm15, %vm433_vm13  ;;  %v1145_v47 = vld.sshfl [vmem:[%s1391_s6 + $0xc] sm:$0x11 pattern:$0x75316420]  ;;  %v602_v52 = vcombine.low %v1137_v43, %v1138_v44  ;;  %v1287_v11 = vld [vmem:[%s1520_s1 + $0x30] sm:$0xff]  }
  0x26   : > { %v350_v36 = vrot.slane %v343_v28, %v1397_v20  ;;  %v443_v41 = vsel %vm1415_vm1, %v436_v30, %v441_v33  ;;  %v536_v46 = vrot.slane %v529_v40, %v1397_v20  ;;  %v1146_v48 = vld.sshfl [vmem:[%s1391_s6 + $0xe] sm:$0x11 pattern:$0x75316420]  ;;  %v678_v49 = vcombine.high %v1145_v47, %v1145_v47  ;;  %v1153_v2 = vld [vmem:[%s1391_s6 + $0x2] sm:$0x1] }
  0x27   : > { %1199 = vmatmul.mubr.msk.bf16.vlgmr.msra.gmra.mrb[0].mxu0 %vm290_vm2, %v283_v31  ;;  %v1424_v42 = vsel %vm1415_vm1, %v445_v34, %v450_v35  ;;  %v688_v50 = vshrl.u32 %v1145_v47, 16  ;;  %v686_v53 = vcombine.high %v1146_v48, %v1146_v48  ;;  %v1285_v54 = vld [vmem:[%s1520_s1 + $0x20] sm:$0xff]   ;;  %v697_v57 = vshrl.u32 %v1146_v48, 16  ;;  %v1288_v17 = vld [vmem:[%s1520_s1 + $0x38] sm:$0xff]   ;;  %s1529_s15 = smov (!%p251_p8, %s1108_s15), 1 }
  0x28   : > { %1205 = vmatmul.mubr.msk.bf16.vlgmr.msra.gmra.mrb[0].mxu1 %vm290_vm2, %v350_v36  ;;  %1209 = vmatpush3.bf16.msra.mxu0 %v1283_v29  ;;  %v456_v45 = vcombine.low %v443_v41, %v1424_v42  ;;  %v543_v55 = vrot.slane %v536_v46, %v1397_v20  ;;  %v693_v56 = vshll.u32 %v678_v49, 16  ;;  %v1168_v62 = vld.sshfl [vmem:[%s1391_s6 + $0x4] sm:$0x11 pattern:$0x75316420]  ;;  %v609_v63 = vrot.slane %v602_v52, %v1397_v20  ;;  %s1114_s28 = sshll.u32 %s1529_s15, 1 }
  0x29   : > { %1215 = vmatpush3.bf16.msra.mxu1 %v1284_v32  ;;  %1210 = vmatprep.mubr.msk.bf16.mxu0 %vm1315_vm0, %v1314_v10  ;;  %v702_v60 = vshll.u32 %v686_v53, 16  ;;  %v1154_v3 = vld [vmem:[%s1391_s6 + $0x4] sm:$0x1]  ;;  %v938_v4 = vcombine.high %v1168_v62, %v1168_v62  ;;  %v1159_v5 = vld [vmem:[%s1391_s6 + $0x8] sm:$0x1]  ;;  %v949_v15 = vshrl.u32 %v1168_v62, 16  ;;  %s254_s4 = scalar_lea.vmem %s1522_s3, %s1114_s28 }
  0x2a   : > { %1220 = vmatprep.subr.bf16.mxu0 %v1314_v10  ;;  %1216 = vmatprep.mubr.msk.bf16.mxu1 %vm1315_vm0, %v1314_v10  ;;  %v463_v51 = vrot.slane %v456_v45, %v1397_v20  ;;  %v695_v61 = vsel %vm1415_vm1, %v688_v50, %v693_v56  ;;  %v1160_v6 = vld [vmem:[%s1391_s6 + $0xa] sm:$0x1]  ;;  %v616_v8 = vrot.slane %v609_v63, %v1397_v20 }
  0x2b   : > { %1226 = vmatprep.subr.bf16.mxu1 %v1314_v10  ;;  %v704_v0 = vsel %vm1415_vm1, %v697_v57, %v702_v60  ;;  %v781_v9 = vcombine.low %v1153_v2, %v1154_v3  ;;  %v854_v13 = vcombine.low %v1159_v5, %v1160_v6  ;;  %v954_v16 = vshll.u32 %v938_v4, 16  ;;  %v1289_v24 = vld [vmem:[%s1520_s1 + $0x40] sm:$0xff]  }
  0x2c   : > { %v470_v58 = vrot.slane %v463_v51, %v1397_v20  ;;  %v708_v1 = vcombine.low %v695_v61, %v704_v0  ;;  %v1317_v0 = vmov 1983009808   ;;  %v1175_v4 = vld [vmem:[%s1521_s2] ss:$0 sm:$0xff] }
  0x2d   : > { %v788_v18 = vrot.slane %v781_v9, %v1397_v20  ;;  %v861_v19 = vrot.slane %v854_v13, %v1397_v20  ;;  %v956_v21 = vsel %vm1415_vm1, %v949_v15, %v954_v16 }
  0x2e   : > { %v715_v7 = vrot.slane %v708_v1, %v1397_v20  ;;  %v960_v23 = vcombine.low %v1424_v42, %v956_v21  ;;  %v1035_v1 = vunpack.c.l.s4 %v1317_v0 }
  0x2f   : > { %1211 = vmatmul.mubr.msk.bf16.vlgmr.msra.gmra.mrb[4].mxu0 %vm290_vm2, %v470_v58  ;;  %v795_v22 = vrot.slane %v788_v18, %v1397_v20  ;;  %v868_v25 = vrot.slane %v861_v19, %v1397_v20 }
  0x30   : > { %1221 = vmatpush3.bf16.msra.mxu0 %v1285_v54  ;;  %1217 = vmatmul.mubr.msk.bf16.vlgmr.msra.gmra.mrb[4].mxu1 %vm290_vm2, %v543_v55  ;;  %v722_v12 = vrot.slane %v715_v7, %v1397_v20  ;;  %v967_v26 = vrot.slane %v960_v23, %v1397_v20  ;;  %v1036_v3 = vunpack.c.0.s8 %v1035_v1 }
  0x31   : > { %1227 = vmatpush3.bf16.msra.mxu1 %v1286_v59  ;;  %1222 = vmatprep.mubr.msk.bf16.mxu0 %vm1315_vm0, %v1314_v10 }
  0x32   : > { %1232 = vmatprep.subr.bf16.mxu0 %v1314_v10  ;;  %1228 = vmatprep.mubr.msk.bf16.mxu1 %vm1315_vm0, %v1314_v10  ;;  %v974_v27 = vrot.slane %v967_v26, %v1397_v20 }
  0x33   : > { %1238 = vmatprep.subr.bf16.mxu1 %v1314_v10 }
  0x37   : > { %1223 = vmatmul.mubr.msk.bf16.vlgmr.msra.gmra.mrb[8].mxu0 %vm290_vm2, %v616_v8 }
  0x38   : > { %1233 = vmatpush3.bf16.msra.mxu0 %v1287_v11  ;;  %1229 = vmatmul.mubr.msk.bf16.vlgmr.msra.gmra.mrb[8].mxu1 %vm290_vm2, %v722_v12  ;;  %v1039_v11 = vsub.s32 %v1036_v3, %v1387_v14 }
  0x39   : > { %1239 = vmatpush3.bf16.msra.mxu1 %v1288_v17  ;;  %1234 = vmatprep.mubr.msk.bf16.mxu0 %vm1315_vm0, %v1314_v10 }
  0x3a   : > { %1244 = vmatprep.subr.bf16.mxu0 %v1314_v10  ;;  %1240 = vmatprep.mubr.msk.bf16.mxu1 %vm1315_vm0, %v1314_v10 }
  0x3f   : > { %1235 = vmatmul.mubr.msk.bf16.vlgmr.msra.gmra.mrb[12].mxu0 %vm290_vm2, %v795_v22 }
  0x40   : > { %1245 = vmatpush3.bf16.msra.mxu0 %v1289_v24  ;;  %1241 = vmatmul.mubr.msk.bf16.vlgmr.msra.gmra.mrb[12].mxu1 %vm290_vm2, %v868_v25 }
  0x41   : > { %1246 = vmatprep.mubr.msk.bf16.mxu0 %vm1315_vm0, %v1314_v10  ;;  %vm1046_vm0 = vcmask 253952  }
  0x47   : > { %1247 = vmatmul.mubr.msk.bf16.vlgmr.msra.gmra.mrb[16].mxu0 %vm290_vm2, %v974_v27 }
  0xfa   : > { %v328_v28 = vpop.f32.mrb[0].mxu0 }
  0xfb   : > { %v394_v29 = vpop.f32.mrb[0].mxu1  ;;  %v1200_v30 = vpop.f32.mrb[1].mxu0 }
  0xfc   : > { %v395_v31 = vadd.f32 %v394_v29, %v328_v28  ;;  %v331_v32 = vpop.f32.mrb[2].mxu0  ;;  %v1206_v33 = vpop.f32.mrb[1].mxu1 }
  0xfd   : > { %v1201_v34 = vpop.f32.mrb[3].mxu0  ;;  %v397_v35 = vpop.f32.mrb[2].mxu1 }
  0xfe   : > { %v1207_v36 = vpop.f32.mrb[3].mxu1 }
 0x102   : > { %v514_v37 = vpop.f32.mrb[4].mxu0 }
 0x103   : > { %v520_v38 = vadd.f32 %v514_v37, %v395_v31  ;;  %v1212_v39 = vpop.f32.mrb[5].mxu0  ;;  %v587_v40 = vpop.f32.mrb[4].mxu1 }
 0x104   : > { %v517_v41 = vpop.f32.mrb[6].mxu0  ;;  %v1218_v42 = vpop.f32.mrb[5].mxu1 }
 0x105   : > { %v593_v10 = vadd.f32 %v587_v40, %v520_v38  ;;  %v1213_v43 = vpop.f32.mrb[7].mxu0  ;;  %v590_v20 = vpop.f32.mrb[6].mxu1 }
 0x106   : > { %v1219_v44 = vpop.f32.mrb[7].mxu1 }
 0x10a   : > { %v660_v45 = vpop.f32.mrb[8].mxu0 }
 0x10b   : > { %v666_v46 = vadd.f32 %v660_v45, %v593_v10  ;;  %v1224_v47 = vpop.f32.mrb[9].mxu0  ;;  %v766_v48 = vpop.f32.mrb[8].mxu1 }
 0x10c   : > { %v663_v49 = vpop.f32.mrb[10].mxu0  ;;  %v1230_v50 = vpop.f32.mrb[9].mxu1 }
 0x10d   : > { %v772_v51 = vadd.f32 %v766_v48, %v666_v46  ;;  %v1225_v52 = vpop.f32.mrb[11].mxu0  ;;  %v769_v53 = vpop.f32.mrb[10].mxu1 }
 0x10e   : > { %v1231_v54 = vpop.f32.mrb[11].mxu1 }
 0x112   : > { %v839_v55 = vpop.f32.mrb[12].mxu0 }
 0x113   : > { %v845_v56 = vadd.f32 %v839_v55, %v772_v51  ;;  %v1236_v57 = vpop.f32.mrb[13].mxu0  ;;  %v912_v58 = vpop.f32.mrb[12].mxu1 }
 0x114   : > { %v842_v59 = vpop.f32.mrb[14].mxu0  ;;  %v1242_v60 = vpop.f32.mrb[13].mxu1 }
 0x115   : > { %v918_v61 = vadd.f32 %v912_v58, %v845_v56  ;;  %v1237_v62 = vpop.f32.mrb[15].mxu0  ;;  %v915_v63 = vpop.f32.mrb[14].mxu1 }
 0x116   : > { %v1243_v2 = vpop.f32.mrb[15].mxu1 }
 0x11a   : > { %v1018_v5 = vpop.f32.mrb[16].mxu0 }
 0x11b   : > { %v1024_v6 = vadd.f32 %v1018_v5, %v918_v61  ;;  %v1248_v7 = vpop.f32.mrb[17].mxu0 }
 0x11c   : > { %v1021_v8 = vpop.f32.mrb[18].mxu0 }
 0x11d   : > { %v1031_v9 = vadd.f32 %v1175_v4, %v1024_v6  ;;  %v1249_v12 = vpop.f32.mrb[19].mxu0 }
 0x11f   : > { %v1032_v13 = vmax.f32 %v1031_v9, 0.0 }
 0x121   : > { %v1040_v15 = vrot.slane %v1032_v13, %v1039_v11 }
 0x123   : > { %v1041_v16 = vcombine.high %v1040_v15, %v1040_v15  ;;  %v1044_v17 = vpack.c.bf16 %v1040_v15, %v1040_v15 }
 0x125   : > { %v1045_v18 = vpack.c.bf16 %v1041_v16, %v1041_v16  ;;  %1047 = vst.msk [vmem:[%s254_s4] sm:$0x1] %vm1046_vm0, %v1044_v17 }
 0x127   : > { %1048 = vst.msk [vmem:[%s254_s4 + $0x1] sm:$0x1] %vm1046_vm0, %v1045_v18 }
 0x128 PF: > { %p10_p9 = scmp.ge.s32.totalorder %s1355_s16, 4   ;;  %s1525_s12 = smov %s1308_s13 }
 0x129   : > { %s1526_s13 = smov %s1364_s19  ;;  %s1527_s14 = smov %s1355_s16 }
 0x12a   :  { %12 = sbr.rel (!%p10_p9) target bundleno = 2 (0x2), region = 121 }

// kernel: _lambda_.9
= control target key start
LH: loop header
LB: loop body
LE: loop exit
PB: predicated region body
PF: predicated region fallthrough
CT: control target
= control target key end

     0   :  { %12 = vsyncpa [#allocation4], 0  ;;  %s1970_s0 = inlined_call_operand.vmem [shape: bf16[2,2,2,32], index: 0, kind: input, shape index: {}]   ;;  %s1971_s1 = inlined_call_operand.vmem [shape: bf16[32,16], index: 1, kind: input, shape index: {}]   ;;  %s1972_s2 = inlined_call_operand.vmem [shape: f32[1,16], index: 2, kind: input, shape index: {}, may-alias: {2,4}]   ;;  %s1973_s3 = inlined_call_operand.vmem [shape: bf16[9,16,16], index: 3, kind: input, shape index: {}]   ;;  %s1974_s4 = inlined_call_operand.vmem [shape: f32[1,16], index: 4, kind: input, shape index: {}, may-alias: {2,4}]   ;;  %s1975_s5 = inlined_call_operand.vmem [shape: bf16[2,2,2,16], index: 5, kind: output, shape index: {0}]   ;;  %s1976_s6 = inlined_call_operand.hbm [shape: f32[2,2,2,16], index: 6, kind: output, shape index: {1}]  }
   0x1   :  { %14 = vsyncpa [#allocation4 + $0x1], 0  ;;  %s1696_s21 = smov 0   ;;  %s1698_s22 = smov 0  }
   0x2   :  { %s1700_s23 = smov 0   ;;  %s1702_s24 = smov 0  }
   0x3 LB: > { %s1717_s25 = sadd.s32 4294967295, %s1651_s24   ;;  %s1376_s26 = sadd.s32 4294967294, %s1651_s24   ;;  %s1651_s24 = sphi %s1702_s24, %s1988_s24   ;;  %s1647_s23 = sphi %s1700_s23, %s1987_s23   ;;  %s1643_s22 = sphi %s1698_s22, %s1986_s22   ;;  %s1639_s21 = sphi %s1696_s21, %s1985_s21  }
   0x4   : > { %s1721_s27 = sadd.s32 1, %s1651_s24   ;;  %s163_s28 = sadd.s32 1, %s1647_s23 }
   0x5   : > { %s160_s29 = ssub.s32 %s1651_s24, %s1721_s27  ;;  %p173_p0 = scmp.ne.s32.totalorder %s1647_s23, %s1643_s22 }
   0x6   : > { %p161_p1 = scmp.eq.s32.totalorder %s160_s29, 0  ;;  %p174_p2 = scmp.eq.s32.totalorder %s1717_s25, 1 }
   0x7   : > { %p179_p3 = scmp.ne.s32.totalorder %s1643_s22, %s1639_s21  ;;  %p180_p4 = scmp.eq.s32.totalorder %s1376_s26, 1 }
   0x8   : > { %s1732_s30 = scalar_select %p161_p1, %s1647_s23, %s163_s28  }
   0x9   : > { %p1734_p5 = por %p174_p2, %p173_p0  ;;  %p1738_p6 = por %p180_p4, %p179_p3 }
   0xa   : > { %p1379_p7 = scmp.ge.s32.totalorder %s1651_s24, 1  ;;  %p217_p8 = scmp.lt.s32.totalorder %s1651_s24, 3 }
   0xc   : > { %p218_p9 = pnand %p1379_p7, %p217_p8 }
   0xd   : > { %v1578_v0 = vld [vmem:[%s1971_s1] sm:$0xff] (!%p218_p9)   ;;  %v278_v1 = vlaneseq (!%p218_p9)  ;;  %v1653_v2 = vmov (!%p218_p9), 0.0   ;;  %v1579_v3 = vld [vmem:[%s1971_s1 + $0x8] sm:$0xff] (!%p218_p9)   ;;  %vm1654_vm0 = vmmov (!%p218_p9), 0   ;;  %p250_p10 = scmp.lt.s32.totalorder (!%p218_p9), %s1717_s25, 1  ;;  %vm301_vm1 = vcmask (!%p218_p9), 261120  }
   0xe   : > { %221 = sbr.rel (%p218_p9) target bundleno = 548 (0x224), region = 40  ;;  %1470 = vmatprep.subr.bf16.mxu0 (!%p218_p9), %v1653_v2  ;;  %1478 = vmatprep.subr.bf16.mxu1 (!%p218_p9), %v1653_v2  ;;  %v1655_v4 = vmov (!%p218_p9), 1966171168   ;;  %vm358_vm2 = vcmask (!%p218_p9), 122880   ;;  %vm366_vm3 = vsmask.f32 (!%p218_p9), 256 }
   0xf   : > { %1471 = vmatpush3.bf16.msra.mxu0 (!%p218_p9), %v1578_v0  ;;  %1474 = vmatprep.mubr.msk.bf16.mxu0 (!%p218_p9), %vm1654_vm0, %v1653_v2  ;;  %v276_v5 = vunpack.c.l.s4 (!%p218_p9), %v1655_v4  ;;  %v279_v6 = vshrl.u32 (!%p218_p9), %v278_v1, 7  ;;  %vm380_vm4 = vcmask (!%p218_p9), 123905   ;;  %vm381_vm5 = vsmask.f32 (!%p218_p9), 7942  ;;  %vm1776_vm6 = vmand (!%p218_p9), %vm358_vm2, %vm366_vm3  ;;  %v371_v15 = vld [vmem:[#allocation2 + $0x2] sm:$0x1] (!%p218_p9) }
  0x10   : > { %1472 = vmatprep.subr.bf16.mxu0 (!%p218_p9), %v1653_v2  ;;  %1480 = vmatprep.mubr.msk.bf16.mxu1 (!%p218_p9), %vm1654_vm0, %v1653_v2  ;;  %v386_v16 = vld [vmem:[#allocation2 + $0x2] sm:$0x2] (!%p218_p9)  ;;  %vm361_vm7 = vcmask (!%p218_p9), 123904   ;;  %v372_v17 = vsel (!%p218_p9), %vm1776_vm6, 0, %v371_v15  ;;  %vm1782_vm8 = vmand (!%p218_p9), %vm380_vm4, %vm381_vm5  ;;  %v1656_v19 = vmov (!%p218_p9), 0   ;;  %v1580_v33 = vld [vmem:[%s1973_s3 + $0x10] sm:$0xff] (!%p218_p9)  }
  0x11   : > { %v277_v7 = vunpack.c.0.s8 (!%p218_p9), %v276_v5  ;;  %362 = vst.msk [vmem:[#allocation2] sm:$0x3] (!%p218_p9), %vm361_vm7, %v1656_v19  ;;  %364 = vst.msk [vmem:[#allocation2 + $0x6] sm:$0x3] (!%p218_p9), %vm361_vm7, %v1656_v19  ;;  %v374_v20 = vld [vmem:[#allocation2 + $0x4] sm:$0x1] (!%p218_p9) }
  0x12   : > { %373 = vst [vmem:[#allocation2 + $0x2] sm:$0x1] (!%p218_p9), %v372_v17  ;;  %v387_v21 = vsel (!%p218_p9), %vm1782_vm8, 0, %v386_v16  ;;  %v389_v22 = vld [vmem:[#allocation2 + $0x4] sm:$0x2] (!%p218_p9)  ;;  %v375_v23 = vsel (!%p218_p9), %vm1776_vm6, 0, %v374_v20 }
  0x13   : > { %1473 = vmatpush3.bf16.msra.mxu0 (!%p218_p9), %v1579_v3  ;;  %v1767_v8 = vsub.s32 (!%p218_p9), %v277_v7, %v279_v6  ;;  %388 = vst [vmem:[#allocation2 + $0x2] sm:$0x2] (!%p218_p9), %v387_v21  ;;  %v390_v24 = vsel (!%p218_p9), %vm1782_vm8, 0, %v389_v22  ;;  %376 = vst [vmem:[#allocation2 + $0x4] sm:$0x1] (!%p218_p9), %v375_v23  ;;  %v1581_v34 = vld [vmem:[%s1973_s3 + $0x8] sm:$0xff] (!%p218_p9)  }
  0x14   : > { %1490 = vmatprep.subr.bf16.mxu0 (!%p218_p9), %v1653_v2  ;;  %391 = vst [vmem:[#allocation2 + $0x4] sm:$0x2] (!%p218_p9), %v390_v24  ;;  %1479 = vmatpush3.bf16.msra.mxu1 (!%p218_p9), %v1581_v34  ;;  %v1657_v35 = vmov (!%p218_p9), 1983009808   ;;  %v1383_v38 = vld [vmem:[%s1972_s2] ss:$0 sm:$0xff] (!%p218_p9) }
  0x15   : > { %s1759_s13 = scalar_select %p250_p10, %s1717_s25, 1  ;;  %1484 = vmatprep.subr.bf16.mxu1 %v1653_v2  ;;  %v347_v36 = vunpack.c.l.s4 %v1657_v35  ;;  %vm462_vm9 = vsmask.f32 1284  ;;  %vm464_vm11 = vsmask.f32 2312  ;;  %v1583_v17 = vld [vmem:[%s1973_s3 + $0x20] sm:$0xff]  }
  0x16   : > { %vm463_vm10 = vmor %vm366_vm3, %vm462_vm9  ;;  %vm429_vm12 = vsmask.f32 1282  ;;  %vm466_vm14 = vsmask.f32 3340  ;;  %vm468_vm3 = vsmask.f32 4368 }
  0x17   : > { %s1381_s14 = sshll.u32 %s1759_s13, 1  ;;  %v348_v37 = vunpack.c.0.s8 %v347_v36  ;;  %vm465_vm13 = vmor %vm463_vm10, %vm464_vm11  ;;  %vm470_vm4 = vsmask.f32 5396  ;;  %vm474_vm9 = vsmask.f32 7452  ;;  %vm518_vm11 = vcmask 130048  }
  0x18   : > { %s253_s17 = scalar_lea.vmem %s1970_s0, %s1381_s14  ;;  %v368_v25 = vld [vmem:[#allocation2] sm:$0x1]  ;;  %v377_v26 = vld [vmem:[#allocation2 + $0x6] sm:$0x1]  ;;  %v383_v27 = vld [vmem:[#allocation2] sm:$0x2]  ;;  %s257_s11 = scalar_lea.vmem %s1975_s5, %s1381_s14 }
  0x19   : > { %v259_v9 = vld [vmem:[%s253_s17] sm:$0x1]  ;;  %v260_v10 = vld [vmem:[%s253_s17 + $0x1] sm:$0x1]  ;;  %v369_v28 = vsel %vm1776_vm6, 0, %v368_v25  ;;  %v378_v29 = vsel %vm1776_vm6, 0, %v377_v26  ;;  %v1813_v39 = vsub.s32 %v348_v37, %v279_v6  ;;  %vm430_vm15 = vmand %vm361_vm7, %vm429_vm12 }
  0x1a   : > { %v274_v11 = vcombine.low %v259_v9, %v260_v10  ;;  %v384_v30 = vsel %vm1782_vm8, 0, %v383_v27  ;;  %v392_v31 = vld [vmem:[#allocation2 + $0x6] sm:$0x2]  ;;  %370 = vst [vmem:[#allocation2] sm:$0x1] %v369_v28  ;;  %v1585_v35 = vld [vmem:[%s1973_s3 + $0x30] sm:$0xff]  }
  0x1b   : > { %379 = vst [vmem:[#allocation2 + $0x6] sm:$0x1] %v378_v29  ;;  %385 = vst [vmem:[#allocation2] sm:$0x2] %v384_v30  ;;  %v393_v32 = vsel %vm1782_vm8, 0, %v392_v31  ;;  %v1582_v28 = vld [vmem:[%s1973_s3] sm:$0xff]  }
  0x1c   : > { %v281_v12 = vrot.slane %v274_v11, %v1767_v8  ;;  %394 = vst [vmem:[#allocation2 + $0x6] sm:$0x2] %v393_v32  ;;  %v431_v55 = vld [vmem:[#allocation2 + $0x2] sm:$0x3]  ;;  %v434_v59 = vld [vmem:[#allocation2 + $0x4] sm:$0x3] }
  0x1d   : > { %vm472_vm6 = vsmask.f32 6424  ;;  %s1448_s15 = sshll.u32 %s1717_s25, 6  ;;  %s1658_s28 = smov [#allocation3]  }
  0x1e   : > { %v288_v13 = vrot.slane %v281_v12, %v1767_v8  ;;  %s1923_s20 = scalar_lea.hbm %s1976_s6, %s1448_s15  ;;  %s1593_s29 = sshll.u32 %s1658_s28, 4  ;;  %s1594_s29 = int_to_ptr.vmem [resolvable:$false] %s1593_s29 }
  0x1f   : > { %s1595_s9 = scalar_lea.vmem %s1594_s29, 128 }
  0x20   : > { %1475 = vmatmul.mubr.msk.bf16.vlgmr.msra.gmra.mrb[0].mxu0 %vm301_vm1, %v288_v13  ;;  %vm467_vm1 = vmor %vm465_vm13, %vm466_vm14 }
  0x21   : > { %1492 = vmatprep.mubr.msk.bf16.mxu0 %vm1654_vm0, %v1653_v2  ;;  %1491 = vmatpush3.bf16.msra.mxu0 %v1580_v33  ;;  %v438_v25 = vld [vmem:[#allocation2] sm:$0x1] }
  0x22   : > { %1502 = vmatprep.subr.bf16.mxu0 %v1653_v2  ;;  %v1387_v62 = vld.sshfl [vmem:[#allocation2] sm:$0x11 pattern:$0x75316420]  ;;  %v984_v31 = vld [vmem:[#allocation2 + $0x6] sm:$0x1] }
  0x23   : > { %v453_v0 = vcombine.high %v1387_v62, %v1387_v62  ;;  %v1397_v1 = vld.sshfl [vmem:[#allocation2] sm:$0x10 pattern:$0x75316420]  ;;  %v477_v4 = vshrl.u32 %v1387_v62, 16  ;;  %v1588_v62 = vld [vmem:[%s1973_s3 + $0x38] sm:$0xff]  }
  0x25   : > { %v482_v5 = vshll.u32 %v453_v0, 16 }
  0xf3   : > { %v339_v40 = vpop.f32.mrb[0].mxu0 }
  0xf4   : > { %v340_v41 = vadd.f32 %v1383_v38, %v339_v40  ;;  %v1476_v42 = vpop.f32.mrb[1].mxu0  ;;  %v1584_v40 = vld [vmem:[%s1973_s3 + $0x18] sm:$0xff]  }
  0xf5   : > { %v342_v43 = vpop.f32.mrb[2].mxu0  ;;  %v1436_v42 = vld.sshfl [vmem:[#allocation2 + $0x6] sm:$0x10 pattern:$0x75316420] }
  0xf6   : > { %v352_v44 = vrot.slane %v340_v41, %v1813_v39  ;;  %v1477_v45 = vpop.f32.mrb[3].mxu0 }
  0xf8   : > { %v353_v46 = vcombine.high %v352_v44, %v352_v44  ;;  %v356_v47 = vpack.c.bf16 %v352_v44, %v352_v44 }
  0xfa   : > { %v357_v48 = vpack.c.bf16 %v353_v46, %v353_v46  ;;  %359 = vst.msk [vmem:[%s257_s11] sm:$0x1] %vm358_vm2, %v356_v47  ;;  %v403_v49 = vrot.slane %v356_v47, %v1813_v39  ;;  %v1587_v47 = vld [vmem:[%s1973_s3 + $0x40] sm:$0xff]  }
  0xfc   : > { %360 = vst.msk [vmem:[%s257_s11 + $0x1] sm:$0x1] %vm358_vm2, %v357_v48  ;;  %v410_v50 = vrot.slane %v357_v48, %v1813_v39  ;;  %v412_v51 = vshrl.u32 %v403_v49, 16  ;;  %v415_v53 = vshll.u32 %v403_v49, 16  ;;  %vm469_vm2 = vmor %vm467_vm1, %vm468_vm3  ;;  %s247_s11 = sand.u32 1, %s1643_s22  }
  0xfd   : > { %vm471_vm5 = vmor %vm469_vm2, %vm470_vm4  ;;  %s1380_s12 = sshll.u32 %s247_s11, 2  ;;  %s1929_s25 = scalar_lea.sflag [#allocation4], %s247_s11 }
  0xfe   : > { %v414_v52 = vrot.slane %v412_v51, 7  ;;  %v419_v54 = vshrl.u32 %v410_v50, 16  ;;  %v422_v58 = vshll.u32 %v410_v50, 16  ;;  %vm473_vm8 = vmor %vm471_vm5, %vm472_vm6  ;;  %s249_s16 = scalar_lea.vmem [#allocation3], %s1380_s12 }
  0xff   : > { %vm1830_vm10 = vmor %vm473_vm8, %vm474_vm9  ;;  %v1428_v50 = vld.sshfl [vmem:[#allocation2 + $0x6] sm:$0x11 pattern:$0x75316420]  ;;  %s1290_s17 = sshll.u32 %s249_s16, 4  ;;  %s1925_s17 = int_to_ptr.vmem [resolvable:$true] %s1290_s17 }
 0x100   : > { %v417_v56 = vor.u32 %v415_v53, %v414_v52  ;;  %v421_v57 = vrot.slane %v419_v54, 7  ;;  %v484_v14 = vsel %vm1830_vm10, %v477_v4, %v482_v5  ;;  %v1074_v52 = vcombine.high %v1428_v50, %v1428_v50  ;;  %v1586_v54 = vld [vmem:[%s1973_s3 + $0x28] sm:$0xff]   ;;  %s1589_s26 = scalar_lea.vmem %s1925_s17, 64  ;;  %p1596_p0 = scmp.lt.s32.totalorder %s1925_s17, %s1594_s29 }
 0x101   : > { %p1590_p11 = scmp.ne.s32.totalorder %s1925_s17, %s1589_s26  ;;  %p1597_p1 = scmp.lt.s32.totalorder %s1595_s9, %s1589_s26 }
 0x102   : > { %v424_v60 = vor.u32 %v422_v58, %v421_v57  ;;  %v432_v61 = vsel %vm430_vm15, %v417_v56, %v431_v55  ;;  %v1085_v57 = vshrl.u32 %v1428_v50, 16  ;;  %v1090_v58 = vshll.u32 %v1074_v52, 16 }
 0x103   : > { %433 = vst [vmem:[#allocation2 + $0x2] sm:$0x3] %v432_v61  ;;  %p1591_p12 = pnand %p1590_p11, %p1734_p5  ;;  %p1598_p2 = por %p1597_p1, %p1596_p0 }
 0x104   : > { %v435_v63 = vsel %vm430_vm15, %v424_v60, %v434_v59  ;;  %v1092_v61 = vsel %vm1830_vm10, %v1085_v57, %v1090_v58 }
 0x105   : > { %436 = vst [vmem:[#allocation2 + $0x4] sm:$0x3] %v435_v63  ;;  %p1592_p13 = pneg %p1591_p12 }
 0x107   : > { %p1599_p3 = pnand %p1598_p2, %p1592_p13 }
 0x10a   : > { %v1827_v3 = vld.sshfl [vmem:[#allocation2 + $0x2] sm:$0x10 pattern:$0x75316420]  ;;  %v439_v26 = vld [vmem:[#allocation2 + $0x2] sm:$0x1] }
 0x10b   : > { %v1401_v6 = vcombine.high %v1397_v1, %v1827_v3  ;;  %v1388_v7 = vld.sshfl [vmem:[#allocation2 + $0x2] sm:$0x11 pattern:$0x75316420]  ;;  %v564_v33 = vcombine.low %v438_v25, %v439_v26 }
 0x10c   : > { %v461_v10 = vcombine.high %v1388_v7, %v1388_v7  ;;  %v1409_v11 = vld.sshfl [vmem:[#allocation2 + $0x4] sm:$0x11 pattern:$0x75316420]  ;;  %v486_v15 = vshrl.u32 %v1388_v7, 16 }
 0x10d   : > { %v658_v12 = vrot.slane %v1401_v6, %v1767_v8  ;;  %v807_v13 = vcombine.high %v1409_v11, %v1409_v11  ;;  %v818_v19 = vshrl.u32 %v1409_v11, 16  ;;  %v983_v30 = vld [vmem:[#allocation2 + $0x4] sm:$0x1]  ;;  %v571_v37 = vrot.slane %v564_v33, %v1767_v8  ;;  %v716_v43 = vld [vmem:[#allocation2 + $0x2] sm:$0x1] }
 0x10e   : > { %v491_v16 = vshll.u32 %v461_v10, 16  ;;  %v990_v36 = vcombine.low %v983_v30, %v984_v31  ;;  %v717_v38 = vld [vmem:[#allocation2 + $0x4] sm:$0x1] }
 0x10f   : > { %v665_v18 = vrot.slane %v658_v12, %v1767_v8  ;;  %v823_v20 = vshll.u32 %v807_v13, 16  ;;  %v1435_v44 = vld.sshfl [vmem:[#allocation2 + $0x4] sm:$0x10 pattern:$0x75316420]  ;;  %v578_v45 = vrot.slane %v571_v37, %v1767_v8  ;;  %v723_v46 = vcombine.low %v716_v43, %v717_v38 }
 0x110   : > { %v493_v21 = vsel %vm1830_vm10, %v486_v15, %v491_v16  ;;  %v997_v41 = vrot.slane %v990_v36, %v1767_v8  ;;  %v1439_v49 = vcombine.high %v1435_v44, %v1436_v42  ;;  %v1420_v56 = vcombine.high %v1827_v3, %v1435_v44 }
 0x111   : > { %1493 = vmatmul.mubr.msk.bf16.vlgmr.msra.gmra.mrb[4].mxu0 %vm518_vm11, %v665_v18  ;;  %v497_v22 = vcombine.low %v484_v14, %v493_v21  ;;  %v1846_v23 = vsel %vm1830_vm10, %v818_v19, %v823_v20  ;;  %v730_v51 = vrot.slane %v723_v46, %v1767_v8 }
 0x112   : > { %1503 = vmatpush3.bf16.msra.mxu0 %v1583_v17  ;;  %1504 = vmatprep.mubr.msk.bf16.mxu0 %vm1654_vm0, %v1653_v2  ;;  %v829_v24 = vcombine.low %v493_v21, %v1846_v23  ;;  %v1004_v48 = vrot.slane %v997_v41, %v1767_v8  ;;  %v1191_v53 = vrot.slane %v1439_v49, %v1767_v8 }
 0x113   : > { %v504_v27 = vrot.slane %v497_v22, %v1767_v8  ;;  %1514 = vmatprep.subr.bf16.mxu0 %v1653_v2  ;;  %v737_v55 = vrot.slane %v730_v51, %v1767_v8  ;;  %v924_v60 = vrot.slane %v1420_v56, %v1767_v8  ;;  %v1096_v0 = vcombine.low %v1846_v23, %v1092_v61 }
 0x114   : > { %v836_v29 = vrot.slane %v829_v24, %v1767_v8  ;;  %v1198_v59 = vrot.slane %v1191_v53, %v1767_v8 }
 0x115   : > { %v511_v32 = vrot.slane %v504_v27, %v1767_v8  ;;  %v931_v63 = vrot.slane %v924_v60, %v1767_v8  ;;  %v1103_v1 = vrot.slane %v1096_v0, %v1767_v8 }
 0x116   : > { %v843_v34 = vrot.slane %v836_v29, %v1767_v8 }
 0x117   : > { %1481 = vmatmul.mubr.msk.bf16.vlgmr.msra.gmra.mrb[0].mxu1 %vm518_vm11, %v511_v32  ;;  %v1110_v3 = vrot.slane %v1103_v1, %v1767_v8 }
 0x118   : > { %1485 = vmatpush3.bf16.msra.mxu1 %v1582_v28  ;;  %1486 = vmatprep.mubr.msk.bf16.mxu1 %vm1654_vm0, %v1653_v2 }
 0x119   : > { %1505 = vmatmul.mubr.msk.bf16.vlgmr.msra.gmra.mrb[8].mxu0 %vm518_vm11, %v843_v34  ;;  %1496 = vmatprep.subr.bf16.mxu1 %v1653_v2 }
 0x11a   : > { %1515 = vmatpush3.bf16.msra.mxu0 %v1585_v35  ;;  %1516 = vmatprep.mubr.msk.bf16.mxu0 %vm1654_vm0, %v1653_v2 }
 0x11b   : > { %1526 = vmatprep.subr.bf16.mxu0 %v1653_v2 }
 0x11f   : > { %1487 = vmatmul.mubr.msk.bf16.vlgmr.msra.gmra.mrb[4].mxu1 %vm518_vm11, %v578_v45  ;;  %v1442_v45 = vld [vmem:[%s1974_s4] ss:$0 sm:$0xff] }
 0x120   : > { %1497 = vmatpush3.bf16.msra.mxu1 %v1584_v40  ;;  %1498 = vmatprep.mubr.msk.bf16.mxu1 %vm1654_vm0, %v1653_v2 }
 0x121   : > { %1517 = vmatmul.mubr.msk.bf16.vlgmr.msra.gmra.mrb[12].mxu0 %vm518_vm11, %v1004_v48  ;;  %1508 = vmatprep.subr.bf16.mxu1 %v1653_v2 }
 0x122   : > { %1527 = vmatpush3.bf16.msra.mxu0 %v1587_v47  ;;  %1528 = vmatprep.mubr.msk.bf16.mxu0 %vm1654_vm0, %v1653_v2 }
 0x127   : > { %1499 = vmatmul.mubr.msk.bf16.vlgmr.msra.gmra.mrb[8].mxu1 %vm518_vm11, %v737_v55 }
 0x128   : > { %1509 = vmatpush3.bf16.msra.mxu1 %v1586_v54  ;;  %1510 = vmatprep.mubr.msk.bf16.mxu1 %vm1654_vm0, %v1653_v2 }
 0x129   : > { %1529 = vmatmul.mubr.msk.bf16.vlgmr.msra.gmra.mrb[16].mxu0 %vm518_vm11, %v1198_v59  ;;  %1520 = vmatprep.subr.bf16.mxu1 %v1653_v2 }
 0x12f   : > { %1511 = vmatmul.mubr.msk.bf16.vlgmr.msra.gmra.mrb[12].mxu1 %vm518_vm11, %v931_v63 }
 0x130   : > { %1521 = vmatpush3.bf16.msra.mxu1 %v1588_v62  ;;  %1522 = vmatprep.mubr.msk.bf16.mxu1 %vm1654_vm0, %v1653_v2 }
 0x137   : > { %1523 = vmatmul.mubr.msk.bf16.vlgmr.msra.gmra.mrb[16].mxu1 %vm518_vm11, %v1110_v3 }
 0x1e4   : > { %v709_v4 = vpop.f32.mrb[4].mxu0 }
 0x1e5   : > { %v1494_v5 = vpop.f32.mrb[5].mxu0 }
 0x1e6   : > { %v712_v6 = vpop.f32.mrb[6].mxu0 }
 0x1e7   : > { %v1495_v7 = vpop.f32.mrb[7].mxu0 }
 0x1ea   : > { %v556_v9 = vpop.f32.mrb[0].mxu1 }
 0x1eb   : > { %v1482_v10 = vpop.f32.mrb[1].mxu1 }
 0x1ec   : > { %v559_v11 = vpop.f32.mrb[2].mxu1  ;;  %v887_v12 = vpop.f32.mrb[8].mxu0 }
 0x1ed   : > { %v1483_v13 = vpop.f32.mrb[3].mxu1  ;;  %v1506_v14 = vpop.f32.mrb[9].mxu0 }
 0x1ee   : > { %v890_v15 = vpop.f32.mrb[10].mxu0 }
 0x1ef   : > { %v1507_v16 = vpop.f32.mrb[11].mxu0 }
 0x1f2   : > { %v622_v17 = vpop.f32.mrb[4].mxu1 }
 0x1f3   : > { %v623_v2 = vadd.f32 %v622_v17, %v556_v9  ;;  %v1488_v18 = vpop.f32.mrb[5].mxu1 }
 0x1f4   : > { %v625_v19 = vpop.f32.mrb[6].mxu1  ;;  %v1048_v20 = vpop.f32.mrb[12].mxu0 }
 0x1f5   : > { %v1489_v8 = vpop.f32.mrb[7].mxu1  ;;  %v1518_v21 = vpop.f32.mrb[13].mxu0  ;;  %v715_v22 = vadd.f32 %v709_v4, %v623_v2 }
 0x1f6   : > { %v1051_v23 = vpop.f32.mrb[14].mxu0 }
 0x1f7   : > { %v1519_v24 = vpop.f32.mrb[15].mxu0 }
 0x1fa   : > { %v781_v25 = vpop.f32.mrb[8].mxu1 }
 0x1fb   : > { %v787_v26 = vadd.f32 %v781_v25, %v715_v22  ;;  %v1500_v27 = vpop.f32.mrb[9].mxu1 }
 0x1fc   : > { %v784_v28 = vpop.f32.mrb[10].mxu1  ;;  %v1242_v29 = vpop.f32.mrb[16].mxu0 }
 0x1fd   : > { %v1501_v30 = vpop.f32.mrb[11].mxu1  ;;  %v1530_v31 = vpop.f32.mrb[17].mxu0  ;;  %v893_v32 = vadd.f32 %v887_v12, %v787_v26 }
 0x1fe   : > { %v1245_v33 = vpop.f32.mrb[18].mxu0 }
 0x1ff   : > { %v1531_v34 = vpop.f32.mrb[19].mxu0 }
 0x202   : > { %v975_v35 = vpop.f32.mrb[12].mxu1 }
 0x203   : > { %v981_v36 = vadd.f32 %v975_v35, %v893_v32  ;;  %v1512_v37 = vpop.f32.mrb[13].mxu1 }
 0x204   : > { %v978_v38 = vpop.f32.mrb[14].mxu1 }
 0x205   : > { %v1513_v40 = vpop.f32.mrb[15].mxu1  ;;  %v1054_v41 = vadd.f32 %v1048_v20, %v981_v36 }
 0x20a   : > { %v1154_v42 = vpop.f32.mrb[16].mxu1 }
 0x20b   : > { %v1160_v43 = vadd.f32 %v1154_v42, %v1054_v41  ;;  %v1524_v44 = vpop.f32.mrb[17].mxu1 }
 0x20c   : > { %v1157_v46 = vpop.f32.mrb[18].mxu1 }
 0x20d   : > { %v1248_v47 = vadd.f32 %v1242_v29, %v1160_v43  ;;  %v1525_v48 = vpop.f32.mrb[19].mxu1 }
 0x20f   : > { %v1255_v49 = vadd.f32 %v1442_v45, %v1248_v47 }
 0x211   : > { %v1263_v50 = vrot.slane %v1255_v49, %v1813_v39 }
 0x213   : > { %v1264_v51 = vcombine.high %v1263_v50, %v1263_v50  ;;  %1267 = vst.msk [vmem:[%s249_s16] sm:$0x3] %vm361_vm7, %v1263_v50 }
 0x215   : > { %1268 = vst.msk [vmem:[%s249_s16 + $0x2] sm:$0x3] %vm361_vm7, %v1264_v51 }
 0x216   : > { %1602 = shalt.err (!%p1599_p3)
}
 0x217   : > { %s1603_s10 = scalar_lea.hbm %s1923_s20, 64  ;;  %s1607_s13 = scalar_lea.hbm %s1976_s6, 128 }
 0x218   : > { %p1604_p4 = scmp.ne.s32.totalorder %s1923_s20, %s1603_s10  ;;  %p1608_p9 = scmp.lt.u32.totalorder %s1923_s20, %s1976_s6 }
 0x219   : > { %p1609_p10 = scmp.lt.u32.totalorder %s1607_s13, %s1603_s10  ;;  %p1611_p12 = scmp.lt.u32.totalorder %s1603_s10, %s1923_s20 }
 0x21a   : > { %p1605_p7 = pnand %p1604_p4, %p1734_p5 }
 0x21b   : > { %p1610_p11 = por %p1609_p10, %p1608_p9 }
 0x21c   : > { %p1606_p8 = pneg %p1605_p7 }
 0x21d   : > { %p1612_p13 = por %p1611_p12, %p1610_p11 }
 0x21f   : > { %p1613_p0 = pnand %p1612_p13, %p1606_p8 }
 0x221   : > { %1616 = shalt.err (!%p1613_p0)
}
 0x222   : > { %s1659_s16 = smov 32   ;;  %s1660_s18 = smov 2  }
 0x223   : > { %1532 = dma.vmem_to_hbm [thread:$0]  (%p1734_p5), %s1925_s17, 64, %s1923_s20, %s1929_s25, %s1659_s16, %s1659_s16, %s1660_s18  }
 0x224 PF: > { %p1538_p1 = scmp.ge.s32.totalorder %s1651_s24, 2  ;;  %s1312_s19 = sand.u32 1, %s1639_s21  }
 0x225   : > { %s1313_s26 = scalar_lea.sflag [#allocation4], %s1312_s19 }
 0x226   : > { %p1535_p2 = pnand %p1538_p1, %p1738_p6 }
 0x228   : > { %1634 = dma.done.wait (!%p1535_p2), %s1313_s26, 64  }
 0x229   : > { %1636 = vsyncadd (!%p1535_p2), %s1313_s26, 4294967232  ;;  %p17_p3 = scmp.ge.s32.totalorder %s1721_s27, 4   ;;  %s1985_s21 = smov %s1643_s22 }
 0x22a   : > { %s1986_s22 = smov %s1647_s23  ;;  %s1987_s23 = smov %s1732_s30 }
 0x22b   : > { %s1988_s24 = smov %s1721_s27  ;;  %19 = sbr.rel (!%p17_p3) target bundleno = 3 (0x3), region = 98 }
 0x232   :  { %1318 = vsyncpa [#allocation4], 1 }
 0x233   :  { %1320 = vsyncpa [#allocation4 + $0x1], 1 }

// kernel: _lambda_.10
= control target key start
LH: loop header
LB: loop body
LE: loop exit
PB: predicated region body
PF: predicated region fallthrough
CT: control target
= control target key end

     0   :  { %13 = vsyncpa [#allocation4], 0  ;;  %s2578_s0 = inlined_call_operand.vmem [shape: bf16[2,4,4,16], index: 0, kind: input, shape index: {}]   ;;  %s2579_s1 = inlined_call_operand.vmem [shape: bf16[16,16], index: 1, kind: input, shape index: {}]   ;;  %s2580_s2 = inlined_call_operand.vmem [shape: f32[1,16], index: 2, kind: input, shape index: {}, may-alias: {2,5}]   ;;  %s2581_s3 = inlined_call_operand.vmem [shape: bf16[2,2,2,16], index: 3, kind: input, shape index: {}]   ;;  %s2582_s4 = inlined_call_operand.vmem [shape: bf16[9,16,16], index: 4, kind: input, shape index: {}]   ;;  %s2583_s5 = inlined_call_operand.vmem [shape: f32[1,16], index: 5, kind: input, shape index: {}, may-alias: {2,5}]   ;;  %s2584_s6 = inlined_call_operand.vmem [shape: bf16[2,4,4,16], index: 6, kind: output, shape index: {0}]   ;;  %s2585_s7 = inlined_call_operand.hbm [shape: f32[2,4,4,16], index: 7, kind: output, shape index: {1}]  }
   0x1   :  { %15 = vsyncpa [#allocation4 + $0x1], 0  ;;  %s2213_s24 = smov 0   ;;  %s2215_s25 = smov 0  }
   0x2   :  { %s2217_s26 = smov 0   ;;  %s2219_s27 = smov 0  }
   0x3 LB: > { %s2234_s28 = sadd.s32 4294967295, %s2163_s27   ;;  %s1853_s29 = sadd.s32 4294967294, %s2163_s27   ;;  %s2163_s27 = sphi %s2219_s27, %s2605_s27   ;;  %s2159_s26 = sphi %s2217_s26, %s2604_s26   ;;  %s2155_s25 = sphi %s2215_s25, %s2603_s25   ;;  %s2151_s24 = sphi %s2213_s24, %s2602_s24  }
   0x4   : > { %s2238_s30 = sadd.s32 1, %s2163_s27   ;;  %s190_s8 = sadd.s32 1, %s2159_s26 }
   0x5   : > { %s187_s9 = ssub.s32 %s2163_s27, %s2238_s30  ;;  %p200_p0 = scmp.ne.s32.totalorder %s2159_s26, %s2155_s25 }
   0x6   : > { %p188_p1 = scmp.eq.s32.totalorder %s187_s9, 0  ;;  %p201_p2 = scmp.eq.s32.totalorder %s2234_s28, 1 }
   0x7   : > { %p206_p3 = scmp.ne.s32.totalorder %s2155_s25, %s2151_s24  ;;  %p207_p4 = scmp.eq.s32.totalorder %s1853_s29, 1 }
   0x8   : > { %s2249_s10 = scalar_select %p188_p1, %s2159_s26, %s190_s8  }
   0x9   : > { %p2251_p5 = por %p201_p2, %p200_p0  ;;  %p2255_p6 = por %p207_p4, %p206_p3 }
   0xa   : > { %p1856_p7 = scmp.ge.s32.totalorder %s2163_s27, 1  ;;  %p252_p8 = scmp.lt.s32.totalorder %s2163_s27, 3 }
   0xc   : > { %p253_p9 = pnand %p1856_p7, %p252_p8 }
   0xd   : > { %v2079_v0 = vld [vmem:[%s2579_s1] sm:$0xff] (!%p253_p9)   ;;  %v330_v1 = vlaneseq (!%p253_p9)  ;;  %v2165_v2 = vmov (!%p253_p9), 0.0   ;;  %p293_p10 = scmp.lt.s32.totalorder (!%p253_p9), %s2234_s28, 1  ;;  %vm2166_vm0 = vmmov (!%p253_p9), 0   ;;  %v2167_v3 = vmov (!%p253_p9), 1983009808  }
   0xe   : > { %256 = sbr.rel (%p253_p9) target bundleno = 555 (0x22b), region = 44  ;;  %1973 = vmatprep.subr.bf16.mxu0 (!%p253_p9), %v2165_v2  ;;  %1979 = vmatprep.subr.bf16.mxu1 (!%p253_p9), %v2165_v2  ;;  %v328_v4 = vunpack.c.l.s4 (!%p253_p9), %v2167_v3  ;;  %vm348_vm1 = vcmask (!%p253_p9), 130048   ;;  %vm472_vm2 = vcmask (!%p253_p9), 122880   ;;  %vm473_vm3 = vsmask.f32 (!%p253_p9), 256  ;;  %v2080_v44 = vld [vmem:[%s2582_s4] sm:$0xff] (!%p253_p9)  }
   0xf   : > { %1974 = vmatpush3.bf16.msra.mxu0 (!%p253_p9), %v2079_v0  ;;  %1975 = vmatprep.mubr.msk.bf16.mxu0 (!%p253_p9), %vm2166_vm0, %v2165_v2  ;;  %v2269_v5 = vshrl.u32 (!%p253_p9), %v330_v1, 7  ;;  %vm493_vm4 = vcmask (!%p253_p9), 124930   ;;  %vm494_vm5 = vsmask.f32 (!%p253_p9), 7946  ;;  %vm2291_vm6 = vmand (!%p253_p9), %vm472_vm2, %vm473_vm3  ;;  %v478_v18 = vld [vmem:[#allocation2 + $0x4] sm:$0x1] (!%p253_p9) }
  0x10   : > { %1985 = vmatprep.subr.bf16.mxu0 (!%p253_p9), %v2165_v2  ;;  %1981 = vmatprep.mubr.msk.bf16.mxu1 (!%p253_p9), %vm2166_vm0, %v2165_v2  ;;  %v329_v6 = vunpack.c.0.s8 (!%p253_p9), %v328_v4  ;;  %v499_v19 = vld [vmem:[#allocation2 + $0x4] sm:$0x4] (!%p253_p9)  ;;  %vm468_vm7 = vcmask (!%p253_p9), 124928   ;;  %v479_v20 = vsel (!%p253_p9), %vm2291_vm6, 0, %v478_v18  ;;  %vm2297_vm8 = vmand (!%p253_p9), %vm493_vm4, %vm494_vm5  ;;  %v2168_v22 = vmov (!%p253_p9), 0   ;;  %v2083_v45 = vld [vmem:[%s2582_s4 + $0x8] sm:$0xff] (!%p253_p9)  }
  0x11   : > { %469 = vst.msk [vmem:[#allocation2] sm:$0x7] (!%p253_p9), %vm468_vm7, %v2168_v22  ;;  %471 = vst.msk [vmem:[#allocation2 + $0x14] sm:$0x7] (!%p253_p9), %vm468_vm7, %v2168_v22  ;;  %v481_v23 = vld [vmem:[#allocation2 + $0x8] sm:$0x1] (!%p253_p9)  ;;  %1980 = vmatpush3.bf16.msra.mxu1 (!%p253_p9), %v2083_v45 }
  0x12   : > { %v2284_v7 = vsub.s32 (!%p253_p9), %v329_v6, %v2269_v5  ;;  %480 = vst [vmem:[#allocation2 + $0x4] sm:$0x1] (!%p253_p9), %v479_v20  ;;  %v500_v24 = vsel (!%p253_p9), %vm2297_vm8, 0, %v499_v19  ;;  %v502_v25 = vld [vmem:[#allocation2 + $0x8] sm:$0x4] (!%p253_p9)  ;;  %v482_v26 = vsel (!%p253_p9), %vm2291_vm6, 0, %v481_v23  ;;  %1991 = vmatprep.subr.bf16.mxu1 (!%p253_p9), %v2165_v2 }
  0x13   : > { %501 = vst [vmem:[#allocation2 + $0x4] sm:$0x4] (!%p253_p9), %v500_v24  ;;  %v503_v27 = vsel (!%p253_p9), %vm2297_vm8, 0, %v502_v25  ;;  %v484_v28 = vld [vmem:[#allocation2 + $0xc] sm:$0x1] (!%p253_p9)  ;;  %v423_v57 = vsub.s32 (!%p253_p9), 0, %v2269_v5 }
  0x14   : > { %483 = vst [vmem:[#allocation2 + $0x8] sm:$0x1] (!%p253_p9), %v482_v26  ;;  %504 = vst [vmem:[#allocation2 + $0x8] sm:$0x4] (!%p253_p9), %v503_v27  ;;  %v485_v29 = vsel (!%p253_p9), %vm2291_vm6, 0, %v484_v28  ;;  %vm463_vm9 = vcmask (!%p253_p9), 123904  }
  0x15   : > { %s2272_s15 = scalar_select %p293_p10, %s2234_s28, 1  ;;  %v505_v30 = vld [vmem:[#allocation2 + $0xc] sm:$0x4]  ;;  %486 = vst [vmem:[#allocation2 + $0xc] sm:$0x1] %v485_v29  ;;  %vm865_vm4 = vcmask 1040384  }
  0x16   : > { %v487_v31 = vld [vmem:[#allocation2 + $0x10] sm:$0x1]  ;;  %v506_v32 = vsel %vm2297_vm8, 0, %v505_v30  ;;  %v508_v33 = vld [vmem:[#allocation2 + $0x10] sm:$0x4]  ;;  %vm866_vm5 = vcmask 1042434  }
  0x17   : > { %s1946_s16 = sshll.u32 %s2272_s15, 3  ;;  %v488_v34 = vsel %vm2291_vm6, 0, %v487_v31  ;;  %507 = vst [vmem:[#allocation2 + $0xc] sm:$0x4] %v506_v32  ;;  %v509_v35 = vsel %vm2297_vm8, 0, %v508_v33  ;;  %s1860_s29 = sshll.u32 %s2272_s15, 1 }
  0x18   : > { %s297_s19 = scalar_lea.vmem %s2578_s0, %s1946_s16  ;;  %489 = vst [vmem:[#allocation2 + $0x10] sm:$0x1] %v488_v34  ;;  %510 = vst [vmem:[#allocation2 + $0x10] sm:$0x4] %v509_v35  ;;  %v475_v36 = vld [vmem:[#allocation2] sm:$0x1]  ;;  %s301_s13 = scalar_lea.vmem %s2581_s3, %s1860_s29 }
  0x19   : > { %v308_v8 = vld [vmem:[%s297_s19] sm:$0x3]  ;;  %v309_v9 = vld [vmem:[%s297_s19 + $0x2] sm:$0x3]  ;;  %v310_v10 = vld [vmem:[%s297_s19 + $0x4] sm:$0x3]  ;;  %s306_s20 = scalar_lea.vmem %s2584_s6, %s1946_s16 }
  0x1a   : > { %v311_v11 = vld [vmem:[%s297_s19 + $0x6] sm:$0x3]  ;;  %v325_v12 = vcombine.low %v308_v8, %v309_v9  ;;  %v490_v37 = vld [vmem:[#allocation2 + $0x14] sm:$0x1]  ;;  %v496_v38 = vld [vmem:[#allocation2] sm:$0x4] }
  0x1b   : > { %v326_v13 = vcombine.low %v310_v10, %v311_v11  ;;  %v476_v39 = vsel %vm2291_vm6, 0, %v475_v36  ;;  %v491_v40 = vsel %vm2291_vm6, 0, %v490_v37  ;;  %v497_v41 = vsel %vm2297_vm8, 0, %v496_v38  ;;  %v511_v42 = vld [vmem:[#allocation2 + $0x14] sm:$0x4]  ;;  %s290_s15 = sand.u32 1, %s2155_s25  }
  0x1c   : > { %v333_v14 = vrot.slane %v325_v12, %v2284_v7  ;;  %477 = vst [vmem:[#allocation2] sm:$0x1] %v476_v39  ;;  %492 = vst [vmem:[#allocation2 + $0x14] sm:$0x1] %v491_v40  ;;  %v512_v43 = vsel %vm2297_vm8, 0, %v511_v42  ;;  %vm868_vm6 = vcmask 1044484  }
  0x1d   : > { %v340_v15 = vrot.slane %v326_v13, %v2284_v7  ;;  %498 = vst [vmem:[#allocation2] sm:$0x4] %v497_v41  ;;  %513 = vst [vmem:[#allocation2 + $0x14] sm:$0x4] %v512_v43  ;;  %v2169_v46 = vmov 1966171168  }
  0x1e   : > { %v406_v47 = vunpack.c.l.s4 %v2169_v46  ;;  %v399_v49 = vld [vmem:[%s301_s13] sm:$0x1]  ;;  %v400_v50 = vld [vmem:[%s301_s13 + $0x1] sm:$0x1]  ;;  %vm560_vm10 = vsmask.f32 2306 }
  0x1f   : > { %v341_v16 = vcombine.low %v333_v14, %v340_v15  ;;  %v401_v51 = vunpack.c.l.bf16 %v399_v49  ;;  %v402_v53 = vunpack.c.l.bf16 %v400_v50  ;;  %v1863_v1 = vld [vmem:[%s2580_s2] ss:$0 sm:$0xff]  ;;  %v562_v28 = vld [vmem:[#allocation2 + $0x4] sm:$0x7]  ;;  %vm2352_vm11 = vmand %vm468_vm7, %vm560_vm10  ;;  %vm621_vm12 = vsmask.f32 1280 }
  0x20   : > { %v407_v48 = vunpack.c.0.s8 %v406_v47  ;;  %v565_v31 = vld [vmem:[#allocation2 + $0x8] sm:$0x7]  ;;  %v568_v40 = vld [vmem:[#allocation2 + $0xc] sm:$0x7]  ;;  %vm622_vm13 = vsmask.f32 3336 }
  0x21   : > { %1976 = vmatmul.mubr.msk.bf16.vlgmr.msra.gmra.mrb[0].mxu0 %vm348_vm1, %v341_v16  ;;  %v571_v49 = vld [vmem:[#allocation2 + $0x10] sm:$0x7]  ;;  %vm623_vm14 = vmor %vm621_vm12, %vm622_vm13  ;;  %vm624_vm15 = vsmask.f32 5392  ;;  %vm626_vm3 = vsmask.f32 7448 }
  0x22   : > { %1987 = vmatprep.mubr.msk.bf16.mxu0 %vm2166_vm0, %v2165_v2  ;;  %1986 = vmatpush3.bf16.msra.mxu0 %v2080_v44  ;;  %v410_v52 = vsub.s32 %v407_v48, %v2269_v5  ;;  %vm625_vm2 = vmor %vm623_vm14, %vm624_vm15  ;;  %vm870_vm8 = vcmask 1046534   ;;  %v2087_v30 = vld [vmem:[%s2582_s4 + $0x10] sm:$0xff]   ;;  %s1857_s16 = sshll.u32 %s290_s15, 4  ;;  %s1952_s8 = sshll.u32 %s2234_s28, 8 }
  0x23   : > { %1997 = vmatprep.subr.bf16.mxu0 %v2165_v2  ;;  %vm2383_vm7 = vmor %vm625_vm2, %vm626_vm3  ;;  %s292_s23 = scalar_lea.vmem [#allocation3], %s1857_s16  ;;  %s2530_s14 = scalar_lea.hbm %s2585_s7, %s1952_s8 }
  0x24   : > { %v411_v54 = vrot.slane %v401_v51, %v410_v52  ;;  %v419_v55 = vrot.slane %v402_v53, %v410_v52  ;;  %v1870_v14 = vld.sshfl [vmem:[#allocation2] sm:$0x13 pattern:$0x76325410]  ;;  %s1754_s29 = sshll.u32 %s292_s23, 4  ;;  %s2537_s28 = scalar_lea.sflag [#allocation4], %s290_s15  ;;  %s2532_s29 = int_to_ptr.vmem [resolvable:$true] %s1754_s29 }
  0x25   : > { %v629_v19 = vshrl.u32 %v1870_v14, 16  ;;  %v632_v20 = vshll.u32 %v1870_v14, 16  ;;  %v596_v33 = vcombine.high %v1870_v14, %v1870_v14  ;;  %v2360_v47 = vld.sshfl [vmem:[#allocation2] sm:$0x12 pattern:$0x76325410] }
  0x26   : > { %v412_v56 = vcombine.high %v411_v54, %v411_v54  ;;  %v420_v58 = vcombine.high %v419_v55, %v419_v55  ;;  %v424_v59 = vrot.slane %v411_v54, %v423_v57  ;;  %v432_v61 = vrot.slane %v419_v55, %v423_v57  ;;  %v2362_v50 = vld.sshfl [vmem:[#allocation2 + $0x14] sm:$0x13 pattern:$0x76325410]  ;;  %v2084_v14 = vld [vmem:[%s2582_s4 + $0x18] sm:$0xff]   ;;  %s2101_s17 = scalar_lea.vmem %s2532_s29, 256 }
  0x27   : > { %v631_v34 = vrot.slane %v629_v19, 6  ;;  %v634_v35 = vrot.slane %v632_v20, 7  ;;  %v638_v55 = vshll.u32 %v596_v33, 16  ;;  %p2102_p11 = scmp.ne.s32.totalorder %s2532_s29, %s2101_s17  ;;  %s2170_s18 = smov [#allocation3]  }
  0x28   : > { %v428_v60 = vrot.slane %v412_v56, %v423_v57  ;;  %v436_v62 = vrot.slane %v420_v58, %v423_v57  ;;  %v840_v56 = vcombine.high %v2360_v47, %v2360_v47  ;;  %v1500_v58 = vshrl.u32 %v2362_v50, 16  ;;  %s2105_s19 = sshll.u32 %s2170_s18, 4  ;;  %s2106_s19 = int_to_ptr.vmem [resolvable:$false] %s2105_s19 }
  0x29   : > { %v635_v53 = vor.u32 %v634_v35, %v631_v34  ;;  %p2103_p12 = pnand %p2102_p11, %p2251_p5  ;;  %p2108_p0 = scmp.lt.s32.totalorder %s2532_s29, %s2106_s19 }
  0x2a   : > { %v437_v63 = vcombine.low %v424_v59, %v428_v60  ;;  %v445_v0 = vcombine.low %v432_v61, %v436_v62  ;;  %v1503_v59 = vshll.u32 %v2362_v50, 16  ;;  %v640_v61 = vrot.slane %v638_v55, 7 }
  0x2b   : > { %v636_v60 = vrot.slane %v635_v53, 2  ;;  %v1884_v62 = vrot.slane %v2360_v47, 9  ;;  %p2104_p13 = pneg %p2103_p12 }
  0x2c   : > { %v444_v3 = vrot.slane %v437_v63, %v2284_v7  ;;  %v452_v9 = vrot.slane %v445_v0, %v2284_v7  ;;  %v2377_v63 = vrot.slane %v840_v56, 7  ;;  %v2379_v0 = vrot.slane %v1500_v58, 6 }
  0xf4   : > { %v386_v4 = vpop.f32.mrb[0].mxu0 }
  0xf5   : > { %v387_v6 = vadd.f32 %v1863_v1, %v386_v4  ;;  %v1977_v8 = vpop.f32.mrb[1].mxu0 }
  0xf6   : > { %v389_v5 = vpop.f32.mrb[2].mxu0 }
  0xf7   : > { %v395_v10 = vcombine.high %v387_v6, %v387_v6  ;;  %v455_v11 = vadd.f32 %v444_v3, %v387_v6  ;;  %v390_v12 = vadd.f32 %v1863_v1, %v389_v5  ;;  %v1978_v13 = vpop.f32.mrb[3].mxu0  ;;  %v2381_v1 = vrot.slane %v1503_v59, 7 }
  0xf9   : > { %v456_v15 = vadd.f32 %v444_v3, %v395_v10  ;;  %v459_v16 = vpack.c.bf16 %v455_v11, %v455_v11  ;;  %v396_v17 = vcombine.high %v390_v12, %v390_v12  ;;  %v457_v18 = vadd.f32 %v452_v9, %v390_v12 }
  0xfa   : > { %v2393_v11 = vsel %vm2383_vm7, %v636_v60, %v640_v61 }
  0xfb   : > { %v460_v21 = vpack.c.bf16 %v456_v15, %v456_v15  ;;  %464 = vst.msk [vmem:[%s306_s20] sm:$0x3] %vm463_vm9, %v459_v16  ;;  %v527_v22 = vshrl.u32 %v459_v16, 16  ;;  %v458_v23 = vadd.f32 %v452_v9, %v396_v17  ;;  %v461_v24 = vpack.c.bf16 %v457_v18, %v457_v18 }
  0xfc   : > { %v530_v26 = vshll.u32 %v459_v16, 16  ;;  %v1456_v17 = vcombine.high %v2362_v50, %v2362_v50 }
  0xfd   : > { %465 = vst.msk [vmem:[%s306_s20 + $0x2] sm:$0x3] %vm463_vm9, %v460_v21  ;;  %v529_v25 = vrot.slane %v527_v22, 7  ;;  %v534_v27 = vshrl.u32 %v460_v21, 16  ;;  %v462_v29 = vpack.c.bf16 %v458_v23, %v458_v23  ;;  %466 = vst.msk [vmem:[%s306_s20 + $0x4] sm:$0x3] %vm463_vm9, %v461_v24  ;;  %v1506_v22 = vor.u32 %v2381_v1, %v2379_v0 }
  0xfe   : > { %v541_v32 = vshrl.u32 %v461_v24, 16  ;;  %v537_v38 = vshll.u32 %v460_v21, 16  ;;  %v544_v42 = vshll.u32 %v461_v24, 16 }
  0xff   : > { %v532_v36 = vor.u32 %v530_v26, %v529_v25  ;;  %v536_v37 = vrot.slane %v534_v27, 7  ;;  %467 = vst.msk [vmem:[%s306_s20 + $0x6] sm:$0x3] %vm463_vm9, %v462_v29  ;;  %v548_v39 = vshrl.u32 %v462_v29, 16  ;;  %v551_v46 = vshll.u32 %v462_v29, 16  ;;  %vm2404_vm9 = vmor %vm865_vm4, %vm866_vm5  ;;  %s2107_s20 = scalar_lea.vmem %s2106_s19, 512 }
 0x100   : > { %v543_v41 = vrot.slane %v541_v32, 7  ;;  %vm2415_vm10 = vmor %vm2404_vm9, %vm868_vm6  ;;  %v1507_v47 = vrot.slane %v1506_v22, 2  ;;  %p2109_p1 = scmp.lt.s32.totalorder %s2107_s20, %s2101_s17 }
 0x101   : > { %v539_v43 = vor.u32 %v537_v38, %v536_v37  ;;  %v563_v44 = vsel %vm2352_vm11, %v532_v36, %v562_v28  ;;  %v550_v45 = vrot.slane %v548_v39, 7 }
 0x102   : > { %564 = vst [vmem:[#allocation2 + $0x4] sm:$0x7] %v563_v44  ;;  %v546_v48 = vor.u32 %v544_v42, %v543_v41  ;;  %p2110_p2 = por %p2109_p1, %p2108_p0 }
 0x103   : > { %v566_v51 = vsel %vm2352_vm11, %v539_v43, %v565_v31  ;;  %v553_v52 = vor.u32 %v551_v46, %v550_v45  ;;  %v2089_v43 = vld [vmem:[%s2582_s4 + $0x20] sm:$0xff]  }
 0x104   : > { %567 = vst [vmem:[#allocation2 + $0x8] sm:$0x7] %v566_v51  ;;  %v569_v54 = vsel %vm2352_vm11, %v546_v48, %v568_v40  ;;  %p2111_p3 = pnand %p2110_p2, %p2104_p13 }
 0x105   : > { %570 = vst [vmem:[#allocation2 + $0xc] sm:$0x7] %v569_v54  ;;  %v572_v57 = vsel %vm2352_vm11, %v553_v52, %v571_v49  ;;  %v2088_v49 = vld [vmem:[%s2582_s4 + $0x28] sm:$0xff]   ;;  %vm2431_vm11 = vmor %vm2415_vm10, %vm870_vm8 }
 0x106   : > { %573 = vst [vmem:[#allocation2 + $0x10] sm:$0x7] %v572_v57 }
 0x109   : > { %v2095_v3 = vld.sshfl [vmem:[#allocation2] sm:$0xf pattern:$0x76325410] }
 0x10a   : > { %v1871_v4 = vld.sshfl [vmem:[#allocation2 + $0x4] sm:$0x13 pattern:$0x76325410] }
 0x10b   : > { %v2387_v8 = vld.sshfl [vmem:[#allocation2 + $0x4] sm:$0xf pattern:$0x76325410]  ;;  %v604_v9 = vcombine.high %v1871_v4, %v1871_v4  ;;  %v643_v12 = vshrl.u32 %v1871_v4, 16  ;;  %v646_v13 = vshll.u32 %v1871_v4, 16 }
 0x10c   : > { %v2096_v5 = vld.sshfl [vmem:[#allocation2 + $0x8] sm:$0xf pattern:$0x76325410] }
 0x10d   : > { %v2389_v10 = vld.sshfl [vmem:[#allocation2 + $0xc] sm:$0xf pattern:$0x76325410]  ;;  %v652_v16 = vshll.u32 %v604_v9, 16  ;;  %v645_v20 = vrot.slane %v643_v12, 6  ;;  %v774_v23 = vcombine.low %v2095_v3, %v2096_v5 }
 0x10e   : > { %v1872_v15 = vld.sshfl [vmem:[#allocation2 + $0x8] sm:$0x13 pattern:$0x76325410]  ;;  %v648_v21 = vrot.slane %v646_v13, 7  ;;  %v987_v57 = vcombine.low %v2387_v8, %v2389_v10 }
 0x10f   : > { %v1873_v18 = vld.sshfl [vmem:[#allocation2 + $0xc] sm:$0x13 pattern:$0x76325410]  ;;  %v612_v19 = vcombine.high %v1872_v15, %v1872_v15  ;;  %v657_v25 = vshrl.u32 %v1872_v15, 16  ;;  %v660_v28 = vshll.u32 %v1872_v15, 16  ;;  %1988 = vmatmul.mubr.msk.bf16.vlgmr.msra.gmra.mrb[4].mxu0 %vm348_vm1, %v774_v23 }
 0x110   : > { %v620_v24 = vcombine.high %v1873_v18, %v1873_v18  ;;  %v1904_v26 = vld.sshfl [vmem:[#allocation2 + $0x4] sm:$0x12 pattern:$0x76325410]  ;;  %v649_v27 = vor.u32 %v648_v21, %v645_v20  ;;  %v671_v33 = vshrl.u32 %v1873_v18, 16  ;;  %v674_v34 = vshll.u32 %v1873_v18, 16  ;;  %1998 = vmatpush3.bf16.msra.mxu0 %v2084_v14  ;;  %1999 = vmatprep.mubr.msk.bf16.mxu0 %vm2166_vm0, %v2165_v2 }
 0x111   : > { %v666_v29 = vshll.u32 %v612_v19, 16  ;;  %v1905_v31 = vld.sshfl [vmem:[#allocation2 + $0x8] sm:$0x12 pattern:$0x76325410]  ;;  %v659_v32 = vrot.slane %v657_v25, 6  ;;  %v1223_v39 = vcombine.high %v1904_v26, %v1904_v26  ;;  %2009 = vmatprep.subr.bf16.mxu0 %v2165_v2 }
 0x112   : > { %v680_v35 = vshll.u32 %v620_v24, 16  ;;  %v650_v36 = vrot.slane %v649_v27, 2  ;;  %v654_v37 = vrot.slane %v652_v16, 7  ;;  %v662_v38 = vrot.slane %v660_v28, 7 }
 0x113   : > { %v668_v40 = vrot.slane %v666_v29, 7  ;;  %v673_v41 = vrot.slane %v671_v33, 6  ;;  %v676_v42 = vrot.slane %v674_v34, 7  ;;  %v1231_v44 = vcombine.high %v1905_v31, %v1905_v31 }
 0x114   : > { %v2421_v45 = vsel %vm2383_vm7, %v650_v36, %v654_v37  ;;  %v663_v46 = vor.u32 %v662_v38, %v659_v32  ;;  %v682_v48 = vrot.slane %v680_v35, 7  ;;  %v1906_v50 = vld.sshfl [vmem:[#allocation2 + $0xc] sm:$0x12 pattern:$0x76325410]  ;;  %v1908_v51 = vrot.slane %v1904_v26, 9 }
 0x115   : > { %v677_v52 = vor.u32 %v676_v42, %v673_v41  ;;  %v1907_v53 = vld.sshfl [vmem:[#allocation2 + $0x10] sm:$0x12 pattern:$0x76325410]  ;;  %v1239_v54 = vcombine.high %v1906_v50, %v1906_v50  ;;  %v1250_v55 = vrot.slane %v1223_v39, 7  ;;  %v1909_v56 = vrot.slane %v1905_v31, 9 }
 0x116   : > { %v664_v58 = vrot.slane %v663_v46, 2  ;;  %v1247_v60 = vcombine.high %v1907_v53, %v1907_v53  ;;  %v1254_v61 = vrot.slane %v1231_v44, 7  ;;  %v1922_v3 = vld.sshfl [vmem:[#allocation2 + $0x10] sm:$0x13 pattern:$0x76325410]  ;;  %v687_v9 = vcombine.low %v2393_v11, %v2421_v45 }
 0x117   : > { %v678_v4 = vrot.slane %v677_v52, 2  ;;  %v1910_v5 = vrot.slane %v1906_v50, 9  ;;  %v1258_v12 = vrot.slane %v1239_v54, 7  ;;  %v1911_v13 = vrot.slane %v1907_v53, 9  ;;  %2000 = vmatmul.mubr.msk.bf16.vlgmr.msra.gmra.mrb[8].mxu0 %vm348_vm1, %v987_v57  ;;  %v2090_v36 = vld [vmem:[%s2582_s4 + $0x38] sm:$0xff]  }
 0x118   : > { %v2439_v8 = vsel %vm2383_vm7, %v664_v58, %v668_v40  ;;  %v1255_v10 = vsel %vm2431_vm11, %v1909_v56, %v1254_v61  ;;  %v1262_v14 = vrot.slane %v1247_v60, 7  ;;  %v1251_v16 = vsel %vm2431_vm11, %v1908_v51, %v1250_v55  ;;  %2010 = vmatpush3.bf16.msra.mxu0 %v2088_v49  ;;  %2011 = vmatprep.mubr.msk.bf16.mxu0 %vm2166_vm0, %v2165_v2  ;;  %v1931_v51 = vld.sshfl [vmem:[#allocation2 + $0x14] sm:$0x12 pattern:$0x76325410] }
 0x119   : > { %v683_v15 = vsel %vm2383_vm7, %v678_v4, %v682_v48  ;;  %v1259_v11 = vsel %vm2431_vm11, %v1910_v5, %v1258_v12  ;;  %v1509_v18 = vshll.u32 %v1456_v17, 16  ;;  %v1267_v21 = vcombine.low %v1251_v16, %v1255_v10  ;;  %2021 = vmatprep.subr.bf16.mxu0 %v2165_v2  ;;  %v2091_v55 = vld [vmem:[%s2582_s4 + $0x30] sm:$0xff]   ;;  %v2100_v60 = vld.sshfl [vmem:[#allocation2 + $0x8] sm:$0xf pattern:$0x76325410] }
 0x11a   : > { %v688_v19 = vcombine.low %v2439_v8, %v683_v15  ;;  %v2455_v20 = vsel %vm2431_vm11, %v1911_v13, %v1262_v14  ;;  %v1486_v23 = vshrl.u32 %v1922_v3, 16  ;;  %v875_v17 = vsel %vm2431_vm11, %v1884_v62, %v2377_v63  ;;  %v2099_v56 = vld.sshfl [vmem:[#allocation2 + $0x10] sm:$0xf pattern:$0x76325410] }
 0x11b   : > { %v1268_v24 = vcombine.low %v1259_v11, %v2455_v20  ;;  %v1448_v25 = vcombine.high %v1922_v3, %v1922_v3  ;;  %v695_v26 = vrot.slane %v687_v9, %v2284_v7  ;;  %v1489_v29 = vshll.u32 %v1922_v3, 16  ;;  %v2094_v3 = vld [vmem:[%s2582_s4 + $0x40] sm:$0xff]  }
 0x11c   : > { %v702_v27 = vrot.slane %v688_v19, %v2284_v7  ;;  %v1488_v28 = vrot.slane %v1486_v23, 6  ;;  %v892_v32 = vcombine.low %v1255_v10, %v1259_v11  ;;  %v1511_v62 = vrot.slane %v1509_v18, 7 }
 0x11d   : > { %v1282_v31 = vrot.slane %v1268_v24, %v2284_v7  ;;  %v1275_v33 = vrot.slane %v1267_v21, %v2284_v7  ;;  %v1491_v34 = vrot.slane %v1489_v29, 7  ;;  %v1495_v35 = vshll.u32 %v1448_v25, 16 }
 0x11e   : > { %v703_v63 = vcombine.low %v695_v26, %v702_v27  ;;  %v891_v38 = vcombine.low %v875_v17, %v1251_v16  ;;  %v906_v0 = vrot.slane %v892_v32, %v2284_v7  ;;  %v1512_v40 = vsel %vm2383_vm7, %v1507_v47, %v1511_v62 }
 0x11f   : > { %v1283_v37 = vcombine.low %v1275_v33, %v1282_v31  ;;  %v1492_v39 = vor.u32 %v1491_v34, %v1488_v28  ;;  %v1497_v22 = vrot.slane %v1495_v35, 7  ;;  %v1139_v50 = vcombine.low %v2421_v45, %v2439_v8 }
 0x120   : > { %1982 = vmatmul.mubr.msk.bf16.vlgmr.msra.gmra.mrb[0].mxu1 %vm348_vm1, %v703_v63  ;;  %v899_v41 = vrot.slane %v891_v38, %v2284_v7  ;;  %v1624_v53 = vcombine.high %v1931_v51, %v1931_v51  ;;  %v1935_v57 = vrot.slane %v1931_v51, 9  ;;  %v1364_v4 = vcombine.low %v2100_v60, %v2099_v56 }
 0x121   : > { %1992 = vmatpush3.bf16.msra.mxu1 %v2087_v30  ;;  %1993 = vmatprep.mubr.msk.bf16.mxu1 %vm2166_vm0, %v2165_v2  ;;  %v1493_v1 = vrot.slane %v1492_v39, 2  ;;  %v1147_v54 = vrot.slane %v1139_v50, %v2284_v7  ;;  %v1940_v50 = vld [vmem:[%s2583_s5] ss:$0 sm:$0xff] }
 0x122   : > { %2003 = vmatprep.subr.bf16.mxu1 %v2165_v2  ;;  %2012 = vmatmul.mubr.msk.bf16.vlgmr.msra.gmra.mrb[12].mxu0 %vm348_vm1, %v1283_v37  ;;  %v907_v46 = vcombine.low %v899_v41, %v906_v0  ;;  %v1639_v58 = vrot.slane %v1624_v53, 7 }
 0x123   : > { %2022 = vmatpush3.bf16.msra.mxu0 %v2090_v36  ;;  %2023 = vmatprep.mubr.msk.bf16.mxu0 %vm2166_vm0, %v2165_v2  ;;  %v1498_v42 = vsel %vm2383_vm7, %v1493_v1, %v1497_v22 }
 0x124   : > { %v1517_v44 = vcombine.low %v1498_v42, %v1512_v40  ;;  %v1140_v48 = vcombine.low %v683_v15, %v1498_v42  ;;  %v1640_v61 = vsel %vm2431_vm11, %v1935_v57, %v1639_v58 }
 0x125   : > { %v1645_v9 = vcombine.low %v2455_v20, %v1640_v61 }
 0x126   : > { %v1531_v49 = vrot.slane %v1517_v44, %v2284_v7  ;;  %v1154_v52 = vrot.slane %v1140_v48, %v2284_v7 }
 0x127   : > { %v1659_v5 = vrot.slane %v1645_v9, %v2284_v7 }
 0x128   : > { %1994 = vmatmul.mubr.msk.bf16.vlgmr.msra.gmra.mrb[4].mxu1 %vm348_vm1, %v907_v46  ;;  %v1532_v6 = vcombine.low %v702_v27, %v1531_v49  ;;  %v1155_v45 = vcombine.low %v1147_v54, %v1154_v52 }
 0x129   : > { %2004 = vmatpush3.bf16.msra.mxu1 %v2089_v43  ;;  %2005 = vmatprep.mubr.msk.bf16.mxu1 %vm2166_vm0, %v2165_v2  ;;  %v1660_v12 = vcombine.low %v906_v0, %v1659_v5 }
 0x12a   : > { %2015 = vmatprep.subr.bf16.mxu1 %v2165_v2  ;;  %2024 = vmatmul.mubr.msk.bf16.vlgmr.msra.gmra.mrb[16].mxu0 %vm348_vm1, %v1532_v6 }
 0x130   : > { %2006 = vmatmul.mubr.msk.bf16.vlgmr.msra.gmra.mrb[8].mxu1 %vm348_vm1, %v1155_v45 }
 0x131   : > { %2016 = vmatpush3.bf16.msra.mxu1 %v2091_v55  ;;  %2017 = vmatprep.mubr.msk.bf16.mxu1 %vm2166_vm0, %v2165_v2 }
 0x132   : > { %2027 = vmatprep.subr.bf16.mxu1 %v2165_v2 }
 0x138   : > { %2018 = vmatmul.mubr.msk.bf16.vlgmr.msra.gmra.mrb[12].mxu1 %vm348_vm1, %v1364_v4 }
 0x139   : > { %2028 = vmatpush3.bf16.msra.mxu1 %v2094_v3  ;;  %2029 = vmatprep.mubr.msk.bf16.mxu1 %vm2166_vm0, %v2165_v2  ;;  %vm1727_vm0 = vcmask 125952  }
 0x140   : > { %2030 = vmatmul.mubr.msk.bf16.vlgmr.msra.gmra.mrb[16].mxu1 %vm348_vm1, %v1660_v12 }
 0x1e2   : > { %v818_v59 = vpop.f32.mrb[4].mxu0 }
 0x1e3   : > { %v1989_v8 = vpop.f32.mrb[5].mxu0 }
 0x1e4   : > { %v821_v10 = vpop.f32.mrb[6].mxu0 }
 0x1e5   : > { %v1990_v13 = vpop.f32.mrb[7].mxu0 }
 0x1ea   : > { %v1031_v14 = vpop.f32.mrb[8].mxu0 }
 0x1eb   : > { %v2001_v15 = vpop.f32.mrb[9].mxu0 }
 0x1ec   : > { %v1034_v16 = vpop.f32.mrb[10].mxu0 }
 0x1ed   : > { %v2002_v11 = vpop.f32.mrb[11].mxu0 }
 0x1f3   : > { %v747_v18 = vpop.f32.mrb[0].mxu1 }
 0x1f4   : > { %v819_v19 = vadd.f32 %v818_v59, %v747_v18  ;;  %v1983_v20 = vpop.f32.mrb[1].mxu1 }
 0x1f5   : > { %v750_v21 = vpop.f32.mrb[2].mxu1  ;;  %v1327_v23 = vpop.f32.mrb[12].mxu0 }
 0x1f6   : > { %v822_v24 = vadd.f32 %v821_v10, %v750_v21  ;;  %v1984_v2 = vpop.f32.mrb[3].mxu1  ;;  %v2013_v17 = vpop.f32.mrb[13].mxu0 }
 0x1f7   : > { %v1330_v7 = vpop.f32.mrb[14].mxu0 }
 0x1f8   : > { %v2014_v25 = vpop.f32.mrb[15].mxu0 }
 0x1fb   : > { %v951_v26 = vpop.f32.mrb[4].mxu1 }
 0x1fc   : > { %v958_v27 = vadd.f32 %v951_v26, %v819_v19  ;;  %v1995_v28 = vpop.f32.mrb[5].mxu1 }
 0x1fd   : > { %v954_v29 = vpop.f32.mrb[6].mxu1  ;;  %v1576_v32 = vpop.f32.mrb[16].mxu0 }
 0x1fe   : > { %v959_v30 = vadd.f32 %v954_v29, %v822_v24  ;;  %v1996_v31 = vpop.f32.mrb[7].mxu1  ;;  %v1038_v47 = vadd.f32 %v1031_v14, %v958_v27  ;;  %v2025_v62 = vpop.f32.mrb[17].mxu0 }
 0x1ff   : > { %v1579_v63 = vpop.f32.mrb[18].mxu0 }
 0x200   : > { %v1039_v33 = vadd.f32 %v1034_v16, %v959_v30  ;;  %v2026_v34 = vpop.f32.mrb[19].mxu0 }
 0x203   : > { %v1199_v35 = vpop.f32.mrb[8].mxu1 }
 0x204   : > { %v1206_v36 = vadd.f32 %v1199_v35, %v1038_v47  ;;  %v2007_v37 = vpop.f32.mrb[9].mxu1 }
 0x205   : > { %v1202_v38 = vpop.f32.mrb[10].mxu1 }
 0x206   : > { %v1207_v39 = vadd.f32 %v1202_v38, %v1039_v33  ;;  %v2008_v0 = vpop.f32.mrb[11].mxu1  ;;  %v1334_v1 = vadd.f32 %v1327_v23, %v1206_v36 }
 0x208   : > { %v1335_v22 = vadd.f32 %v1330_v7, %v1207_v39 }
 0x20b   : > { %v1408_v40 = vpop.f32.mrb[12].mxu1 }
 0x20c   : > { %v1415_v41 = vadd.f32 %v1408_v40, %v1334_v1  ;;  %v2019_v42 = vpop.f32.mrb[13].mxu1 }
 0x20d   : > { %v1411_v43 = vpop.f32.mrb[14].mxu1 }
 0x20e   : > { %v1416_v44 = vadd.f32 %v1411_v43, %v1335_v22  ;;  %v2020_v46 = vpop.f32.mrb[15].mxu1  ;;  %v1583_v48 = vadd.f32 %v1576_v32, %v1415_v41 }
 0x210   : > { %v1584_v49 = vadd.f32 %v1579_v63, %v1416_v44 }
 0x213   : > { %v1704_v51 = vpop.f32.mrb[16].mxu1 }
 0x214   : > { %v1711_v6 = vadd.f32 %v1704_v51, %v1583_v48  ;;  %v2031_v52 = vpop.f32.mrb[17].mxu1 }
 0x215   : > { %v1707_v53 = vpop.f32.mrb[18].mxu1 }
 0x216   : > { %v1719_v54 = vadd.f32 %v1940_v50, %v1711_v6  ;;  %v1712_v55 = vadd.f32 %v1707_v53, %v1584_v49  ;;  %v2032_v45 = vpop.f32.mrb[19].mxu1 }
 0x218   : > { %v1723_v56 = vcombine.high %v1719_v54, %v1719_v54  ;;  %1728 = vst.msk [vmem:[%s292_s23] sm:$0xf] %vm1727_vm0, %v1719_v54  ;;  %v1720_v57 = vadd.f32 %v1940_v50, %v1712_v55 }
 0x21a   : > { %1729 = vst.msk [vmem:[%s292_s23 + $0x4] sm:$0xf] %vm1727_vm0, %v1723_v56  ;;  %v1724_v58 = vcombine.high %v1720_v57, %v1720_v57  ;;  %1730 = vst.msk [vmem:[%s292_s23 + $0x8] sm:$0xf] %vm1727_vm0, %v1720_v57 }
 0x21c   : > { %1731 = vst.msk [vmem:[%s292_s23 + $0xc] sm:$0xf] %vm1727_vm0, %v1724_v58 }
 0x21d   : > { %2114 = shalt.err (!%p2111_p3)
}
 0x21e   : > { %s2115_s15 = scalar_lea.hbm %s2530_s14, 256  ;;  %s2119_s22 = scalar_lea.hbm %s2585_s7, 512 }
 0x21f   : > { %p2116_p4 = scmp.ne.s32.totalorder %s2530_s14, %s2115_s15  ;;  %p2120_p9 = scmp.lt.u32.totalorder %s2530_s14, %s2585_s7 }
 0x220   : > { %p2121_p10 = scmp.lt.u32.totalorder %s2119_s22, %s2115_s15  ;;  %p2123_p12 = scmp.lt.u32.totalorder %s2115_s15, %s2530_s14 }
 0x221   : > { %p2117_p7 = pnand %p2116_p4, %p2251_p5 }
 0x222   : > { %p2122_p11 = por %p2121_p10, %p2120_p9 }
 0x223   : > { %p2118_p8 = pneg %p2117_p7 }
 0x224   : > { %p2124_p13 = por %p2123_p12, %p2122_p11 }
 0x226   : > { %p2125_p0 = pnand %p2124_p13, %p2118_p8 }
 0x228   : > { %2128 = shalt.err (!%p2125_p0)
}
 0x229   : > { %s2171_s9 = smov 64   ;;  %s2172_s13 = smov 4  }
 0x22a   : > { %2033 = dma.vmem_to_hbm [thread:$0]  (%p2251_p5), %s2532_s29, 256, %s2530_s14, %s2537_s28, %s2171_s9, %s2171_s9, %s2172_s13  }
 0x22b PF: > { %p2039_p1 = scmp.ge.s32.totalorder %s2163_s27, 2  ;;  %s1777_s17 = sand.u32 1, %s2151_s24  }
 0x22c   : > { %s1778_s18 = scalar_lea.sflag [#allocation4], %s1777_s17 }
 0x22d   : > { %p2036_p2 = pnand %p2039_p1, %p2255_p6 }
 0x22f   : > { %2146 = dma.done.wait (!%p2036_p2), %s1778_s18, 256  }
 0x230   : > { %2148 = vsyncadd (!%p2036_p2), %s1778_s18, 4294967040  ;;  %p18_p3 = scmp.ge.s32.totalorder %s2238_s30, 4   ;;  %s2602_s24 = smov %s2155_s25 }
 0x231   : > { %s2603_s25 = smov %s2159_s26  ;;  %s2604_s26 = smov %s2249_s10 }
 0x232   : > { %s2605_s27 = smov %s2238_s30  ;;  %20 = sbr.rel (!%p18_p3) target bundleno = 3 (0x3), region = 105 }
 0x239   :  { %1783 = vsyncpa [#allocation4], 1 }
 0x23a   :  { %1785 = vsyncpa [#allocation4 + $0x1], 1 }

// kernel: _lambda_.11
= control target key start
LH: loop header
LB: loop body
LE: loop exit
PB: predicated region body
PF: predicated region fallthrough
CT: control target
= control target key end

     0   :  { %11 = vsyncpa [#allocation4], 0  ;;  %s3661_s0 = inlined_call_operand.vmem [shape: bf16[2,8,8,8], index: 0, kind: input, shape index: {}]   ;;  %s3662_s1 = inlined_call_operand.vmem [shape: bf16[8,16], index: 1, kind: input, shape index: {}]   ;;  %s3663_s2 = inlined_call_operand.vmem [shape: f32[1,16], index: 2, kind: input, shape index: {}, may-alias: {2,5}]   ;;  %s3664_s3 = inlined_call_operand.vmem [shape: bf16[2,4,4,16], index: 3, kind: input, shape index: {}]   ;;  %s3665_s4 = inlined_call_operand.vmem [shape: bf16[9,16,16], index: 4, kind: input, shape index: {}]   ;;  %s3666_s5 = inlined_call_operand.vmem [shape: f32[1,16], index: 5, kind: input, shape index: {}, may-alias: {2,5}]   ;;  %s3667_s6 = inlined_call_operand.hbm [shape: f32[2,8,8,16], index: 6, kind: output, shape index: {}]  }
   0x1   :  { %13 = vsyncpa [#allocation4 + $0x1], 0  ;;  %s3077_s21 = smov 0   ;;  %s3079_s22 = smov 0  }
   0x2   :  { %s3081_s23 = smov 0   ;;  %s3083_s24 = smov 0  }
   0x3 LB: > { %s3098_s25 = sadd.s32 4294967295, %s3034_s24   ;;  %s2524_s26 = sadd.s32 4294967294, %s3034_s24   ;;  %s3034_s24 = sphi %s3083_s24, %s3683_s24   ;;  %s3030_s23 = sphi %s3081_s23, %s3682_s23   ;;  %s3026_s22 = sphi %s3079_s22, %s3681_s22   ;;  %s3022_s21 = sphi %s3077_s21, %s3680_s21  }
   0x4   : > { %s3102_s27 = sadd.s32 1, %s3034_s24   ;;  %s162_s28 = sadd.s32 1, %s3030_s23 }
   0x5   : > { %s159_s29 = ssub.s32 %s3034_s24, %s3102_s27  ;;  %p172_p0 = scmp.ne.s32.totalorder %s3030_s23, %s3026_s22 }
   0x6   : > { %p160_p1 = scmp.eq.s32.totalorder %s159_s29, 0  ;;  %p173_p2 = scmp.eq.s32.totalorder %s3098_s25, 1 }
   0x7   : > { %p178_p3 = scmp.ne.s32.totalorder %s3026_s22, %s3022_s21  ;;  %p179_p4 = scmp.eq.s32.totalorder %s2524_s26, 1 }
   0x8   : > { %s3113_s30 = scalar_select %p160_p1, %s3030_s23, %s162_s28  }
   0x9   : > { %p3115_p5 = por %p173_p2, %p172_p0  ;;  %p3119_p6 = por %p179_p4, %p178_p3 }
   0xa   : > { %p2527_p7 = scmp.ge.s32.totalorder %s3034_s24, 1  ;;  %p225_p8 = scmp.lt.s32.totalorder %s3034_s24, 3 }
   0xc   : > { %p226_p9 = pnand %p2527_p7, %p225_p8 }
   0xd   : > { %v279_v0 = vld [vmem:[%s3662_s1] sm:$0xf] (!%p226_p9)  ;;  %vm320_vm0 = vcmask (!%p226_p9), 1043456   ;;  %p260_p10 = scmp.lt.s32.totalorder (!%p226_p9), %s3098_s25, 1  ;;  %vm307_vm1 = vcmask (!%p226_p9), 64512   ;;  %vm651_vm2 = vcmask (!%p226_p9), 122880   ;;  %v404_v56 = vlaneseq (!%p226_p9) }
   0xe   : > { %229 = sbr.rel (%p226_p9) target bundleno = 607 (0x25f), region = 44  ;;  %2902 = vmatprep.subr.msk.bf16.mxu0 (!%p226_p9), %vm320_vm0, %v279_v0  ;;  %v322_v1 = vsel (!%p226_p9), %vm320_vm0, %v279_v0, 0  ;;  %vm657_vm3 = vsmask.f32 (!%p226_p9), 256  ;;  %vm689_vm4 = vsmask.f32 (!%p226_p9), 7938 }
   0xf   : > { %2739 = vmatpush3.bf16.msra.mxu0 (!%p226_p9), %v322_v1  ;;  %vm649_vm5 = vcmask (!%p226_p9), 125952   ;;  %vm3136_vm6 = vmand (!%p226_p9), %vm651_vm2, %vm657_vm3  ;;  %v668_v7 = vld [vmem:[#allocation2 + $0x18] sm:$0x1] (!%p226_p9)  ;;  %v700_v8 = vld [vmem:[#allocation2 + $0x1c] sm:$0x1] (!%p226_p9)  ;;  %v3036_v9 = vmov (!%p226_p9), 0  }
  0x10   : > { %650 = vst.msk [vmem:[#allocation2] sm:$0xf] (!%p226_p9), %vm649_vm5, %v3036_v9  ;;  %654 = vst.msk [vmem:[#allocation2 + $0x48] sm:$0xf] (!%p226_p9), %vm649_vm5, %v3036_v9  ;;  %v669_v10 = vsel (!%p226_p9), %vm3136_vm6, 0, %v668_v7  ;;  %v2951_v50 = vld [vmem:[%s3665_s4 + $0x8] sm:$0xff] (!%p226_p9)  }
  0x11   : > { %652 = vst.msk [vmem:[#allocation2 + $0x4] sm:$0x1] (!%p226_p9), %vm651_vm2, %v3036_v9  ;;  %655 = vst.msk [vmem:[#allocation2 + $0x4c] sm:$0x1] (!%p226_p9), %vm651_vm2, %v3036_v9  ;;  %v662_v12 = vld [vmem:[#allocation2 + $0x8] sm:$0x1] (!%p226_p9)  ;;  %2748 = vmatprep.subr.bf16.mxu0 (!%p226_p9), %v2951_v50 }
  0x12   : > { %vm3145_vm7 = vmand (!%p226_p9), %vm651_vm2, %vm689_vm4  ;;  %v694_v13 = vld [vmem:[#allocation2 + $0xc] sm:$0x1] (!%p226_p9)  ;;  %670 = vst [vmem:[#allocation2 + $0x18] sm:$0x1] (!%p226_p9), %v669_v10  ;;  %v663_v15 = vsel (!%p226_p9), %vm3136_vm6, 0, %v662_v12  ;;  %v2952_v51 = vld [vmem:[%s3665_s4 + $0x20] sm:$0xff] (!%p226_p9)  }
  0x13   : > { %v701_v14 = vsel (!%p226_p9), %vm3145_vm7, 0, %v700_v8  ;;  %v695_v16 = vsel (!%p226_p9), %vm3145_vm7, 0, %v694_v13  ;;  %v671_v17 = vld [vmem:[#allocation2 + $0x20] sm:$0x1] (!%p226_p9)  ;;  %664 = vst [vmem:[#allocation2 + $0x8] sm:$0x1] (!%p226_p9), %v663_v15  ;;  %vm3171_vm8 = vmand (!%p226_p9), %vm649_vm5, %vm689_vm4  ;;  %2788 = vmatprep.subr.bf16.mxu1 (!%p226_p9), %v2952_v51 }
  0x14   : > { %702 = vst [vmem:[#allocation2 + $0x1c] sm:$0x1] (!%p226_p9), %v701_v14  ;;  %696 = vst [vmem:[#allocation2 + $0xc] sm:$0x1] (!%p226_p9), %v695_v16  ;;  %v672_v18 = vsel (!%p226_p9), %vm3136_vm6, 0, %v671_v17  ;;  %2789 = vmatpush3.bf16.msra.mxu1 (!%p226_p9), %v2952_v51  ;;  %v3202_v52 = vld [vmem:[%s3665_s4 + $0x28] sm:$0xff] (!%p226_p9)  }
  0x15   : > { %s3130_s11 = scalar_select %p260_p10, %s3098_s25, 1  ;;  %v703_v19 = vld [vmem:[#allocation2 + $0x24] sm:$0x1]  ;;  %v665_v20 = vld [vmem:[#allocation2 + $0x10] sm:$0x1]  ;;  %2798 = vmatprep.subr.bf16.mxu1 %v3202_v52  ;;  %v405_v58 = vshrl.u32 %v404_v56, 7 }
  0x16   : > { %673 = vst [vmem:[#allocation2 + $0x20] sm:$0x1] %v672_v18  ;;  %v704_v21 = vsel %vm3145_vm7, 0, %v703_v19  ;;  %v666_v22 = vsel %vm3136_vm6, 0, %v665_v20  ;;  %v697_v23 = vld [vmem:[#allocation2 + $0x14] sm:$0x1] }
  0x17   : > { %s2677_s12 = sshll.u32 %s3130_s11, 5  ;;  %705 = vst [vmem:[#allocation2 + $0x24] sm:$0x1] %v704_v21  ;;  %667 = vst [vmem:[#allocation2 + $0x10] sm:$0x1] %v666_v22  ;;  %v698_v24 = vsel %vm3145_vm7, 0, %v697_v23 }
  0x18   : > { %s264_s15 = scalar_lea.vmem %s3661_s0, %s2677_s12  ;;  %699 = vst [vmem:[#allocation2 + $0x14] sm:$0x1] %v698_v24  ;;  %v659_v25 = vld [vmem:[#allocation2] sm:$0x1]  ;;  %v686_v26 = vld [vmem:[#allocation2 + $0x48] sm:$0x1] }
  0x19   : > { %v2947_v2 = vld [vmem:[%s264_s15] sm:$0xff]   ;;  %v2948_v3 = vld [vmem:[%s264_s15 + $0x8] sm:$0xff]   ;;  %v2949_v4 = vld [vmem:[%s264_s15 + $0x10] sm:$0xff]   ;;  %v660_v28 = vsel %vm3136_vm6, 0, %v659_v25  ;;  %v687_v29 = vsel %vm3136_vm6, 0, %v686_v26  ;;  %s2678_s9 = sshll.u32 %s3130_s11, 3 }
  0x1a   : > { %2740 = vmatprep.mubr.msk.bf16.mxu0 %vm307_vm1, %v2947_v2  ;;  %v2950_v5 = vld [vmem:[%s264_s15 + $0x18] sm:$0xff]   ;;  %v691_v27 = vld [vmem:[#allocation2 + $0x4] sm:$0x1]  ;;  %v718_v31 = vld [vmem:[#allocation2 + $0x4c] sm:$0x1]  ;;  %s269_s13 = scalar_lea.vmem %s3664_s3, %s2678_s9  ;;  %v499_v16 = vsub.s32 0, %v405_v58 }
  0x1b   : > { %2741 = vmatmul.mubr.msk.bf16.vlgmr.msra.gmra.mrb[0].mxu0 %vm307_vm1, %v2948_v3  ;;  %v692_v30 = vsel %vm3145_vm7, 0, %v691_v27  ;;  %661 = vst [vmem:[#allocation2] sm:$0x1] %v660_v28  ;;  %688 = vst [vmem:[#allocation2 + $0x48] sm:$0x1] %v687_v29  ;;  %v719_v33 = vsel %vm3145_vm7, 0, %v718_v31 }
  0x1c   : > { %2744 = vmatprep.mubr.msk.bf16.mxu0 %vm307_vm1, %v2949_v4  ;;  %693 = vst [vmem:[#allocation2 + $0x4] sm:$0x1] %v692_v30  ;;  %720 = vst [vmem:[#allocation2 + $0x4c] sm:$0x1] %v719_v33  ;;  %v680_v34 = vld [vmem:[#allocation2 + $0x38] sm:$0x1]  ;;  %2749 = vmatpush3.bf16.msra.mxu0 %v2951_v50 }
  0x1d   : > { %v681_v35 = vsel %vm3136_vm6, 0, %v680_v34  ;;  %v712_v36 = vld [vmem:[#allocation2 + $0x3c] sm:$0x1]  ;;  %v674_v38 = vld [vmem:[#allocation2 + $0x28] sm:$0x1]  ;;  %v3208_v53 = vld [vmem:[%s3665_s4] sm:$0xff]  }
  0x1e   : > { %682 = vst [vmem:[#allocation2 + $0x38] sm:$0x1] %v681_v35  ;;  %v713_v37 = vsel %vm3145_vm7, 0, %v712_v36  ;;  %v706_v39 = vld [vmem:[#allocation2 + $0x2c] sm:$0x1]  ;;  %v675_v40 = vsel %vm3136_vm6, 0, %v674_v38  ;;  %2758 = vmatprep.subr.bf16.mxu0 %v3208_v53 }
  0x1f   : > { %714 = vst [vmem:[#allocation2 + $0x3c] sm:$0x1] %v713_v37  ;;  %v707_v41 = vsel %vm3145_vm7, 0, %v706_v39  ;;  %v683_v42 = vld [vmem:[#allocation2 + $0x40] sm:$0x1]  ;;  %vm1031_vm11 = vcmask 130048  }
  0x20   : > { %v715_v43 = vld [vmem:[#allocation2 + $0x44] sm:$0x1]  ;;  %676 = vst [vmem:[#allocation2 + $0x28] sm:$0x1] %v675_v40  ;;  %708 = vst [vmem:[#allocation2 + $0x2c] sm:$0x1] %v707_v41 }
  0x21   : > { %v684_v44 = vsel %vm3136_vm6, 0, %v683_v42  ;;  %v716_v45 = vsel %vm3145_vm7, 0, %v715_v43  ;;  %v677_v46 = vld [vmem:[#allocation2 + $0x30] sm:$0x1]  ;;  %v709_v47 = vld [vmem:[#allocation2 + $0x34] sm:$0x1] }
  0x22   : > { %685 = vst [vmem:[#allocation2 + $0x40] sm:$0x1] %v684_v44  ;;  %717 = vst [vmem:[#allocation2 + $0x44] sm:$0x1] %v716_v45  ;;  %v678_v48 = vsel %vm3136_vm6, 0, %v677_v46  ;;  %v710_v49 = vsel %vm3145_vm7, 0, %v709_v47 }
  0x23   : > { %2745 = vmatmul.mubr.msk.bf16.gmra.mrb[4].mxu0 %vm307_vm1, %v2950_v5  ;;  %679 = vst [vmem:[#allocation2 + $0x30] sm:$0x1] %v678_v48  ;;  %711 = vst [vmem:[#allocation2 + $0x34] sm:$0x1] %v710_v49  ;;  %v3037_v54 = vmov 1966171168  }
  0x24   : > { %v402_v55 = vunpack.c.l.s4 %v3037_v54  ;;  %v390_v59 = vld [vmem:[%s269_s13 + $0x2] sm:$0x3]  ;;  %v389_v60 = vld [vmem:[%s269_s13] sm:$0x3]  ;;  %v392_v0 = vld [vmem:[%s269_s13 + $0x6] sm:$0x3] }
  0x25   : > { %v394_v61 = vunpack.c.l.bf16 %v390_v59  ;;  %v393_v63 = vunpack.c.l.bf16 %v389_v60  ;;  %v391_v2 = vld [vmem:[%s269_s13 + $0x4] sm:$0x3]  ;;  %v396_v4 = vunpack.c.l.bf16 %v392_v0  ;;  %v3038_v20 = vmov 1983009808   ;;  %s257_s10 = sand.u32 1, %s3026_s22   ;;  %s2687_s15 = sshll.u32 %s3098_s25, 10 }
  0x26   : > { %v403_v57 = vunpack.c.0.s8 %v402_v55  ;;  %v395_v5 = vunpack.c.l.bf16 %v391_v2  ;;  %v564_v21 = vunpack.c.l.s4 %v3038_v20  ;;  %vm895_vm9 = vsmask.f32 3328  ;;  %s2528_s12 = sshll.u32 %s257_s10, 6  ;;  %s3611_s19 = scalar_lea.hbm %s3667_s6, %s2687_s15 }
  0x27   : > { %vm896_vm10 = vsmask.f32 7440  ;;  %vm1236_vm13 = vcmask 1042432   ;;  %vm1237_vm14 = vcmask 1046532   ;;  %s259_s14 = scalar_lea.vmem [#allocation3], %s2528_s12  ;;  %s3620_s25 = scalar_lea.sflag [#allocation4], %s257_s10 }
  0x28   : > { %v406_v62 = vsub.s32 %v403_v57, %v405_v58  ;;  %v565_v33 = vunpack.c.0.s8 %v564_v21  ;;  %vm3292_vm12 = vmor %vm895_vm9, %vm896_vm10  ;;  %s2450_s16 = sshll.u32 %s259_s14, 4  ;;  %s3039_s26 = smov [#allocation3]   ;;  %s3613_s16 = int_to_ptr.vmem [resolvable:$true] %s2450_s16 }
  0x29   : > { %vm3421_vm15 = vmor %vm1236_vm13, %vm1237_vm14  ;;  %s2972_s20 = scalar_lea.vmem %s3613_s16, 1024  ;;  %s2976_s28 = sshll.u32 %s3039_s26, 4  ;;  %s2977_s28 = int_to_ptr.vmem [resolvable:$false] %s2976_s28 }
  0x2a   : > { %v431_v1 = vrot.slane %v394_v61, %v406_v62  ;;  %v407_v3 = vrot.slane %v393_v63, %v406_v62  ;;  %v479_v9 = vrot.slane %v396_v4, %v406_v62  ;;  %v455_v10 = vrot.slane %v395_v5, %v406_v62  ;;  %v3220_v5 = vld [vmem:[#allocation2] sm:$0xf]  ;;  %p2973_p11 = scmp.ne.s32.totalorder %s3613_s16, %s2972_s20  ;;  %s2978_s29 = scalar_lea.vmem %s2977_s28, 2048 }
  0x2b   : > { %v568_v42 = vsub.s32 %v565_v33, %v405_v58  ;;  %v3218_v58 = vld [vmem:[%s3663_s2] ss:$0 sm:$0xff]  ;;  %p2979_p0 = scmp.lt.s32.totalorder %s3613_s16, %s2977_s28  ;;  %p2980_p1 = scmp.lt.s32.totalorder %s2978_s29, %s2972_s20 }
  0x2c   : > { %v432_v7 = vcombine.high %v431_v1, %v431_v1  ;;  %v408_v8 = vcombine.high %v407_v3, %v407_v3  ;;  %v439_v11 = vrot.slane %v431_v1, %v406_v62  ;;  %v415_v13 = vrot.slane %v407_v3, %v406_v62  ;;  %p2974_p12 = pnand %p2973_p11, %p3115_p5 }
  0x2d   : > { %v480_v15 = vcombine.high %v479_v9, %v479_v9  ;;  %v456_v17 = vcombine.high %v455_v10, %v455_v10  ;;  %v487_v24 = vrot.slane %v479_v9, %v406_v62  ;;  %v463_v27 = vrot.slane %v455_v10, %v406_v62  ;;  %p2981_p2 = por %p2980_p1, %p2979_p0 }
  0x2e   : > { %v446_v12 = vrot.slane %v432_v7, %v406_v62  ;;  %v422_v14 = vrot.slane %v408_v8, %v406_v62  ;;  %v447_v18 = vcombine.high %v439_v11, %v439_v11  ;;  %v423_v22 = vcombine.high %v415_v13, %v415_v13  ;;  %p2975_p13 = pneg %p2974_p12 }
  0x2f   : > { %v494_v25 = vrot.slane %v480_v15, %v406_v62  ;;  %v516_v26 = vrot.slane %v439_v11, %v499_v16  ;;  %v470_v28 = vrot.slane %v456_v17, %v406_v62  ;;  %v500_v34 = vrot.slane %v415_v13, %v499_v16 }
  0x30   : > { %v448_v19 = vcombine.high %v446_v12, %v446_v12  ;;  %v424_v23 = vcombine.high %v422_v14, %v422_v14  ;;  %v520_v29 = vrot.slane %v446_v12, %v499_v16  ;;  %v524_v30 = vrot.slane %v447_v18, %v499_v16  ;;  %p2982_p3 = pnand %p2981_p2, %p2975_p13 }
  0x31   : > { %v504_v35 = vrot.slane %v422_v14, %v499_v16  ;;  %v508_v36 = vrot.slane %v423_v22, %v499_v16  ;;  %v495_v38 = vcombine.high %v487_v24, %v487_v24  ;;  %v496_v39 = vcombine.high %v494_v25, %v494_v25 }
  0x32   : > { %v528_v31 = vrot.slane %v448_v19, %v499_v16  ;;  %v512_v37 = vrot.slane %v424_v23, %v499_v16  ;;  %v471_v40 = vcombine.high %v463_v27, %v463_v27  ;;  %v472_v41 = vcombine.high %v470_v28, %v470_v28 }
  0x33   : > { %v578_v43 = vcombine.low %v516_v26, %v520_v29  ;;  %v561_v45 = vcombine.low %v500_v34, %v504_v35  ;;  %v548_v47 = vrot.slane %v487_v24, %v499_v16  ;;  %v552_v48 = vrot.slane %v494_v25, %v499_v16  ;;  %v3230_v25 = vld [vmem:[#allocation2 + $0x4] sm:$0x1] }
  0x34   : > { %v579_v44 = vcombine.low %v524_v30, %v528_v31  ;;  %v562_v46 = vcombine.low %v508_v36, %v512_v37  ;;  %v556_v49 = vrot.slane %v495_v38, %v499_v16  ;;  %v560_v50 = vrot.slane %v496_v39, %v499_v16  ;;  %v840_v36 = vld [vmem:[#allocation2 + $0x18] sm:$0xf] }
  0x35   : > { %v532_v51 = vrot.slane %v463_v27, %v499_v16  ;;  %v536_v54 = vrot.slane %v470_v28, %v499_v16  ;;  %v540_v55 = vrot.slane %v471_v40, %v499_v16  ;;  %v544_v56 = vrot.slane %v472_v41, %v499_v16 }
  0x36   : > { %v586_v57 = vrot.slane %v578_v43, %v568_v42  ;;  %v593_v59 = vrot.slane %v579_v44, %v568_v42  ;;  %v569_v60 = vrot.slane %v561_v45, %v568_v42  ;;  %v576_v61 = vrot.slane %v562_v46, %v568_v42 }
  0x37   : > { %v612_v62 = vcombine.low %v548_v47, %v552_v48  ;;  %v613_v63 = vcombine.low %v556_v49, %v560_v50  ;;  %v595_v0 = vcombine.low %v532_v51, %v536_v54  ;;  %v596_v1 = vcombine.low %v540_v55, %v544_v56  ;;  %v828_v48 = vld [vmem:[#allocation2 + $0x8] sm:$0xf] }
  0x38   : > { %v594_v2 = vcombine.low %v586_v57, %v593_v59  ;;  %v577_v4 = vcombine.low %v569_v60, %v576_v61  ;;  %v899_v18 = vshrl.u32 %v3220_v5, 16  ;;  %v902_v19 = vshll.u32 %v3220_v5, 16  ;;  %v831_v57 = vld [vmem:[#allocation2 + $0xc] sm:$0x1] }
  0x39   : > { %v620_v9 = vrot.slane %v612_v62, %v568_v42  ;;  %v627_v10 = vrot.slane %v613_v63, %v568_v42  ;;  %v603_v13 = vrot.slane %v595_v0, %v568_v42  ;;  %v610_v14 = vrot.slane %v596_v1, %v568_v42  ;;  %v843_v42 = vld [vmem:[#allocation2 + $0x1c] sm:$0x1]  ;;  %v846_v0 = vld [vmem:[#allocation2 + $0x20] sm:$0xf]  ;;  %v849_v1 = vld [vmem:[#allocation2 + $0x24] sm:$0x1] }
  0x3a   : > { %v908_v29 = vshll.u32 %v3230_v25, 16  ;;  %v3235_v33 = vrot.slane %v899_v18, 4  ;;  %v3237_v34 = vrot.slane %v902_v19, 5 }
  0x3b   : > { %v3228_v24 = vcombine.low %v620_v9, %v627_v10  ;;  %v3232_v28 = vcombine.low %v603_v13, %v610_v14  ;;  %v834_v10 = vld [vmem:[#allocation2 + $0x10] sm:$0xf] }
  0xee   : > { %v2742_v3 = vpop.f32.mrb[0].mxu0 }
  0xef   : > { %v367_v7 = vadd.f32 %v2742_v3, %v3218_v58  ;;  %v358_v8 = vpop.f32.mrb[1].mxu0 }
  0xf0   : > { %v359_v11 = vadd.f32 %v3218_v58, %v358_v8  ;;  %v2743_v12 = vpop.f32.mrb[2].mxu0 }
  0xf1   : > { %v635_v15 = vadd.f32 %v594_v2, %v367_v7  ;;  %v370_v16 = vadd.f32 %v2743_v12, %v3218_v58  ;;  %v361_v17 = vpop.f32.mrb[3].mxu0 }
  0xf2   : > { %v633_v20 = vadd.f32 %v577_v4, %v359_v11  ;;  %v362_v21 = vadd.f32 %v3218_v58, %v361_v17  ;;  %v837_v11 = vld [vmem:[#allocation2 + $0x14] sm:$0x1] }
  0xf3   : > { %v2681_v22 = vpack.c.bf16 %v635_v15, %v635_v15  ;;  %v636_v23 = vadd.f32 %v594_v2, %v370_v16 }
  0xf4   : > { %v2679_v26 = vpack.c.bf16 %v633_v20, %v633_v20  ;;  %v634_v27 = vadd.f32 %v577_v4, %v362_v21 }
  0xf5   : > { %v762_v30 = vshrl.u32 %v2681_v22, 16  ;;  %v2682_v31 = vpack.c.bf16 %v636_v23, %v636_v23  ;;  %v765_v35 = vshll.u32 %v2681_v22, 16 }
  0xf6   : > { %v746_v37 = vshrl.u32 %v2679_v26, 16  ;;  %v749_v38 = vshll.u32 %v2679_v26, 16  ;;  %v2680_v39 = vpack.c.bf16 %v634_v27, %v634_v27  ;;  %v2746_v40 = vpop.f32.mrb[4].mxu0 }
  0xf7   : > { %v764_v41 = vrot.slane %v762_v30, 7  ;;  %v770_v43 = vshrl.u32 %v2682_v31, 16  ;;  %v773_v44 = vshll.u32 %v2682_v31, 16  ;;  %v383_v45 = vadd.f32 %v2746_v40, %v3218_v58  ;;  %v374_v46 = vpop.f32.mrb[5].mxu0  ;;  %v864_v30 = vld [vmem:[#allocation2 + $0x38] sm:$0xf] }
  0xf8   : > { %v748_v47 = vrot.slane %v746_v37, 7  ;;  %v754_v49 = vshrl.u32 %v2680_v39, 16  ;;  %v757_v50 = vshll.u32 %v2680_v39, 16  ;;  %v375_v51 = vadd.f32 %v3218_v58, %v374_v46  ;;  %v2747_v54 = vpop.f32.mrb[6].mxu0 }
  0xf9   : > { %v767_v55 = vor.u32 %v765_v35, %v764_v41  ;;  %v768_v56 = vrot.slane %v764_v41, 4  ;;  %v772_v59 = vrot.slane %v770_v43, 7  ;;  %v639_v60 = vadd.f32 %v3228_v24, %v383_v45  ;;  %v377_v61 = vpop.f32.mrb[7].mxu0  ;;  %v852_v41 = vld [vmem:[#allocation2 + $0x28] sm:$0xf] }
  0xfa   : > { %v751_v62 = vor.u32 %v749_v38, %v748_v47  ;;  %v752_v63 = vrot.slane %v748_v47, 4  ;;  %v756_v2 = vrot.slane %v754_v49, 7  ;;  %v637_v3 = vadd.f32 %v3232_v28, %v375_v51  ;;  %v867_v38 = vld [vmem:[#allocation2 + $0x3c] sm:$0x1] }
  0xfb   : > { %v841_v4 = vsel %vm3171_vm8, %v767_v55, %v840_v36  ;;  %v844_v7 = vsel %vm3136_vm6, %v768_v56, %v843_v42  ;;  %v775_v8 = vor.u32 %v773_v44, %v772_v59  ;;  %v776_v9 = vrot.slane %v772_v59, 4  ;;  %v855_v42 = vld [vmem:[#allocation2 + $0x2c] sm:$0x1]  ;;  %v873_v59 = vld [vmem:[#allocation2 + $0x44] sm:$0x1] }
  0xfc   : > { %842 = vst [vmem:[#allocation2 + $0x18] sm:$0xf] %v841_v4  ;;  %845 = vst [vmem:[#allocation2 + $0x1c] sm:$0x1] %v844_v7  ;;  %v829_v12 = vsel %vm3171_vm8, %v751_v62, %v828_v48  ;;  %v832_v13 = vsel %vm3136_vm6, %v752_v63, %v831_v57  ;;  %v759_v14 = vor.u32 %v757_v50, %v756_v2  ;;  %v760_v15 = vrot.slane %v756_v2, 4 }
  0xfd   : > { %830 = vst [vmem:[#allocation2 + $0x8] sm:$0xf] %v829_v12  ;;  %833 = vst [vmem:[#allocation2 + $0xc] sm:$0x1] %v832_v13  ;;  %v847_v16 = vsel %vm3171_vm8, %v775_v8, %v846_v0  ;;  %v850_v17 = vsel %vm3136_vm6, %v776_v9, %v849_v1  ;;  %v2685_v18 = vpack.c.bf16 %v639_v60, %v639_v60  ;;  %v3267_v45 = vrot.slane %v908_v29, 5 }
  0xfe   : > { %v2683_v19 = vpack.c.bf16 %v637_v3, %v637_v3  ;;  %848 = vst [vmem:[#allocation2 + $0x20] sm:$0xf] %v847_v16  ;;  %851 = vst [vmem:[#allocation2 + $0x24] sm:$0x1] %v850_v17  ;;  %v835_v20 = vsel %vm3171_vm8, %v759_v14, %v834_v10  ;;  %v838_v21 = vsel %vm3136_vm6, %v760_v15, %v837_v11  ;;  %v870_v57 = vld [vmem:[#allocation2 + $0x40] sm:$0xf] }
  0xff   : > { %v386_v22 = vadd.f32 %v2747_v54, %v3218_v58  ;;  %v378_v23 = vadd.f32 %v3218_v58, %v377_v61  ;;  %836 = vst [vmem:[#allocation2 + $0x10] sm:$0xf] %v835_v20  ;;  %839 = vst [vmem:[#allocation2 + $0x14] sm:$0x1] %v838_v21  ;;  %v794_v26 = vshrl.u32 %v2685_v18, 16  ;;  %v797_v37 = vshll.u32 %v2685_v18, 16 }
 0x100   : > { %v778_v27 = vshrl.u32 %v2683_v19, 16  ;;  %v781_v40 = vshll.u32 %v2683_v19, 16  ;;  %v905_v44 = vor.u32 %v3237_v34, %v3235_v33  ;;  %v858_v60 = vld [vmem:[#allocation2 + $0x30] sm:$0xf]  ;;  %v861_v3 = vld [vmem:[#allocation2 + $0x34] sm:$0x1] }
 0x101   : > { %v640_v31 = vadd.f32 %v3228_v24, %v386_v22  ;;  %v638_v35 = vadd.f32 %v3232_v28, %v378_v23  ;;  %v796_v36 = vrot.slane %v794_v26, 7 }
 0x102   : > { %v780_v39 = vrot.slane %v778_v27, 7  ;;  %v906_v4 = vrot.slane %v905_v44, 4 }
 0x103   : > { %v2686_v43 = vpack.c.bf16 %v640_v31, %v640_v31  ;;  %v2684_v58 = vpack.c.bf16 %v638_v35, %v638_v35  ;;  %v799_v24 = vor.u32 %v797_v37, %v796_v36  ;;  %v800_v28 = vrot.slane %v796_v36, 4  ;;  %v3269_v48 = vld [vmem:[#allocation2 + $0x18] sm:$0xf]  ;;  %v3307_v27 = vld [vmem:[#allocation2 + $0x1c] sm:$0x1] }
 0x104   : > { %v783_v46 = vor.u32 %v781_v40, %v780_v39  ;;  %v784_v47 = vrot.slane %v780_v39, 4  ;;  %v3271_v55 = vld [vmem:[#allocation2 + $0x8] sm:$0xf]  ;;  %v3281_v61 = vld [vmem:[#allocation2 + $0xc] sm:$0x1]  ;;  %v941_v9 = vshrl.u32 %v3269_v48, 16 }
 0x105   : > { %v802_v49 = vshrl.u32 %v2686_v43, 16  ;;  %v805_v50 = vshll.u32 %v2686_v43, 16  ;;  %v786_v51 = vshrl.u32 %v2684_v58, 16  ;;  %v789_v54 = vshll.u32 %v2684_v58, 16  ;;  %v1499_v20 = vld [vmem:[#allocation2 + $0x8] sm:$0xf] }
 0x106   : > { %v865_v56 = vsel %vm3171_vm8, %v799_v24, %v864_v30  ;;  %v868_v33 = vsel %vm3136_vm6, %v800_v28, %v867_v38  ;;  %v853_v29 = vsel %vm3171_vm8, %v783_v46, %v852_v41  ;;  %v856_v34 = vsel %vm3136_vm6, %v784_v47, %v855_v42  ;;  %v3285_v2 = vld [vmem:[#allocation2 + $0x10] sm:$0xf]  ;;  %v3296_v15 = vld [vmem:[#allocation2 + $0x14] sm:$0x1]  ;;  %v3313_v37 = vld [vmem:[#allocation2 + $0xc] sm:$0x1] }
 0x107   : > { %866 = vst [vmem:[#allocation2 + $0x38] sm:$0xf] %v865_v56  ;;  %869 = vst [vmem:[#allocation2 + $0x3c] sm:$0x1] %v868_v33  ;;  %v804_v62 = vrot.slane %v802_v49, 7  ;;  %v788_v63 = vrot.slane %v786_v51, 7  ;;  %v911_v30 = vsel %vm3292_vm12, %v906_v4, %v3267_v45 }
 0x108   : > { %854 = vst [vmem:[#allocation2 + $0x28] sm:$0xf] %v853_v29  ;;  %857 = vst [vmem:[#allocation2 + $0x2c] sm:$0x1] %v856_v34  ;;  %v913_v0 = vshrl.u32 %v3271_v55, 16  ;;  %v916_v1 = vshll.u32 %v3271_v55, 16 }
 0x109   : > { %v927_v7 = vshrl.u32 %v3285_v2, 16  ;;  %v930_v8 = vshll.u32 %v3285_v2, 16  ;;  %v807_v10 = vor.u32 %v805_v50, %v804_v62  ;;  %v808_v11 = vrot.slane %v804_v62, 4  ;;  %v1501_v38 = vld [vmem:[#allocation2 + $0x10] sm:$0xf] }
 0x10a   : > { %v791_v12 = vor.u32 %v789_v54, %v788_v63  ;;  %v792_v13 = vrot.slane %v788_v63, 4  ;;  %v915_v16 = vrot.slane %v913_v0, 4  ;;  %v918_v17 = vrot.slane %v916_v1, 5  ;;  %v3319_v49 = vld [vmem:[#allocation2 + $0x14] sm:$0x1] }
 0x10b   : > { %v922_v18 = vshll.u32 %v3281_v61, 16  ;;  %v929_v19 = vrot.slane %v927_v7, 4  ;;  %v871_v21 = vsel %vm3171_vm8, %v807_v10, %v870_v57  ;;  %v874_v22 = vsel %vm3136_vm6, %v808_v11, %v873_v59  ;;  %v1503_v34 = vld [vmem:[#allocation2 + $0x18] sm:$0xf] }
 0x10c   : > { %v859_v23 = vsel %vm3171_vm8, %v791_v12, %v858_v60  ;;  %v862_v26 = vsel %vm3136_vm6, %v792_v13, %v861_v3  ;;  %872 = vst [vmem:[#allocation2 + $0x40] sm:$0xf] %v871_v21  ;;  %875 = vst [vmem:[#allocation2 + $0x44] sm:$0x1] %v874_v22  ;;  %v919_v31 = vor.u32 %v918_v17, %v915_v16  ;;  %v932_v35 = vrot.slane %v930_v8, 5  ;;  %v3338_v21 = vld [vmem:[%s3665_s4 + $0x10] sm:$0xff]  }
 0x10d   : > { %860 = vst [vmem:[#allocation2 + $0x30] sm:$0xf] %v859_v23  ;;  %863 = vst [vmem:[#allocation2 + $0x34] sm:$0x1] %v862_v26  ;;  %v936_v36 = vshll.u32 %v3296_v15, 16  ;;  %v943_v32 = vrot.slane %v941_v9, 4 }
 0x10e   : > { %v944_v6 = vshll.u32 %v3269_v48, 16  ;;  %v1516_v39 = vshrl.u32 %v1499_v20, 16  ;;  %v1519_v40 = vshll.u32 %v1499_v20, 16  ;;  %v920_v41 = vrot.slane %v919_v31, 4  ;;  %v1505_v60 = vld [vmem:[#allocation2 + $0x20] sm:$0xf] }
 0x10f   : > { %v924_v42 = vrot.slane %v922_v18, 5  ;;  %v933_v43 = vor.u32 %v932_v35, %v929_v19  ;;  %v950_v58 = vshll.u32 %v3307_v27, 16  ;;  %v938_v44 = vrot.slane %v936_v36, 5  ;;  %v3326_v3 = vld [vmem:[#allocation2 + $0x1c] sm:$0x1] }
 0x110   : > { %v946_v24 = vrot.slane %v944_v6, 5  ;;  %v1518_v45 = vrot.slane %v1516_v39, 4  ;;  %v1521_v28 = vrot.slane %v1519_v40, 5  ;;  %v1525_v50 = vshll.u32 %v3313_v37, 16  ;;  %v3330_v12 = vld [vmem:[#allocation2 + $0x24] sm:$0x1] }
 0x111   : > { %v925_v46 = vsel %vm3292_vm12, %v920_v41, %v924_v42  ;;  %v934_v47 = vrot.slane %v933_v43, 4  ;;  %v1530_v51 = vshrl.u32 %v1501_v38, 16  ;;  %v1533_v29 = vshll.u32 %v1501_v38, 16  ;;  %v3332_v16 = vld [vmem:[#allocation2 + $0x20] sm:$0xf] }
 0x112   : > { %v2552_v54 = vcombine.low %v911_v30, %v925_v46  ;;  %v947_v56 = vor.u32 %v946_v24, %v943_v32  ;;  %v1522_v33 = vor.u32 %v1521_v28, %v1518_v45  ;;  %v952_v57 = vrot.slane %v950_v58, 5  ;;  %v3342_v36 = vld [vmem:[#allocation2 + $0x28] sm:$0xf]  ;;  %v3344_v32 = vld [vmem:[#allocation2 + $0x24] sm:$0x1] }
 0x113   : > { %v1532_v59 = vrot.slane %v1530_v51, 4  ;;  %v939_v62 = vsel %vm3292_vm12, %v934_v47, %v938_v44  ;;  %v1535_v0 = vrot.slane %v1533_v29, 5  ;;  %v1539_v1 = vshll.u32 %v3319_v49, 16  ;;  %v3351_v41 = vld [vmem:[#allocation2 + $0x2c] sm:$0x1] }
 0x114   : > { %2750 = vmatprep.mubr.msk.bf16.mxu0 %vm1031_vm11, %v2552_v54  ;;  %v948_v63 = vrot.slane %v947_v56, 4  ;;  %v1527_v4 = vrot.slane %v1525_v50, 5  ;;  %v1544_v7 = vshrl.u32 %v1503_v34, 16  ;;  %v1547_v8 = vshll.u32 %v1503_v34, 16  ;;  %v3354_v43 = vld [vmem:[#allocation2 + $0x30] sm:$0xf] }
 0x115   : > { %v1523_v10 = vrot.slane %v1522_v33, 4  ;;  %v1536_v11 = vor.u32 %v1535_v0, %v1532_v59  ;;  %v1558_v13 = vshrl.u32 %v1505_v60, 16  ;;  %v1553_v20 = vshll.u32 %v3326_v3, 16  ;;  %v3360_v51 = vld [vmem:[#allocation2 + $0x34] sm:$0x1] }
 0x116   : > { %v953_v9 = vsel %vm3292_vm12, %v948_v63, %v952_v57  ;;  %v1546_v18 = vrot.slane %v1544_v7, 4  ;;  %v1549_v19 = vrot.slane %v1547_v8, 5  ;;  %v1541_v23 = vrot.slane %v1539_v1, 5  ;;  %v3365_v33 = vld [vmem:[#allocation2 + $0x38] sm:$0xf] }
 0x117   : > { %v2553_v17 = vcombine.low %v939_v62, %v953_v9  ;;  %v1537_v22 = vrot.slane %v1536_v11, 4  ;;  %v1560_v26 = vrot.slane %v1558_v13, 4  ;;  %v1561_v30 = vshll.u32 %v1505_v60, 16  ;;  %v3370_v63 = vld [vmem:[#allocation2 + $0x3c] sm:$0x1] }
 0x118   : > { %v1550_v31 = vor.u32 %v1549_v19, %v1546_v18  ;;  %v1567_v35 = vshll.u32 %v3330_v12, 16  ;;  %v955_v6 = vshrl.u32 %v3332_v16, 16  ;;  %v1528_v38 = vsel %vm3292_vm12, %v1523_v10, %v1527_v4  ;;  %v1507_v11 = vld [vmem:[#allocation2 + $0x28] sm:$0xf] }
 0x119   : > { %2751 = vmatmul.mubr.msk.bf16.vlgmr.msra.gmra.mrb[8].mxu0 %vm1031_vm11, %v2553_v17  ;;  %v1542_v39 = vsel %vm3292_vm12, %v1537_v22, %v1541_v23  ;;  %v1563_v40 = vrot.slane %v1561_v30, 5  ;;  %v958_v42 = vshll.u32 %v3332_v16, 16  ;;  %v1555_v24 = vrot.slane %v1553_v20, 5  ;;  %v1509_v20 = vld [vmem:[#allocation2 + $0x30] sm:$0xf] }
 0x11a   : > { %2759 = vmatpush3.bf16.msra.mxu0 %v3208_v53  ;;  %v2602_v58 = vcombine.low %v1528_v38, %v1542_v39  ;;  %v1551_v44 = vrot.slane %v1550_v31, 4  ;;  %v957_v45 = vrot.slane %v955_v6, 4  ;;  %v969_v47 = vshrl.u32 %v3342_v36, 16  ;;  %v3381_v22 = vld [vmem:[%s3665_s4 + $0x30] sm:$0xff]  }
 0x11b   : > { %2768 = vmatprep.subr.bf16.mxu0 %v3338_v21  ;;  %v1564_v28 = vor.u32 %v1563_v40, %v1560_v26  ;;  %v960_v46 = vrot.slane %v958_v42, 5  ;;  %v972_v50 = vshll.u32 %v3342_v36, 16  ;;  %v1569_v54 = vrot.slane %v1567_v35, 5  ;;  %v3384_v35 = vld [vmem:[#allocation2 + $0x2c] sm:$0x1] }
 0x11c   : > { %2790 = vmatprep.mubr.msk.bf16.mxu1 %vm1031_vm11, %v2602_v58  ;;  %v964_v56 = vshll.u32 %v3344_v32, 16  ;;  %v978_v53 = vshll.u32 %v3351_v41, 16  ;;  %v983_v29 = vshrl.u32 %v3354_v43, 16  ;;  %v971_v59 = vrot.slane %v969_v47, 4 }
 0x11d   : > { %v1565_v34 = vrot.slane %v1564_v28, 4  ;;  %v961_v57 = vor.u32 %v960_v46, %v957_v45  ;;  %v974_v60 = vrot.slane %v972_v50, 5  ;;  %v1556_v62 = vsel %vm3292_vm12, %v1551_v44, %v1555_v24  ;;  %v3392_v24 = vld [vmem:[#allocation2 + $0x34] sm:$0x1] }
 0x11e   : > { %v985_v0 = vrot.slane %v983_v29, 4  ;;  %v986_v1 = vshll.u32 %v3354_v43, 16  ;;  %v992_v4 = vshll.u32 %v3360_v51, 16  ;;  %v997_v10 = vshrl.u32 %v3365_v33, 16 }
 0x11f   : > { %v1570_v7 = vsel %vm3292_vm12, %v1565_v34, %v1569_v54  ;;  %v962_v8 = vrot.slane %v961_v57, 4  ;;  %v975_v9 = vor.u32 %v974_v60, %v971_v59  ;;  %v966_v17 = vrot.slane %v964_v56, 5  ;;  %v1511_v54 = vld [vmem:[#allocation2 + $0x38] sm:$0xf]  ;;  %v1513_v34 = vld [vmem:[#allocation2 + $0x40] sm:$0xf] }
 0x120   : > { %v2603_v13 = vcombine.low %v1556_v62, %v1570_v7  ;;  %v988_v18 = vrot.slane %v986_v1, 5  ;;  %v1000_v19 = vshll.u32 %v3365_v33, 16  ;;  %v980_v26 = vrot.slane %v978_v53, 5 }
 0x121   : > { %v976_v23 = vrot.slane %v975_v9, 4  ;;  %v999_v30 = vrot.slane %v997_v10, 4  ;;  %v1006_v31 = vshll.u32 %v3370_v63, 16  ;;  %v1572_v39 = vshrl.u32 %v1507_v11, 16  ;;  %v3404_v10 = vld [vmem:[#allocation2 + $0x44] sm:$0x1] }
 0x122   : > { %2791 = vmatmul.mubr.msk.bf16.vlgmr.msra.gmra.mrb[0].mxu1 %vm1031_vm11, %v2603_v13  ;;  %v989_v6 = vor.u32 %v988_v18, %v985_v0  ;;  %v1002_v38 = vrot.slane %v1000_v19, 5  ;;  %v1575_v40 = vshll.u32 %v1507_v11, 16  ;;  %v967_v42 = vsel %vm3292_vm12, %v962_v8, %v966_v17 }
 0x123   : > { %2799 = vmatpush3.bf16.msra.mxu1 %v3202_v52  ;;  %v981_v58 = vsel %vm3292_vm12, %v976_v23, %v980_v26  ;;  %v994_v44 = vrot.slane %v992_v4, 5  ;;  %v1586_v45 = vshrl.u32 %v1509_v20, 16  ;;  %v1574_v50 = vrot.slane %v1572_v39, 4  ;;  %v3400_v4 = vld [vmem:[#allocation2 + $0x3c] sm:$0x1] }
 0x124   : > { %v2554_v28 = vcombine.low %v967_v42, %v981_v58  ;;  %v990_v46 = vrot.slane %v989_v6, 4  ;;  %v1003_v47 = vor.u32 %v1002_v38, %v999_v30  ;;  %2808 = vmatprep.subr.bf16.mxu1 %v3381_v22  ;;  %v1008_v56 = vrot.slane %v1006_v31, 5 }
 0x125   : > { %v1577_v53 = vrot.slane %v1575_v40, 5  ;;  %v1588_v52 = vrot.slane %v1586_v45, 4  ;;  %v1589_v29 = vshll.u32 %v1509_v20, 16  ;;  %v1581_v60 = vshll.u32 %v3384_v35, 16  ;;  %v1734_v20 = vld [vmem:[#allocation2 + $0x10] sm:$0xe] }
 0x126   : > { %2754 = vmatprep.mubr.msk.bf16.mxu0 %vm1031_vm11, %v2554_v28  ;;  %v995_v57 = vsel %vm3292_vm12, %v990_v46, %v994_v44  ;;  %v1004_v59 = vrot.slane %v1003_v47, 4  ;;  %v1595_v62 = vshll.u32 %v3392_v24, 16  ;;  %v1600_v7 = vshrl.u32 %v1511_v54, 16  ;;  %v1212_v40 = vld [vmem:[#allocation2] sm:$0xe] }
 0x127   : > { %v1578_v0 = vor.u32 %v1577_v53, %v1574_v50  ;;  %v1591_v1 = vrot.slane %v1589_v29, 5  ;;  %v1603_v8 = vshll.u32 %v1511_v54, 16  ;;  %v1614_v11 = vshrl.u32 %v1513_v34, 16  ;;  %v1733_v28 = vld [vmem:[#allocation2 + $0x8] sm:$0xe] }
 0x128   : > { %v1009_v9 = vsel %vm3292_vm12, %v1004_v59, %v1008_v56  ;;  %v1602_v19 = vrot.slane %v1600_v7, 4  ;;  %v2561_v23 = vcombine.low %v3220_v5, %v3271_v55  ;;  %v1617_v31 = vshll.u32 %v1513_v34, 16  ;;  %v1213_v59 = vld [vmem:[#allocation2 + $0x8] sm:$0xe] }
 0x129   : > { %v2555_v13 = vcombine.low %v995_v57, %v1009_v9  ;;  %v1579_v17 = vrot.slane %v1578_v0, 4  ;;  %v1592_v18 = vor.u32 %v1591_v1, %v1588_v52  ;;  %v1605_v26 = vrot.slane %v1603_v8, 5  ;;  %v1736_v0 = vld [vmem:[#allocation2 + $0x20] sm:$0xe]  ;;  %v1738_v1 = vld [vmem:[#allocation2 + $0x30] sm:$0xe] }
 0x12a   : > { %v1616_v30 = vrot.slane %v1614_v11, 4  ;;  %v1583_v6 = vrot.slane %v1581_v60, 5  ;;  %v1597_v39 = vrot.slane %v1595_v62, 5  ;;  %v1609_v58 = vshll.u32 %v3400_v4, 16  ;;  %v3433_v8 = vld [vmem:[%s3665_s4 + $0x18] sm:$0xff]  }
 0x12b   : > { %2755 = vmatmul.mubr.msk.bf16.gmra.mrb[12].mxu0 %vm1031_vm11, %v2555_v13  ;;  %v1593_v38 = vrot.slane %v1592_v18, 4  ;;  %v1606_v42 = vor.u32 %v1605_v26, %v1602_v19  ;;  %v1619_v44 = vrot.slane %v1617_v31, 5  ;;  %v1623_v45 = vshll.u32 %v3404_v10, 16  ;;  %v1737_v18 = vld [vmem:[#allocation2 + $0x28] sm:$0xe] }
 0x12c   : > { %2760 = vmatprep.mubr.msk.bf16.mxu0 %vm1031_vm11, %v2561_v23  ;;  %v1763_v5 = vrot.slane %v3319_v49, 5  ;;  %v1584_v55 = vsel %vm3292_vm12, %v1579_v17, %v1583_v6  ;;  %v2612_v47 = vrot.slane %v1734_v20, 9  ;;  %v1759_v53 = vrot.slane %v3313_v37, 5 }
 0x12d   : > { %v1598_v46 = vsel %vm3292_vm12, %v1593_v38, %v1597_v39  ;;  %v1607_v54 = vrot.slane %v1606_v42, 4  ;;  %v1620_v56 = vor.u32 %v1619_v44, %v1616_v30  ;;  %v2611_v52 = vrot.slane %v1733_v28, 9  ;;  %v1214_v38 = vld [vmem:[#allocation2 + $0x10] sm:$0xe]  ;;  %v1217_v39 = vld [vmem:[#allocation2 + $0x28] sm:$0xe] }
 0x12e   : > { %v2604_v50 = vcombine.low %v1584_v55, %v1598_v46  ;;  %v1611_v29 = vrot.slane %v1609_v58, 5  ;;  %v1625_v57 = vrot.slane %v1623_v45, 5  ;;  %v2570_v60 = vrot.slane %v1212_v40, 9  ;;  %v1740_v42 = vld [vmem:[#allocation2 + $0x40] sm:$0xe]  ;;  %v3472_v55 = vld [vmem:[%s3665_s4 + $0x38] sm:$0xff]  }
 0x12f   : > { %v1621_v34 = vrot.slane %v1620_v56, 4  ;;  %v1764_v62 = vsel %vm3421_vm15, %v2612_v47, %v1763_v5  ;;  %v2562_v37 = vcombine.low %v3285_v2, %v3269_v48  ;;  %v1241_v7 = vrot.slane %v3230_v25, 5  ;;  %v1735_v2 = vld [vmem:[#allocation2 + $0x18] sm:$0xe]  ;;  %v1216_v46 = vld [vmem:[#allocation2 + $0x20] sm:$0xe] }
 0x130   : > { %2794 = vmatprep.mubr.msk.bf16.mxu1 %vm1031_vm11, %v2604_v50  ;;  %v1771_v9 = vrot.slane %v3330_v12, 5  ;;  %v1612_v11 = vsel %vm3292_vm12, %v1607_v54, %v1611_v29  ;;  %v2563_v48 = vcombine.low %v3332_v16, %v3342_v36  ;;  %v1760_v25 = vsel %vm3421_vm15, %v2611_v52, %v1759_v53  ;;  %v1215_v58 = vld [vmem:[#allocation2 + $0x18] sm:$0xe] }
 0x131   : > { %v1626_v13 = vsel %vm3292_vm12, %v1621_v34, %v1625_v57  ;;  %v2571_v19 = vrot.slane %v1213_v59, 9  ;;  %v1245_v12 = vrot.slane %v3281_v61, 5  ;;  %v2621_v20 = vcombine.low %v1760_v25, %v1764_v62  ;;  %v2020_v62 = vld [vmem:[#allocation2 + $0x18] sm:$0xf] }
 0x132   : > { %v2605_v17 = vcombine.low %v1612_v11, %v1626_v13  ;;  %v2614_v23 = vrot.slane %v1736_v0, 9  ;;  %v2616_v26 = vrot.slane %v1738_v1, 9  ;;  %v1779_v30 = vrot.slane %v3392_v24, 5  ;;  %v1219_v0 = vld [vmem:[#allocation2 + $0x38] sm:$0xe] }
 0x133   : > { %2761 = vmatmul.mubr.msk.bf16.vlgmr.msra.gmra.mrb[8].mxu0 %vm1031_vm11, %v2562_v37  ;;  %v1767_v16 = vrot.slane %v3326_v3, 5  ;;  %v2613_v36 = vrot.slane %v1735_v2, 9  ;;  %v2615_v31 = vrot.slane %v1737_v18, 9  ;;  %v1775_v61 = vrot.slane %v3384_v35, 5  ;;  %v2960_v18 = vld [vmem:[#allocation2 + $0x10] ss:$8 sps:$4 sm:$0xff]  }
 0x134   : > { %2764 = vmatprep.mubr.msk.bf16.mxu0 %vm1031_vm11, %v2563_v48  ;;  %2769 = vmatpush3.bf16.msra.mxu0 %v3338_v21  ;;  %v1242_v6 = vsel %vm3421_vm15, %v2570_v60, %v1241_v7  ;;  %v1246_v24 = vsel %vm3421_vm15, %v2571_v19, %v1245_v12  ;;  %v1772_v3 = vsel %vm3421_vm15, %v2614_v23, %v1771_v9  ;;  %v2572_v28 = vrot.slane %v1214_v38, 9  ;;  %v2018_v60 = vld [vmem:[#allocation2 + $0x10] sm:$0xf] }
 0x135   : > { %2795 = vmatmul.mubr.msk.bf16.gmra.mrb[4].mxu1 %vm1031_vm11, %v2605_v17  ;;  %2778 = vmatprep.subr.bf16.mxu0 %v3433_v8  ;;  %v1780_v21 = vsel %vm3421_vm15, %v2616_v26, %v1779_v30  ;;  %v1768_v40 = vsel %vm3421_vm15, %v2613_v36, %v1767_v16  ;;  %v2564_v35 = vcombine.low %v3354_v43, %v3365_v33  ;;  %v1249_v5 = vrot.slane %v3296_v15, 5  ;;  %v1739_v43 = vld [vmem:[#allocation2 + $0x38] sm:$0xe]  ;;  %v2024_v26 = vld [vmem:[#allocation2 + $0x28] sm:$0xf] }
 0x136   : > { %2800 = vmatprep.mubr.msk.bf16.mxu1 %vm1031_vm11, %v2621_v20  ;;  %v1776_v44 = vsel %vm3421_vm15, %v2615_v31, %v1775_v61  ;;  %v2580_v45 = vcombine.low %v1242_v6, %v1246_v24  ;;  %v2622_v47 = vcombine.low %v1768_v40, %v1772_v3  ;;  %v2575_v33 = vrot.slane %v1217_v39, 9  ;;  %v2026_v30 = vld [vmem:[#allocation2 + $0x30] sm:$0xf]  ;;  %v2022_v31 = vld [vmem:[#allocation2 + $0x20] sm:$0xf] }
 0x137   : > { %v2623_v50 = vcombine.low %v1776_v44, %v1780_v21  ;;  %v1261_v54 = vrot.slane %v3351_v41, 5  ;;  %v2618_v56 = vrot.slane %v1740_v42, 9  ;;  %v1787_v53 = vrot.slane %v3404_v10, 5  ;;  %v1218_v10 = vld [vmem:[#allocation2 + $0x30] sm:$0xe] }
 0x138   : > { %v2573_v15 = vrot.slane %v1215_v58, 9  ;;  %v1253_v52 = vrot.slane %v3307_v27, 5  ;;  %v2574_v29 = vrot.slane %v1216_v46, 9  ;;  %v1257_v34 = vrot.slane %v3344_v32, 5  ;;  %v2028_v24 = vld [vmem:[#allocation2 + $0x38] sm:$0xf] }
 0x139   : > { %v2617_v57 = vrot.slane %v1739_v43, 9  ;;  %v1783_v41 = vrot.slane %v3400_v4, 5  ;;  %v1250_v59 = vsel %vm3421_vm15, %v2572_v28, %v1249_v5  ;;  %v1262_v27 = vsel %vm3421_vm15, %v2575_v33, %v1261_v54  ;;  %v2032_v40 = vld [vmem:[#allocation2 + $0x48] sm:$0xf]  ;;  %v3510_v42 = vld [vmem:[#allocation2 + $0x1c] sm:$0x1] }
 0x13a   : > { %v1788_v32 = vsel %vm3421_vm15, %v2618_v56, %v1787_v53  ;;  %v1258_v4 = vsel %vm3421_vm15, %v2574_v29, %v1257_v34  ;;  %v2035_v1 = vshrl.u32 %v2018_v60, 16  ;;  %v2038_v7 = vshll.u32 %v2018_v60, 16  ;;  %v3517_v46 = vld [vmem:[%s3665_s4 + $0x40] sm:$0xff]   ;;  %v2964_v43 = vld [vmem:[#allocation2 + $0x30] ss:$8 sps:$4 sm:$0xff]  }
 0x13b   : > { %2765 = vmatmul.mubr.msk.bf16.gmra.mrb[12].mxu0 %vm1031_vm11, %v2564_v35  ;;  %v1784_v9 = vsel %vm3421_vm15, %v2617_v57, %v1783_v41  ;;  %v2582_v11 = vcombine.low %v1258_v4, %v1262_v27  ;;  %v2576_v13 = vrot.slane %v1218_v10, 9  ;;  %v1265_v48 = vrot.slane %v3360_v51, 5  ;;  %v2965_v35 = vld [vmem:[#allocation2 + $0x8] ss:$8 sps:$4 sm:$0xff]   ;;  %v2030_v34 = vld [vmem:[#allocation2 + $0x40] sm:$0xf] }
 0x13c   : > { %2770 = vmatprep.mubr.msk.bf16.mxu0 %vm1031_vm11, %v2580_v45  ;;  %v2624_v2 = vcombine.low %v1784_v9, %v1788_v32  ;;  %v2049_v17 = vshrl.u32 %v2020_v62, 16  ;;  %v2052_v25 = vshll.u32 %v2020_v62, 16  ;;  %v2577_v19 = vrot.slane %v1219_v0, 9  ;;  %v2963_v45 = vld [vmem:[#allocation2 + $0x20] ss:$8 sps:$4 sm:$0xff]  }
 0x13d   : > { %2801 = vmatmul.mubr.msk.bf16.vlgmr.msra.gmra.mrb[0].mxu1 %vm1031_vm11, %v2622_v47  ;;  %v1269_v12 = vrot.slane %v3370_v63, 5  ;;  %v2037_v20 = vrot.slane %v2035_v1, 4  ;;  %v2040_v23 = vrot.slane %v2038_v7, 5  ;;  %v1266_v51 = vsel %vm3421_vm15, %v2576_v13, %v1265_v48  ;;  %v3508_v63 = vld [vmem:[#allocation2 + $0x14] sm:$0x1] }
 0x13e   : > { %2809 = vmatpush3.bf16.msra.mxu1 %v3381_v22  ;;  %2804 = vmatprep.mubr.msk.bf16.mxu1 %vm1031_vm11, %v2623_v50  ;;  %v1254_v22 = vsel %vm3421_vm15, %v2573_v15, %v1253_v52  ;;  %v2051_v16 = vrot.slane %v2049_v17, 4  ;;  %v2054_v36 = vrot.slane %v2052_v25, 5  ;;  %v2080_v6 = vshll.u32 %v2024_v26, 16  ;;  %v3525_v10 = vld [vmem:[#allocation2 + $0x2c] sm:$0x1] }
 0x13f   : > { %2818 = vmatprep.subr.bf16.mxu1 %v3472_v55  ;;  %v2581_v37 = vcombine.low %v1250_v59, %v1254_v22  ;;  %v1270_v61 = vsel %vm3421_vm15, %v2577_v19, %v1269_v12  ;;  %v2041_v3 = vor.u32 %v2040_v23, %v2037_v20  ;;  %v2091_v21 = vshrl.u32 %v2026_v30, 16  ;;  %v3527_v62 = vld [vmem:[#allocation2 + $0x24] sm:$0x1]  ;;  %v3529_v4 = vld [vmem:[#allocation2 + $0x34] sm:$0x1] }
 0x140   : > { %v2583_v38 = vcombine.low %v1266_v51, %v1270_v61  ;;  %v2094_v39 = vshll.u32 %v2026_v30, 16  ;;  %v2063_v58 = vshrl.u32 %v2022_v31, 16  ;;  %v2066_v44 = vshll.u32 %v2022_v31, 16  ;;  %v2968_v9 = vld [vmem:[#allocation2 + $0x18] ss:$8 sps:$4 sm:$0xff]  }
 0x141   : > { %v2044_v28 = vshll.u32 %v3508_v63, 16  ;;  %v2055_v5 = vor.u32 %v2054_v36, %v2051_v16  ;;  %v2105_v47 = vshrl.u32 %v2028_v24, 16  ;;  %v2108_v50 = vshll.u32 %v2028_v24, 16  ;;  %v2970_v48 = vld [vmem:[#allocation2 + $0x28] ss:$8 sps:$4 sm:$0xff]  }
 0x142   : > { %v2082_v54 = vrot.slane %v2080_v6, 5  ;;  %v2133_v56 = vshrl.u32 %v2032_v40, 16  ;;  %v2042_v53 = vrot.slane %v2041_v3, 4  ;;  %v2058_v15 = vshll.u32 %v3510_v42, 16  ;;  %v3534_v25 = vld [vmem:[#allocation2 + $0x3c] sm:$0x1] }
 0x143   : > { %2771 = vmatmul.mubr.msk.bf16.vlgmr.msra.gmra.mrb[8].mxu0 %vm1031_vm11, %v2581_v37  ;;  %v2093_v52 = vrot.slane %v2091_v21, 4  ;;  %v2096_v29 = vrot.slane %v2094_v39, 5  ;;  %v2065_v57 = vrot.slane %v2063_v58, 4  ;;  %v2068_v41 = vrot.slane %v2066_v44, 5  ;;  %v2966_v19 = vld [vmem:[#allocation2 + $0x40] ss:$8 sps:$4 sm:$0xff]  }
 0x144   : > { %2774 = vmatprep.mubr.msk.bf16.mxu0 %vm1031_vm11, %v2582_v11  ;;  %2779 = vmatpush3.bf16.msra.mxu0 %v3433_v8  ;;  %v2077_v8 = vshrl.u32 %v2024_v26, 16  ;;  %v2136_v59 = vshll.u32 %v2032_v40, 16  ;;  %v2046_v60 = vrot.slane %v2044_v28, 5  ;;  %v2056_v27 = vrot.slane %v2055_v5, 4  ;;  %v3545_v3 = vld [vmem:[#allocation2 + $0x44] sm:$0x1] }
 0x145   : > { %2805 = vmatmul.mubr.msk.bf16.gmra.mrb[4].mxu1 %vm1031_vm11, %v2624_v2  ;;  %v2107_v32 = vrot.slane %v2105_v47, 4  ;;  %v2110_v22 = vrot.slane %v2108_v50, 5  ;;  %v2119_v0 = vshrl.u32 %v2030_v34, 16  ;;  %v2060_v7 = vrot.slane %v2058_v15, 5  ;;  %v3547_v21 = vld [vmem:[#allocation2 + $0x4c] sm:$0x1] }
 0x146   : > { %2810 = vmatprep.mubr.msk.bf16.mxu1 %vm1031_vm11, %v2960_v18  ;;  %v2079_v33 = vrot.slane %v2077_v8, 4  ;;  %v2047_v1 = vsel %vm3292_vm12, %v2042_v53, %v2046_v60  ;;  %v2097_v11 = vor.u32 %v2096_v29, %v2093_v52  ;;  %v2135_v13 = vrot.slane %v2133_v56, 4  ;;  %v2971_v5 = vld [vmem:[#allocation2 + $0x38] ss:$8 sps:$4 sm:$0xff]  }
 0x147   : > { %v2069_v2 = vor.u32 %v2068_v41, %v2065_v57  ;;  %v2086_v17 = vshll.u32 %v3525_v10, 16  ;;  %v2138_v18 = vrot.slane %v2136_v59, 5  ;;  %v2061_v12 = vsel %vm3292_vm12, %v2056_v27, %v2060_v7  ;;  %v2253_v29 = vld [vmem:[#allocation2 + $0x18] sm:$0xe] }
 0x148   : > { %v2083_v37 = vor.u32 %v2082_v54, %v2079_v33  ;;  %v2072_v20 = vshll.u32 %v3527_v62, 16  ;;  %v2100_v23 = vshll.u32 %v3529_v4, 16  ;;  %v2111_v26 = vor.u32 %v2110_v22, %v2107_v32 }
 0x149   : > { %v2643_v51 = vcombine.low %v2047_v1, %v2061_v12  ;;  %v2121_v16 = vrot.slane %v2119_v0, 4  ;;  %v2098_v31 = vrot.slane %v2097_v11, 4  ;;  %v2114_v61 = vshll.u32 %v3534_v25, 16  ;;  %v2256_v0 = vld [vmem:[#allocation2 + $0x30] sm:$0xe] }
 0x14a   : > { %v2084_v30 = vrot.slane %v2083_v37, 4  ;;  %v2070_v8 = vrot.slane %v2069_v2, 4  ;;  %v2088_v6 = vrot.slane %v2086_v17, 5  ;;  %v2102_v24 = vrot.slane %v2100_v23, 5  ;;  %v2255_v37 = vld [vmem:[#allocation2 + $0x28] sm:$0xe] }
 0x14b   : > { %2775 = vmatmul.mubr.msk.bf16.gmra.mrb[12].mxu0 %vm1031_vm11, %v2583_v38  ;;  %v2112_v38 = vrot.slane %v2111_v26, 4  ;;  %v2139_v39 = vor.u32 %v2138_v18, %v2135_v13  ;;  %v2074_v40 = vrot.slane %v2072_v20, 5  ;;  %v2142_v44 = vshll.u32 %v3547_v21, 16  ;;  %v2258_v12 = vld [vmem:[#allocation2 + $0x40] sm:$0xe] }
 0x14c   : > { %2780 = vmatprep.mubr.msk.bf16.mxu0 %vm1031_vm11, %v2965_v35  ;;  %v2089_v35 = vsel %vm3292_vm12, %v2084_v30, %v2088_v6  ;;  %v2116_v28 = vrot.slane %v2114_v61, 5  ;;  %v2128_v50 = vshll.u32 %v3545_v3, 16  ;;  %v2278_v57 = vrot.slane %v3508_v63, 5 }
 0x14d   : > { %2811 = vmatmul.mubr.msk.bf16.vlgmr.msra.gmra.mrb[0].mxu1 %vm1031_vm11, %v2963_v45  ;;  %v2103_v45 = vsel %vm3292_vm12, %v2098_v31, %v2102_v24  ;;  %v2075_v47 = vsel %vm3292_vm12, %v2070_v8, %v2074_v40  ;;  %v2140_v15 = vrot.slane %v2139_v39, 4  ;;  %v2144_v52 = vrot.slane %v2142_v44, 5  ;;  %v2671_v40 = vld [vmem:[%s3666_s5] ss:$0 sm:$0xff] }
 0x14e   : > { %2819 = vmatpush3.bf16.msra.mxu1 %v3472_v55  ;;  %2814 = vmatprep.mubr.msk.bf16.mxu1 %vm1031_vm11, %v2964_v43  ;;  %v2122_v55 = vshll.u32 %v2030_v34, 16  ;;  %v2252_v43 = vld [vmem:[#allocation2 + $0x10] sm:$0xe]  ;;  %v2644_v33 = vcombine.low %v2075_v47, %v2089_v35  ;;  %v2117_v54 = vsel %vm3292_vm12, %v2112_v38, %v2116_v28  ;;  %v2130_v41 = vrot.slane %v2128_v50, 5 }
 0x14f   : > { %2828 = vmatprep.subr.bf16.mxu1 %v3517_v46  ;;  %v2645_v56 = vcombine.low %v2103_v45, %v2117_v54  ;;  %v2652_v34 = vrot.slane %v2252_v43, 9  ;;  %v2653_v59 = vrot.slane %v2253_v29, 9  ;;  %v2282_v60 = vrot.slane %v3510_v42, 5 }
 0x150   : > { %v2124_v36 = vrot.slane %v2122_v55, 5  ;;  %v2145_v32 = vsel %vm3292_vm12, %v2140_v15, %v2144_v52  ;;  %v2254_v55 = vld [vmem:[#allocation2 + $0x20] sm:$0xe]  ;;  %v2655_v7 = vrot.slane %v2255_v37, 9  ;;  %v2290_v42 = vrot.slane %v3525_v10, 5 }
 0x151   : > { %v2279_v22 = vsel %vm3421_vm15, %v2652_v34, %v2278_v57  ;;  %v2656_v11 = vrot.slane %v2256_v0, 9  ;;  %v2294_v14 = vrot.slane %v3529_v4, 5  ;;  %v2654_v13 = vrot.slane %v2254_v55, 9 }
 0x152   : > { %v2125_v58 = vor.u32 %v2124_v36, %v2121_v16  ;;  %v2298_v17 = vrot.slane %v3534_v25, 5  ;;  %v2291_v18 = vsel %vm3421_vm15, %v2655_v7, %v2290_v42  ;;  %v2302_v25 = vrot.slane %v3545_v3, 5 }
 0x153   : > { %2781 = vmatmul.mubr.msk.bf16.vlgmr.msra.gmra.mrb[8].mxu0 %vm1031_vm11, %v2968_v9  ;;  %v2257_v9 = vld [vmem:[#allocation2 + $0x38] sm:$0xe]  ;;  %v2295_v10 = vsel %vm3421_vm15, %v2656_v11, %v2294_v14  ;;  %v2306_v30 = vrot.slane %v3547_v21, 5 }
 0x154   : > { %2784 = vmatprep.mubr.msk.bf16.mxu0 %vm1031_vm11, %v2970_v48  ;;  %v2126_v53 = vrot.slane %v2125_v58, 4  ;;  %v2286_v48 = vrot.slane %v3527_v62, 5  ;;  %v2657_v2 = vrot.slane %v2257_v9, 9 }
 0x155   : > { %2815 = vmatmul.mubr.msk.bf16.gmra.mrb[4].mxu1 %vm1031_vm11, %v2966_v19  ;;  %v2259_v19 = vld [vmem:[#allocation2 + $0x48] sm:$0xe] }
 0x156   : > { %2820 = vmatprep.mubr.msk.bf16.mxu1 %vm1031_vm11, %v2643_v51  ;;  %v2131_v27 = vsel %vm3292_vm12, %v2126_v53, %v2130_v41  ;;  %v2287_v20 = vsel %vm3421_vm15, %v2654_v13, %v2286_v48  ;;  %v2299_v23 = vsel %vm3421_vm15, %v2657_v2, %v2298_v17  ;;  %v2659_v26 = vrot.slane %v2259_v19, 9 }
 0x157   : > { %v2646_v63 = vcombine.low %v2131_v27, %v2145_v32  ;;  %v2663_v4 = vcombine.low %v2287_v20, %v2291_v18  ;;  %v2664_v62 = vcombine.low %v2295_v10, %v2299_v23  ;;  %v2658_v51 = vrot.slane %v2258_v12, 9 }
 0x158   : > { %v2307_v36 = vsel %vm3421_vm15, %v2659_v26, %v2306_v30 }
 0x159   : > { %v2303_v16 = vsel %vm3421_vm15, %v2658_v51, %v2302_v25 }
 0x15a   : > { %v2665_v31 = vcombine.low %v2303_v16, %v2307_v36 }
 0x15b   : > { %2785 = vmatmul.mubr.msk.bf16.gmra.mrb[12].mxu0 %vm1031_vm11, %v2971_v5 }
 0x15d   : > { %2821 = vmatmul.mubr.msk.bf16.vlgmr.msra.gmra.mrb[0].mxu1 %vm1031_vm11, %v2644_v33 }
 0x15e   : > { %2829 = vmatpush3.bf16.msra.mxu1 %v3517_v46  ;;  %2824 = vmatprep.mubr.msk.bf16.mxu1 %vm1031_vm11, %v2645_v56  ;;  %v2283_v46 = vsel %vm3421_vm15, %v2653_v59, %v2282_v60 }
 0x15f   : > { %v2662_v1 = vcombine.low %v2279_v22, %v2283_v46 }
 0x165   : > { %2825 = vmatmul.mubr.msk.bf16.gmra.mrb[4].mxu1 %vm1031_vm11, %v2646_v63 }
 0x166   : > { %2830 = vmatprep.mubr.msk.bf16.mxu1 %vm1031_vm11, %v2662_v1 }
 0x16d   : > { %2831 = vmatmul.mubr.msk.bf16.vlgmr.msra.gmra.mrb[0].mxu1 %vm1031_vm11, %v2663_v4 }
 0x16e   : > { %2834 = vmatprep.mubr.msk.bf16.mxu1 %vm1031_vm11, %v2664_v62 }
 0x175   : > { %2835 = vmatmul.mubr.msk.bf16.gmra.mrb[4].mxu1 %vm1031_vm11, %v2665_v31 }
 0x226   : > { %v2782_v61 = vpop.f32.mrb[8].mxu0 }
 0x227   : > { %v1460_v8 = vpop.f32.mrb[9].mxu0 }
 0x228   : > { %v2783_v6 = vpop.f32.mrb[10].mxu0 }
 0x229   : > { %v1463_v24 = vpop.f32.mrb[11].mxu0 }
 0x22e   : > { %v2786_v38 = vpop.f32.mrb[12].mxu0 }
 0x22f   : > { %v1476_v3 = vpop.f32.mrb[13].mxu0 }
 0x230   : > { %v2787_v21 = vpop.f32.mrb[14].mxu0 }
 0x231   : > { %v1479_v39 = vpop.f32.mrb[15].mxu0 }
 0x240   : > { %v2832_v49 = vpop.f32.mrb[0].mxu1 }
 0x241   : > { %v2838_v35 = vadd.f32 %v2832_v49, %v2782_v61  ;;  %v2375_v58 = vpop.f32.mrb[1].mxu1 }
 0x242   : > { %v2839_v44 = vadd.f32 %v2375_v58, %v1460_v8  ;;  %v2833_v45 = vpop.f32.mrb[2].mxu1 }
 0x243   : > { %v2422_v28 = vadd.f32 %v2838_v35, %v2671_v40  ;;  %v2840_v5 = vadd.f32 %v2833_v45, %v2783_v6  ;;  %v2378_v47 = vpop.f32.mrb[3].mxu1 }
 0x244   : > { %v2420_v50 = vadd.f32 %v2839_v44, %v2671_v40  ;;  %v2841_v43 = vadd.f32 %v2378_v47, %v1463_v24 }
 0x245   : > { %2430 = vst.msk [vmem:[%s259_s14 + $0x10] sm:$0xff] %vm1031_vm11, %v2422_v28  ;;  %v2423_v33 = vadd.f32 %v2840_v5, %v2671_v40 }
 0x246   : > { %2428 = vst.msk [vmem:[%s259_s14] sm:$0xff] %vm1031_vm11, %v2420_v50  ;;  %v2421_v54 = vadd.f32 %v2841_v43, %v2671_v40 }
 0x247   : > { %2431 = vst.msk [vmem:[%s259_s14 + $0x18] sm:$0xff] %vm1031_vm11, %v2423_v33 }
 0x248   : > { %2429 = vst.msk [vmem:[%s259_s14 + $0x8] sm:$0xff] %vm1031_vm11, %v2421_v54  ;;  %v2836_v56 = vpop.f32.mrb[4].mxu1 }
 0x249   : > { %v2842_v53 = vadd.f32 %v2836_v56, %v2786_v38  ;;  %v2391_v15 = vpop.f32.mrb[5].mxu1 }
 0x24a   : > { %v2843_v52 = vadd.f32 %v2391_v15, %v1476_v3  ;;  %v2837_v29 = vpop.f32.mrb[6].mxu1 }
 0x24b   : > { %v2426_v34 = vadd.f32 %v2842_v53, %v2671_v40  ;;  %v2844_v57 = vadd.f32 %v2837_v29, %v2787_v21  ;;  %v2394_v41 = vpop.f32.mrb[7].mxu1 }
 0x24c   : > { %v2424_v59 = vadd.f32 %v2843_v52, %v2671_v40  ;;  %v2845_v60 = vadd.f32 %v2394_v41, %v1479_v39 }
 0x24d   : > { %2434 = vst.msk [vmem:[%s259_s14 + $0x30] sm:$0xff] %vm1031_vm11, %v2426_v34  ;;  %v2427_v27 = vadd.f32 %v2844_v57, %v2671_v40 }
 0x24e   : > { %2432 = vst.msk [vmem:[%s259_s14 + $0x20] sm:$0xff] %vm1031_vm11, %v2424_v59  ;;  %v2425_v32 = vadd.f32 %v2845_v60, %v2671_v40 }
 0x24f   : > { %2435 = vst.msk [vmem:[%s259_s14 + $0x38] sm:$0xff] %vm1031_vm11, %v2427_v27 }
 0x250   : > { %2433 = vst.msk [vmem:[%s259_s14 + $0x28] sm:$0xff] %vm1031_vm11, %v2425_v32 }
 0x251   : > { %2985 = shalt.err (!%p2982_p3)
}
 0x252   : > { %s2986_s9 = scalar_lea.hbm %s3611_s19, 1024  ;;  %s2990_s13 = scalar_lea.hbm %s3667_s6, 2048 }
 0x253   : > { %p2987_p4 = scmp.ne.s32.totalorder %s3611_s19, %s2986_s9  ;;  %p2991_p9 = scmp.lt.u32.totalorder %s3611_s19, %s3667_s6 }
 0x254   : > { %p2992_p10 = scmp.lt.u32.totalorder %s2990_s13, %s2986_s9  ;;  %p2994_p12 = scmp.lt.u32.totalorder %s2986_s9, %s3611_s19 }
 0x255   : > { %p2988_p7 = pnand %p2987_p4, %p3115_p5 }
 0x256   : > { %p2993_p11 = por %p2992_p10, %p2991_p9 }
 0x257   : > { %p2989_p8 = pneg %p2988_p7 }
 0x258   : > { %p2995_p13 = por %p2994_p12, %p2993_p11 }
 0x25a   : > { %p2996_p0 = pnand %p2995_p13, %p2989_p8 }
 0x25c   : > { %2999 = shalt.err (!%p2996_p0)
}
 0x25d   : > { %s3040_s15 = smov 128   ;;  %s3041_s17 = smov 8  }
 0x25e   : > { %2903 = dma.vmem_to_hbm [thread:$0]  (%p3115_p5), %s3613_s16, 1024, %s3611_s19, %s3620_s25, %s3040_s15, %s3040_s15, %s3041_s17  }
 0x25f PF: > { %p2909_p1 = scmp.ge.s32.totalorder %s3034_s24, 2  ;;  %s2465_s18 = sand.u32 1, %s3022_s21  }
 0x260   : > { %s2466_s20 = scalar_lea.sflag [#allocation4], %s2465_s18 }
 0x261   : > { %p2906_p2 = pnand %p2909_p1, %p3119_p6 }
 0x263   : > { %3017 = dma.done.wait (!%p2906_p2), %s2466_s20, 1024  }
 0x264   : > { %3019 = vsyncadd (!%p2906_p2), %s2466_s20, 4294966272  ;;  %p16_p3 = scmp.ge.s32.totalorder %s3102_s27, 4   ;;  %s3680_s21 = smov %s3026_s22 }
 0x265   : > { %s3681_s22 = smov %s3030_s23  ;;  %s3682_s23 = smov %s3113_s30 }
 0x266   : > { %s3683_s24 = smov %s3102_s27  ;;  %18 = sbr.rel (!%p16_p3) target bundleno = 3 (0x3), region = 93 }
 0x26d   :  { %2471 = vsyncpa [#allocation4], 1 }
 0x26e   :  { %2473 = vsyncpa [#allocation4 + $0x1], 1 }

</bundles_post_ra>
